<compile_context>
chip_gen: v7x
topology: tpu7x:2x2x1
jax: 0.10.0
libtpu: 0.0.40
codegen_flags: <defaults>
</compile_context>

<pallas_src>
import math

import jax
import jax.numpy as jnp
from jax.experimental import pallas as pl
from jax.experimental.pallas import tpu as pltpu

# ----------------------------- configuration ---------------------------------
NUM_RAYS = 8
NUM_LEVELS = 2
N_SAMPLES = 16          # small, stands in for the default 64
HIDDEN = 64             # small, stands in for the default 256
MIN_DEG, MAX_DEG = 0, 16
VMIN_DEG, VMAX_DEG = 0, 4
DENSITY_BIAS = -1.0
RGB_PADDING = 0.001
RESAMPLE_PADDING = 0.01
WHITE_BKGD = True

DENSITY_INPUT = 3 + (MAX_DEG - MIN_DEG) * 3 * 2      # 99
RGB_INPUT = 3 + (VMAX_DEG - VMIN_DEG) * 3 * 2        # 27

LANE = 128              # padded feature width (lanes)
BIAS_LANE = LANE - 1    # constant-1 lane carrying the folded biases
NUM_W = 12              # packed (128,128) weight matrices
OUT_DENS_LANE = 3       # density lane in the output slab (rgb in lanes 0..2)
TARGET_TILE_ROWS = 1024  # MLP rows per grid step (perf review: 512-1024)


def _round_up(x, m):
    return ((x + m - 1) // m) * m


# ------------------------------ Pallas kernel --------------------------------
def mipnerf_mlp_kernel(x_ref, vpart_ref, w_ref, out_ref):
    """Full MipNeRF MLP on one (rays_per_tile, samples_pad) tile.

    x_ref    : [R, S, 128] bf16  padded IPE(samples); lane 127 == 1 (bias lane)
    vpart_ref: [R, 128]    f32   per-RAY viewdir partial product (32 real lanes)
    w_ref    : [12,128,128] bf16 packed weights, biases folded into row 127
                                 (VMEM resident across the grid)
    out_ref  : [R, S, 128] bf16  lanes 0..2 = rgb, lane 3 = density
    """
    f32, bf16 = jnp.float32, jnp.bfloat16
    R, S, L = x_ref.shape
    x = x_ref[...].reshape(R * S, L)          # free merge: S is a multiple of 16

    def dense_relu(h, wi):
        acc = jnp.dot(h, w_ref[wi], preferred_element_type=f32)
        return jnp.maximum(acc, 0.0).astype(bf16)

    # density_net0: 5 x (Linear + ReLU); bias rides on the constant-1 lane
    h = x
    for i in range(5):
        h = dense_relu(h, i)

    # density_net1 layer 0: skip connection as two accumulating matmuls (no concat)
    acc = (jnp.dot(h, w_ref[5], preferred_element_type=f32)
           + jnp.dot(x, w_ref[6], preferred_element_type=f32))
    h = jnp.maximum(acc, 0.0).astype(bf16)

    # density_net1 layers 1..2
    h = dense_relu(h, 7)
    h = dense_relu(h, 8)

    # fused final_density (lane 0) + rgb_net0 (lanes 1..64), no activation
    g = jnp.dot(h, w_ref[9], preferred_element_type=f32)

    # density epilogue: softplus(raw + density_bias)   (numerically stable form)
    z = g[:, 0:1] + DENSITY_BIAS
    density = jnp.maximum(z, 0.0) + jnp.log(1.0 + jnp.exp(-jnp.abs(z)))

    # rgb_net1: relu(g @ W_h + viewdir_partial); viewdir term is per-ray and gets
    # expanded over samples here via a sublane broadcast (never materialized in HBM)
    vp = vpart_ref[...].astype(f32)                              # (R, 128)
    acc = jnp.dot(g.astype(bf16), w_ref[10], preferred_element_type=f32)
    acc = acc.reshape(R, S, L) + vp[:, None, :]
    h2 = jnp.maximum(acc, 0.0).reshape(R * S, L).astype(bf16)

    # final_rgb + sigmoid + rgb-padding affine
    raw_rgb = jnp.dot(h2, w_ref[11], preferred_element_type=f32)
    rgb = jax.nn.sigmoid(raw_rgb) * (1.0 + 2.0 * RGB_PADDING) - RGB_PADDING

    lane = jax.lax.broadcasted_iota(jnp.int32, rgb.shape, 1)
    res = jnp.where(lane == OUT_DENS_LANE, density, rgb)
    out_ref[...] = res.reshape(R, S, L).astype(out_ref.dtype)


def _pick_rays_per_tile(n_rays, s_pad):
    """Rays per grid step: ~TARGET_TILE_ROWS MLP rows per step, rays_per_tile a
    multiple of 8 (keeps the per-ray viewdir block (8,128)-tileable), and >= 2
    grid steps whenever the ray count allows (feeds both v7x TensorCores)."""
    rpt = max(8, (TARGET_TILE_ROWS // s_pad) // 8 * 8)
    rpt = min(rpt, _round_up(n_rays, 8))          # never pad rays beyond one tile
    if n_rays >= 16:
        rpt = min(rpt, _round_up((n_rays + 1) // 2, 8))
    return rpt


def run_mlp_kernel(x, vpart, w_slab, rays_per_tile):
    rays_pad, s_pad, _ = x.shape
    grid = (rays_pad // rays_per_tile,)
    rows = rays_pad * s_pad
    flops = 2 * rows * LANE * LANE * NUM_W
    bytes_accessed = (x.size * 2 + vpart.size * 4 + w_slab.size * 2
                      + rows * LANE * 2)
    return pl.pallas_call(
        mipnerf_mlp_kernel,
        out_shape=jax.ShapeDtypeStruct((rays_pad, s_pad, LANE), jnp.bfloat16),
        grid=grid,
        in_specs=[
            pl.BlockSpec((rays_per_tile, s_pad, LANE), lambda r: (r, 0, 0)),  # IPE
            pl.BlockSpec((rays_per_tile, LANE), lambda r: (r, 0)),            # viewdir
            # weight slab: constant index_map -> stays VMEM resident across grid
            pl.BlockSpec((NUM_W, LANE, LANE), lambda r: (0, 0, 0)),
        ],
        out_specs=pl.BlockSpec((rays_per_tile, s_pad, LANE), lambda r: (r, 0, 0)),
        compiler_params=pltpu.CompilerParams(
            dimension_semantics=("parallel",),
            vmem_limit_bytes=32 * 1024 * 1024),   # ample for <=2048-row tiles
        cost_estimate=pl.CostEstimate(
            flops=flops, transcendentals=rows * (LANE + 2),
            bytes_accessed=bytes_accessed),
    )(x, vpart, w_slab)


# ----------------------------- parameter init --------------------------------
def init_params(key):
    dims = ([(DENSITY_INPUT, HIDDEN)] + [(HIDDEN, HIDDEN)] * 4        # density_net0
            + [(DENSITY_INPUT + HIDDEN, HIDDEN)] + [(HIDDEN, HIDDEN)] * 2  # density_net1
            + [(HIDDEN, 1)]                                           # final_density
            + [(HIDDEN, HIDDEN)]                                      # rgb_net0
            + [(HIDDEN + RGB_INPUT, HIDDEN // 2)]                     # rgb_net1
            + [(HIDDEN // 2, 3)])                                     # final_rgb
    keys = jax.random.split(key, 2 * len(dims))
    params = []
    for i, (fi, fo) in enumerate(dims):
        limit = math.sqrt(6.0 / (fi + fo))                # xavier_uniform weights
        w = jax.random.uniform(keys[2 * i], (fi, fo), jnp.float32, -limit, limit)
        bound = 1.0 / math.sqrt(fi)                       # torch Linear default bias
        b = jax.random.uniform(keys[2 * i + 1], (fo,), jnp.float32, -bound, bound)
        params.append((w, b))
    return params


def _pack_w(w, b=None, passthrough=True):
    m = jnp.zeros((LANE, LANE), jnp.float32)
    m = m.at[:w.shape[0], :w.shape[1]].set(w)
    if b is not None:
        m = m.at[BIAS_LANE, :b.shape[0]].set(b)           # bias folded into row 127
    if passthrough:
        m = m.at[BIAS_LANE, BIAS_LANE].set(1.0)           # keep constant-1 lane alive
    return m


def pack_params(params):
    """Pack torch-style params into one bf16 [12,128,128] weight slab.

    Biases live in row 127 (the input's constant-1 lane); every layer feeding
    another layer passes the constant through via W[127,127] = 1.
    """
    ws = []
    for i in range(5):                                    # density_net0
        w, b = params[i]
        ws.append(_pack_w(w, b))
    # density_net1 layer 0: torch concat order is (hidden, encoded_x) ->
    # W_h = w[:HIDDEN] (carries the bias), W_x = w[HIDDEN:]
    w, b = params[5]
    ws.append(_pack_w(w[:HIDDEN], b))                     # idx 5: W_h
    ws.append(_pack_w(w[HIDDEN:], None, passthrough=False))  # idx 6: W_x
    for i in (6, 7):                                      # density_net1 layers 1, 2
        w, b = params[i]
        ws.append(_pack_w(w, b))
    # fused final_density (col 0) + rgb_net0 (cols 1..HIDDEN)
    (wd, bd), (wr, br) = params[8], params[9]
    wf = jnp.zeros((LANE, LANE), jnp.float32)
    wf = wf.at[:HIDDEN, 0:1].set(wd)
    wf = wf.at[:HIDDEN, 1:1 + HIDDEN].set(wr)
    wf = wf.at[BIAS_LANE, 0].set(bd[0])
    wf = wf.at[BIAS_LANE, 1:1 + HIDDEN].set(br)
    wf = wf.at[BIAS_LANE, BIAS_LANE].set(1.0)
    ws.append(wf)                                         # idx 9
    # rgb_net1: hidden rows follow the fused layout (shifted by 1); the viewdir
    # rows are applied per-ray OUTSIDE the kernel (w_view)
    w1, b1 = params[10]
    wv = jnp.zeros((LANE, LANE), jnp.float32)
    wv = wv.at[1:1 + HIDDEN, :HIDDEN // 2].set(w1[:HIDDEN])
    wv = wv.at[BIAS_LANE, :HIDDEN // 2].set(b1)
    wv = wv.at[BIAS_LANE, BIAS_LANE].set(1.0)
    ws.append(wv)                                         # idx 10
    w_view = w1[HIDDEN:]                                  # (RGB_INPUT, HIDDEN//2)
    w3, b3 = params[11]                                   # final_rgb
    ws.append(_pack_w(w3, b3, passthrough=False))         # idx 11
    w_slab = jnp.stack(ws).astype(jnp.bfloat16)           # [12,128,128]
    return w_slab, w_view


# ------------------------- positional encodings (glue) ------------------------
def integrated_pos_enc(mean, var):
    scales = jnp.asarray([2.0 ** i for i in range(MIN_DEG, MAX_DEG)], jnp.float32)
    shape = mean.shape[:-1] + (-1,)
    x_enc = (mean[..., None, :] * scales[:, None]).reshape(shape)
    x_enc = jnp.concatenate([x_enc, x_enc + 0.5 * jnp.pi], -1)
    y_enc = (var[..., None, :] * (scales[:, None] ** 2)).reshape(shape)
    y_enc = jnp.concatenate([y_enc, y_enc], -1)
    x_ret = jnp.exp(-0.5 * y_enc) * jnp.sin(x_enc)
    return jnp.concatenate([mean, x_ret], -1)


def pos_enc(x):
    scales = jnp.asarray([2.0 ** i for i in range(VMIN_DEG, VMAX_DEG)], jnp.float32)
    shape = x.shape[:-1] + (-1,)
    x_enc = (x[..., None, :] * scales[:, None]).reshape(shape)
    x_enc = jnp.concatenate([x_enc, x_enc + 0.5 * jnp.pi], -1)
    return jnp.concatenate([x, jnp.sin(x_enc)], -1)


# --------------------------- ray sampling (glue) ------------------------------
def lift_gaussian(d, t_mean, t_var, r_var):
    mean = d[..., None, :] * t_mean[..., None]
    d_mag_sq = jnp.sum(d ** 2, axis=-1, keepdims=True) + 1e-10
    d_outer_diag = d ** 2
    null_outer_diag = 1.0 - d_outer_diag / d_mag_sq
    t_cov_diag = t_var[..., None] * d_outer_diag[..., None, :]
    xy_cov_diag = r_var[..., None] * null_outer_diag[..., None, :]
    return mean, t_cov_diag + xy_cov_diag


def conical_frustum_to_gaussian(d, t0, t1, base_radius):
    mu = (t0 + t1) / 2.0
    hw = (t1 - t0) / 2.0
    t_mean = mu + (2.0 * mu * hw ** 2) / (3.0 * mu ** 2 + hw ** 2)
    t_var = (hw ** 2) / 3.0 - (4.0 / 15.0) * ((hw ** 4 * (12.0 * mu ** 2 - hw ** 2)) /
                                              (3.0 * mu ** 2 + hw ** 2) ** 2)
    r_var = base_radius ** 2 * ((mu ** 2) / 4.0 + (5.0 / 12.0) * hw ** 2 -
                                (4.0 / 15.0) * (hw ** 4) / (3.0 * mu ** 2 + hw ** 2))
    return lift_gaussian(d, t_mean, t_var, r_var)


def cast_rays(t_vals, origins, directions, radii):
    t0, t1 = t_vals[..., :-1], t_vals[..., 1:]
    means, covs = conical_frustum_to_gaussian(directions, t0, t1, radii)
    means = means + origins[..., None, :]
    return means, covs


def sample_along_rays(origins, directions, radii, num_samples, near, far):
    t_vals = jnp.linspace(0.0, 1.0, num_samples + 1)
    t_vals = near * (1.0 - t_vals) + far * t_vals
    t_vals = jnp.broadcast_to(t_vals, (origins.shape[0], num_samples + 1))
    mean, var = cast_rays(t_vals, origins, directions, radii)
    return t_vals, (mean, var)


def sorted_piecewise_constant_pdf(bins, weights, num_samples):
    eps = 1e-5
    weight_sum = jnp.sum(weights, axis=-1, keepdims=True)
    padding = jnp.maximum(0.0, eps - weight_sum)
    weights = weights + padding / weights.shape[-1]
    weight_sum = weight_sum + padding
    pdf = weights / weight_sum
    cdf = jnp.minimum(1.0, jnp.cumsum(pdf[..., :-1], axis=-1))
    cdf = jnp.concatenate([jnp.zeros_like(cdf[..., :1]), cdf, jnp.ones_like(cdf[..., :1])], -1)

    u = jnp.linspace(0.0, 1.0 - jnp.finfo(jnp.float32).eps, num_samples)
    u = jnp.broadcast_to(u, cdf.shape[:-1] + (num_samples,))

    mask = u[..., None, :] >= cdf[..., :, None]

    def find_interval(x):
        x0 = jnp.max(jnp.where(mask, x[..., None], x[..., :1, None]), axis=-2)
        x1 = jnp.min(jnp.where(~mask, x[..., None], x[..., -1:, None]), axis=-2)
        return x0, x1

    bins_g0, bins_g1 = find_interval(bins)
    cdf_g0, cdf_g1 = find_interval(cdf)
    t = jnp.clip(jnp.nan_to_num((u - cdf_g0) / (cdf_g1 - cdf_g0), nan=0.0), 0.0, 1.0)
    return bins_g0 + t * (bins_g1 - bins_g0)


def resample_along_rays(origins, directions, radii, t_vals, weights, resample_padding):
    weights_pad = jnp.concatenate([weights[..., :1], weights, weights[..., -1:]], -1)
    weights_max = jnp.maximum(weights_pad[..., :-1], weights_pad[..., 1:])
    weights_blur = 0.5 * (weights_max[..., :-1] + weights_max[..., 1:])
    weights = weights_blur + resample_padding
    new_t = sorted_piecewise_constant_pdf(t_vals, weights, t_vals.shape[-1])
    combined = jnp.sort(jnp.concatenate([t_vals, new_t], axis=-1), axis=-1)
    mean, var = cast_rays(combined, origins, directions, radii)
    return combined, (mean, var)


def volumetric_rendering(rgb, density, t_vals, dirs, white_bkgd):
    t_mids = 0.5 * (t_vals[..., :-1] + t_vals[..., 1:])
    t_interval = t_vals[..., 1:] - t_vals[..., :-1]
    delta = t_interval * jnp.linalg.norm(dirs[..., None, :], axis=-1)
    density_delta = density[..., 0] * delta

    alpha = 1.0 - jnp.exp(-density_delta)
    trans = jnp.exp(-jnp.concatenate(
        [jnp.zeros_like(density_delta[..., :1]),
         jnp.cumsum(density_delta[..., :-1], axis=-1)], axis=-1))
    weights = alpha * trans

    comp_rgb = jnp.sum(weights[..., None] * rgb, axis=-2)
    acc = jnp.sum(weights, axis=-1)
    distance = jnp.sum(weights * t_mids, axis=-1) / acc
    distance = jnp.clip(jnp.nan_to_num(distance, nan=jnp.inf), t_vals[:, 0], t_vals[:, -1])
    if white_bkgd:
        comp_rgb = comp_rgb + (1.0 - acc[..., None])
    return comp_rgb, distance, acc, weights, alpha


# ------------------------------- full forward ---------------------------------
def mipnerf_forward(ray_batch, w_slab, w_view):
    comp_rgbs, distances, accs = [], [], []
    rays_o, rays_d = ray_batch[:, 0:3], ray_batch[:, 3:6]
    bounds = ray_batch[..., 6:8].reshape(-1, 1, 2)
    near, far = bounds[..., 0], bounds[..., 1]
    radii = ray_batch[..., 8].reshape(-1, 1)
    view_dirs = ray_batch[:, -3:]
    n_rays = ray_batch.shape[0]

    # View-direction branch: per-RAY partial product of rgb_net1's viewdir rows;
    # the per-sample expansion happens inside the kernel (sublane broadcast), so
    # no n_samples-replicated array is ever written to HBM.
    vpart_ray = pos_enc(view_dirs) @ w_view               # [rays, HIDDEN//2]

    t_vals, weights = None, None
    n_samples = N_SAMPLES
    for level in range(NUM_LEVELS):
        if level == 0:
            n_samples = N_SAMPLES
            t_vals, (mean, var) = sample_along_rays(rays_o, rays_d, radii,
                                                    N_SAMPLES, near, far)
        else:
            t_vals, (mean, var) = resample_along_rays(rays_o, rays_d, radii,
                                                      t_vals, weights, RESAMPLE_PADDING)
            n_samples = n_samples * 2 + 1

        s_pad = _round_up(n_samples, 16)                   # bf16 sublane tile (16,128)
        rpt = _pick_rays_per_tile(n_rays, s_pad)
        rays_pad = _round_up(n_rays, rpt)

        samples_enc = integrated_pos_enc(mean, var)        # [rays, n_samples, 99]
        x = jnp.pad(samples_enc, ((0, rays_pad - n_rays),
                                  (0, s_pad - n_samples),
                                  (0, LANE - DENSITY_INPUT)))
        x = x.at[..., BIAS_LANE].set(1.0).astype(jnp.bfloat16)   # constant bias lane

        vpart = jnp.pad(vpart_ray, ((0, rays_pad - n_rays),
                                    (0, LANE - HIDDEN // 2)))    # per-ray, f32

        # --- Pallas kernel: whole MLP (density + rgb branches) + activations ---
        out = run_mlp_kernel(x, vpart, w_slab, rpt)        # [rays_pad, s_pad, 128] bf16

        rgb = out[:n_rays, :n_samples, 0:3].astype(jnp.float32)
        density = out[:n_rays, :n_samples,
                      OUT_DENS_LANE:OUT_DENS_LANE + 1].astype(jnp.float32)

        comp_rgb, distance, acc, weights, _alpha = volumetric_rendering(
            rgb, density, t_vals, rays_d, WHITE_BKGD)
        comp_rgbs.append(comp_rgb)
        distances.append(distance)
        accs.append(acc)

    return jnp.stack(comp_rgbs), jnp.stack(distances), jnp.stack(accs)


# ----------------------------------- main --------------------------------------
if __name__ == "__main__":
    key = jax.random.PRNGKey(0)
    k_params, k_o, k_d, k_r = jax.random.split(key, 4)

    params = init_params(k_params)
    w_slab, w_view = pack_params(params)

    rays_o = jax.random.normal(k_o, (NUM_RAYS, 3), jnp.float32)
    d = jax.random.normal(k_d, (NUM_RAYS, 3), jnp.float32)
    rays_d = d / jnp.linalg.norm(d, axis=-1, keepdims=True)
    near = jnp.full((NUM_RAYS, 1), 2.0, jnp.float32)
    far = jnp.full((NUM_RAYS, 1), 6.0, jnp.float32)
    radii = 0.01 + 0.02 * jax.random.uniform(k_r, (NUM_RAYS, 1), jnp.float32)
    view_dirs = rays_d
    ray_batch = jnp.concatenate([rays_o, rays_d, near, far, radii, view_dirs], -1)  # [8, 12]

    fwd = jax.jit(mipnerf_forward)
    comp_rgbs, distances, accs = fwd(ray_batch, w_slab, w_view)
    jax.block_until_ready((comp_rgbs, distances, accs))

    assert comp_rgbs.shape == (NUM_LEVELS, NUM_RAYS, 3)
    assert distances.shape == (NUM_LEVELS, NUM_RAYS)
    assert accs.shape == (NUM_LEVELS, NUM_RAYS)
    assert bool(jnp.all(jnp.isfinite(comp_rgbs)))
    print("KERNEL_OK")
</pallas_src>

<mosaic_0001>
module attributes {stable_mosaic.version = 11 : i64} {
  func.func @mipnerf_mlp_kernel(%arg0: i32, %arg1: memref<8x16x128xbf16, #tpu.memory_space<vmem>>, %arg2: memref<8x128xf32, #tpu.memory_space<vmem>>, %arg3: memref<12x128x128xbf16, #tpu.memory_space<vmem>>, %arg4: memref<8x16x128xbf16, #tpu.memory_space<vmem>>) attributes {dimension_semantics = [#tpu.dimension_semantics<parallel>], iteration_bounds = array<i64: 1>, scalar_prefetch = 0 : i64, scratch_operands = 0 : i64, tpu.core_type = #tpu.core_type<tc>, window_params = [{transform_indices = @transform_0, window_bounds = array<i64: 8, 16, 128>}, {transform_indices = @transform_1, window_bounds = array<i64: 8, 128>}, {pipeline_mode = #tpu.pipeline_mode<synchronous>, transform_indices = @transform_2, window_bounds = array<i64: 12, 128, 128>}, {transform_indices = @transform_3, window_bounds = array<i64: 8, 16, 128>}]} {
    %c0 = arith.constant 0 : index
    %c0_0 = arith.constant 0 : index
    %c0_1 = arith.constant 0 : index
    %0 = vector.load %arg1[%c0, %c0_0, %c0_1] : memref<8x16x128xbf16, #tpu.memory_space<vmem>>, vector<8x16x128xbf16>
    %1 = vector.shape_cast %0 : vector<8x16x128xbf16> to vector<128x128xbf16>
    %c0_2 = arith.constant 0 : index
    %c0_3 = arith.constant 0 : index
    %c0_4 = arith.constant 0 : index
    %2 = vector.load %arg3[%c0_2, %c0_3, %c0_4] : memref<12x128x128xbf16, #tpu.memory_space<vmem>>, vector<1x128x128xbf16>
    %3 = vector.shape_cast %2 : vector<1x128x128xbf16> to vector<128x128xbf16>
    %cst = arith.constant dense<0.000000e+00> : vector<128x128xf32>
    %4 = tpu.matmul %1, %3, %cst {dimension_numbers = #tpu.dot_dimension_numbers<[1], [0], [0], [1], [0, 0, 1, 1], [], []>} : vector<128x128xbf16>, vector<128x128xbf16>, vector<128x128xf32> -> vector<128x128xf32>
    %cst_5 = arith.constant 0.000000e+00 : f32
    %5 = vector.broadcast %cst_5 : f32 to vector<128x128xf32>
    %6 = arith.maximumf %4, %5 : vector<128x128xf32>
    %7 = arith.truncf %6 : vector<128x128xf32> to vector<128x128xbf16>
    %c1 = arith.constant 1 : index
    %c0_6 = arith.constant 0 : index
    %c0_7 = arith.constant 0 : index
    %8 = vector.load %arg3[%c1, %c0_6, %c0_7] : memref<12x128x128xbf16, #tpu.memory_space<vmem>>, vector<1x128x128xbf16>
    %9 = vector.shape_cast %8 : vector<1x128x128xbf16> to vector<128x128xbf16>
    %cst_8 = arith.constant dense<0.000000e+00> : vector<128x128xf32>
    %10 = tpu.matmul %7, %9, %cst_8 {dimension_numbers = #tpu.dot_dimension_numbers<[1], [0], [0], [1], [0, 0, 1, 1], [], []>} : vector<128x128xbf16>, vector<128x128xbf16>, vector<128x128xf32> -> vector<128x128xf32>
    %cst_9 = arith.constant 0.000000e+00 : f32
    %11 = vector.broadcast %cst_9 : f32 to vector<128x128xf32>
    %12 = arith.maximumf %10, %11 : vector<128x128xf32>
    %13 = arith.truncf %12 : vector<128x128xf32> to vector<128x128xbf16>
    %c2 = arith.constant 2 : index
    %c0_10 = arith.constant 0 : index
    %c0_11 = arith.constant 0 : index
    %14 = vector.load %arg3[%c2, %c0_10, %c0_11] : memref<12x128x128xbf16, #tpu.memory_space<vmem>>, vector<1x128x128xbf16>
    %15 = vector.shape_cast %14 : vector<1x128x128xbf16> to vector<128x128xbf16>
    %cst_12 = arith.constant dense<0.000000e+00> : vector<128x128xf32>
    %16 = tpu.matmul %13, %15, %cst_12 {dimension_numbers = #tpu.dot_dimension_numbers<[1], [0], [0], [1], [0, 0, 1, 1], [], []>} : vector<128x128xbf16>, vector<128x128xbf16>, vector<128x128xf32> -> vector<128x128xf32>
    %cst_13 = arith.constant 0.000000e+00 : f32
    %17 = vector.broadcast %cst_13 : f32 to vector<128x128xf32>
    %18 = arith.maximumf %16, %17 : vector<128x128xf32>
    %19 = arith.truncf %18 : vector<128x128xf32> to vector<128x128xbf16>
    %c3 = arith.constant 3 : index
    %c0_14 = arith.constant 0 : index
    %c0_15 = arith.constant 0 : index
    %20 = vector.load %arg3[%c3, %c0_14, %c0_15] : memref<12x128x128xbf16, #tpu.memory_space<vmem>>, vector<1x128x128xbf16>
    %21 = vector.shape_cast %20 : vector<1x128x128xbf16> to vector<128x128xbf16>
    %cst_16 = arith.constant dense<0.000000e+00> : vector<128x128xf32>
    %22 = tpu.matmul %19, %21, %cst_16 {dimension_numbers = #tpu.dot_dimension_numbers<[1], [0], [0], [1], [0, 0, 1, 1], [], []>} : vector<128x128xbf16>, vector<128x128xbf16>, vector<128x128xf32> -> vector<128x128xf32>
    %cst_17 = arith.constant 0.000000e+00 : f32
    %23 = vector.broadcast %cst_17 : f32 to vector<128x128xf32>
    %24 = arith.maximumf %22, %23 : vector<128x128xf32>
    %25 = arith.truncf %24 : vector<128x128xf32> to vector<128x128xbf16>
    %c4 = arith.constant 4 : index
    %c0_18 = arith.constant 0 : index
    %c0_19 = arith.constant 0 : index
    %26 = vector.load %arg3[%c4, %c0_18, %c0_19] : memref<12x128x128xbf16, #tpu.memory_space<vmem>>, vector<1x128x128xbf16>
    %27 = vector.shape_cast %26 : vector<1x128x128xbf16> to vector<128x128xbf16>
    %cst_20 = arith.constant dense<0.000000e+00> : vector<128x128xf32>
    %28 = tpu.matmul %25, %27, %cst_20 {dimension_numbers = #tpu.dot_dimension_numbers<[1], [0], [0], [1], [0, 0, 1, 1], [], []>} : vector<128x128xbf16>, vector<128x128xbf16>, vector<128x128xf32> -> vector<128x128xf32>
    %cst_21 = arith.constant 0.000000e+00 : f32
    %29 = vector.broadcast %cst_21 : f32 to vector<128x128xf32>
    %30 = arith.maximumf %28, %29 : vector<128x128xf32>
    %31 = arith.truncf %30 : vector<128x128xf32> to vector<128x128xbf16>
    %c5 = arith.constant 5 : index
    %c0_22 = arith.constant 0 : index
    %c0_23 = arith.constant 0 : index
    %32 = vector.load %arg3[%c5, %c0_22, %c0_23] : memref<12x128x128xbf16, #tpu.memory_space<vmem>>, vector<1x128x128xbf16>
    %33 = vector.shape_cast %32 : vector<1x128x128xbf16> to vector<128x128xbf16>
    %cst_24 = arith.constant dense<0.000000e+00> : vector<128x128xf32>
    %34 = tpu.matmul %31, %33, %cst_24 {dimension_numbers = #tpu.dot_dimension_numbers<[1], [0], [0], [1], [0, 0, 1, 1], [], []>} : vector<128x128xbf16>, vector<128x128xbf16>, vector<128x128xf32> -> vector<128x128xf32>
    %c6 = arith.constant 6 : index
    %c0_25 = arith.constant 0 : index
    %c0_26 = arith.constant 0 : index
    %35 = vector.load %arg3[%c6, %c0_25, %c0_26] : memref<12x128x128xbf16, #tpu.memory_space<vmem>>, vector<1x128x128xbf16>
    %36 = vector.shape_cast %35 : vector<1x128x128xbf16> to vector<128x128xbf16>
    %cst_27 = arith.constant dense<0.000000e+00> : vector<128x128xf32>
    %37 = tpu.matmul %1, %36, %cst_27 {dimension_numbers = #tpu.dot_dimension_numbers<[1], [0], [0], [1], [0, 0, 1, 1], [], []>} : vector<128x128xbf16>, vector<128x128xbf16>, vector<128x128xf32> -> vector<128x128xf32>
    %38 = arith.addf %34, %37 : vector<128x128xf32>
    %cst_28 = arith.constant 0.000000e+00 : f32
    %39 = vector.broadcast %cst_28 : f32 to vector<128x128xf32>
    %40 = arith.maximumf %38, %39 : vector<128x128xf32>
    %41 = arith.truncf %40 : vector<128x128xf32> to vector<128x128xbf16>
    %c7 = arith.constant 7 : index
    %c0_29 = arith.constant 0 : index
    %c0_30 = arith.constant 0 : index
    %42 = vector.load %arg3[%c7, %c0_29, %c0_30] : memref<12x128x128xbf16, #tpu.memory_space<vmem>>, vector<1x128x128xbf16>
    %43 = vector.shape_cast %42 : vector<1x128x128xbf16> to vector<128x128xbf16>
    %cst_31 = arith.constant dense<0.000000e+00> : vector<128x128xf32>
    %44 = tpu.matmul %41, %43, %cst_31 {dimension_numbers = #tpu.dot_dimension_numbers<[1], [0], [0], [1], [0, 0, 1, 1], [], []>} : vector<128x128xbf16>, vector<128x128xbf16>, vector<128x128xf32> -> vector<128x128xf32>
    %cst_32 = arith.constant 0.000000e+00 : f32
    %45 = vector.broadcast %cst_32 : f32 to vector<128x128xf32>
    %46 = arith.maximumf %44, %45 : vector<128x128xf32>
    %47 = arith.truncf %46 : vector<128x128xf32> to vector<128x128xbf16>
    %c8 = arith.constant 8 : index
    %c0_33 = arith.constant 0 : index
    %c0_34 = arith.constant 0 : index
    %48 = vector.load %arg3[%c8, %c0_33, %c0_34] : memref<12x128x128xbf16, #tpu.memory_space<vmem>>, vector<1x128x128xbf16>
    %49 = vector.shape_cast %48 : vector<1x128x128xbf16> to vector<128x128xbf16>
    %cst_35 = arith.constant dense<0.000000e+00> : vector<128x128xf32>
    %50 = tpu.matmul %47, %49, %cst_35 {dimension_numbers = #tpu.dot_dimension_numbers<[1], [0], [0], [1], [0, 0, 1, 1], [], []>} : vector<128x128xbf16>, vector<128x128xbf16>, vector<128x128xf32> -> vector<128x128xf32>
    %cst_36 = arith.constant 0.000000e+00 : f32
    %51 = vector.broadcast %cst_36 : f32 to vector<128x128xf32>
    %52 = arith.maximumf %50, %51 : vector<128x128xf32>
    %53 = arith.truncf %52 : vector<128x128xf32> to vector<128x128xbf16>
    %c9 = arith.constant 9 : index
    %c0_37 = arith.constant 0 : index
    %c0_38 = arith.constant 0 : index
    %54 = vector.load %arg3[%c9, %c0_37, %c0_38] : memref<12x128x128xbf16, #tpu.memory_space<vmem>>, vector<1x128x128xbf16>
    %55 = vector.shape_cast %54 : vector<1x128x128xbf16> to vector<128x128xbf16>
    %cst_39 = arith.constant dense<0.000000e+00> : vector<128x128xf32>
    %56 = tpu.matmul %53, %55, %cst_39 {dimension_numbers = #tpu.dot_dimension_numbers<[1], [0], [0], [1], [0, 0, 1, 1], [], []>} : vector<128x128xbf16>, vector<128x128xbf16>, vector<128x128xf32> -> vector<128x128xf32>
    %57 = vector.extract_strided_slice %56 {offsets = [0, 0], sizes = [128, 1], strides = [1, 1]} : vector<128x128xf32> to vector<128x1xf32>
    %cst_40 = arith.constant -1.000000e+00 : f32
    %58 = vector.broadcast %cst_40 : f32 to vector<128x1xf32>
    %59 = arith.addf %57, %58 : vector<128x1xf32>
    %cst_41 = arith.constant 0.000000e+00 : f32
    %60 = vector.broadcast %cst_41 : f32 to vector<128x1xf32>
    %61 = arith.maximumf %59, %60 : vector<128x1xf32>
    %62 = math.absf %59 : vector<128x1xf32>
    %cst_42 = arith.constant 0.000000e+00 : f32
    %63 = vector.broadcast %cst_42 : f32 to vector<128x1xf32>
    %64 = arith.subf %63, %62 : vector<128x1xf32>
    %65 = math.exp %64 : vector<128x1xf32>
    %cst_43 = arith.constant 1.000000e+00 : f32
    %66 = vector.broadcast %cst_43 : f32 to vector<128x1xf32>
    %67 = arith.addf %66, %65 : vector<128x1xf32>
    %68 = math.log %67 : vector<128x1xf32>
    %69 = arith.addf %61, %68 : vector<128x1xf32>
    %c0_44 = arith.constant 0 : index
    %c0_45 = arith.constant 0 : index
    %70 = vector.load %arg2[%c0_44, %c0_45] : memref<8x128xf32, #tpu.memory_space<vmem>>, vector<8x128xf32>
    %71 = arith.truncf %56 : vector<128x128xf32> to vector<128x128xbf16>
    %c10 = arith.constant 10 : index
    %c0_46 = arith.constant 0 : index
    %c0_47 = arith.constant 0 : index
    %72 = vector.load %arg3[%c10, %c0_46, %c0_47] : memref<12x128x128xbf16, #tpu.memory_space<vmem>>, vector<1x128x128xbf16>
    %73 = vector.shape_cast %72 : vector<1x128x128xbf16> to vector<128x128xbf16>
    %cst_48 = arith.constant dense<0.000000e+00> : vector<128x128xf32>
    %74 = tpu.matmul %71, %73, %cst_48 {dimension_numbers = #tpu.dot_dimension_numbers<[1], [0], [0], [1], [0, 0, 1, 1], [], []>} : vector<128x128xbf16>, vector<128x128xbf16>, vector<128x128xf32> -> vector<128x128xf32>
    %75 = vector.shape_cast %74 : vector<128x128xf32> to vector<8x16x128xf32>
    %76 = vector.shape_cast %70 : vector<8x128xf32> to vector<8x1x128xf32>
    %77 = vector.broadcast %76 : vector<8x1x128xf32> to vector<8x16x128xf32>
    %78 = arith.addf %75, %77 : vector<8x16x128xf32>
    %cst_49 = arith.constant 0.000000e+00 : f32
    %79 = vector.broadcast %cst_49 : f32 to vector<8x16x128xf32>
    %80 = arith.maximumf %78, %79 : vector<8x16x128xf32>
    %81 = vector.shape_cast %80 : vector<8x16x128xf32> to vector<128x128xf32>
    %82 = arith.truncf %81 : vector<128x128xf32> to vector<128x128xbf16>
    %c11 = arith.constant 11 : index
    %c0_50 = arith.constant 0 : index
    %c0_51 = arith.constant 0 : index
    %83 = vector.load %arg3[%c11, %c0_50, %c0_51] : memref<12x128x128xbf16, #tpu.memory_space<vmem>>, vector<1x128x128xbf16>
    %84 = vector.shape_cast %83 : vector<1x128x128xbf16> to vector<128x128xbf16>
    %cst_52 = arith.constant dense<0.000000e+00> : vector<128x128xf32>
    %85 = tpu.matmul %82, %84, %cst_52 {dimension_numbers = #tpu.dot_dimension_numbers<[1], [0], [0], [1], [0, 0, 1, 1], [], []>} : vector<128x128xbf16>, vector<128x128xbf16>, vector<128x128xf32> -> vector<128x128xf32>
    %86 = arith.negf %85 : vector<128x128xf32>
    %87 = math.exp %86 : vector<128x128xf32>
    %cst_53 = arith.constant 1.000000e+00 : f32
    %88 = vector.broadcast %cst_53 : f32 to vector<128x128xf32>
    %89 = arith.addf %88, %87 : vector<128x128xf32>
    %90 = arith.divf %88, %89 : vector<128x128xf32>
    %cst_54 = arith.constant 1.002000e+00 : f32
    %91 = vector.broadcast %cst_54 : f32 to vector<128x128xf32>
    %92 = arith.mulf %90, %91 : vector<128x128xf32>
    %cst_55 = arith.constant 1.000000e-03 : f32
    %93 = vector.broadcast %cst_55 : f32 to vector<128x128xf32>
    %94 = arith.subf %92, %93 : vector<128x128xf32>
    %95 = tpu.iota {dimensions = array<i32: 1>} : vector<128x128xi32>
    %c3_i32 = arith.constant 3 : i32
    %96 = vector.broadcast %c3_i32 : i32 to vector<128x128xi32>
    %97 = arith.cmpi eq, %95, %96 : vector<128x128xi32>
    %98 = vector.shape_cast %69 : vector<128x1xf32> to vector<128x1xf32>
    %99 = vector.broadcast %98 : vector<128x1xf32> to vector<128x128xf32>
    %100 = arith.select %97, %99, %94 : vector<128x128xi1>, vector<128x128xf32>
    %101 = vector.shape_cast %100 : vector<128x128xf32> to vector<8x16x128xf32>
    %102 = arith.truncf %101 : vector<8x16x128xf32> to vector<8x16x128xbf16>
    %c0_56 = arith.constant 0 : index
    %c0_57 = arith.constant 0 : index
    %c0_58 = arith.constant 0 : index
    %103 = vector.load %arg4[%c0_56, %c0_57, %c0_58] : memref<8x16x128xbf16, #tpu.memory_space<vmem>>, vector<8x16x128xbf16>
    tpu.vector_store %arg4[%c0_56, %c0_57, %c0_58], %102 {strides = array<i32>} : memref<8x16x128xbf16, #tpu.memory_space<vmem>>, vector<8x16x128xbf16>,
    return
  }
  func.func @transform_0(%arg0: i32) -> (i32, i32, i32) {
    %c0_i32 = arith.constant 0 : i32
    %c0_i32_0 = arith.constant 0 : i32
    %c0_i32_1 = arith.constant 0 : i32
    return %arg0, %c0_i32, %c0_i32_0 : i32, i32, i32
  }
  func.func @transform_1(%arg0: i32) -> (i32, i32) {
    %c0_i32 = arith.constant 0 : i32
    %c0_i32_0 = arith.constant 0 : i32
    return %arg0, %c0_i32 : i32, i32
  }
  func.func @transform_2(%arg0: i32) -> (i32, i32, i32) {
    %c0_i32 = arith.constant 0 : i32
    %c0_i32_0 = arith.constant 0 : i32
    %c0_i32_1 = arith.constant 0 : i32
    %c0_i32_2 = arith.constant 0 : i32
    return %c0_i32, %c0_i32_0, %c0_i32_1 : i32, i32, i32
  }
  func.func @transform_3(%arg0: i32) -> (i32, i32, i32) {
    %c0_i32 = arith.constant 0 : i32
    %c0_i32_0 = arith.constant 0 : i32
    %c0_i32_1 = arith.constant 0 : i32
    return %arg0, %c0_i32, %c0_i32_0 : i32, i32, i32
  }
}

module attributes {stable_mosaic.version = 11 : i64} {
  func.func @mipnerf_mlp_kernel(%arg0: i32, %arg1: memref<8x48x128xbf16, #tpu.memory_space<vmem>>, %arg2: memref<8x128xf32, #tpu.memory_space<vmem>>, %arg3: memref<12x128x128xbf16, #tpu.memory_space<vmem>>, %arg4: memref<8x48x128xbf16, #tpu.memory_space<vmem>>) attributes {dimension_semantics = [#tpu.dimension_semantics<parallel>], iteration_bounds = array<i64: 1>, scalar_prefetch = 0 : i64, scratch_operands = 0 : i64, tpu.core_type = #tpu.core_type<tc>, window_params = [{transform_indices = @transform_0, window_bounds = array<i64: 8, 48, 128>}, {transform_indices = @transform_1, window_bounds = array<i64: 8, 128>}, {pipeline_mode = #tpu.pipeline_mode<synchronous>, transform_indices = @transform_2, window_bounds = array<i64: 12, 128, 128>}, {transform_indices = @transform_3, window_bounds = array<i64: 8, 48, 128>}]} {
    %c0 = arith.constant 0 : index
    %c0_0 = arith.constant 0 : index
    %c0_1 = arith.constant 0 : index
    %0 = vector.load %arg1[%c0, %c0_0, %c0_1] : memref<8x48x128xbf16, #tpu.memory_space<vmem>>, vector<8x48x128xbf16>
    %1 = vector.shape_cast %0 : vector<8x48x128xbf16> to vector<384x128xbf16>
    %c0_2 = arith.constant 0 : index
    %c0_3 = arith.constant 0 : index
    %c0_4 = arith.constant 0 : index
    %2 = vector.load %arg3[%c0_2, %c0_3, %c0_4] : memref<12x128x128xbf16, #tpu.memory_space<vmem>>, vector<1x128x128xbf16>
    %3 = vector.shape_cast %2 : vector<1x128x128xbf16> to vector<128x128xbf16>
    %cst = arith.constant dense<0.000000e+00> : vector<384x128xf32>
    %4 = tpu.matmul %1, %3, %cst {dimension_numbers = #tpu.dot_dimension_numbers<[1], [0], [0], [1], [0, 0, 1, 1], [], []>} : vector<384x128xbf16>, vector<128x128xbf16>, vector<384x128xf32> -> vector<384x128xf32>
    %cst_5 = arith.constant 0.000000e+00 : f32
    %5 = vector.broadcast %cst_5 : f32 to vector<384x128xf32>
    %6 = arith.maximumf %4, %5 : vector<384x128xf32>
    %7 = arith.truncf %6 : vector<384x128xf32> to vector<384x128xbf16>
    %c1 = arith.constant 1 : index
    %c0_6 = arith.constant 0 : index
    %c0_7 = arith.constant 0 : index
    %8 = vector.load %arg3[%c1, %c0_6, %c0_7] : memref<12x128x128xbf16, #tpu.memory_space<vmem>>, vector<1x128x128xbf16>
    %9 = vector.shape_cast %8 : vector<1x128x128xbf16> to vector<128x128xbf16>
    %cst_8 = arith.constant dense<0.000000e+00> : vector<384x128xf32>
    %10 = tpu.matmul %7, %9, %cst_8 {dimension_numbers = #tpu.dot_dimension_numbers<[1], [0], [0], [1], [0, 0, 1, 1], [], []>} : vector<384x128xbf16>, vector<128x128xbf16>, vector<384x128xf32> -> vector<384x128xf32>
    %cst_9 = arith.constant 0.000000e+00 : f32
    %11 = vector.broadcast %cst_9 : f32 to vector<384x128xf32>
    %12 = arith.maximumf %10, %11 : vector<384x128xf32>
    %13 = arith.truncf %12 : vector<384x128xf32> to vector<384x128xbf16>
    %c2 = arith.constant 2 : index
    %c0_10 = arith.constant 0 : index
    %c0_11 = arith.constant 0 : index
    %14 = vector.load %arg3[%c2, %c0_10, %c0_11] : memref<12x128x128xbf16, #tpu.memory_space<vmem>>, vector<1x128x128xbf16>
    %15 = vector.shape_cast %14 : vector<1x128x128xbf16> to vector<128x128xbf16>
    %cst_12 = arith.constant dense<0.000000e+00> : vector<384x128xf32>
    %16 = tpu.matmul %13, %15, %cst_12 {dimension_numbers = #tpu.dot_dimension_numbers<[1], [0], [0], [1], [0, 0, 1, 1], [], []>} : vector<384x128xbf16>, vector<128x128xbf16>, vector<384x128xf32> -> vector<384x128xf32>
    %cst_13 = arith.constant 0.000000e+00 : f32
    %17 = vector.broadcast %cst_13 : f32 to vector<384x128xf32>
    %18 = arith.maximumf %16, %17 : vector<384x128xf32>
    %19 = arith.truncf %18 : vector<384x128xf32> to vector<384x128xbf16>
    %c3 = arith.constant 3 : index
    %c0_14 = arith.constant 0 : index
    %c0_15 = arith.constant 0 : index
    %20 = vector.load %arg3[%c3, %c0_14, %c0_15] : memref<12x128x128xbf16, #tpu.memory_space<vmem>>, vector<1x128x128xbf16>
    %21 = vector.shape_cast %20 : vector<1x128x128xbf16> to vector<128x128xbf16>
    %cst_16 = arith.constant dense<0.000000e+00> : vector<384x128xf32>
    %22 = tpu.matmul %19, %21, %cst_16 {dimension_numbers = #tpu.dot_dimension_numbers<[1], [0], [0], [1], [0, 0, 1, 1], [], []>} : vector<384x128xbf16>, vector<128x128xbf16>, vector<384x128xf32> -> vector<384x128xf32>
    %cst_17 = arith.constant 0.000000e+00 : f32
    %23 = vector.broadcast %cst_17 : f32 to vector<384x128xf32>
    %24 = arith.maximumf %22, %23 : vector<384x128xf32>
    %25 = arith.truncf %24 : vector<384x128xf32> to vector<384x128xbf16>
    %c4 = arith.constant 4 : index
    %c0_18 = arith.constant 0 : index
    %c0_19 = arith.constant 0 : index
    %26 = vector.load %arg3[%c4, %c0_18, %c0_19] : memref<12x128x128xbf16, #tpu.memory_space<vmem>>, vector<1x128x128xbf16>
    %27 = vector.shape_cast %26 : vector<1x128x128xbf16> to vector<128x128xbf16>
    %cst_20 = arith.constant dense<0.000000e+00> : vector<384x128xf32>
    %28 = tpu.matmul %25, %27, %cst_20 {dimension_numbers = #tpu.dot_dimension_numbers<[1], [0], [0], [1], [0, 0, 1, 1], [], []>} : vector<384x128xbf16>, vector<128x128xbf16>, vector<384x128xf32> -> vector<384x128xf32>
    %cst_21 = arith.constant 0.000000e+00 : f32
    %29 = vector.broadcast %cst_21 : f32 to vector<384x128xf32>
    %30 = arith.maximumf %28, %29 : vector<384x128xf32>
    %31 = arith.truncf %30 : vector<384x128xf32> to vector<384x128xbf16>
    %c5 = arith.constant 5 : index
    %c0_22 = arith.constant 0 : index
    %c0_23 = arith.constant 0 : index
    %32 = vector.load %arg3[%c5, %c0_22, %c0_23] : memref<12x128x128xbf16, #tpu.memory_space<vmem>>, vector<1x128x128xbf16>
    %33 = vector.shape_cast %32 : vector<1x128x128xbf16> to vector<128x128xbf16>
    %cst_24 = arith.constant dense<0.000000e+00> : vector<384x128xf32>
    %34 = tpu.matmul %31, %33, %cst_24 {dimension_numbers = #tpu.dot_dimension_numbers<[1], [0], [0], [1], [0, 0, 1, 1], [], []>} : vector<384x128xbf16>, vector<128x128xbf16>, vector<384x128xf32> -> vector<384x128xf32>
    %c6 = arith.constant 6 : index
    %c0_25 = arith.constant 0 : index
    %c0_26 = arith.constant 0 : index
    %35 = vector.load %arg3[%c6, %c0_25, %c0_26] : memref<12x128x128xbf16, #tpu.memory_space<vmem>>, vector<1x128x128xbf16>
    %36 = vector.shape_cast %35 : vector<1x128x128xbf16> to vector<128x128xbf16>
    %cst_27 = arith.constant dense<0.000000e+00> : vector<384x128xf32>
    %37 = tpu.matmul %1, %36, %cst_27 {dimension_numbers = #tpu.dot_dimension_numbers<[1], [0], [0], [1], [0, 0, 1, 1], [], []>} : vector<384x128xbf16>, vector<128x128xbf16>, vector<384x128xf32> -> vector<384x128xf32>
    %38 = arith.addf %34, %37 : vector<384x128xf32>
    %cst_28 = arith.constant 0.000000e+00 : f32
    %39 = vector.broadcast %cst_28 : f32 to vector<384x128xf32>
    %40 = arith.maximumf %38, %39 : vector<384x128xf32>
    %41 = arith.truncf %40 : vector<384x128xf32> to vector<384x128xbf16>
    %c7 = arith.constant 7 : index
    %c0_29 = arith.constant 0 : index
    %c0_30 = arith.constant 0 : index
    %42 = vector.load %arg3[%c7, %c0_29, %c0_30] : memref<12x128x128xbf16, #tpu.memory_space<vmem>>, vector<1x128x128xbf16>
    %43 = vector.shape_cast %42 : vector<1x128x128xbf16> to vector<128x128xbf16>
    %cst_31 = arith.constant dense<0.000000e+00> : vector<384x128xf32>
    %44 = tpu.matmul %41, %43, %cst_31 {dimension_numbers = #tpu.dot_dimension_numbers<[1], [0], [0], [1], [0, 0, 1, 1], [], []>} : vector<384x128xbf16>, vector<128x128xbf16>, vector<384x128xf32> -> vector<384x128xf32>
    %cst_32 = arith.constant 0.000000e+00 : f32
    %45 = vector.broadcast %cst_32 : f32 to vector<384x128xf32>
    %46 = arith.maximumf %44, %45 : vector<384x128xf32>
    %47 = arith.truncf %46 : vector<384x128xf32> to vector<384x128xbf16>
    %c8 = arith.constant 8 : index
    %c0_33 = arith.constant 0 : index
    %c0_34 = arith.constant 0 : index
    %48 = vector.load %arg3[%c8, %c0_33, %c0_34] : memref<12x128x128xbf16, #tpu.memory_space<vmem>>, vector<1x128x128xbf16>
    %49 = vector.shape_cast %48 : vector<1x128x128xbf16> to vector<128x128xbf16>
    %cst_35 = arith.constant dense<0.000000e+00> : vector<384x128xf32>
    %50 = tpu.matmul %47, %49, %cst_35 {dimension_numbers = #tpu.dot_dimension_numbers<[1], [0], [0], [1], [0, 0, 1, 1], [], []>} : vector<384x128xbf16>, vector<128x128xbf16>, vector<384x128xf32> -> vector<384x128xf32>
    %cst_36 = arith.constant 0.000000e+00 : f32
    %51 = vector.broadcast %cst_36 : f32 to vector<384x128xf32>
    %52 = arith.maximumf %50, %51 : vector<384x128xf32>
    %53 = arith.truncf %52 : vector<384x128xf32> to vector<384x128xbf16>
    %c9 = arith.constant 9 : index
    %c0_37 = arith.constant 0 : index
    %c0_38 = arith.constant 0 : index
    %54 = vector.load %arg3[%c9, %c0_37, %c0_38] : memref<12x128x128xbf16, #tpu.memory_space<vmem>>, vector<1x128x128xbf16>
    %55 = vector.shape_cast %54 : vector<1x128x128xbf16> to vector<128x128xbf16>
    %cst_39 = arith.constant dense<0.000000e+00> : vector<384x128xf32>
    %56 = tpu.matmul %53, %55, %cst_39 {dimension_numbers = #tpu.dot_dimension_numbers<[1], [0], [0], [1], [0, 0, 1, 1], [], []>} : vector<384x128xbf16>, vector<128x128xbf16>, vector<384x128xf32> -> vector<384x128xf32>
    %57 = vector.extract_strided_slice %56 {offsets = [0, 0], sizes = [384, 1], strides = [1, 1]} : vector<384x128xf32> to vector<384x1xf32>
    %cst_40 = arith.constant -1.000000e+00 : f32
    %58 = vector.broadcast %cst_40 : f32 to vector<384x1xf32>
    %59 = arith.addf %57, %58 : vector<384x1xf32>
    %cst_41 = arith.constant 0.000000e+00 : f32
    %60 = vector.broadcast %cst_41 : f32 to vector<384x1xf32>
    %61 = arith.maximumf %59, %60 : vector<384x1xf32>
    %62 = math.absf %59 : vector<384x1xf32>
    %cst_42 = arith.constant 0.000000e+00 : f32
    %63 = vector.broadcast %cst_42 : f32 to vector<384x1xf32>
    %64 = arith.subf %63, %62 : vector<384x1xf32>
    %65 = math.exp %64 : vector<384x1xf32>
    %cst_43 = arith.constant 1.000000e+00 : f32
    %66 = vector.broadcast %cst_43 : f32 to vector<384x1xf32>
    %67 = arith.addf %66, %65 : vector<384x1xf32>
    %68 = math.log %67 : vector<384x1xf32>
    %69 = arith.addf %61, %68 : vector<384x1xf32>
    %c0_44 = arith.constant 0 : index
    %c0_45 = arith.constant 0 : index
    %70 = vector.load %arg2[%c0_44, %c0_45] : memref<8x128xf32, #tpu.memory_space<vmem>>, vector<8x128xf32>
    %71 = arith.truncf %56 : vector<384x128xf32> to vector<384x128xbf16>
    %c10 = arith.constant 10 : index
    %c0_46 = arith.constant 0 : index
    %c0_47 = arith.constant 0 : index
    %72 = vector.load %arg3[%c10, %c0_46, %c0_47] : memref<12x128x128xbf16, #tpu.memory_space<vmem>>, vector<1x128x128xbf16>
    %73 = vector.shape_cast %72 : vector<1x128x128xbf16> to vector<128x128xbf16>
    %cst_48 = arith.constant dense<0.000000e+00> : vector<384x128xf32>
    %74 = tpu.matmul %71, %73, %cst_48 {dimension_numbers = #tpu.dot_dimension_numbers<[1], [0], [0], [1], [0, 0, 1, 1], [], []>} : vector<384x128xbf16>, vector<128x128xbf16>, vector<384x128xf32> -> vector<384x128xf32>
    %75 = vector.shape_cast %74 : vector<384x128xf32> to vector<8x48x128xf32>
    %76 = vector.shape_cast %70 : vector<8x128xf32> to vector<8x1x128xf32>
    %77 = vector.broadcast %76 : vector<8x1x128xf32> to vector<8x48x128xf32>
    %78 = arith.addf %75, %77 : vector<8x48x128xf32>
    %cst_49 = arith.constant 0.000000e+00 : f32
    %79 = vector.broadcast %cst_49 : f32 to vector<8x48x128xf32>
    %80 = arith.maximumf %78, %79 : vector<8x48x128xf32>
    %81 = vector.shape_cast %80 : vector<8x48x128xf32> to vector<384x128xf32>
    %82 = arith.truncf %81 : vector<384x128xf32> to vector<384x128xbf16>
    %c11 = arith.constant 11 : index
    %c0_50 = arith.constant 0 : index
    %c0_51 = arith.constant 0 : index
    %83 = vector.load %arg3[%c11, %c0_50, %c0_51] : memref<12x128x128xbf16, #tpu.memory_space<vmem>>, vector<1x128x128xbf16>
    %84 = vector.shape_cast %83 : vector<1x128x128xbf16> to vector<128x128xbf16>
    %cst_52 = arith.constant dense<0.000000e+00> : vector<384x128xf32>
    %85 = tpu.matmul %82, %84, %cst_52 {dimension_numbers = #tpu.dot_dimension_numbers<[1], [0], [0], [1], [0, 0, 1, 1], [], []>} : vector<384x128xbf16>, vector<128x128xbf16>, vector<384x128xf32> -> vector<384x128xf32>
    %86 = arith.negf %85 : vector<384x128xf32>
    %87 = math.exp %86 : vector<384x128xf32>
    %cst_53 = arith.constant 1.000000e+00 : f32
    %88 = vector.broadcast %cst_53 : f32 to vector<384x128xf32>
    %89 = arith.addf %88, %87 : vector<384x128xf32>
    %90 = arith.divf %88, %89 : vector<384x128xf32>
    %cst_54 = arith.constant 1.002000e+00 : f32
    %91 = vector.broadcast %cst_54 : f32 to vector<384x128xf32>
    %92 = arith.mulf %90, %91 : vector<384x128xf32>
    %cst_55 = arith.constant 1.000000e-03 : f32
    %93 = vector.broadcast %cst_55 : f32 to vector<384x128xf32>
    %94 = arith.subf %92, %93 : vector<384x128xf32>
    %95 = tpu.iota {dimensions = array<i32: 1>} : vector<384x128xi32>
    %c3_i32 = arith.constant 3 : i32
    %96 = vector.broadcast %c3_i32 : i32 to vector<384x128xi32>
    %97 = arith.cmpi eq, %95, %96 : vector<384x128xi32>
    %98 = vector.shape_cast %69 : vector<384x1xf32> to vector<384x1xf32>
    %99 = vector.broadcast %98 : vector<384x1xf32> to vector<384x128xf32>
    %100 = arith.select %97, %99, %94 : vector<384x128xi1>, vector<384x128xf32>
    %101 = vector.shape_cast %100 : vector<384x128xf32> to vector<8x48x128xf32>
    %102 = arith.truncf %101 : vector<8x48x128xf32> to vector<8x48x128xbf16>
    %c0_56 = arith.constant 0 : index
    %c0_57 = arith.constant 0 : index
    %c0_58 = arith.constant 0 : index
    %103 = vector.load %arg4[%c0_56, %c0_57, %c0_58] : memref<8x48x128xbf16, #tpu.memory_space<vmem>>, vector<8x48x128xbf16>
    tpu.vector_store %arg4[%c0_56, %c0_57, %c0_58], %102 {strides = array<i32>} : memref<8x48x128xbf16, #tpu.memory_space<vmem>>, vector<8x48x128xbf16>,
    return
  }
  func.func @transform_0(%arg0: i32) -> (i32, i32, i32) {
    %c0_i32 = arith.constant 0 : i32
    %c0_i32_0 = arith.constant 0 : i32
    %c0_i32_1 = arith.constant 0 : i32
    return %arg0, %c0_i32, %c0_i32_0 : i32, i32, i32
  }
  func.func @transform_1(%arg0: i32) -> (i32, i32) {
    %c0_i32 = arith.constant 0 : i32
    %c0_i32_0 = arith.constant 0 : i32
    return %arg0, %c0_i32 : i32, i32
  }
  func.func @transform_2(%arg0: i32) -> (i32, i32, i32) {
    %c0_i32 = arith.constant 0 : i32
    %c0_i32_0 = arith.constant 0 : i32
    %c0_i32_1 = arith.constant 0 : i32
    %c0_i32_2 = arith.constant 0 : i32
    return %c0_i32, %c0_i32_0, %c0_i32_1 : i32, i32, i32
  }
  func.func @transform_3(%arg0: i32) -> (i32, i32, i32) {
    %c0_i32 = arith.constant 0 : i32
    %c0_i32_0 = arith.constant 0 : i32
    %c0_i32_1 = arith.constant 0 : i32
    return %arg0, %c0_i32, %c0_i32_0 : i32, i32, i32
  }
}

</mosaic_0001>

<bundles_post_ra>
// kernel: mipnerf_forward.2
= control target key start
LH: loop header
LB: loop body
LE: loop exit
PB: predicated region body
PF: predicated region fallthrough
CT: control target
= control target key end

     0   :  { %s4594_s2 = inlined_call_operand.vmem [shape: bf16[12,128,128], index: 2, kind: input, shape index: {}]   ;;  %s4595_s0 = inlined_call_operand.vmem [shape: bf16[8,16,128], index: 0, kind: input, shape index: {}]   ;;  %s4596_s1 = inlined_call_operand.vmem [shape: f32[8,128], index: 1, kind: input, shape index: {}]   ;;  %s4597_s3 = inlined_call_operand.vmem [shape: bf16[8,16,128], index: 3, kind: output, shape index: {}]  }
   0x1   :  { %v3851_v0 = vld [vmem:[%s4594_s2] sm:$0xff]   ;;  %v3852_v1 = vld [vmem:[%s4594_s2 + $0x8] sm:$0xff]   ;;  %v3853_v2 = vld [vmem:[%s4594_s2 + $0x10] sm:$0xff]  }
   0x2   :  { %3407 = vmatprep.subr.bf16.mxu0 %v3851_v0  ;;  %v3854_v3 = vld [vmem:[%s4594_s2 + $0x18] sm:$0xff]   ;;  %v4121_v4 = vld [vmem:[%s4595_s0] sm:$0xff]   ;;  %v3856_v6 = vld [vmem:[%s4594_s2 + $0x28] sm:$0xff]  }
   0x3   :  { %3408 = vmatpush3.bf16.msra.mxu0 %v3851_v0  ;;  %3423 = vmatprep.mubr.bf16.mxu0 %v4121_v4  ;;  %v3855_v5 = vld [vmem:[%s4594_s2 + $0x20] sm:$0xff]   ;;  %v3868_v8 = vld [vmem:[%s4594_s2 + $0x48] sm:$0xff]   ;;  %v3857_v9 = vld [vmem:[%s4594_s2 + $0x30] sm:$0xff]  }
   0x4   :  { %3409 = vmatprep.subr.bf16.mxu0 %v3852_v1  ;;  %v3867_v7 = vld [vmem:[%s4594_s2 + $0x40] sm:$0xff]   ;;  %v3869_v10 = vld [vmem:[%s4594_s2 + $0x50] sm:$0xff]   ;;  %v3858_v11 = vld [vmem:[%s4594_s2 + $0x38] sm:$0xff]  }
   0x5   :  { %3439 = vmatprep.subr.bf16.mxu1 %v3867_v7  ;;  %v3870_v12 = vld [vmem:[%s4594_s2 + $0x58] sm:$0xff]   ;;  %v3871_v13 = vld [vmem:[%s4594_s2 + $0x60] sm:$0xff]   ;;  %v4154_v14 = vld [vmem:[%s4595_s0 + $0x8] sm:$0xff]  }
   0x6   :  { %3440 = vmatpush3.bf16.msra.mxu1 %v3867_v7  ;;  %v4159_v15 = vld [vmem:[%s4595_s0 + $0x10] sm:$0xff]   ;;  %v3872_v16 = vld [vmem:[%s4594_s2 + $0x68] sm:$0xff]   ;;  %v4169_v17 = vld [vmem:[%s4595_s0 + $0x18] sm:$0xff]  }
   0x7   :  { %3410 = vmatpush3.bf16.msra.mxu0 %v3852_v1  ;;  %3441 = vmatprep.subr.bf16.mxu1 %v3868_v8  ;;  %v4174_v18 = vld [vmem:[%s4595_s0 + $0x20] sm:$0xff]   ;;  %v4181_v19 = vld [vmem:[%s4595_s0 + $0x28] sm:$0xff]   ;;  %v4186_v20 = vld [vmem:[%s4595_s0 + $0x30] sm:$0xff]  }
   0x8   :  { %3411 = vmatprep.subr.bf16.mxu0 %v3853_v2  ;;  %v4193_v21 = vld [vmem:[%s4595_s0 + $0x38] sm:$0xff]   ;;  %v3873_v22 = vld [vmem:[%s4594_s2 + $0x70] sm:$0xff]   ;;  %v3875_v24 = vld [vmem:[%s4594_s2 + $0x80] sm:$0xff]  }
   0x9   :  { %v3874_v23 = vld [vmem:[%s4594_s2 + $0x78] sm:$0xff]   ;;  %v3876_v25 = vld [vmem:[%s4594_s2 + $0x88] sm:$0xff]   ;;  %v3877_v26 = vld [vmem:[%s4594_s2 + $0x90] sm:$0xff]  }
   0xa   :  { %3442 = vmatpush3.bf16.msra.mxu1 %v3868_v8  ;;  %v3878_v27 = vld [vmem:[%s4594_s2 + $0x98] sm:$0xff]   ;;  %v3879_v28 = vld [vmem:[%s4594_s2 + $0xa0] sm:$0xff]   ;;  %v3880_v29 = vld [vmem:[%s4594_s2 + $0xa8] sm:$0xff]  }
   0xb   :  { %3412 = vmatpush3.bf16.msra.mxu0 %v3853_v2  ;;  %3443 = vmatprep.subr.bf16.mxu1 %v3869_v10  ;;  %v3881_v7 = vld [vmem:[%s4594_s2 + $0xb0] sm:$0xff]   ;;  %v3882_v8 = vld [vmem:[%s4594_s2 + $0xb8] sm:$0xff]  }
   0xc   :  { %3413 = vmatprep.subr.bf16.mxu0 %v3854_v3 }
   0xe   :  { %3444 = vmatpush3.bf16.msra.mxu1 %v3869_v10  ;;  %v3884_v10 = vld [vmem:[%s4594_s2 + $0xc8] sm:$0xff]  }
   0xf   :  { %3414 = vmatpush3.bf16.msra.mxu0 %v3854_v3  ;;  %3445 = vmatprep.subr.bf16.mxu1 %v3870_v12 }
  0x10   :  { %3415 = vmatprep.subr.bf16.mxu0 %v3855_v5 }
  0x12   :  { %3446 = vmatpush3.bf16.msra.mxu1 %v3870_v12  ;;  %v3886_v12 = vld [vmem:[%s4594_s2 + $0xd8] sm:$0xff]  }
  0x13   :  { %3416 = vmatpush3.bf16.msra.mxu0 %v3855_v5  ;;  %3447 = vmatprep.subr.bf16.mxu1 %v3871_v13 }
  0x14   :  { %3417 = vmatprep.subr.bf16.mxu0 %v3856_v6 }
  0x16   :  { %3448 = vmatpush3.bf16.msra.mxu1 %v3871_v13  ;;  %v3887_v13 = vld [vmem:[%s4594_s2 + $0xe0] sm:$0xff]  }
  0x17   :  { %3418 = vmatpush3.bf16.msra.mxu0 %v3856_v6  ;;  %3449 = vmatprep.subr.bf16.mxu1 %v3872_v16 }
  0x18   :  { %3419 = vmatprep.subr.bf16.mxu0 %v3857_v9 }
  0x1a   :  { %3450 = vmatpush3.bf16.msra.mxu1 %v3872_v16  ;;  %v3888_v16 = vld [vmem:[%s4594_s2 + $0xe8] sm:$0xff]  }
  0x1b   :  { %3420 = vmatpush3.bf16.msra.mxu0 %v3857_v9  ;;  %3451 = vmatprep.subr.bf16.mxu1 %v3873_v22  ;;  %v3883_v9 = vld [vmem:[%s4594_s2 + $0xc0] sm:$0xff]  }
  0x1c   :  { %3421 = vmatprep.subr.bf16.mxu0 %v3858_v11 }
  0x1e   :  { %3452 = vmatpush3.bf16.msra.mxu1 %v3873_v22 }
  0x1f   :  { %3422 = vmatpush3.bf16.msra.mxu0 %v3858_v11  ;;  %3453 = vmatprep.subr.bf16.mxu1 %v3874_v23  ;;  %v3885_v11 = vld [vmem:[%s4594_s2 + $0xd0] sm:$0xff]  }
  0x20   :  { %3471 = vmatprep.subr.bf16.mxu0 %v3875_v24 }
  0x22   :  { %3424 = vmatmul.mubr.bf16.vlgmr.msra.gmra.mrb[0].mxu0 %v4154_v14  ;;  %3454 = vmatpush3.bf16.msra.mxu1 %v3874_v23 }
  0x23   :  { %3427 = vmatprep.mubr.bf16.mxu0 %v4159_v15  ;;  %3472 = vmatpush3.bf16.msra.mxu0 %v3875_v24 }
  0x24   :  { %3473 = vmatprep.subr.bf16.mxu0 %v3876_v25  ;;  %3503 = vmatprep.subr.bf16.mxu1 %v3883_v9 }
  0x27   :  { %3474 = vmatpush3.bf16.msra.mxu0 %v3876_v25 }
  0x28   :  { %3475 = vmatprep.subr.bf16.mxu0 %v3877_v26 }
  0x2a   :  { %3428 = vmatmul.mubr.bf16.gmra.mrb[4].mxu0 %v4169_v17 }
  0x2b   :  { %3431 = vmatprep.mubr.bf16.mxu0 %v4174_v18  ;;  %3476 = vmatpush3.bf16.msra.mxu0 %v3877_v26 }
  0x2c   :  { %3477 = vmatprep.subr.bf16.mxu0 %v3878_v27 }
  0x2f   :  { %3478 = vmatpush3.bf16.msra.mxu0 %v3878_v27 }
  0x30   :  { %3479 = vmatprep.subr.bf16.mxu0 %v3879_v28 }
  0x32   :  { %3432 = vmatmul.mubr.bf16.gmra.mrb[8].mxu0 %v4181_v19 }
  0x33   :  { %3435 = vmatprep.mubr.bf16.mxu0 %v4186_v20  ;;  %3480 = vmatpush3.bf16.msra.mxu0 %v3879_v28 }
  0x34   :  { %3481 = vmatprep.subr.bf16.mxu0 %v3880_v29 }
  0x37   :  { %3482 = vmatpush3.bf16.msra.mxu0 %v3880_v29 }
  0x38   :  { %3483 = vmatprep.subr.bf16.mxu0 %v3881_v7 }
  0x3a   :  { %3436 = vmatmul.mubr.bf16.gmra.mrb[12].mxu0 %v4193_v21 }
  0x3b   :  { %3484 = vmatpush3.bf16.msra.mxu0 %v3881_v7 }
  0x3c   :  { %3485 = vmatprep.subr.bf16.mxu0 %v3882_v8 }
  0x3f   :  { %3486 = vmatpush3.bf16.msra.mxu0 %v3882_v8 }
  0xf5   :  { %v3425_v30 = vpop.f32.mrb[0].mxu0 }
  0xf6   :  { %v177_v31 = vpop.f32.mrb[1].mxu0  ;;  %v242_v33 = vmax.f32 %v3425_v30, 0.0 }
  0xf7   :  { %v3426_v32 = vpop.f32.mrb[2].mxu0  ;;  %v240_v36 = vmax.f32 %v177_v31, 0.0 }
  0xf8   :  { %v243_v34 = vmax.f32 %v3426_v32, 0.0  ;;  %v180_v35 = vpop.f32.mrb[3].mxu0 }
  0xf9   :  { %v241_v37 = vmax.f32 %v180_v35, 0.0 }
  0xfa   :  { %v257_v38 = vpack.c.bf16 %v243_v34, %v242_v33 }
  0xfb   :  { %v256_v39 = vpack.c.bf16 %v241_v37, %v240_v36 }
  0xfd   :  { %v3429_v40 = vpop.f32.mrb[4].mxu0  ;;  %3455 = vmatprep.mubr.bf16.mxu1 %v256_v39 }
  0xfe   :  { %v193_v41 = vpop.f32.mrb[5].mxu0  ;;  %3456 = vmatmul.mubr.bf16.vlgmr.msra.gmra.mrb[0].mxu1 %v257_v38  ;;  %v246_v43 = vmax.f32 %v3429_v40, 0.0 }
  0xff   :  { %v3430_v42 = vpop.f32.mrb[6].mxu0  ;;  %v244_v46 = vmax.f32 %v193_v41, 0.0  ;;  %3504 = vmatpush3.bf16.msra.mxu1 %v3883_v9 }
 0x100   :  { %v247_v44 = vmax.f32 %v3430_v42, 0.0  ;;  %v196_v45 = vpop.f32.mrb[7].mxu0  ;;  %3505 = vmatprep.subr.bf16.mxu1 %v3884_v10 }
 0x101   :  { %v245_v47 = vmax.f32 %v196_v45, 0.0 }
 0x102   :  { %v259_v48 = vpack.c.bf16 %v247_v44, %v246_v43 }
 0x103   :  { %v258_v49 = vpack.c.bf16 %v245_v47, %v244_v46  ;;  %3506 = vmatpush3.bf16.msra.mxu1 %v3884_v10 }
 0x104   :  { %3507 = vmatprep.subr.bf16.mxu1 %v3885_v11 }
 0x105   :  { %v3433_v50 = vpop.f32.mrb[8].mxu0  ;;  %3459 = vmatprep.mubr.bf16.mxu1 %v258_v49 }
 0x106   :  { %v209_v51 = vpop.f32.mrb[9].mxu0  ;;  %3460 = vmatmul.mubr.bf16.gmra.mrb[4].mxu1 %v259_v48  ;;  %v250_v53 = vmax.f32 %v3433_v50, 0.0 }
 0x107   :  { %v3434_v52 = vpop.f32.mrb[10].mxu0  ;;  %v248_v56 = vmax.f32 %v209_v51, 0.0  ;;  %3508 = vmatpush3.bf16.msra.mxu1 %v3885_v11 }
 0x108   :  { %v251_v54 = vmax.f32 %v3434_v52, 0.0  ;;  %v212_v55 = vpop.f32.mrb[11].mxu0  ;;  %3509 = vmatprep.subr.bf16.mxu1 %v3886_v12 }
 0x109   :  { %v249_v57 = vmax.f32 %v212_v55, 0.0 }
 0x10a   :  { %v261_v58 = vpack.c.bf16 %v251_v54, %v250_v53 }
 0x10b   :  { %v260_v59 = vpack.c.bf16 %v249_v57, %v248_v56  ;;  %3510 = vmatpush3.bf16.msra.mxu1 %v3886_v12 }
 0x10c   :  { %3511 = vmatprep.subr.bf16.mxu1 %v3887_v13 }
 0x10d   :  { %v3437_v60 = vpop.f32.mrb[12].mxu0  ;;  %3463 = vmatprep.mubr.bf16.mxu1 %v260_v59 }
 0x10e   :  { %v225_v61 = vpop.f32.mrb[13].mxu0  ;;  %3464 = vmatmul.mubr.bf16.gmra.mrb[8].mxu1 %v261_v58  ;;  %v254_v63 = vmax.f32 %v3437_v60, 0.0 }
 0x10f   :  { %v3438_v62 = vpop.f32.mrb[14].mxu0  ;;  %v252_v2 = vmax.f32 %v225_v61, 0.0  ;;  %3512 = vmatpush3.bf16.msra.mxu1 %v3887_v13 }
 0x110   :  { %v255_v0 = vmax.f32 %v3438_v62, 0.0  ;;  %v228_v1 = vpop.f32.mrb[15].mxu0  ;;  %3513 = vmatprep.subr.bf16.mxu1 %v3888_v16  ;;  %v3889_v62 = vld [vmem:[%s4594_s2 + $0xf0] sm:$0xff]  }
 0x111   :  { %v253_v3 = vmax.f32 %v228_v1, 0.0  ;;  %v3892_v1 = vld [vmem:[%s4594_s2 + $0x108] sm:$0xff]  }
 0x112   :  { %v263_v5 = vpack.c.bf16 %v255_v0, %v254_v63  ;;  %v3890_v63 = vld [vmem:[%s4594_s2 + $0xf8] sm:$0xff]   ;;  %v3891_v0 = vld [vmem:[%s4594_s2 + $0x100] sm:$0xff]  }
 0x113   :  { %v262_v6 = vpack.c.bf16 %v253_v3, %v252_v2  ;;  %3514 = vmatpush3.bf16.msra.mxu1 %v3888_v16  ;;  %3535 = vmatprep.subr.bf16.mxu0 %v3891_v0  ;;  %v3893_v2 = vld [vmem:[%s4594_s2 + $0x110] sm:$0xff]   ;;  %v3894_v3 = vld [vmem:[%s4594_s2 + $0x118] sm:$0xff]  }
 0x114   :  { %3515 = vmatprep.subr.bf16.mxu1 %v3889_v62 }
 0x115   :  { %3467 = vmatprep.mubr.bf16.mxu1 %v262_v6  ;;  %v3896_v6 = vld [vmem:[%s4594_s2 + $0x128] sm:$0xff]  }
 0x116   :  { %3468 = vmatmul.mubr.bf16.gmra.mrb[12].mxu1 %v263_v5  ;;  %v3895_v5 = vld [vmem:[%s4594_s2 + $0x120] sm:$0xff]  }
 0x117   :  { %3516 = vmatpush3.bf16.msra.mxu1 %v3889_v62  ;;  %v3906_v62 = vld [vmem:[%s4594_s2 + $0x1b8] sm:$0xff]  }
 0x118   :  { %3517 = vmatprep.subr.bf16.mxu1 %v3890_v63 }
 0x11b   :  { %3518 = vmatpush3.bf16.msra.mxu1 %v3890_v63  ;;  %v3907_v63 = vld [vmem:[%s4594_s2 + $0x140] sm:$0xff]  }
 0x1d1   :  { %v3457_v22 = vpop.f32.mrb[0].mxu1 }
 0x1d2   :  { %v363_v23 = vpop.f32.mrb[1].mxu1  ;;  %v428_v25 = vmax.f32 %v3457_v22, 0.0 }
 0x1d3   :  { %v3458_v24 = vpop.f32.mrb[2].mxu1  ;;  %v426_v28 = vmax.f32 %v363_v23, 0.0 }
 0x1d4   :  { %v429_v26 = vmax.f32 %v3458_v24, 0.0  ;;  %v366_v27 = vpop.f32.mrb[3].mxu1 }
 0x1d5   :  { %v427_v29 = vmax.f32 %v366_v27, 0.0 }
 0x1d6   :  { %v443_v30 = vpack.c.bf16 %v429_v26, %v428_v25 }
 0x1d7   :  { %v442_v31 = vpack.c.bf16 %v427_v29, %v426_v28 }
 0x1d9   :  { %v3461_v32 = vpop.f32.mrb[4].mxu1  ;;  %3487 = vmatprep.mubr.bf16.mxu0 %v442_v31 }
 0x1da   :  { %v379_v33 = vpop.f32.mrb[5].mxu1  ;;  %3488 = vmatmul.mubr.bf16.vlgmr.msra.gmra.mrb[16].mxu0 %v443_v30  ;;  %v432_v35 = vmax.f32 %v3461_v32, 0.0 }
 0x1db   :  { %v3462_v34 = vpop.f32.mrb[6].mxu1  ;;  %v430_v38 = vmax.f32 %v379_v33, 0.0  ;;  %3536 = vmatpush3.bf16.msra.mxu0 %v3891_v0  ;;  %v3908_v0 = vld [vmem:[%s4594_s2 + $0x148] sm:$0xff]  }
 0x1dc   :  { %v433_v36 = vmax.f32 %v3462_v34, 0.0  ;;  %v382_v37 = vpop.f32.mrb[7].mxu1  ;;  %3537 = vmatprep.subr.bf16.mxu0 %v3892_v1 }
 0x1dd   :  { %v431_v39 = vmax.f32 %v382_v37, 0.0 }
 0x1de   :  { %v445_v40 = vpack.c.bf16 %v433_v36, %v432_v35 }
 0x1df   :  { %v444_v41 = vpack.c.bf16 %v431_v39, %v430_v38  ;;  %3538 = vmatpush3.bf16.msra.mxu0 %v3892_v1  ;;  %v3909_v1 = vld [vmem:[%s4594_s2 + $0x150] sm:$0xff]  }
 0x1e0   :  { %3539 = vmatprep.subr.bf16.mxu0 %v3893_v2 }
 0x1e1   :  { %v3465_v42 = vpop.f32.mrb[8].mxu1  ;;  %3491 = vmatprep.mubr.bf16.mxu0 %v444_v41 }
 0x1e2   :  { %v395_v43 = vpop.f32.mrb[9].mxu1  ;;  %3492 = vmatmul.mubr.bf16.gmra.mrb[20].mxu0 %v445_v40  ;;  %v436_v45 = vmax.f32 %v3465_v42, 0.0 }
 0x1e3   :  { %v3466_v44 = vpop.f32.mrb[10].mxu1  ;;  %v434_v48 = vmax.f32 %v395_v43, 0.0  ;;  %3540 = vmatpush3.bf16.msra.mxu0 %v3893_v2  ;;  %v3910_v2 = vld [vmem:[%s4594_s2 + $0x158] sm:$0xff]  }
 0x1e4   :  { %v437_v46 = vmax.f32 %v3466_v44, 0.0  ;;  %v398_v47 = vpop.f32.mrb[11].mxu1  ;;  %3541 = vmatprep.subr.bf16.mxu0 %v3894_v3 }
 0x1e5   :  { %v435_v49 = vmax.f32 %v398_v47, 0.0 }
 0x1e6   :  { %v447_v50 = vpack.c.bf16 %v437_v46, %v436_v45 }
 0x1e7   :  { %v446_v51 = vpack.c.bf16 %v435_v49, %v434_v48  ;;  %3542 = vmatpush3.bf16.msra.mxu0 %v3894_v3 }
 0x1e8   :  { %3543 = vmatprep.subr.bf16.mxu0 %v3895_v5 }
 0x1e9   :  { %v3469_v52 = vpop.f32.mrb[12].mxu1  ;;  %3495 = vmatprep.mubr.bf16.mxu0 %v446_v51 }
 0x1ea   :  { %v411_v53 = vpop.f32.mrb[13].mxu1  ;;  %3496 = vmatmul.mubr.bf16.gmra.mrb[24].mxu0 %v447_v50  ;;  %v440_v55 = vmax.f32 %v3469_v52, 0.0 }
 0x1eb   :  { %v3470_v54 = vpop.f32.mrb[14].mxu1  ;;  %v438_v58 = vmax.f32 %v411_v53, 0.0  ;;  %3544 = vmatpush3.bf16.msra.mxu0 %v3895_v5 }
 0x1ec   :  { %v441_v56 = vmax.f32 %v3470_v54, 0.0  ;;  %v414_v57 = vpop.f32.mrb[15].mxu1  ;;  %3545 = vmatprep.subr.bf16.mxu0 %v3896_v6  ;;  %v3897_v54 = vld [vmem:[%s4594_s2 + $0x130] sm:$0xff]  }
 0x1ed   :  { %v439_v59 = vmax.f32 %v414_v57, 0.0  ;;  %v3901_v57 = vld [vmem:[%s4594_s2 + $0x190] sm:$0xff]  }
 0x1ee   :  { %v449_v60 = vpack.c.bf16 %v441_v56, %v440_v55  ;;  %v3898_v55 = vld [vmem:[%s4594_s2 + $0x138] sm:$0xff]   ;;  %v3899_v56 = vld [vmem:[%s4594_s2 + $0x180] sm:$0xff]  }
 0x1ef   :  { %v448_v61 = vpack.c.bf16 %v439_v59, %v438_v58  ;;  %3546 = vmatpush3.bf16.msra.mxu0 %v3896_v6  ;;  %3567 = vmatprep.subr.bf16.mxu1 %v3899_v56  ;;  %v3902_v58 = vld [vmem:[%s4594_s2 + $0x198] sm:$0xff]   ;;  %v3903_v59 = vld [vmem:[%s4594_s2 + $0x1a0] sm:$0xff]  }
 0x1f0   :  { %3547 = vmatprep.subr.bf16.mxu0 %v3897_v54 }
 0x1f1   :  { %3499 = vmatprep.mubr.bf16.mxu0 %v448_v61  ;;  %v3905_v61 = vld [vmem:[%s4594_s2 + $0x1b0] sm:$0xff]  }
 0x1f2   :  { %3500 = vmatmul.mubr.bf16.gmra.mrb[28].mxu0 %v449_v60  ;;  %v3904_v60 = vld [vmem:[%s4594_s2 + $0x1a8] sm:$0xff]  }
 0x1f3   :  { %3548 = vmatpush3.bf16.msra.mxu0 %v3897_v54 }
 0x1f4   :  { %3549 = vmatprep.subr.bf16.mxu0 %v3898_v55 }
 0x1f7   :  { %3550 = vmatpush3.bf16.msra.mxu0 %v3898_v55 }
 0x2ad   :  { %v3489_v7 = vpop.f32.mrb[16].mxu0 }
 0x2ae   :  { %v549_v8 = vpop.f32.mrb[17].mxu0  ;;  %v614_v10 = vmax.f32 %v3489_v7, 0.0 }
 0x2af   :  { %v3490_v9 = vpop.f32.mrb[18].mxu0  ;;  %v612_v13 = vmax.f32 %v549_v8, 0.0 }
 0x2b0   :  { %v615_v11 = vmax.f32 %v3490_v9, 0.0  ;;  %v552_v12 = vpop.f32.mrb[19].mxu0 }
 0x2b1   :  { %v613_v16 = vmax.f32 %v552_v12, 0.0 }
 0x2b2   :  { %v629_v22 = vpack.c.bf16 %v615_v11, %v614_v10 }
 0x2b3   :  { %v628_v23 = vpack.c.bf16 %v613_v16, %v612_v13 }
 0x2b5   :  { %v3493_v24 = vpop.f32.mrb[20].mxu0  ;;  %3519 = vmatprep.mubr.bf16.mxu1 %v628_v23 }
 0x2b6   :  { %v565_v25 = vpop.f32.mrb[21].mxu0  ;;  %3520 = vmatmul.mubr.bf16.vlgmr.msra.gmra.mrb[16].mxu1 %v629_v22  ;;  %v618_v27 = vmax.f32 %v3493_v24, 0.0 }
 0x2b7   :  { %v3494_v26 = vpop.f32.mrb[22].mxu0  ;;  %v616_v30 = vmax.f32 %v565_v25, 0.0  ;;  %3568 = vmatpush3.bf16.msra.mxu1 %v3899_v56 }
 0x2b8   :  { %v619_v28 = vmax.f32 %v3494_v26, 0.0  ;;  %v568_v29 = vpop.f32.mrb[23].mxu0 }
 0x2b9   :  { %v617_v31 = vmax.f32 %v568_v29, 0.0 }
 0x2ba   :  { %v631_v32 = vpack.c.bf16 %v619_v28, %v618_v27 }
 0x2bb   :  { %v630_v33 = vpack.c.bf16 %v617_v31, %v616_v30 }
 0x2bd   :  { %v3497_v34 = vpop.f32.mrb[24].mxu0  ;;  %3523 = vmatprep.mubr.bf16.mxu1 %v630_v33 }
 0x2be   :  { %v581_v35 = vpop.f32.mrb[25].mxu0  ;;  %3524 = vmatmul.mubr.bf16.gmra.mrb[20].mxu1 %v631_v32  ;;  %v622_v37 = vmax.f32 %v3497_v34, 0.0 }
 0x2bf   :  { %v3498_v36 = vpop.f32.mrb[26].mxu0  ;;  %v620_v40 = vmax.f32 %v581_v35, 0.0 }
 0x2c0   :  { %v623_v38 = vmax.f32 %v3498_v36, 0.0  ;;  %v584_v39 = vpop.f32.mrb[27].mxu0 }
 0x2c1   :  { %v621_v41 = vmax.f32 %v584_v39, 0.0 }
 0x2c2   :  { %v633_v42 = vpack.c.bf16 %v623_v38, %v622_v37 }
 0x2c3   :  { %v632_v43 = vpack.c.bf16 %v621_v41, %v620_v40 }
 0x2c5   :  { %v3501_v44 = vpop.f32.mrb[28].mxu0  ;;  %3527 = vmatprep.mubr.bf16.mxu1 %v632_v43 }
 0x2c6   :  { %v597_v45 = vpop.f32.mrb[29].mxu0  ;;  %3528 = vmatmul.mubr.bf16.gmra.mrb[24].mxu1 %v633_v42  ;;  %v626_v47 = vmax.f32 %v3501_v44, 0.0 }
 0x2c7   :  { %v3502_v46 = vpop.f32.mrb[30].mxu0  ;;  %v624_v50 = vmax.f32 %v597_v45, 0.0 }
 0x2c8   :  { %v627_v48 = vmax.f32 %v3502_v46, 0.0  ;;  %v600_v49 = vpop.f32.mrb[31].mxu0  ;;  %v3913_v46 = vld [vmem:[%s4594_s2 + $0x170] sm:$0xff]  }
 0x2c9   :  { %v625_v51 = vmax.f32 %v600_v49, 0.0  ;;  %v3916_v49 = vld [vmem:[%s4594_s2 + $0x1c8] sm:$0xff]  }
 0x2ca   :  { %v635_v52 = vpack.c.bf16 %v627_v48, %v626_v47  ;;  %v3914_v47 = vld [vmem:[%s4594_s2 + $0x178] sm:$0xff]   ;;  %v3915_v48 = vld [vmem:[%s4594_s2 + $0x1c0] sm:$0xff]  }
 0x2cb   :  { %v634_v53 = vpack.c.bf16 %v625_v51, %v624_v50  ;;  %3631 = vmatprep.subr.bf16.mxu0 %v3915_v48  ;;  %v3917_v50 = vld [vmem:[%s4594_s2 + $0x1d0] sm:$0xff]   ;;  %v3918_v51 = vld [vmem:[%s4594_s2 + $0x1d8] sm:$0xff]  }
 0x2cd   :  { %3531 = vmatprep.mubr.bf16.mxu1 %v634_v53  ;;  %v3920_v53 = vld [vmem:[%s4594_s2 + $0x1e8] sm:$0xff]  }
 0x2ce   :  { %3532 = vmatmul.mubr.bf16.gmra.mrb[28].mxu1 %v635_v52  ;;  %v3919_v52 = vld [vmem:[%s4594_s2 + $0x1e0] sm:$0xff]  }
 0x2cf   :  { %3583 = vmatprep.mubr.bf16.mxu1 %v4121_v4  ;;  %v3900_v4 = vld [vmem:[%s4594_s2 + $0x188] sm:$0xff]  }
 0x2d0   :  { %3569 = vmatprep.subr.bf16.mxu1 %v3900_v4 }
 0x2d1   :  { %3570 = vmatpush3.bf16.msra.mxu1 %v3900_v4 }
 0x2d2   :  { %3571 = vmatprep.subr.bf16.mxu1 %v3901_v57 }
 0x2d5   :  { %3572 = vmatpush3.bf16.msra.mxu1 %v3901_v57 }
 0x2d6   :  { %3573 = vmatprep.subr.bf16.mxu1 %v3902_v58 }
 0x2d9   :  { %3574 = vmatpush3.bf16.msra.mxu1 %v3902_v58 }
 0x2da   :  { %3575 = vmatprep.subr.bf16.mxu1 %v3903_v59 }
 0x2dd   :  { %3576 = vmatpush3.bf16.msra.mxu1 %v3903_v59 }
 0x2de   :  { %3577 = vmatprep.subr.bf16.mxu1 %v3904_v60 }
 0x2e1   :  { %3578 = vmatpush3.bf16.msra.mxu1 %v3904_v60 }
 0x2e2   :  { %3579 = vmatprep.subr.bf16.mxu1 %v3905_v61 }
 0x2e5   :  { %3580 = vmatpush3.bf16.msra.mxu1 %v3905_v61 }
 0x2e6   :  { %3581 = vmatprep.subr.bf16.mxu1 %v3906_v62 }
 0x2e9   :  { %3582 = vmatpush3.bf16.msra.mxu1 %v3906_v62 }
 0x2ea   :  { %3599 = vmatprep.subr.bf16.mxu1 %v3907_v63 }
 0x2ec   :  { %3584 = vmatmul.mubr.bf16.vlgmr.msra.gmra.mrb[32].mxu1 %v4154_v14  ;;  %v3911_v14 = vld [vmem:[%s4594_s2 + $0x160] sm:$0xff]  }
 0x2ed   :  { %3600 = vmatpush3.bf16.msra.mxu1 %v3907_v63  ;;  %3587 = vmatprep.mubr.bf16.mxu1 %v4159_v15  ;;  %v3912_v15 = vld [vmem:[%s4594_s2 + $0x168] sm:$0xff]  }
 0x2ee   :  { %3601 = vmatprep.subr.bf16.mxu1 %v3908_v0 }
 0x2f1   :  { %3602 = vmatpush3.bf16.msra.mxu1 %v3908_v0 }
 0x2f2   :  { %3603 = vmatprep.subr.bf16.mxu1 %v3909_v1 }
 0x2f4   :  { %3588 = vmatmul.mubr.bf16.gmra.mrb[36].mxu1 %v4169_v17 }
 0x2f5   :  { %3604 = vmatpush3.bf16.msra.mxu1 %v3909_v1  ;;  %3591 = vmatprep.mubr.bf16.mxu1 %v4174_v18 }
 0x2f6   :  { %3605 = vmatprep.subr.bf16.mxu1 %v3910_v2 }
 0x2f9   :  { %3606 = vmatpush3.bf16.msra.mxu1 %v3910_v2 }
 0x2fa   :  { %3607 = vmatprep.subr.bf16.mxu1 %v3911_v14 }
 0x2fc   :  { %3592 = vmatmul.mubr.bf16.gmra.mrb[40].mxu1 %v4181_v19 }
 0x2fd   :  { %3608 = vmatpush3.bf16.msra.mxu1 %v3911_v14  ;;  %3595 = vmatprep.mubr.bf16.mxu1 %v4186_v20 }
 0x2fe   :  { %3609 = vmatprep.subr.bf16.mxu1 %v3912_v15 }
 0x301   :  { %3610 = vmatpush3.bf16.msra.mxu1 %v3912_v15 }
 0x302   :  { %3611 = vmatprep.subr.bf16.mxu1 %v3913_v46 }
 0x304   :  { %3596 = vmatmul.mubr.bf16.gmra.mrb[44].mxu1 %v4193_v21 }
 0x305   :  { %3612 = vmatpush3.bf16.msra.mxu1 %v3913_v46 }
 0x306   :  { %3613 = vmatprep.subr.bf16.mxu1 %v3914_v47 }
 0x309   :  { %3614 = vmatpush3.bf16.msra.mxu1 %v3914_v47 }
 0x389   :  { %v3521_v17 = vpop.f32.mrb[16].mxu1 }
 0x38a   :  { %v735_v18 = vpop.f32.mrb[17].mxu1  ;;  %v800_v5 = vmax.f32 %v3521_v17, 0.0 }
 0x38b   :  { %v3522_v3 = vpop.f32.mrb[18].mxu1  ;;  %v798_v8 = vmax.f32 %v735_v18, 0.0 }
 0x38c   :  { %v801_v6 = vmax.f32 %v3522_v3, 0.0  ;;  %v738_v7 = vpop.f32.mrb[19].mxu1 }
 0x38d   :  { %v799_v9 = vmax.f32 %v738_v7, 0.0 }
 0x38e   :  { %v815_v10 = vpack.c.bf16 %v801_v6, %v800_v5 }
 0x38f   :  { %v814_v11 = vpack.c.bf16 %v799_v9, %v798_v8 }
 0x391   :  { %v3525_v12 = vpop.f32.mrb[20].mxu1  ;;  %3551 = vmatprep.mubr.bf16.mxu0 %v814_v11 }
 0x392   :  { %v751_v19 = vpop.f32.mrb[21].mxu1  ;;  %3552 = vmatmul.mubr.bf16.vlgmr.msra.gmra.mrb[32].mxu0 %v815_v10  ;;  %v804_v20 = vmax.f32 %v3525_v12, 0.0 }
 0x393   :  { %v3526_v13 = vpop.f32.mrb[22].mxu1  ;;  %v802_v23 = vmax.f32 %v751_v19, 0.0  ;;  %3632 = vmatpush3.bf16.msra.mxu0 %v3915_v48 }
 0x394   :  { %v805_v16 = vmax.f32 %v3526_v13, 0.0  ;;  %v754_v22 = vpop.f32.mrb[23].mxu1  ;;  %3633 = vmatprep.subr.bf16.mxu0 %v3916_v49 }
 0x395   :  { %v803_v21 = vmax.f32 %v754_v22, 0.0 }
 0x396   :  { %v817_v24 = vpack.c.bf16 %v805_v16, %v804_v20 }
 0x397   :  { %v816_v25 = vpack.c.bf16 %v803_v21, %v802_v23  ;;  %3634 = vmatpush3.bf16.msra.mxu0 %v3916_v49 }
 0x398   :  { %3635 = vmatprep.subr.bf16.mxu0 %v3917_v50 }
 0x399   :  { %v3529_v26 = vpop.f32.mrb[24].mxu1  ;;  %3555 = vmatprep.mubr.bf16.mxu0 %v816_v25 }
 0x39a   :  { %v767_v27 = vpop.f32.mrb[25].mxu1  ;;  %3556 = vmatmul.mubr.bf16.gmra.mrb[36].mxu0 %v817_v24  ;;  %v808_v29 = vmax.f32 %v3529_v26, 0.0 }
 0x39b   :  { %v3530_v28 = vpop.f32.mrb[26].mxu1  ;;  %v806_v32 = vmax.f32 %v767_v27, 0.0  ;;  %3636 = vmatpush3.bf16.msra.mxu0 %v3917_v50  ;;  %v3925_v50 = vld [vmem:[%s4594_s2 + $0x210] sm:$0xff]  }
 0x39c   :  { %v809_v30 = vmax.f32 %v3530_v28, 0.0  ;;  %v770_v31 = vpop.f32.mrb[27].mxu1  ;;  %3637 = vmatprep.subr.bf16.mxu0 %v3918_v51 }
 0x39d   :  { %v807_v33 = vmax.f32 %v770_v31, 0.0  ;;  %v3922_v31 = vld [vmem:[%s4594_s2 + $0x1f8] sm:$0xff]  }
 0x39e   :  { %v819_v34 = vpack.c.bf16 %v809_v30, %v808_v29  ;;  %v3921_v30 = vld [vmem:[%s4594_s2 + $0x1f0] sm:$0xff]  }
 0x39f   :  { %v818_v35 = vpack.c.bf16 %v807_v33, %v806_v32  ;;  %3638 = vmatpush3.bf16.msra.mxu0 %v3918_v51  ;;  %v3923_v32 = vld [vmem:[%s4594_s2 + $0x200] sm:$0xff]  }
 0x3a0   :  { %3639 = vmatprep.subr.bf16.mxu0 %v3919_v52 }
 0x3a1   :  { %v3533_v36 = vpop.f32.mrb[28].mxu1  ;;  %3559 = vmatprep.mubr.bf16.mxu0 %v818_v35 }
 0x3a2   :  { %v783_v37 = vpop.f32.mrb[29].mxu1  ;;  %3560 = vmatmul.mubr.bf16.gmra.mrb[40].mxu0 %v819_v34  ;;  %v812_v39 = vmax.f32 %v3533_v36, 0.0 }
 0x3a3   :  { %v3534_v38 = vpop.f32.mrb[30].mxu1  ;;  %v810_v42 = vmax.f32 %v783_v37, 0.0  ;;  %3640 = vmatpush3.bf16.msra.mxu0 %v3919_v52 }
 0x3a4   :  { %v813_v40 = vmax.f32 %v3534_v38, 0.0  ;;  %v786_v41 = vpop.f32.mrb[31].mxu1  ;;  %3641 = vmatprep.subr.bf16.mxu0 %v3920_v53 }
 0x3a5   :  { %v811_v43 = vmax.f32 %v786_v41, 0.0 }
 0x3a6   :  { %v821_v44 = vpack.c.bf16 %v813_v40, %v812_v39 }
 0x3a7   :  { %v820_v45 = vpack.c.bf16 %v811_v43, %v810_v42  ;;  %3642 = vmatpush3.bf16.msra.mxu0 %v3920_v53  ;;  %v3924_v43 = vld [vmem:[%s4594_s2 + $0x208] sm:$0xff]  }
 0x3a8   :  { %3643 = vmatprep.subr.bf16.mxu0 %v3921_v30 }
 0x3a9   :  { %3563 = vmatprep.mubr.bf16.mxu0 %v820_v45 }
 0x3aa   :  { %3564 = vmatmul.mubr.bf16.gmra.mrb[44].mxu0 %v821_v44 }
 0x3ab   :  { %3644 = vmatpush3.bf16.msra.mxu0 %v3921_v30 }
 0x3ac   :  { %3645 = vmatprep.subr.bf16.mxu0 %v3922_v31 }
 0x3af   :  { %3646 = vmatpush3.bf16.msra.mxu0 %v3922_v31 }
 0x3b0   :  { %3663 = vmatprep.subr.bf16.mxu0 %v3923_v32 }
 0x465   :  { %v3553_v54 = vpop.f32.mrb[32].mxu0 }
 0x466   :  { %v921_v55 = vpop.f32.mrb[33].mxu0  ;;  %v986_v4 = vmax.f32 %v3553_v54, 0.0 }
 0x467   :  { %v3554_v56 = vpop.f32.mrb[34].mxu0  ;;  %v984_v59 = vmax.f32 %v921_v55, 0.0  ;;  %v3926_v55 = vld [vmem:[%s4594_s2 + $0x218] sm:$0xff]  }
 0x468   :  { %v987_v57 = vmax.f32 %v3554_v56, 0.0  ;;  %v924_v58 = vpop.f32.mrb[35].mxu0 }
 0x469   :  { %v985_v60 = vmax.f32 %v924_v58, 0.0 }
 0x46a   :  { %v1001_v61 = vpack.c.bf16 %v987_v57, %v986_v4 }
 0x46b   :  { %v1000_v62 = vpack.c.bf16 %v985_v60, %v984_v59 }
 0x46d   :  { %v3557_v63 = vpop.f32.mrb[36].mxu0  ;;  %3615 = vmatprep.mubr.bf16.mxu1 %v1000_v62 }
 0x46e   :  { %v937_v0 = vpop.f32.mrb[37].mxu0  ;;  %3616 = vmatmul.mubr.bf16.vlgmr.msra.gmra.mrb[32].mxu1 %v1001_v61  ;;  %v990_v2 = vmax.f32 %v3557_v63, 0.0  ;;  %v3927_v61 = vld [vmem:[%s4594_s2 + $0x220] sm:$0xff]  }
 0x46f   :  { %v3558_v1 = vpop.f32.mrb[38].mxu0  ;;  %v988_v17 = vmax.f32 %v937_v0, 0.0 }
 0x470   :  { %v991_v14 = vmax.f32 %v3558_v1, 0.0  ;;  %v940_v15 = vpop.f32.mrb[39].mxu0 }
 0x471   :  { %v989_v18 = vmax.f32 %v940_v15, 0.0 }
 0x472   :  { %v1003_v3 = vpack.c.bf16 %v991_v14, %v990_v2  ;;  %v3928_v2 = vld [vmem:[%s4594_s2 + $0x228] sm:$0xff]  }
 0x473   :  { %v1002_v5 = vpack.c.bf16 %v989_v18, %v988_v17 }
 0x475   :  { %v3561_v6 = vpop.f32.mrb[40].mxu0  ;;  %3619 = vmatprep.mubr.bf16.mxu1 %v1002_v5 }
 0x476   :  { %v953_v7 = vpop.f32.mrb[41].mxu0  ;;  %3620 = vmatmul.mubr.bf16.gmra.mrb[36].mxu1 %v1003_v3  ;;  %v994_v9 = vmax.f32 %v3561_v6, 0.0 }
 0x477   :  { %v3562_v8 = vpop.f32.mrb[42].mxu0  ;;  %v992_v12 = vmax.f32 %v953_v7, 0.0 }
 0x478   :  { %v995_v10 = vmax.f32 %v3562_v8, 0.0  ;;  %v956_v11 = vpop.f32.mrb[43].mxu0 }
 0x479   :  { %v993_v19 = vmax.f32 %v956_v11, 0.0  ;;  %v3930_v11 = vld [vmem:[%s4594_s2 + $0x238] sm:$0xff]  }
 0x47a   :  { %v1005_v13 = vpack.c.bf16 %v995_v10, %v994_v9  ;;  %v3929_v10 = vld [vmem:[%s4594_s2 + $0x230] sm:$0xff]  }
 0x47b   :  { %v1004_v20 = vpack.c.bf16 %v993_v19, %v992_v12  ;;  %v3931_v12 = vld [vmem:[%s4594_s2 + $0x240] sm:$0xff]   ;;  %v3932_v19 = vld [vmem:[%s4594_s2 + $0x248] sm:$0xff]  }
 0x47c   :  { %3695 = vmatprep.subr.bf16.mxu1 %v3931_v12 }
 0x47d   :  { %v3565_v16 = vpop.f32.mrb[44].mxu0  ;;  %3623 = vmatprep.mubr.bf16.mxu1 %v1004_v20  ;;  %3696 = vmatpush3.bf16.msra.mxu1 %v3931_v12  ;;  %v3934_v20 = vld [vmem:[%s4594_s2 + $0x258] sm:$0xff]  }
 0x47e   :  { %v969_v22 = vpop.f32.mrb[45].mxu0  ;;  %3624 = vmatmul.mubr.bf16.gmra.mrb[40].mxu1 %v1005_v13  ;;  %v998_v21 = vmax.f32 %v3565_v16, 0.0  ;;  %3697 = vmatprep.subr.bf16.mxu1 %v3932_v19  ;;  %v3933_v13 = vld [vmem:[%s4594_s2 + $0x250] sm:$0xff]   ;;  %v3935_v16 = vld [vmem:[%s4594_s2 + $0x260] sm:$0xff]  }
 0x47f   :  { %v3566_v23 = vpop.f32.mrb[46].mxu0  ;;  %v996_v26 = vmax.f32 %v969_v22, 0.0  ;;  %v3936_v22 = vld [vmem:[%s4594_s2 + $0x268] sm:$0xff]  }
 0x480   :  { %v999_v24 = vmax.f32 %v3566_v23, 0.0  ;;  %v972_v25 = vpop.f32.mrb[47].mxu0 }
 0x481   :  { %v997_v27 = vmax.f32 %v972_v25, 0.0  ;;  %3698 = vmatpush3.bf16.msra.mxu1 %v3932_v19 }
 0x482   :  { %v1007_v28 = vpack.c.bf16 %v999_v24, %v998_v21  ;;  %3699 = vmatprep.subr.bf16.mxu1 %v3933_v13 }
 0x483   :  { %v1006_v29 = vpack.c.bf16 %v997_v27, %v996_v26 }
 0x485   :  { %3627 = vmatprep.mubr.bf16.mxu1 %v1006_v29  ;;  %3700 = vmatpush3.bf16.msra.mxu1 %v3933_v13 }
 0x486   :  { %3628 = vmatmul.mubr.bf16.gmra.mrb[44].mxu1 %v1007_v28  ;;  %3701 = vmatprep.subr.bf16.mxu1 %v3934_v20 }
 0x489   :  { %3702 = vmatpush3.bf16.msra.mxu1 %v3934_v20 }
 0x48a   :  { %3703 = vmatprep.subr.bf16.mxu1 %v3935_v16 }
 0x48d   :  { %3704 = vmatpush3.bf16.msra.mxu1 %v3935_v16 }
 0x48e   :  { %3705 = vmatprep.subr.bf16.mxu1 %v3936_v22 }
 0x491   :  { %3706 = vmatpush3.bf16.msra.mxu1 %v3936_v22 }
 0x541   :  { %v3617_v33 = vpop.f32.mrb[32].mxu1 }
 0x542   :  { %v1269_v34 = vpop.f32.mrb[33].mxu1  ;;  %v1334_v36 = vmax.f32 %v3617_v33, 0.0 }
 0x543   :  { %v3618_v35 = vpop.f32.mrb[34].mxu1  ;;  %v1332_v39 = vmax.f32 %v1269_v34, 0.0 }
 0x544   :  { %v1335_v37 = vmax.f32 %v3618_v35, 0.0  ;;  %v1272_v38 = vpop.f32.mrb[35].mxu1 }
 0x545   :  { %v1333_v40 = vmax.f32 %v1272_v38, 0.0 }
 0x546   :  { %v1349_v41 = vpack.c.bf16 %v1335_v37, %v1334_v36 }
 0x547   :  { %v1348_v42 = vpack.c.bf16 %v1333_v40, %v1332_v39 }
 0x549   :  { %v3621_v44 = vpop.f32.mrb[36].mxu1  ;;  %3647 = vmatprep.mubr.bf16.mxu0 %v1348_v42 }
 0x54a   :  { %v1285_v45 = vpop.f32.mrb[37].mxu1  ;;  %3648 = vmatmul.mubr.bf16.vlgmr.msra.gmra.mrb[48].mxu0 %v1349_v41  ;;  %v1338_v47 = vmax.f32 %v3621_v44, 0.0 }
 0x54b   :  { %v3622_v46 = vpop.f32.mrb[38].mxu1  ;;  %3664 = vmatpush3.bf16.msra.mxu0 %v3923_v32  ;;  %v1336_v51 = vmax.f32 %v1285_v45, 0.0 }
 0x54c   :  { %v1339_v48 = vmax.f32 %v3622_v46, 0.0  ;;  %v1288_v49 = vpop.f32.mrb[39].mxu1  ;;  %3665 = vmatprep.subr.bf16.mxu0 %v3924_v43 }
 0x54d   :  { %v1337_v52 = vmax.f32 %v1288_v49, 0.0 }
 0x54e   :  { %v1351_v53 = vpack.c.bf16 %v1339_v48, %v1338_v47 }
 0x54f   :  { %v1350_v54 = vpack.c.bf16 %v1337_v52, %v1336_v51  ;;  %3666 = vmatpush3.bf16.msra.mxu0 %v3924_v43 }
 0x550   :  { %3667 = vmatprep.subr.bf16.mxu0 %v3925_v50 }
 0x551   :  { %v3625_v56 = vpop.f32.mrb[40].mxu1  ;;  %3651 = vmatprep.mubr.bf16.mxu0 %v1350_v54 }
 0x552   :  { %v1301_v4 = vpop.f32.mrb[41].mxu1  ;;  %3652 = vmatmul.mubr.bf16.gmra.mrb[52].mxu0 %v1351_v53  ;;  %v1342_v58 = vmax.f32 %v3625_v56, 0.0 }
 0x553   :  { %v3626_v57 = vpop.f32.mrb[42].mxu1  ;;  %3668 = vmatpush3.bf16.msra.mxu0 %v3925_v50  ;;  %v1340_v62 = vmax.f32 %v1301_v4, 0.0 }
 0x554   :  { %v1343_v59 = vmax.f32 %v3626_v57, 0.0  ;;  %v1304_v60 = vpop.f32.mrb[43].mxu1  ;;  %3669 = vmatprep.subr.bf16.mxu0 %v3926_v55 }
 0x555   :  { %v1341_v63 = vmax.f32 %v1304_v60, 0.0 }
 0x556   :  { %v1353_v0 = vpack.c.bf16 %v1343_v59, %v1342_v58 }
 0x557   :  { %v1352_v1 = vpack.c.bf16 %v1341_v63, %v1340_v62  ;;  %3670 = vmatpush3.bf16.msra.mxu0 %v3926_v55  ;;  %v3938_v62 = vld [vmem:[%s4594_s2 + $0x278] sm:$0xff]   ;;  %v3939_v63 = vld [vmem:[%s4594_s2 + $0x280] sm:$0xff]  }
 0x558   :  { %3671 = vmatprep.subr.bf16.mxu0 %v3927_v61 }
 0x559   :  { %v3629_v14 = vpop.f32.mrb[44].mxu1  ;;  %3655 = vmatprep.mubr.bf16.mxu0 %v1352_v1  ;;  %v3941_v1 = vld [vmem:[%s4594_s2 + $0x290] sm:$0xff]  }
 0x55a   :  { %v1317_v15 = vpop.f32.mrb[45].mxu1  ;;  %3656 = vmatmul.mubr.bf16.gmra.mrb[56].mxu0 %v1353_v0  ;;  %v1346_v18 = vmax.f32 %v3629_v14, 0.0  ;;  %v3940_v0 = vld [vmem:[%s4594_s2 + $0x288] sm:$0xff]   ;;  %v3943_v14 = vld [vmem:[%s4594_s2 + $0x2a0] sm:$0xff]  }
 0x55b   :  { %v3630_v17 = vpop.f32.mrb[46].mxu1  ;;  %3672 = vmatpush3.bf16.msra.mxu0 %v3927_v61  ;;  %v1344_v6 = vmax.f32 %v1317_v15, 0.0  ;;  %v3937_v61 = vld [vmem:[%s4594_s2 + $0x270] sm:$0xff]   ;;  %v3944_v15 = vld [vmem:[%s4594_s2 + $0x2a8] sm:$0xff]  }
 0x55c   :  { %v1347_v3 = vmax.f32 %v3630_v17, 0.0  ;;  %v1320_v5 = vpop.f32.mrb[47].mxu1  ;;  %3673 = vmatprep.subr.bf16.mxu0 %v3928_v2  ;;  %3707 = vmatprep.subr.bf16.mxu1 %v3937_v61  ;;  %v3945_v17 = vld [vmem:[%s4594_s2 + $0x2b0] sm:$0xff]  }
 0x55d   :  { %v1345_v7 = vmax.f32 %v1320_v5, 0.0  ;;  %3708 = vmatpush3.bf16.msra.mxu1 %v3937_v61 }
 0x55e   :  { %v1355_v8 = vpack.c.bf16 %v1347_v3, %v1346_v18  ;;  %3709 = vmatprep.subr.bf16.mxu1 %v3938_v62 }
 0x55f   :  { %v1354_v9 = vpack.c.bf16 %v1345_v7, %v1344_v6  ;;  %3674 = vmatpush3.bf16.msra.mxu0 %v3928_v2  ;;  %v3942_v2 = vld [vmem:[%s4594_s2 + $0x298] sm:$0xff]  }
 0x560   :  { %3675 = vmatprep.subr.bf16.mxu0 %v3929_v10 }
 0x561   :  { %3659 = vmatprep.mubr.bf16.mxu0 %v1354_v9  ;;  %3710 = vmatpush3.bf16.msra.mxu1 %v3938_v62 }
 0x562   :  { %3660 = vmatmul.mubr.bf16.gmra.mrb[60].mxu0 %v1355_v8 }
 0x563   :  { %3676 = vmatpush3.bf16.msra.mxu0 %v3929_v10 }
 0x564   :  { %3677 = vmatprep.subr.bf16.mxu0 %v3930_v11 }
 0x567   :  { %3678 = vmatpush3.bf16.msra.mxu0 %v3930_v11 }
 0x568   :  { %3727 = vmatprep.subr.bf16.mxu0 %v3939_v63 }
 0x61d   :  { %v3649_v23 = vpop.f32.mrb[48].mxu0 }
 0x61e   :  { %v1455_v21 = vpop.f32.mrb[49].mxu0  ;;  %v1520_v25 = vmax.f32 %v3649_v23, 0.0 }
 0x61f   :  { %v3650_v24 = vpop.f32.mrb[50].mxu0  ;;  %v1518_v28 = vmax.f32 %v1455_v21, 0.0 }
 0x620   :  { %v1521_v26 = vmax.f32 %v3650_v24, 0.0  ;;  %v1458_v27 = vpop.f32.mrb[51].mxu0 }
 0x621   :  { %v1519_v29 = vmax.f32 %v1458_v27, 0.0 }
 0x622   :  { %v1535_v30 = vpack.c.bf16 %v1521_v26, %v1520_v25 }
 0x623   :  { %v1534_v31 = vpack.c.bf16 %v1519_v29, %v1518_v28 }
 0x625   :  { %v3653_v32 = vpop.f32.mrb[52].mxu0  ;;  %3679 = vmatprep.mubr.bf16.mxu0 %v1534_v31 }
 0x626   :  { %v1471_v33 = vpop.f32.mrb[53].mxu0  ;;  %3680 = vmatmul.mubr.bf16.vlgmr.msra.gmra.mrb[64].mxu0 %v1535_v30  ;;  %v1524_v35 = vmax.f32 %v3653_v32, 0.0 }
 0x627   :  { %v3654_v34 = vpop.f32.mrb[54].mxu0  ;;  %v1522_v38 = vmax.f32 %v1471_v33, 0.0  ;;  %3728 = vmatpush3.bf16.msra.mxu0 %v3939_v63 }
 0x628   :  { %v1525_v36 = vmax.f32 %v3654_v34, 0.0  ;;  %v1474_v37 = vpop.f32.mrb[55].mxu0  ;;  %3729 = vmatprep.subr.bf16.mxu0 %v3940_v0 }
 0x629   :  { %v1523_v39 = vmax.f32 %v1474_v37, 0.0 }
 0x62a   :  { %v1537_v40 = vpack.c.bf16 %v1525_v36, %v1524_v35 }
 0x62b   :  { %v1536_v41 = vpack.c.bf16 %v1523_v39, %v1522_v38  ;;  %3730 = vmatpush3.bf16.msra.mxu0 %v3940_v0 }
 0x62c   :  { %3731 = vmatprep.subr.bf16.mxu0 %v3941_v1 }
 0x62d   :  { %v3657_v42 = vpop.f32.mrb[56].mxu0  ;;  %3683 = vmatprep.mubr.bf16.mxu0 %v1536_v41 }
 0x62e   :  { %v1487_v43 = vpop.f32.mrb[57].mxu0  ;;  %3684 = vmatmul.mubr.bf16.gmra.mrb[68].mxu0 %v1537_v40  ;;  %v1528_v45 = vmax.f32 %v3657_v42, 0.0 }
 0x62f   :  { %v3658_v44 = vpop.f32.mrb[58].mxu0  ;;  %v1526_v48 = vmax.f32 %v1487_v43, 0.0  ;;  %3732 = vmatpush3.bf16.msra.mxu0 %v3941_v1 }
 0x630   :  { %v1529_v46 = vmax.f32 %v3658_v44, 0.0  ;;  %v1490_v47 = vpop.f32.mrb[59].mxu0  ;;  %3733 = vmatprep.subr.bf16.mxu0 %v3942_v2 }
 0x631   :  { %v1527_v49 = vmax.f32 %v1490_v47, 0.0  ;;  %v3946_v47 = vld [vmem:[%s4594_s2 + $0x2b8] sm:$0xff]  }
 0x632   :  { %v1539_v50 = vpack.c.bf16 %v1529_v46, %v1528_v45 }
 0x633   :  { %v1538_v51 = vpack.c.bf16 %v1527_v49, %v1526_v48  ;;  %3734 = vmatpush3.bf16.msra.mxu0 %v3942_v2  ;;  %v4084_v48 = vmov 0  }
 0x634   :  { %3735 = vmatprep.subr.bf16.mxu0 %v3943_v14  ;;  %3809 = vset.pattern.permute.xlu0 %v4084_v48 }
 0x635   :  { %v3661_v52 = vpop.f32.mrb[60].mxu0  ;;  %3687 = vmatprep.mubr.bf16.mxu0 %v1538_v51  ;;  %3820 = vset.pattern.permute.xlu1 %v4084_v48 }
 0x636   :  { %v1503_v53 = vpop.f32.mrb[61].mxu0  ;;  %3688 = vmatmul.mubr.bf16.gmra.mrb[72].mxu0 %v1539_v50  ;;  %v1532_v55 = vmax.f32 %v3661_v52, 0.0 }
 0x637   :  { %v3662_v54 = vpop.f32.mrb[62].mxu0  ;;  %v1530_v57 = vmax.f32 %v1503_v53, 0.0  ;;  %3736 = vmatpush3.bf16.msra.mxu0 %v3943_v14 }
 0x638   :  { %v1533_v56 = vmax.f32 %v3662_v54, 0.0  ;;  %v1506_v4 = vpop.f32.mrb[63].mxu0  ;;  %3737 = vmatprep.subr.bf16.mxu0 %v3944_v15 }
 0x639   :  { %v1531_v58 = vmax.f32 %v1506_v4, 0.0 }
 0x63a   :  { %v1541_v59 = vpack.c.bf16 %v1533_v56, %v1532_v55 }
 0x63b   :  { %v1540_v60 = vpack.c.bf16 %v1531_v58, %v1530_v57  ;;  %3738 = vmatpush3.bf16.msra.mxu0 %v3944_v15 }
 0x63c   :  { %3739 = vmatprep.subr.bf16.mxu0 %v3945_v17 }
 0x63d   :  { %3691 = vmatprep.mubr.bf16.mxu0 %v1540_v60 }
 0x63e   :  { %3692 = vmatmul.mubr.bf16.gmra.mrb[76].mxu0 %v1541_v59 }
 0x63f   :  { %3740 = vmatpush3.bf16.msra.mxu0 %v3945_v17 }
 0x640   :  { %3741 = vmatprep.subr.bf16.mxu0 %v3946_v47 }
 0x643   :  { %3742 = vmatpush3.bf16.msra.mxu0 %v3946_v47 }
 0x6f9   :  { %v3681_v18 = vpop.f32.mrb[64].mxu0 }
 0x6fa   :  { %v1641_v3 = vpop.f32.mrb[65].mxu0  ;;  %v1706_v6 = vmax.f32 %v3681_v18, 0.0 }
 0x6fb   :  { %v3682_v5 = vpop.f32.mrb[66].mxu0  ;;  %v1704_v9 = vmax.f32 %v1641_v3, 0.0 }
 0x6fc   :  { %v1707_v7 = vmax.f32 %v3682_v5, 0.0  ;;  %v1644_v8 = vpop.f32.mrb[67].mxu0 }
 0x6fd   :  { %v1705_v10 = vmax.f32 %v1644_v8, 0.0 }
 0x6fe   :  { %v1721_v11 = vpack.c.bf16 %v1707_v7, %v1706_v6 }
 0x6ff   :  { %v1720_v12 = vpack.c.bf16 %v1705_v10, %v1704_v9 }
 0x701   :  { %v3685_v19 = vpop.f32.mrb[68].mxu0  ;;  %3711 = vmatprep.mubr.bf16.mxu1 %v1720_v12 }
 0x702   :  { %v1657_v13 = vpop.f32.mrb[69].mxu0  ;;  %3712 = vmatmul.mubr.bf16.vlgmr.msra.gmra.mrb[48].mxu1 %v1721_v11  ;;  %v1710_v16 = vmax.f32 %v3685_v19, 0.0 }
 0x703   :  { %v3686_v20 = vpop.f32.mrb[70].mxu0  ;;  %v1708_v21 = vmax.f32 %v1657_v13, 0.0 }
 0x704   :  { %v1711_v22 = vmax.f32 %v3686_v20, 0.0  ;;  %v1660_v23 = vpop.f32.mrb[71].mxu0 }
 0x705   :  { %v1709_v24 = vmax.f32 %v1660_v23, 0.0 }
 0x706   :  { %v1723_v25 = vpack.c.bf16 %v1711_v22, %v1710_v16 }
 0x707   :  { %v1722_v26 = vpack.c.bf16 %v1709_v24, %v1708_v21 }
 0x709   :  { %v3689_v27 = vpop.f32.mrb[72].mxu0  ;;  %3715 = vmatprep.mubr.bf16.mxu1 %v1722_v26 }
 0x70a   :  { %v1673_v28 = vpop.f32.mrb[73].mxu0  ;;  %3716 = vmatmul.mubr.bf16.gmra.mrb[52].mxu1 %v1723_v25  ;;  %v1714_v30 = vmax.f32 %v3689_v27, 0.0 }
 0x70b   :  { %v3690_v29 = vpop.f32.mrb[74].mxu0  ;;  %v1712_v33 = vmax.f32 %v1673_v28, 0.0 }
 0x70c   :  { %v1715_v31 = vmax.f32 %v3690_v29, 0.0  ;;  %v1676_v32 = vpop.f32.mrb[75].mxu0 }
 0x70d   :  { %v1713_v34 = vmax.f32 %v1676_v32, 0.0 }
 0x70e   :  { %v1725_v35 = vpack.c.bf16 %v1715_v31, %v1714_v30 }
 0x70f   :  { %v1724_v36 = vpack.c.bf16 %v1713_v34, %v1712_v33 }
 0x711   :  { %v3693_v37 = vpop.f32.mrb[76].mxu0  ;;  %3719 = vmatprep.mubr.bf16.mxu1 %v1724_v36 }
 0x712   :  { %v1689_v38 = vpop.f32.mrb[77].mxu0  ;;  %3720 = vmatmul.mubr.bf16.gmra.mrb[56].mxu1 %v1725_v35  ;;  %v1718_v40 = vmax.f32 %v3693_v37, 0.0 }
 0x713   :  { %v3694_v39 = vpop.f32.mrb[78].mxu0  ;;  %v1716_v43 = vmax.f32 %v1689_v38, 0.0 }
 0x714   :  { %v1719_v41 = vmax.f32 %v3694_v39, 0.0  ;;  %v1692_v42 = vpop.f32.mrb[79].mxu0 }
 0x715   :  { %v1717_v44 = vmax.f32 %v1692_v42, 0.0 }
 0x716   :  { %v1727_v45 = vpack.c.bf16 %v1719_v41, %v1718_v40 }
 0x717   :  { %v1726_v46 = vpack.c.bf16 %v1717_v44, %v1716_v43 }
 0x719   :  { %3723 = vmatprep.mubr.bf16.mxu1 %v1726_v46 }
 0x71a   :  { %3724 = vmatmul.mubr.bf16.gmra.mrb[60].mxu1 %v1727_v45 }
 0x7d5   :  { %v3713_v49 = vpop.f32.mrb[48].mxu1 }
 0x7d6   :  { %v4426_v50 = vadd.f32 -1.0, %v3713_v49  ;;  %v1827_v51 = vpop.f32.mrb[49].mxu1 }
 0x7d7   :  { %v4428_v52 = vadd.f32 -1.0, %v1827_v51  ;;  %v3714_v53 = vpop.f32.mrb[50].mxu1 }
 0x7d8   :  { %v1924_v54 = vand.u32 2147483647, %v4426_v50  ;;  %v4431_v55 = vadd.f32 -1.0, %v3714_v53  ;;  %v2052_v56 = vpack.c.bf16 %v3714_v53, %v3713_v49  ;;  %v1830_v4 = vpop.f32.mrb[51].mxu1 }
 0x7d9   :  { %v1922_v57 = vand.u32 2147483647, %v4428_v52  ;;  %v4434_v58 = vadd.f32 -1.0, %v1830_v4  ;;  %v2051_v59 = vpack.c.bf16 %v1830_v4, %v1827_v51 }
 0x7da   :  { %v1940_v60 = vsub.f32 0.0, %v1924_v54  ;;  %v1925_v63 = vand.u32 2147483647, %v4431_v55 }
 0x7db   :  { %v1938_v61 = vsub.f32 0.0, %v1922_v57  ;;  %v1923_v62 = vand.u32 2147483647, %v4434_v58  ;;  %3743 = vmatprep.mubr.bf16.mxu0 %v2051_v59 }
 0x7dc   :  { %3744 = vmatmul.mubr.bf16.vlgmr.msra.gmra.mrb[80].mxu0 %v2052_v56  ;;  %v1958_v14 = vmul.f32 1.442695, %v1940_v60  ;;  %v1941_v6 = vsub.f32 0.0, %v1925_v63 }
 0x7dd   :  { %v1954_v0 = vmul.f32 1.442695, %v1938_v61  ;;  %v1939_v1 = vsub.f32 0.0, %v1923_v62  ;;  %v3717_v2 = vpop.f32.mrb[52].mxu1 }
 0x7de   :  { %v4438_v15 = vadd.f32 -1.0, %v3717_v2  ;;  %v1843_v17 = vpop.f32.mrb[53].mxu1  ;;  %v1960_v22 = vmul.f32 1.442695, %v1941_v6 }
 0x7df   :  { %3956 = vpow2.f32 %v1954_v0  ;;  %v1956_v18 = vmul.f32 1.442695, %v1939_v1  ;;  %v4440_v3 = vadd.f32 -1.0, %v1843_v17  ;;  %v3718_v5 = vpop.f32.mrb[54].mxu1 }
 0x7e0   :  { %v1928_v7 = vand.u32 2147483647, %v4438_v15  ;;  %v4443_v8 = vadd.f32 -1.0, %v3718_v5  ;;  %v1846_v9 = vpop.f32.mrb[55].mxu1  ;;  %v2054_v11 = vpack.c.bf16 %v3718_v5, %v3717_v2 }
 0x7e1   :  { %3958 = vpow2.f32 %v1956_v18  ;;  %v1926_v10 = vand.u32 2147483647, %v4440_v3  ;;  %v4447_v13 = vadd.f32 -1.0, %v1846_v9  ;;  %v2053_v16 = vpack.c.bf16 %v1846_v9, %v1843_v17 }
 0x7e2   :  { %3960 = vpow2.f32 %v1958_v14  ;;  %v1944_v12 = vsub.f32 0.0, %v1928_v7  ;;  %v1929_v19 = vand.u32 2147483647, %v4443_v8 }
 0x7e3   :  { %v1942_v20 = vsub.f32 0.0, %v1926_v10  ;;  %v1927_v23 = vand.u32 2147483647, %v4447_v13  ;;  %3747 = vmatprep.mubr.bf16.mxu0 %v2053_v16 }
 0x7e4   :  { %v1966_v21 = vmul.f32 1.442695, %v1944_v12  ;;  %v1945_v25 = vsub.f32 0.0, %v1929_v19  ;;  %3748 = vmatmul.mubr.bf16.gmra.mrb[84].mxu0 %v2054_v11 }
 0x7e5   :  { %v1962_v24 = vmul.f32 1.442695, %v1942_v20  ;;  %v3721_v26 = vpop.f32.mrb[56].mxu1  ;;  %v1943_v27 = vsub.f32 0.0, %v1927_v23 }
 0x7e6   :  { %v4450_v28 = vadd.f32 -1.0, %v3721_v26  ;;  %v1859_v29 = vpop.f32.mrb[57].mxu1  ;;  %v1968_v36 = vmul.f32 1.442695, %v1945_v25 }
 0x7e7   :  { %3962 = vpow2.f32 %v1962_v24  ;;  %v4452_v30 = vadd.f32 -1.0, %v1859_v29  ;;  %v3722_v31 = vpop.f32.mrb[58].mxu1  ;;  %v1964_v32 = vmul.f32 1.442695, %v1943_v27 }
 0x7e8   :  { %3964 = vpow2.f32 %v1960_v22  ;;  %v1932_v33 = vand.u32 2147483647, %v4450_v28  ;;  %v1862_v34 = vpop.f32.mrb[59].mxu1  ;;  %v4456_v38 = vadd.f32 -1.0, %v3722_v31  ;;  %v2056_v41 = vpack.c.bf16 %v3722_v31, %v3721_v26 }
 0x7e9   :  { %v3957_v35 = vpop.eup %3956  ;;  %3966 = vpow2.f32 %v1966_v21  ;;  %v1930_v37 = vand.u32 2147483647, %v4452_v30  ;;  %v4459_v48 = vadd.f32 -1.0, %v1862_v34  ;;  %v2055_v53 = vpack.c.bf16 %v1862_v34, %v1859_v29 }
 0x7ea   :  { %v1986_v39 = vadd.f32 1.0, %v3957_v35  ;;  %3968 = vpow2.f32 %v1964_v32  ;;  %v1948_v40 = vsub.f32 0.0, %v1932_v33  ;;  %v1933_v44 = vand.u32 2147483647, %v4456_v38 }
 0x7eb   :  { %v3959_v42 = vpop.eup %3958  ;;  %v1946_v43 = vsub.f32 0.0, %v1930_v37  ;;  %v1931_v56 = vand.u32 2147483647, %v4459_v48  ;;  %3751 = vmatprep.mubr.bf16.mxu0 %v2055_v53  ;;  %v1906_v34 = vmax.f32 %v4428_v52, 0.0 }
 0x7ec   :  { %v3961_v45 = vpop.eup %3960  ;;  %3970 = vlog2.f32 %v1986_v39  ;;  %v1987_v46 = vadd.f32 1.0, %v3959_v42  ;;  %v1974_v47 = vmul.f32 1.442695, %v1948_v40  ;;  %v1949_v51 = vsub.f32 0.0, %v1933_v44  ;;  %3752 = vmatmul.mubr.bf16.gmra.mrb[88].mxu0 %v2056_v41 }
 0x7ed   :  { %3972 = vpow2.f32 %v1968_v36  ;;  %v1970_v49 = vmul.f32 1.442695, %v1946_v43  ;;  %v3725_v54 = vpop.f32.mrb[60].mxu1  ;;  %v1988_v59 = vadd.f32 1.0, %v3961_v45  ;;  %v1947_v63 = vsub.f32 0.0, %v1931_v56 }
 0x7ee   :  { %3974 = vlog2.f32 %v1987_v46  ;;  %v4462_v4 = vadd.f32 -1.0, %v3725_v54  ;;  %v1875_v57 = vpop.f32.mrb[61].mxu1  ;;  %v1976_v60 = vmul.f32 1.442695, %v1949_v51  ;;  %v1907_v39 = vmax.f32 %v4434_v58, 0.0 }
 0x7ef   :  { %3976 = vpow2.f32 %v1974_v47  ;;  %v4464_v61 = vadd.f32 -1.0, %v1875_v57  ;;  %v3726_v62 = vpop.f32.mrb[62].mxu1  ;;  %v1972_v5 = vmul.f32 1.442695, %v1947_v63 }
 0x7f0   :  { %3978 = vpow2.f32 %v1970_v49  ;;  %v1936_v0 = vand.u32 2147483647, %v4462_v4  ;;  %v1878_v1 = vpop.f32.mrb[63].mxu1  ;;  %v4468_v7 = vadd.f32 -1.0, %v3726_v62  ;;  %v2058_v11 = vpack.c.bf16 %v3726_v62, %v3725_v54 }
 0x7f1   :  { %v3963_v2 = vpop.eup %3962  ;;  %3980 = vpow2.f32 %v1976_v60  ;;  %v1934_v14 = vand.u32 2147483647, %v4464_v61  ;;  %v4470_v12 = vadd.f32 -1.0, %v1878_v1  ;;  %v2057_v27 = vpack.c.bf16 %v1878_v1, %v1875_v57 }
 0x7f2   :  { %v3965_v17 = vpop.eup %3964  ;;  %v1990_v18 = vadd.f32 1.0, %v3963_v2  ;;  %v1952_v6 = vsub.f32 0.0, %v1936_v0  ;;  %3982 = vlog2.f32 %v1988_v59  ;;  %v1937_v16 = vand.u32 2147483647, %v4468_v7 }
 0x7f3   :  { %v3967_v9 = vpop.eup %3966  ;;  %v1950_v10 = vsub.f32 0.0, %v1934_v14  ;;  %v1989_v22 = vadd.f32 1.0, %v3965_v17  ;;  %v1935_v26 = vand.u32 2147483647, %v4470_v12  ;;  %3755 = vmatprep.mubr.bf16.mxu0 %v2057_v27  ;;  %v1910_v62 = vmax.f32 %v4440_v3, 0.0 }
 0x7f4   :  { %v3969_v19 = vpop.eup %3968  ;;  %3984 = vlog2.f32 %v1990_v18  ;;  %v1982_v20 = vmul.f32 1.442695, %v1952_v6  ;;  %v1953_v25 = vsub.f32 0.0, %v1937_v16  ;;  %v1992_v32 = vadd.f32 1.0, %v3967_v9  ;;  %3756 = vmatmul.mubr.bf16.gmra.mrb[92].mxu0 %v2058_v11 }
 0x7f5   :  { %v1991_v23 = vadd.f32 1.0, %v3969_v19  ;;  %3986 = vpow2.f32 %v1972_v5  ;;  %v1978_v21 = vmul.f32 1.442695, %v1950_v10  ;;  %v1951_v36 = vsub.f32 0.0, %v1935_v26 }
 0x7f6   :  { %v3971_v24 = vpop.eup %3970  ;;  %3988 = vpow2.f32 %v1982_v20  ;;  %v1984_v35 = vmul.f32 1.442695, %v1953_v25  ;;  %v1911_v1 = vmax.f32 %v4447_v13, 0.0  ;;  %v1908_v18 = vmax.f32 %v4426_v50, 0.0 }
 0x7f7   :  { %v3973_v29 = vpop.eup %3972  ;;  %v2003_v31 = vmul.f32 0.6931472, %v3971_v24  ;;  %3990 = vlog2.f32 %v1991_v23  ;;  %v1980_v52 = vmul.f32 1.442695, %v1951_v36  ;;  %v1909_v5 = vmax.f32 %v4431_v55, 0.0 }
 0x7f8   :  { %v3975_v33 = vpop.eup %3974  ;;  %3992 = vpow2.f32 %v1978_v21  ;;  %v1993_v47 = vadd.f32 1.0, %v3973_v29  ;;  %v1916_v55 = vmax.f32 %v4450_v28, 0.0  ;;  %v1917_v27 = vmax.f32 %v4456_v38, 0.0 }
 0x7f9   :  { %v3977_v37 = vpop.eup %3976  ;;  %v2005_v40 = vmul.f32 0.6931472, %v3975_v33  ;;  %3994 = vlog2.f32 %v1989_v22  ;;  %v4476_v42 = vadd.f32 %v2003_v31, %v1906_v34  ;;  %v1912_v33 = vmax.f32 %v4438_v15, 0.0 }
 0x7fa   :  { %v3979_v41 = vpop.eup %3978  ;;  %v1996_v43 = vadd.f32 1.0, %v3977_v37  ;;  %3996 = vpow2.f32 %v1984_v35  ;;  %v1913_v34 = vmax.f32 %v4443_v8, 0.0  ;;  %v1915_v28 = vmax.f32 %v4459_v48, 0.0 }
 0x7fb   :  { %v3981_v44 = vpop.eup %3980  ;;  %v4478_v45 = vadd.f32 %v2005_v40, %v1907_v39  ;;  %v1994_v46 = vadd.f32 1.0, %v3979_v41  ;;  %3998 = vlog2.f32 %v1992_v32 }
 0x7fc   :  { %4000 = vlog2.f32 %v1996_v43  ;;  %v1997_v49 = vadd.f32 1.0, %v3981_v44  ;;  %v3983_v51 = vpop.eup %3982 }
 0x7fd   :  { %4002 = vlog2.f32 %v1994_v46  ;;  %v3815_v58 = vpack.i.bf16 %v4478_v45, %v4476_v42  ;;  %v2007_v14 = vmul.f32 0.6931472, %v3983_v51  ;;  %v1914_v42 = vmax.f32 %v4452_v30, 0.0 }
 0x7fe   :  { %v3985_v53 = vpop.eup %3984  ;;  %4004 = vlog2.f32 %v1997_v49  ;;  %v1921_v30 = vmax.f32 %v4468_v7, 0.0  ;;  %v3948_v7 = vld [vmem:[%s4594_s2 + $0x2c8] sm:$0xff]  }
 0x7ff   :  { %v3987_v54 = vpop.eup %3986  ;;  %4006 = vpow2.f32 %v1980_v52  ;;  %v2011_v57 = vmul.f32 0.6931472, %v3985_v53  ;;  %v2036_v22 = vadd.f32 %v2007_v14, %v1908_v18  ;;  %v3952_v18 = vld [vmem:[%s4594_s2 + $0x2e8] sm:$0xff]  }
 0x800   :  { %v3989_v56 = vpop.eup %3988  ;;  %v1995_v59 = vadd.f32 1.0, %v3987_v54  ;;  %4008 = vlog2.f32 %v1993_v47  ;;  %v1920_v54 = vmax.f32 %v4462_v4, 0.0  ;;  %v3947_v4 = vld [vmem:[%s4594_s2 + $0x2c0] sm:$0xff]  }
 0x801   :  { %v3991_v60 = vpop.eup %3990  ;;  %v2000_v63 = vadd.f32 1.0, %v3989_v56  ;;  %v2038_v9 = vadd.f32 %v2011_v57, %v1910_v62  ;;  %v1918_v62 = vmax.f32 %v4464_v61, 0.0  ;;  %3759 = vmatprep.subr.bf16.mxu1 %v3947_v4  ;;  %v3949_v61 = vld [vmem:[%s4594_s2 + $0x2d0] sm:$0xff]  }
 0x802   :  { %v3993_v0 = vpop.eup %3992  ;;  %v2013_v2 = vmul.f32 0.6931472, %v3991_v60  ;;  %4010 = vlog2.f32 %v1995_v59  ;;  %3760 = vmatpush3.bf16.msra.mxu1 %v3947_v4 }
 0x803   :  { %v3995_v17 = vpop.eup %3994  ;;  %4012 = vlog2.f32 %v2000_v63  ;;  %v1998_v11 = vadd.f32 1.0, %v3993_v0  ;;  %v1919_v63 = vmax.f32 %v4470_v12, 0.0  ;;  %3761 = vmatprep.subr.bf16.mxu1 %v3948_v7  ;;  %v3950_v12 = vld [vmem:[%s4594_s2 + $0x2d8] sm:$0xff]  }
 0x804   :  { %v3997_v6 = vpop.eup %3996  ;;  %v2039_v10 = vadd.f32 %v2013_v2, %v1911_v1  ;;  %v2009_v19 = vmul.f32 0.6931472, %v3995_v17  ;;  %v3951_v17 = vld [vmem:[%s4594_s2 + $0x2e0] sm:$0xff]  }
 0x805   :  { %v3999_v20 = vpop.eup %3998  ;;  %v2001_v3 = vadd.f32 1.0, %v3997_v6  ;;  %v3954_v6 = vld [vmem:[%s4594_s2 + $0x2f8] sm:$0xff]  }
 0x806   :  { %v4001_v16 = vpop.eup %4000  ;;  %v2037_v23 = vadd.f32 %v2009_v19, %v1909_v5  ;;  %v3826_v13 = vpack.i.bf16 %v2039_v10, %v2038_v9  ;;  %v2015_v31 = vmul.f32 0.6931472, %v3999_v20  ;;  %3762 = vmatpush3.bf16.msra.mxu1 %v3948_v7  ;;  %v3953_v5 = vld [vmem:[%s4594_s2 + $0x2f0] sm:$0xff]   ;;  %v4085_v9 = vmov 1966171168  }
 0x807   :  { %v4003_v21 = vpop.eup %4002  ;;  %v2023_v24 = vmul.f32 0.6931472, %v4001_v16  ;;  %4014 = vlog2.f32 %v2001_v3  ;;  %3763 = vmatprep.subr.bf16.mxu1 %v3949_v61  ;;  %v2224_v10 = vunpack.c.l.s4 %v4085_v9  ;;  %v2050_v16 = vld [vmem:[%s4596_s1] sm:$0xff] }
 0x808   :  { %v4005_v25 = vpop.eup %4004  ;;  %4016 = vlog2.f32 %v1998_v11  ;;  %v3810_v50 = vpack.i.bf16 %v2037_v23, %v2036_v22  ;;  %v2019_v37 = vmul.f32 0.6931472, %v4003_v21  ;;  %v2040_v44 = vadd.f32 %v2015_v31, %v1912_v33 }
 0x809   :  { %v4007_v26 = vpop.eup %4006  ;;  %v2025_v29 = vmul.f32 0.6931472, %v4005_v25  ;;  %v2044_v36 = vadd.f32 %v2023_v24, %v1916_v55  ;;  %v2226_v11 = vlaneseq  ;;  %v2225_v19 = vunpack.c.0.s8 %v2224_v10 }
 0x80a   :  { %v4009_v32 = vpop.eup %4008  ;;  %v1999_v35 = vadd.f32 1.0, %v4007_v26  ;;  %3811 = vperm.xlu0 %3809, %v3810_v50   ;;  %v2042_v15 = vadd.f32 %v2019_v37, %v1914_v42  ;;  %3764 = vmatpush3.bf16.msra.mxu1 %v3949_v61 }
 0x80b   :  { %v2045_v39 = vadd.f32 %v2025_v29, %v1917_v27  ;;  %v2017_v40 = vmul.f32 0.6931472, %v4009_v32  ;;  %3765 = vmatprep.subr.bf16.mxu1 %v3950_v12  ;;  %v2227_v20 = vshrl.u32 %v2226_v11, 7  ;;  %v2222_v29 = vcombine.high %v2050_v16, %v2050_v16 }
 0x80c   :  { %v4011_v41 = vpop.eup %4010  ;;  %4018 = vlog2.f32 %v1999_v35 }
 0x80d   :  { %v4013_v38 = vpop.eup %4012  ;;  %v2021_v43 = vmul.f32 0.6931472, %v4011_v41  ;;  %v2041_v45 = vadd.f32 %v2017_v40, %v1913_v34  ;;  %v3831_v46 = vpack.i.bf16 %v2045_v39, %v2044_v36  ;;  %v2228_v3 = vsub.s32 %v2225_v19, %v2227_v20 }
 0x80e   :  { %3816 = vperm.xlu0 %3809, %v3815_v58   ;;  %v2031_v47 = vmul.f32 0.6931472, %v4013_v38  ;;  %3766 = vmatpush3.bf16.msra.mxu1 %v3950_v12  ;;  %v4524_v21 = vsub.s32 0, %v2227_v20 }
 0x80f   :  { %v2043_v8 = vadd.f32 %v2021_v43, %v1915_v28  ;;  %v3821_v52 = vpack.i.bf16 %v2041_v45, %v2040_v44  ;;  %3767 = vmatprep.subr.bf16.mxu1 %v3951_v17  ;;  %v2229_v22 = vrot.slane %v2050_v16, %v2228_v3  ;;  %v2236_v41 = vrot.slane %v2222_v29, %v2228_v3 }
 0x810   :  { %v2048_v56 = vadd.f32 %v2031_v47, %v1920_v54 }
 0x811   :  { %v4015_v49 = vpop.eup %4014  ;;  %3822 = vperm.xlu1 %3820, %v3821_v52   ;;  %v3836_v51 = vpack.i.bf16 %v2043_v8, %v2042_v15  ;;  %v2237_v23 = vcombine.high %v2229_v22, %v2229_v22  ;;  %v2245_v24 = vrot.slane %v2229_v22, %v2228_v3 }
 0x812   :  { %v4017_v53 = vpop.eup %4016  ;;  %v2033_v48 = vmul.f32 0.6931472, %v4015_v49  ;;  %3768 = vmatpush3.bf16.msra.mxu1 %v3951_v17 }
 0x813   :  { %3837 = vperm.xlu0 %3809, %v3836_v51   ;;  %v2027_v59 = vmul.f32 0.6931472, %v4017_v53  ;;  %3769 = vmatprep.subr.bf16.mxu1 %v3952_v18  ;;  %v2274_v50 = vrot.slane %v2245_v24, %v4524_v21  ;;  %v2267_v37 = vcombine.high %v2245_v24, %v2245_v24 }
 0x814   :  { %v2049_v57 = vadd.f32 %v2033_v48, %v1921_v30  ;;  %v2252_v48 = vrot.slane %v2236_v41, %v2228_v3 }
 0x815   :  { %3827 = vperm.xlu1 %3820, %v3826_v13   ;;  %v2046_v1 = vadd.f32 %v2027_v59, %v1918_v62  ;;  %v2259_v13 = vrot.slane %v2237_v23, %v2228_v3  ;;  %v2282_v45 = vrot.slane %v2267_v37, %v4524_v21 }
 0x816   :  { %v4019_v60 = vpop.eup %4018  ;;  %v3846_v58 = vpack.i.bf16 %v2049_v57, %v2048_v56  ;;  %3770 = vmatpush3.bf16.msra.mxu1 %v3952_v18  ;;  %v2268_v18 = vcombine.high %v2252_v48, %v2252_v48 }
 0x817   :  { %v2029_v0 = vmul.f32 0.6931472, %v4019_v60  ;;  %3771 = vmatprep.subr.bf16.mxu1 %v3953_v5  ;;  %v2278_v25 = vrot.slane %v2259_v13, %v4524_v21  ;;  %v2269_v35 = vcombine.high %v2259_v13, %v2259_v13 }
 0x818   :  { %v2298_v16 = vrot.slane %v2268_v18, %v4524_v21 }
 0x819   :  { %v2047_v2 = vadd.f32 %v2029_v0, %v1919_v63  ;;  %3832 = vperm.xlu1 %3820, %v3831_v46   ;;  %v2286_v43 = vrot.slane %v2269_v35, %v4524_v21  ;;  %v2238_v46 = vcombine.high %v2236_v41, %v2236_v41  ;;  %v2290_v0 = vrot.slane %v2252_v48, %v4524_v21 }
 0x81a   :  { %3772 = vmatpush3.bf16.msra.mxu1 %v3953_v5 }
 0x81b   :  { %v3841_v14 = vpack.i.bf16 %v2047_v2, %v2046_v1  ;;  %3773 = vmatprep.subr.bf16.mxu1 %v3954_v6  ;;  %v2266_v54 = vrot.slane %v2238_v46, %v2228_v3 }
 0x81d   :  { %3847 = vperm.xlu1 %3820, %v3846_v58   ;;  %3842 = vperm.xlu0 %3809, %v3841_v14   ;;  %v2294_v62 = vrot.slane %v2266_v54, %v4524_v21  ;;  %v2270_v61 = vcombine.high %v2266_v54, %v2266_v54 }
 0x81e   :  { %3774 = vmatpush3.bf16.msra.mxu1 %v3954_v6 }
 0x81f   :  { %v2302_v20 = vrot.slane %v2270_v61, %v4524_v21 }
 0x8af   :  { %v3745_v26 = vpop.f32.mrb[80].mxu0 }
 0x8b0   :  { %v2313_v55 = vadd.f32 %v3745_v26, %v2278_v25  ;;  %v2158_v27 = vpop.f32.mrb[81].mxu0 }
 0x8b1   :  { %v2311_v31 = vadd.f32 %v2274_v50, %v2158_v27  ;;  %v3746_v32 = vpop.f32.mrb[82].mxu0 }
 0x8b2   :  { %v2314_v33 = vadd.f32 %v3746_v32, %v2278_v25  ;;  %v2161_v34 = vpop.f32.mrb[83].mxu0  ;;  %v2329_v39 = vmax.f32 %v2313_v55, 0.0 }
 0x8b3   :  { %v2312_v36 = vadd.f32 %v2274_v50, %v2161_v34  ;;  %v2327_v42 = vmax.f32 %v2311_v31, 0.0 }
 0x8b4   :  { %v2330_v40 = vmax.f32 %v2314_v33, 0.0 }
 0x8b5   :  { %v2328_v28 = vmax.f32 %v2312_v36, 0.0 }
 0x8b6   :  { %v2344_v38 = vpack.c.bf16 %v2330_v40, %v2329_v39 }
 0x8b7   :  { %v2343_v44 = vpack.c.bf16 %v2328_v28, %v2327_v42  ;;  %v3749_v15 = vpop.f32.mrb[84].mxu0 }
 0x8b8   :  { %v2317_v8 = vadd.f32 %v3749_v15, %v2286_v43  ;;  %v2174_v52 = vpop.f32.mrb[85].mxu0 }
 0x8b9   :  { %3775 = vmatprep.mubr.bf16.mxu1 %v2343_v44  ;;  %v2315_v47 = vadd.f32 %v2282_v45, %v2174_v52  ;;  %v3750_v49 = vpop.f32.mrb[86].mxu0 }
 0x8ba   :  { %3776 = vmatmul.mubr.bf16.vlgmr.msra.gmra.mrb[64].mxu1 %v2344_v38  ;;  %v2318_v51 = vadd.f32 %v3750_v49, %v2286_v43  ;;  %v2177_v53 = vpop.f32.mrb[87].mxu0  ;;  %v2333_v56 = vmax.f32 %v2317_v8, 0.0 }
 0x8bb   :  { %v2316_v30 = vadd.f32 %v2282_v45, %v2177_v53  ;;  %v2331_v59 = vmax.f32 %v2315_v47, 0.0 }
 0x8bc   :  { %v2334_v57 = vmax.f32 %v2318_v51, 0.0 }
 0x8bd   :  { %v2332_v60 = vmax.f32 %v2316_v30, 0.0 }
 0x8be   :  { %v2346_v58 = vpack.c.bf16 %v2334_v57, %v2333_v56 }
 0x8bf   :  { %v2345_v63 = vpack.c.bf16 %v2332_v60, %v2331_v59  ;;  %v3753_v1 = vpop.f32.mrb[88].mxu0  ;;  %v3812_v59 = vpop.permute.xlu0 %3811 }
 0x8c0   :  { %v2321_v2 = vadd.f32 %v3753_v1, %v2294_v62  ;;  %v2190_v14 = vpop.f32.mrb[89].mxu0 }
 0x8c1   :  { %3779 = vmatprep.mubr.bf16.mxu1 %v2345_v63  ;;  %v2319_v4 = vadd.f32 %v2290_v0, %v2190_v14  ;;  %v3754_v7 = vpop.f32.mrb[90].mxu0 }
 0x8c2   :  { %3780 = vmatmul.mubr.bf16.gmra.mrb[68].mxu1 %v2346_v58  ;;  %v2322_v12 = vadd.f32 %v3754_v7, %v2294_v62  ;;  %v2193_v17 = vpop.f32.mrb[91].mxu0  ;;  %v2337_v6 = vmax.f32 %v2321_v2, 0.0 }
 0x8c3   :  { %v2320_v5 = vadd.f32 %v2290_v0, %v2193_v17  ;;  %v2335_v10 = vmax.f32 %v2319_v4, 0.0  ;;  %v4535_v4 = vand.u32 127, %v2226_v11 }
 0x8c4   :  { %v2338_v9 = vmax.f32 %v2322_v12, 0.0 }
 0x8c5   :  { %v2336_v19 = vmax.f32 %v2320_v5, 0.0  ;;  %vm2643_vm0 = vcmp.eq.s32.totalorder %v4535_v4, 3 }
 0x8c6   :  { %v2348_v3 = vpack.c.bf16 %v2338_v9, %v2337_v6  ;;  %v3817_v9 = vpop.permute.xlu0 %3816 }
 0x8c7   :  { %v2347_v22 = vpack.c.bf16 %v2336_v19, %v2335_v10  ;;  %v3757_v23 = vpop.f32.mrb[92].mxu0 }
 0x8c8   :  { %v2325_v13 = vadd.f32 %v3757_v23, %v2302_v20  ;;  %v2206_v24 = vpop.f32.mrb[93].mxu0 }
 0x8c9   :  { %3783 = vmatprep.mubr.bf16.mxu1 %v2347_v22  ;;  %v2323_v25 = vadd.f32 %v2298_v16, %v2206_v24  ;;  %v3758_v50 = vpop.f32.mrb[94].mxu0 }
 0x8ca   :  { %3784 = vmatmul.mubr.bf16.gmra.mrb[72].mxu1 %v2348_v3  ;;  %v2326_v26 = vadd.f32 %v3758_v50, %v2302_v20  ;;  %v2209_v55 = vpop.f32.mrb[95].mxu0  ;;  %v2341_v29 = vmax.f32 %v2325_v13, 0.0  ;;  %v3814_v20 = vunpack.i.h.bf16 %v3812_v59 }
 0x8cb   :  { %v2324_v27 = vadd.f32 %v2298_v16, %v2209_v55  ;;  %v2339_v32 = vmax.f32 %v2323_v25, 0.0  ;;  %v3813_v16 = vunpack.i.l.bf16 %v3812_v59  ;;  %v3818_v25 = vunpack.i.l.bf16 %v3817_v9 }
 0x8cc   :  { %v2342_v31 = vmax.f32 %v2326_v26, 0.0 }
 0x8cd   :  { %v2340_v33 = vmax.f32 %v2324_v27, 0.0  ;;  %v3819_v27 = vunpack.i.h.bf16 %v3817_v9 }
 0x8ce   :  { %v2350_v34 = vpack.c.bf16 %v2342_v31, %v2341_v29  ;;  %v3823_v29 = vpop.permute.xlu1 %3822 }
 0x8cf   :  { %v2349_v35 = vpack.c.bf16 %v2340_v33, %v2339_v32 }
 0x8d1   :  { %3787 = vmatprep.mubr.bf16.mxu1 %v2349_v35 }
 0x8d2   :  { %3788 = vmatmul.mubr.bf16.gmra.mrb[76].mxu1 %v2350_v34 }
 0x98d   :  { %v3777_v21 = vpop.f32.mrb[64].mxu1 }
 0x98e   :  { %v3106_v36 = vmul.f32 -1.442695, %v3777_v21  ;;  %v2450_v37 = vpop.f32.mrb[65].mxu1 }
 0x98f   :  { %v3104_v39 = vmul.f32 -1.442695, %v2450_v37  ;;  %v3778_v40 = vpop.f32.mrb[66].mxu1 }
 0x990   :  { %4020 = vpow2.f32 %v3106_v36  ;;  %v3107_v41 = vmul.f32 -1.442695, %v3778_v40  ;;  %v2453_v42 = vpop.f32.mrb[67].mxu1 }
 0x991   :  { %4022 = vpow2.f32 %v3104_v39  ;;  %v3105_v28 = vmul.f32 -1.442695, %v2453_v42 }
 0x992   :  { %4024 = vpow2.f32 %v3107_v41 }
 0x993   :  { %4026 = vpow2.f32 %v3105_v28 }
 0x995   :  { %v3781_v38 = vpop.f32.mrb[68].mxu1 }
 0x996   :  { %v3110_v43 = vmul.f32 -1.442695, %v3781_v38  ;;  %v2466_v44 = vpop.f32.mrb[69].mxu1 }
 0x997   :  { %v3108_v45 = vmul.f32 -1.442695, %v2466_v44  ;;  %v3782_v46 = vpop.f32.mrb[70].mxu1 }
 0x998   :  { %4028 = vpow2.f32 %v3110_v43  ;;  %v3111_v8 = vmul.f32 -1.442695, %v3782_v46  ;;  %v2469_v52 = vpop.f32.mrb[71].mxu1 }
 0x999   :  { %4030 = vpow2.f32 %v3108_v45  ;;  %v3109_v48 = vmul.f32 -1.442695, %v2469_v52 }
 0x99a   :  { %v4021_v15 = vpop.eup %4020  ;;  %4032 = vpow2.f32 %v3111_v8 }
 0x99b   :  { %v4023_v47 = vpop.eup %4022  ;;  %v2563_v49 = vadd.f32 1.0, %v4021_v15 }
 0x99c   :  { %v4025_v51 = vpop.eup %4024  ;;  %v2561_v53 = vadd.f32 1.0, %v4023_v47 }
 0x99d   :  { %v4027_v54 = vpop.eup %4026  ;;  %4034 = vrcp.f32 %v2563_v49  ;;  %v2564_v30 = vadd.f32 1.0, %v4025_v51  ;;  %v3785_v57 = vpop.f32.mrb[72].mxu1 }
 0x99e   :  { %4036 = vrcp.f32 %v2561_v53  ;;  %v2562_v56 = vadd.f32 1.0, %v4027_v54  ;;  %v3114_v60 = vmul.f32 -1.442695, %v3785_v57  ;;  %v2482_v58 = vpop.f32.mrb[73].mxu1  ;;  %v3828_v51 = vpop.permute.xlu1 %3827 }
 0x99f   :  { %4038 = vrcp.f32 %v2564_v30  ;;  %v3112_v62 = vmul.f32 -1.442695, %v2482_v58  ;;  %v3786_v63 = vpop.f32.mrb[74].mxu1 }
 0x9a0   :  { %4040 = vrcp.f32 %v2562_v56  ;;  %v3115_v1 = vmul.f32 -1.442695, %v3786_v63  ;;  %v2485_v2 = vpop.f32.mrb[75].mxu1  ;;  %v3824_v56 = vunpack.i.l.bf16 %v3823_v29  ;;  %v3825_v63 = vunpack.i.h.bf16 %v3823_v29 }
 0x9a1   :  { %4042 = vpow2.f32 %v3109_v48  ;;  %v3113_v17 = vmul.f32 -1.442695, %v2485_v2 }
 0x9a2   :  { %v4029_v0 = vpop.eup %4028  ;;  %4044 = vpow2.f32 %v3114_v60  ;;  %v3829_v60 = vunpack.i.l.bf16 %v3828_v51 }
 0x9a3   :  { %v4031_v14 = vpop.eup %4030  ;;  %v2567_v7 = vadd.f32 1.0, %v4029_v0  ;;  %4046 = vpow2.f32 %v3112_v62 }
 0x9a4   :  { %v4033_v61 = vpop.eup %4032  ;;  %v2565_v12 = vadd.f32 1.0, %v4031_v14  ;;  %4048 = vpow2.f32 %v3115_v1 }
 0x9a5   :  { %4050 = vrcp.f32 %v2567_v7  ;;  %v2568_v5 = vadd.f32 1.0, %v4033_v61  ;;  %v3789_v13 = vpop.f32.mrb[76].mxu1 }
 0x9a6   :  { %4052 = vrcp.f32 %v2565_v12  ;;  %v3118_v55 = vmul.f32 -1.442695, %v3789_v13  ;;  %v2498_v34 = vpop.f32.mrb[77].mxu1 }
 0x9a7   :  { %v4035_v18 = vpop.eup %4034  ;;  %4054 = vrcp.f32 %v2568_v5  ;;  %v3116_v36 = vmul.f32 -1.442695, %v2498_v34  ;;  %v3790_v37 = vpop.f32.mrb[78].mxu1 }
 0x9a8   :  { %v4037_v6 = vpop.eup %4036  ;;  %v2611_v10 = vmul.f32 1.002, %v4035_v18  ;;  %4056 = vpow2.f32 %v3113_v17  ;;  %v3119_v41 = vmul.f32 -1.442695, %v3790_v37  ;;  %v2501_v42 = vpop.f32.mrb[79].mxu1 }
 0x9a9   :  { %v4039_v19 = vpop.eup %4038  ;;  %v2609_v3 = vmul.f32 1.002, %v4037_v6  ;;  %4058 = vpow2.f32 %v3118_v55  ;;  %v3117_v8 = vmul.f32 -1.442695, %v2501_v42 }
 0x9aa   :  { %v4041_v11 = vpop.eup %4040  ;;  %v3122_v22 = vadd.f32 -0.001, %v2611_v10  ;;  %v2612_v23 = vmul.f32 1.002, %v4039_v19  ;;  %v3830_v19 = vunpack.i.h.bf16 %v3828_v51 }
 0x9ab   :  { %v4043_v24 = vpop.eup %4042  ;;  %v3120_v50 = vadd.f32 -0.001, %v2609_v3  ;;  %v2610_v26 = vmul.f32 1.002, %v4041_v11 }
 0x9ac   :  { %v2726_v31 = vsel %vm2643_vm0, %v3813_v16, %v3122_v22  ;;  %v3123_v32 = vadd.f32 -0.001, %v2612_v23  ;;  %v2566_v33 = vadd.f32 1.0, %v4043_v24  ;;  %v4045_v39 = vpop.eup %4044  ;;  %v3838_v22 = vpop.permute.xlu0 %3837 }
 0x9ad   :  { %v2724_v35 = vsel %vm2643_vm0, %v3818_v25, %v3120_v50  ;;  %v3121_v21 = vadd.f32 -0.001, %v2610_v26  ;;  %v4047_v28 = vpop.eup %4046  ;;  %v2571_v44 = vadd.f32 1.0, %v4045_v39 }
 0x9ae   :  { %v2727_v40 = vsel %vm2643_vm0, %v3814_v20, %v3123_v32  ;;  %4060 = vrcp.f32 %v2566_v33  ;;  %v4049_v45 = vpop.eup %4048  ;;  %v2569_v15 = vadd.f32 1.0, %v4047_v28  ;;  %v3833_v20 = vpop.permute.xlu1 %3832  ;;  %v3840_v28 = vunpack.i.h.bf16 %v3838_v22 }
 0x9af   :  { %v3176_v38 = vpack.c.bf16 %v2727_v40, %v2726_v31  ;;  %v2725_v43 = vsel %vm2643_vm0, %v3819_v27, %v3121_v21  ;;  %4062 = vpow2.f32 %v3116_v36  ;;  %v4051_v52 = vpop.eup %4050  ;;  %v2572_v47 = vadd.f32 1.0, %v4049_v45 }
 0x9b0   :  { %v3171_v46 = vpack.c.bf16 %v2725_v43, %v2724_v35  ;;  %4064 = vpow2.f32 %v3119_v41  ;;  %v4053_v49 = vpop.eup %4052  ;;  %v2615_v53 = vmul.f32 1.002, %v4051_v52  ;;  %v3834_v26 = vunpack.i.l.bf16 %v3833_v20 }
 0x9b1   :  { %3208 = vst [vmem:[%s4597_s3 + $0x8] sm:$0xff] %v3176_v38   ;;  %4066 = vrcp.f32 %v2571_v44  ;;  %v4055_v54 = vpop.eup %4054  ;;  %v2613_v30 = vmul.f32 1.002, %v4053_v49  ;;  %v3839_v31 = vunpack.i.l.bf16 %v3838_v22  ;;  %v3835_v34 = vunpack.i.h.bf16 %v3833_v20 }
 0x9b2   :  { %3172 = vst [vmem:[%s4597_s3] sm:$0xff] %v3171_v46   ;;  %4068 = vrcp.f32 %v2569_v15  ;;  %v4057_v48 = vpop.eup %4056  ;;  %v3126_v57 = vadd.f32 -0.001, %v2615_v53  ;;  %v2616_v59 = vmul.f32 1.002, %v4055_v54  ;;  %v3848_v38 = vpop.permute.xlu1 %3847 }
 0x9b3   :  { %4070 = vrcp.f32 %v2572_v47  ;;  %v3124_v58 = vadd.f32 -0.001, %v2613_v30  ;;  %v2570_v62 = vadd.f32 1.0, %v4057_v48  ;;  %v4059_v2 = vpop.eup %4058  ;;  %v3843_v46 = vpop.permute.xlu0 %3842  ;;  %v3849_v52 = vunpack.i.l.bf16 %v3848_v38 }
 0x9b4   :  { %4072 = vpow2.f32 %v3117_v8  ;;  %v2730_v0 = vsel %vm2643_vm0, %v3824_v56, %v3126_v57  ;;  %v3127_v1 = vadd.f32 -0.001, %v2616_v59  ;;  %v2575_v12 = vadd.f32 1.0, %v4059_v2 }
 0x9b5   :  { %v2728_v14 = vsel %vm2643_vm0, %v3829_v60, %v3124_v58  ;;  %4074 = vrcp.f32 %v2570_v62  ;;  %v3844_v54 = vunpack.i.l.bf16 %v3843_v46  ;;  %v3850_v56 = vunpack.i.h.bf16 %v3848_v38 }
 0x9b6   :  { %v2731_v61 = vsel %vm2643_vm0, %v3825_v63, %v3127_v1  ;;  %4076 = vrcp.f32 %v2575_v12 }
 0x9b7   :  { %v3186_v18 = vpack.c.bf16 %v2731_v61, %v2730_v0  ;;  %v3845_v0 = vunpack.i.h.bf16 %v3843_v46 }
 0x9b8   :  { %v4061_v7 = vpop.eup %4060 }
 0x9b9   :  { %v4063_v17 = vpop.eup %4062  ;;  %v2614_v5 = vmul.f32 1.002, %v4061_v7  ;;  %3210 = vst [vmem:[%s4597_s3 + $0x18] sm:$0xff] %v3186_v18  }
 0x9ba   :  { %v4065_v6 = vpop.eup %4064  ;;  %v2573_v9 = vadd.f32 1.0, %v4063_v17 }
 0x9bb   :  { %v4067_v10 = vpop.eup %4066  ;;  %v3125_v3 = vadd.f32 -0.001, %v2614_v5  ;;  %v2576_v11 = vadd.f32 1.0, %v4065_v6 }
 0x9bc   :  { %v4069_v16 = vpop.eup %4068  ;;  %v2619_v23 = vmul.f32 1.002, %v4067_v10  ;;  %4078 = vrcp.f32 %v2573_v9 }
 0x9bd   :  { %v4071_v13 = vpop.eup %4070  ;;  %v2729_v24 = vsel %vm2643_vm0, %v3830_v19, %v3125_v3  ;;  %v2617_v25 = vmul.f32 1.002, %v4069_v16  ;;  %4080 = vrcp.f32 %v2576_v11 }
 0x9be   :  { %v4073_v50 = vpop.eup %4072  ;;  %v3181_v55 = vpack.c.bf16 %v2729_v24, %v2728_v14  ;;  %v3130_v27 = vadd.f32 -0.001, %v2619_v23  ;;  %v2620_v29 = vmul.f32 1.002, %v4071_v13 }
 0x9bf   :  { %v3128_v32 = vadd.f32 -0.001, %v2617_v25  ;;  %v2574_v33 = vadd.f32 1.0, %v4073_v50  ;;  %v4075_v36 = vpop.eup %4074 }
 0x9c0   :  { %3209 = vst [vmem:[%s4597_s3 + $0x10] sm:$0xff] %v3181_v55   ;;  %v2734_v35 = vsel %vm2643_vm0, %v3834_v26, %v3130_v27  ;;  %v3131_v21 = vadd.f32 -0.001, %v2620_v29  ;;  %v2618_v40 = vmul.f32 1.002, %v4075_v36  ;;  %v4077_v42 = vpop.eup %4076 }
 0x9c1   :  { %v2732_v37 = vsel %vm2643_vm0, %v3839_v31, %v3128_v32  ;;  %4082 = vrcp.f32 %v2574_v33  ;;  %v2623_v44 = vmul.f32 1.002, %v4077_v42 }
 0x9c2   :  { %v2735_v39 = vsel %vm2643_vm0, %v3835_v34, %v3131_v21  ;;  %v3129_v43 = vadd.f32 -0.001, %v2618_v40 }
 0x9c3   :  { %v3196_v41 = vpack.c.bf16 %v2735_v39, %v2734_v35  ;;  %v3134_v49 = vadd.f32 -0.001, %v2623_v44 }
 0x9c4   :  { %v2733_v15 = vsel %vm2643_vm0, %v3840_v28, %v3129_v43 }
 0x9c5   :  { %3212 = vst [vmem:[%s4597_s3 + $0x28] sm:$0xff] %v3196_v41   ;;  %v3191_v47 = vpack.c.bf16 %v2733_v15, %v2732_v37  ;;  %v2738_v30 = vsel %vm2643_vm0, %v3849_v52, %v3134_v49 }
 0x9c6   :  { %v4079_v45 = vpop.eup %4078 }
 0x9c7   :  { %v4081_v8 = vpop.eup %4080  ;;  %v2621_v51 = vmul.f32 1.002, %v4079_v45  ;;  %3211 = vst [vmem:[%s4597_s3 + $0x20] sm:$0xff] %v3191_v47  }
 0x9c8   :  { %v2624_v53 = vmul.f32 1.002, %v4081_v8 }
 0x9c9   :  { %v3132_v48 = vadd.f32 -0.001, %v2621_v51 }
 0x9ca   :  { %v3135_v57 = vadd.f32 -0.001, %v2624_v53 }
 0x9cb   :  { %v4083_v59 = vpop.eup %4082  ;;  %v2736_v60 = vsel %vm2643_vm0, %v3844_v54, %v3132_v48 }
 0x9cc   :  { %v2739_v58 = vsel %vm2643_vm0, %v3850_v56, %v3135_v57  ;;  %v2622_v62 = vmul.f32 1.002, %v4083_v59 }
 0x9cd   :  { %v3206_v63 = vpack.c.bf16 %v2739_v58, %v2738_v30 }
 0x9ce   :  { %v3133_v1 = vadd.f32 -0.001, %v2622_v62 }
 0x9cf   :  { %3214 = vst [vmem:[%s4597_s3 + $0x38] sm:$0xff] %v3206_v63  }
 0x9d0   :  { %v2737_v2 = vsel %vm2643_vm0, %v3845_v0, %v3133_v1 }
 0x9d1   :  { %v3201_v14 = vpack.c.bf16 %v2737_v2, %v2736_v60 }
 0x9d3   :  { %3213 = vst [vmem:[%s4597_s3 + $0x30] sm:$0xff] %v3201_v14  }

// kernel: mipnerf_forward.3
= control target key start
LH: loop header
LB: loop body
LE: loop exit
PB: predicated region body
PF: predicated region fallthrough
CT: control target
= control target key end

     0   :  { %s9523_s2 = inlined_call_operand.vmem [shape: bf16[12,128,128], index: 2, kind: input, shape index: {}]   ;;  %s9524_s0 = inlined_call_operand.vmem [shape: bf16[8,48,128], index: 0, kind: input, shape index: {}]   ;;  %s9525_s1 = inlined_call_operand.vmem [shape: f32[8,128], index: 1, kind: input, shape index: {}]   ;;  %s9526_s3 = inlined_call_operand.vmem [shape: bf16[8,48,128], index: 3, kind: output, shape index: {}]  }
   0x1   :  { %v7851_v0 = vld [vmem:[%s9523_s2] sm:$0xff]   ;;  %v7852_v1 = vld [vmem:[%s9523_s2 + $0x8] sm:$0xff]   ;;  %v7853_v2 = vld [vmem:[%s9523_s2 + $0x10] sm:$0xff]  }
   0x2   :  { %6911 = vmatprep.subr.bf16.mxu0 %v7851_v0  ;;  %v7854_v3 = vld [vmem:[%s9523_s2 + $0x18] sm:$0xff]   ;;  %v7859_v4 = vld [vmem:[%s9524_s0] sm:$0xff]   ;;  %v7856_v6 = vld [vmem:[%s9523_s2 + $0x28] sm:$0xff]  }
   0x3   :  { %6912 = vmatpush3.bf16.msra.mxu0 %v7851_v0  ;;  %6927 = vmatprep.mubr.bf16.mxu0 %v7859_v4  ;;  %v7855_v5 = vld [vmem:[%s9523_s2 + $0x20] sm:$0xff]   ;;  %v7857_v7 = vld [vmem:[%s9523_s2 + $0x30] sm:$0xff]   ;;  %v7858_v8 = vld [vmem:[%s9523_s2 + $0x38] sm:$0xff]  }
   0x4   :  { %6913 = vmatprep.subr.bf16.mxu0 %v7852_v1  ;;  %v7860_v9 = vld [vmem:[%s9524_s0 + $0x8] sm:$0xff]   ;;  %v7861_v10 = vld [vmem:[%s9524_s0 + $0x10] sm:$0xff]   ;;  %v7883_v11 = vld [vmem:[%s9523_s2 + $0x40] sm:$0xff]  }
   0x5   :  { %v7884_v12 = vld [vmem:[%s9523_s2 + $0x48] sm:$0xff]   ;;  %6975 = vmatprep.subr.bf16.mxu1 %v7883_v11  ;;  %v7862_v13 = vld [vmem:[%s9524_s0 + $0x18] sm:$0xff]   ;;  %v7885_v14 = vld [vmem:[%s9523_s2 + $0x50] sm:$0xff]  }
   0x6   :  { %6976 = vmatpush3.bf16.msra.mxu1 %v7883_v11  ;;  %v7863_v15 = vld [vmem:[%s9524_s0 + $0x20] sm:$0xff]   ;;  %v7886_v16 = vld [vmem:[%s9523_s2 + $0x58] sm:$0xff]   ;;  %v7864_v18 = vld [vmem:[%s9524_s0 + $0x28] sm:$0xff]  }
   0x7   :  { %6914 = vmatpush3.bf16.msra.mxu0 %v7852_v1  ;;  %6977 = vmatprep.subr.bf16.mxu1 %v7884_v12  ;;  %v7887_v17 = vld [vmem:[%s9523_s2 + $0x60] sm:$0xff]   ;;  %v7865_v19 = vld [vmem:[%s9524_s0 + $0x30] sm:$0xff]   ;;  %v7888_v20 = vld [vmem:[%s9523_s2 + $0x68] sm:$0xff]  }
   0x8   :  { %6915 = vmatprep.subr.bf16.mxu0 %v7853_v2  ;;  %v7866_v21 = vld [vmem:[%s9524_s0 + $0x38] sm:$0xff]   ;;  %v7867_v22 = vld [vmem:[%s9524_s0 + $0x40] sm:$0xff]   ;;  %v7868_v23 = vld [vmem:[%s9524_s0 + $0x48] sm:$0xff]  }
   0x9   :  { %v7869_v24 = vld [vmem:[%s9524_s0 + $0x50] sm:$0xff]   ;;  %v7870_v25 = vld [vmem:[%s9524_s0 + $0x58] sm:$0xff]   ;;  %v7871_v26 = vld [vmem:[%s9524_s0 + $0x60] sm:$0xff]  }
   0xa   :  { %6978 = vmatpush3.bf16.msra.mxu1 %v7884_v12  ;;  %v7872_v27 = vld [vmem:[%s9524_s0 + $0x68] sm:$0xff]   ;;  %v7873_v28 = vld [vmem:[%s9524_s0 + $0x70] sm:$0xff]   ;;  %v7874_v29 = vld [vmem:[%s9524_s0 + $0x78] sm:$0xff]  }
   0xb   :  { %6916 = vmatpush3.bf16.msra.mxu0 %v7853_v2  ;;  %6979 = vmatprep.subr.bf16.mxu1 %v7885_v14  ;;  %v7875_v30 = vld [vmem:[%s9524_s0 + $0x80] sm:$0xff]   ;;  %v7876_v31 = vld [vmem:[%s9524_s0 + $0x88] sm:$0xff]   ;;  %v7877_v32 = vld [vmem:[%s9524_s0 + $0x90] sm:$0xff]  }
   0xc   :  { %6917 = vmatprep.subr.bf16.mxu0 %v7854_v3  ;;  %v7878_v33 = vld [vmem:[%s9524_s0 + $0x98] sm:$0xff]   ;;  %v7879_v34 = vld [vmem:[%s9524_s0 + $0xa0] sm:$0xff]   ;;  %v7880_v35 = vld [vmem:[%s9524_s0 + $0xa8] sm:$0xff]  }
   0xd   :  { %v7881_v36 = vld [vmem:[%s9524_s0 + $0xb0] sm:$0xff]   ;;  %v7882_v38 = vld [vmem:[%s9524_s0 + $0xb8] sm:$0xff]   ;;  %v7891_v40 = vld [vmem:[%s9523_s2 + $0x80] sm:$0xff]  }
   0xe   :  { %6980 = vmatpush3.bf16.msra.mxu1 %v7885_v14  ;;  %v7889_v37 = vld [vmem:[%s9523_s2 + $0x70] sm:$0xff]   ;;  %v7890_v39 = vld [vmem:[%s9523_s2 + $0x78] sm:$0xff]   ;;  %v7892_v41 = vld [vmem:[%s9523_s2 + $0x88] sm:$0xff]  }
   0xf   :  { %6918 = vmatpush3.bf16.msra.mxu0 %v7854_v3  ;;  %6981 = vmatprep.subr.bf16.mxu1 %v7886_v16  ;;  %v7893_v42 = vld [vmem:[%s9523_s2 + $0x90] sm:$0xff]   ;;  %v7894_v43 = vld [vmem:[%s9523_s2 + $0x98] sm:$0xff]   ;;  %v7895_v44 = vld [vmem:[%s9523_s2 + $0xa0] sm:$0xff]  }
  0x10   :  { %6919 = vmatprep.subr.bf16.mxu0 %v7855_v5  ;;  %v7896_v45 = vld [vmem:[%s9523_s2 + $0xa8] sm:$0xff]   ;;  %v7897_v46 = vld [vmem:[%s9523_s2 + $0xb0] sm:$0xff]   ;;  %v7898_v47 = vld [vmem:[%s9523_s2 + $0xb8] sm:$0xff]  }
  0x12   :  { %6982 = vmatpush3.bf16.msra.mxu1 %v7886_v16 }
  0x13   :  { %6920 = vmatpush3.bf16.msra.mxu0 %v7855_v5  ;;  %6983 = vmatprep.subr.bf16.mxu1 %v7887_v17 }
  0x14   :  { %6921 = vmatprep.subr.bf16.mxu0 %v7856_v6 }
  0x16   :  { %6984 = vmatpush3.bf16.msra.mxu1 %v7887_v17 }
  0x17   :  { %6922 = vmatpush3.bf16.msra.mxu0 %v7856_v6  ;;  %6985 = vmatprep.subr.bf16.mxu1 %v7888_v20 }
  0x18   :  { %6923 = vmatprep.subr.bf16.mxu0 %v7857_v7 }
  0x1a   :  { %6986 = vmatpush3.bf16.msra.mxu1 %v7888_v20 }
  0x1b   :  { %6924 = vmatpush3.bf16.msra.mxu0 %v7857_v7  ;;  %6987 = vmatprep.subr.bf16.mxu1 %v7889_v37 }
  0x1c   :  { %6925 = vmatprep.subr.bf16.mxu0 %v7858_v8 }
  0x1e   :  { %6988 = vmatpush3.bf16.msra.mxu1 %v7889_v37 }
  0x1f   :  { %6926 = vmatpush3.bf16.msra.mxu0 %v7858_v8  ;;  %6989 = vmatprep.subr.bf16.mxu1 %v7890_v39 }
  0x20   :  { %7039 = vmatprep.subr.bf16.mxu0 %v7891_v40 }
  0x22   :  { %6928 = vmatmul.mubr.bf16.vlgmr.msra.gmra.mrb[0].mxu0 %v7860_v9  ;;  %6990 = vmatpush3.bf16.msra.mxu1 %v7890_v39 }
  0x23   :  { %6931 = vmatprep.mubr.bf16.mxu0 %v7861_v10  ;;  %7040 = vmatpush3.bf16.msra.mxu0 %v7891_v40 }
  0x24   :  { %7041 = vmatprep.subr.bf16.mxu0 %v7892_v41 }
  0x27   :  { %7042 = vmatpush3.bf16.msra.mxu0 %v7892_v41 }
  0x28   :  { %7043 = vmatprep.subr.bf16.mxu0 %v7893_v42 }
  0x2a   :  { %6932 = vmatmul.mubr.bf16.gmra.mrb[4].mxu0 %v7862_v13 }
  0x2b   :  { %6935 = vmatprep.mubr.bf16.mxu0 %v7863_v15  ;;  %7044 = vmatpush3.bf16.msra.mxu0 %v7893_v42 }
  0x2c   :  { %7045 = vmatprep.subr.bf16.mxu0 %v7894_v43 }
  0x2f   :  { %7046 = vmatpush3.bf16.msra.mxu0 %v7894_v43 }
  0x30   :  { %7047 = vmatprep.subr.bf16.mxu0 %v7895_v44 }
  0x32   :  { %6936 = vmatmul.mubr.bf16.gmra.mrb[8].mxu0 %v7864_v18 }
  0x33   :  { %6939 = vmatprep.mubr.bf16.mxu0 %v7865_v19  ;;  %7048 = vmatpush3.bf16.msra.mxu0 %v7895_v44 }
  0x34   :  { %7049 = vmatprep.subr.bf16.mxu0 %v7896_v45 }
  0x37   :  { %7050 = vmatpush3.bf16.msra.mxu0 %v7896_v45 }
  0x38   :  { %7051 = vmatprep.subr.bf16.mxu0 %v7897_v46 }
  0x3a   :  { %6940 = vmatmul.mubr.bf16.gmra.mrb[12].mxu0 %v7866_v21 }
  0x3b   :  { %6943 = vmatprep.mubr.bf16.mxu0 %v7867_v22  ;;  %7052 = vmatpush3.bf16.msra.mxu0 %v7897_v46 }
  0x3c   :  { %7053 = vmatprep.subr.bf16.mxu0 %v7898_v47 }
  0x3f   :  { %7054 = vmatpush3.bf16.msra.mxu0 %v7898_v47 }
  0x42   :  { %6944 = vmatmul.mubr.bf16.gmra.mrb[16].mxu0 %v7868_v23 }
  0x43   :  { %6947 = vmatprep.mubr.bf16.mxu0 %v7869_v24 }
  0x4a   :  { %6948 = vmatmul.mubr.bf16.gmra.mrb[20].mxu0 %v7870_v25 }
  0x4b   :  { %6951 = vmatprep.mubr.bf16.mxu0 %v7871_v26 }
  0x52   :  { %6952 = vmatmul.mubr.bf16.gmra.mrb[24].mxu0 %v7872_v27 }
  0x53   :  { %6955 = vmatprep.mubr.bf16.mxu0 %v7873_v28 }
  0x5a   :  { %6956 = vmatmul.mubr.bf16.gmra.mrb[28].mxu0 %v7874_v29 }
  0x5b   :  { %6959 = vmatprep.mubr.bf16.mxu0 %v7875_v30 }
  0x62   :  { %6960 = vmatmul.mubr.bf16.gmra.mrb[32].mxu0 %v7876_v31 }
  0x63   :  { %6963 = vmatprep.mubr.bf16.mxu0 %v7877_v32 }
  0x6a   :  { %6964 = vmatmul.mubr.bf16.gmra.mrb[36].mxu0 %v7878_v33 }
  0x6b   :  { %6967 = vmatprep.mubr.bf16.mxu0 %v7879_v34 }
  0x72   :  { %6968 = vmatmul.mubr.bf16.gmra.mrb[40].mxu0 %v7880_v35 }
  0x73   :  { %6971 = vmatprep.mubr.bf16.mxu0 %v7881_v36 }
  0x7a   :  { %6972 = vmatmul.mubr.bf16.gmra.mrb[44].mxu0 %v7882_v38 }
  0xf5   :  { %v6929_v48 = vpop.f32.mrb[0].mxu0 }
  0xf6   :  { %v305_v49 = vpop.f32.mrb[1].mxu0  ;;  %v498_v51 = vmax.f32 %v6929_v48, 0.0 }
  0xf7   :  { %v6930_v50 = vpop.f32.mrb[2].mxu0  ;;  %v496_v54 = vmax.f32 %v305_v49, 0.0 }
  0xf8   :  { %v499_v52 = vmax.f32 %v6930_v50, 0.0  ;;  %v308_v53 = vpop.f32.mrb[3].mxu0 }
  0xf9   :  { %v497_v55 = vmax.f32 %v308_v53, 0.0 }
  0xfa   :  { %v545_v56 = vpack.c.bf16 %v499_v52, %v498_v51 }
  0xfb   :  { %v544_v57 = vpack.c.bf16 %v497_v55, %v496_v54 }
  0xfd   :  { %v6933_v58 = vpop.f32.mrb[4].mxu0  ;;  %6991 = vmatprep.mubr.bf16.mxu1 %v544_v57 }
  0xfe   :  { %v321_v59 = vpop.f32.mrb[5].mxu0  ;;  %6992 = vmatmul.mubr.bf16.vlgmr.msra.gmra.mrb[0].mxu1 %v545_v56  ;;  %v502_v61 = vmax.f32 %v6933_v58, 0.0 }
  0xff   :  { %v6934_v60 = vpop.f32.mrb[6].mxu0  ;;  %v500_v0 = vmax.f32 %v321_v59, 0.0 }
 0x100   :  { %v503_v62 = vmax.f32 %v6934_v60, 0.0  ;;  %v324_v63 = vpop.f32.mrb[7].mxu0 }
 0x101   :  { %v501_v1 = vmax.f32 %v324_v63, 0.0 }
 0x102   :  { %v547_v2 = vpack.c.bf16 %v503_v62, %v502_v61 }
 0x103   :  { %v546_v3 = vpack.c.bf16 %v501_v1, %v500_v0 }
 0x105   :  { %v6937_v4 = vpop.f32.mrb[8].mxu0  ;;  %6995 = vmatprep.mubr.bf16.mxu1 %v546_v3 }
 0x106   :  { %v337_v5 = vpop.f32.mrb[9].mxu0  ;;  %6996 = vmatmul.mubr.bf16.gmra.mrb[4].mxu1 %v547_v2  ;;  %v506_v7 = vmax.f32 %v6937_v4, 0.0 }
 0x107   :  { %v6938_v6 = vpop.f32.mrb[10].mxu0  ;;  %v504_v10 = vmax.f32 %v337_v5, 0.0 }
 0x108   :  { %v507_v8 = vmax.f32 %v6938_v6, 0.0  ;;  %v340_v9 = vpop.f32.mrb[11].mxu0 }
 0x109   :  { %v505_v11 = vmax.f32 %v340_v9, 0.0 }
 0x10a   :  { %v549_v12 = vpack.c.bf16 %v507_v8, %v506_v7 }
 0x10b   :  { %v548_v13 = vpack.c.bf16 %v505_v11, %v504_v10 }
 0x10d   :  { %v6941_v14 = vpop.f32.mrb[12].mxu0  ;;  %6999 = vmatprep.mubr.bf16.mxu1 %v548_v13 }
 0x10e   :  { %v353_v15 = vpop.f32.mrb[13].mxu0  ;;  %7000 = vmatmul.mubr.bf16.gmra.mrb[8].mxu1 %v549_v12  ;;  %v510_v17 = vmax.f32 %v6941_v14, 0.0 }
 0x10f   :  { %v6942_v16 = vpop.f32.mrb[14].mxu0  ;;  %v508_v20 = vmax.f32 %v353_v15, 0.0 }
 0x110   :  { %v511_v18 = vmax.f32 %v6942_v16, 0.0  ;;  %v356_v19 = vpop.f32.mrb[15].mxu0 }
 0x111   :  { %v509_v21 = vmax.f32 %v356_v19, 0.0 }
 0x112   :  { %v551_v22 = vpack.c.bf16 %v511_v18, %v510_v17 }
 0x113   :  { %v550_v23 = vpack.c.bf16 %v509_v21, %v508_v20 }
 0x115   :  { %v6945_v24 = vpop.f32.mrb[16].mxu0  ;;  %7003 = vmatprep.mubr.bf16.mxu1 %v550_v23 }
 0x116   :  { %v369_v25 = vpop.f32.mrb[17].mxu0  ;;  %7004 = vmatmul.mubr.bf16.gmra.mrb[12].mxu1 %v551_v22  ;;  %v514_v27 = vmax.f32 %v6945_v24, 0.0 }
 0x117   :  { %v6946_v26 = vpop.f32.mrb[18].mxu0  ;;  %v512_v30 = vmax.f32 %v369_v25, 0.0 }
 0x118   :  { %v515_v28 = vmax.f32 %v6946_v26, 0.0  ;;  %v372_v29 = vpop.f32.mrb[19].mxu0 }
 0x119   :  { %v513_v31 = vmax.f32 %v372_v29, 0.0 }
 0x11a   :  { %v553_v32 = vpack.c.bf16 %v515_v28, %v514_v27 }
 0x11b   :  { %v552_v33 = vpack.c.bf16 %v513_v31, %v512_v30 }
 0x11d   :  { %v6949_v34 = vpop.f32.mrb[20].mxu0  ;;  %7007 = vmatprep.mubr.bf16.mxu1 %v552_v33 }
 0x11e   :  { %v385_v35 = vpop.f32.mrb[21].mxu0  ;;  %7008 = vmatmul.mubr.bf16.gmra.mrb[16].mxu1 %v553_v32  ;;  %v518_v37 = vmax.f32 %v6949_v34, 0.0 }
 0x11f   :  { %v6950_v36 = vpop.f32.mrb[22].mxu0  ;;  %v516_v40 = vmax.f32 %v385_v35, 0.0 }
 0x120   :  { %v519_v38 = vmax.f32 %v6950_v36, 0.0  ;;  %v388_v39 = vpop.f32.mrb[23].mxu0 }
 0x121   :  { %v517_v41 = vmax.f32 %v388_v39, 0.0 }
 0x122   :  { %v555_v42 = vpack.c.bf16 %v519_v38, %v518_v37 }
 0x123   :  { %v554_v43 = vpack.c.bf16 %v517_v41, %v516_v40  ;;  %v7899_v40 = vld [vmem:[%s9523_s2 + $0xc0] sm:$0xff]   ;;  %v7900_v41 = vld [vmem:[%s9523_s2 + $0xc8] sm:$0xff]  }
 0x124   :  { %7103 = vmatprep.subr.bf16.mxu1 %v7899_v40 }
 0x125   :  { %v6953_v44 = vpop.f32.mrb[24].mxu0  ;;  %7011 = vmatprep.mubr.bf16.mxu1 %v554_v43  ;;  %7104 = vmatpush3.bf16.msra.mxu1 %v7899_v40  ;;  %v7902_v43 = vld [vmem:[%s9523_s2 + $0xd8] sm:$0xff]  }
 0x126   :  { %v401_v45 = vpop.f32.mrb[25].mxu0  ;;  %7012 = vmatmul.mubr.bf16.gmra.mrb[20].mxu1 %v555_v42  ;;  %v522_v47 = vmax.f32 %v6953_v44, 0.0  ;;  %7105 = vmatprep.subr.bf16.mxu1 %v7900_v41  ;;  %v7901_v42 = vld [vmem:[%s9523_s2 + $0xd0] sm:$0xff]   ;;  %v7903_v44 = vld [vmem:[%s9523_s2 + $0xe0] sm:$0xff]  }
 0x127   :  { %v6954_v46 = vpop.f32.mrb[26].mxu0  ;;  %v520_v50 = vmax.f32 %v401_v45, 0.0  ;;  %v7904_v45 = vld [vmem:[%s9523_s2 + $0xe8] sm:$0xff]  }
 0x128   :  { %v523_v48 = vmax.f32 %v6954_v46, 0.0  ;;  %v404_v49 = vpop.f32.mrb[27].mxu0  ;;  %v7905_v46 = vld [vmem:[%s9523_s2 + $0xf0] sm:$0xff]  }
 0x129   :  { %v521_v51 = vmax.f32 %v404_v49, 0.0  ;;  %7106 = vmatpush3.bf16.msra.mxu1 %v7900_v41 }
 0x12a   :  { %v557_v52 = vpack.c.bf16 %v523_v48, %v522_v47  ;;  %7107 = vmatprep.subr.bf16.mxu1 %v7901_v42  ;;  %v7906_v47 = vld [vmem:[%s9523_s2 + $0xf8] sm:$0xff]  }
 0x12b   :  { %v556_v53 = vpack.c.bf16 %v521_v51, %v520_v50 }
 0x12d   :  { %v6957_v54 = vpop.f32.mrb[28].mxu0  ;;  %7015 = vmatprep.mubr.bf16.mxu1 %v556_v53  ;;  %7108 = vmatpush3.bf16.msra.mxu1 %v7901_v42 }
 0x12e   :  { %v417_v55 = vpop.f32.mrb[29].mxu0  ;;  %7016 = vmatmul.mubr.bf16.gmra.mrb[24].mxu1 %v557_v52  ;;  %v526_v57 = vmax.f32 %v6957_v54, 0.0  ;;  %7109 = vmatprep.subr.bf16.mxu1 %v7902_v43 }
 0x12f   :  { %v6958_v56 = vpop.f32.mrb[30].mxu0  ;;  %v524_v60 = vmax.f32 %v417_v55, 0.0 }
 0x130   :  { %v527_v58 = vmax.f32 %v6958_v56, 0.0  ;;  %v420_v59 = vpop.f32.mrb[31].mxu0 }
 0x131   :  { %v525_v61 = vmax.f32 %v420_v59, 0.0  ;;  %7110 = vmatpush3.bf16.msra.mxu1 %v7902_v43 }
 0x132   :  { %v559_v62 = vpack.c.bf16 %v527_v58, %v526_v57  ;;  %7111 = vmatprep.subr.bf16.mxu1 %v7903_v44 }
 0x133   :  { %v558_v63 = vpack.c.bf16 %v525_v61, %v524_v60 }
 0x135   :  { %v6961_v0 = vpop.f32.mrb[32].mxu0  ;;  %7019 = vmatprep.mubr.bf16.mxu1 %v558_v63  ;;  %7112 = vmatpush3.bf16.msra.mxu1 %v7903_v44 }
 0x136   :  { %v433_v1 = vpop.f32.mrb[33].mxu0  ;;  %7020 = vmatmul.mubr.bf16.gmra.mrb[28].mxu1 %v559_v62  ;;  %v530_v3 = vmax.f32 %v6961_v0, 0.0  ;;  %7113 = vmatprep.subr.bf16.mxu1 %v7904_v45 }
 0x137   :  { %v6962_v2 = vpop.f32.mrb[34].mxu0  ;;  %v528_v6 = vmax.f32 %v433_v1, 0.0 }
 0x138   :  { %v531_v4 = vmax.f32 %v6962_v2, 0.0  ;;  %v436_v5 = vpop.f32.mrb[35].mxu0 }
 0x139   :  { %v529_v7 = vmax.f32 %v436_v5, 0.0  ;;  %7114 = vmatpush3.bf16.msra.mxu1 %v7904_v45 }
 0x13a   :  { %v561_v8 = vpack.c.bf16 %v531_v4, %v530_v3  ;;  %7115 = vmatprep.subr.bf16.mxu1 %v7905_v46 }
 0x13b   :  { %v560_v9 = vpack.c.bf16 %v529_v7, %v528_v6 }
 0x13d   :  { %v6965_v10 = vpop.f32.mrb[36].mxu0  ;;  %7023 = vmatprep.mubr.bf16.mxu1 %v560_v9  ;;  %7116 = vmatpush3.bf16.msra.mxu1 %v7905_v46 }
 0x13e   :  { %v449_v11 = vpop.f32.mrb[37].mxu0  ;;  %7024 = vmatmul.mubr.bf16.gmra.mrb[32].mxu1 %v561_v8  ;;  %v534_v13 = vmax.f32 %v6965_v10, 0.0  ;;  %7117 = vmatprep.subr.bf16.mxu1 %v7906_v47 }
 0x13f   :  { %v6966_v12 = vpop.f32.mrb[38].mxu0  ;;  %v532_v16 = vmax.f32 %v449_v11, 0.0 }
 0x140   :  { %v535_v14 = vmax.f32 %v6966_v12, 0.0  ;;  %v452_v15 = vpop.f32.mrb[39].mxu0 }
 0x141   :  { %v533_v17 = vmax.f32 %v452_v15, 0.0  ;;  %7118 = vmatpush3.bf16.msra.mxu1 %v7906_v47 }
 0x142   :  { %v563_v18 = vpack.c.bf16 %v535_v14, %v534_v13 }
 0x143   :  { %v562_v19 = vpack.c.bf16 %v533_v17, %v532_v16 }
 0x145   :  { %v6969_v20 = vpop.f32.mrb[40].mxu0  ;;  %7027 = vmatprep.mubr.bf16.mxu1 %v562_v19 }
 0x146   :  { %v465_v21 = vpop.f32.mrb[41].mxu0  ;;  %7028 = vmatmul.mubr.bf16.gmra.mrb[36].mxu1 %v563_v18  ;;  %v538_v23 = vmax.f32 %v6969_v20, 0.0 }
 0x147   :  { %v6970_v22 = vpop.f32.mrb[42].mxu0  ;;  %v536_v26 = vmax.f32 %v465_v21, 0.0 }
 0x148   :  { %v539_v24 = vmax.f32 %v6970_v22, 0.0  ;;  %v468_v25 = vpop.f32.mrb[43].mxu0 }
 0x149   :  { %v537_v27 = vmax.f32 %v468_v25, 0.0 }
 0x14a   :  { %v565_v28 = vpack.c.bf16 %v539_v24, %v538_v23 }
 0x14b   :  { %v564_v29 = vpack.c.bf16 %v537_v27, %v536_v26 }
 0x14d   :  { %v6973_v30 = vpop.f32.mrb[44].mxu0  ;;  %7031 = vmatprep.mubr.bf16.mxu1 %v564_v29 }
 0x14e   :  { %v481_v31 = vpop.f32.mrb[45].mxu0  ;;  %7032 = vmatmul.mubr.bf16.gmra.mrb[40].mxu1 %v565_v28  ;;  %v542_v33 = vmax.f32 %v6973_v30, 0.0 }
 0x14f   :  { %v6974_v32 = vpop.f32.mrb[46].mxu0  ;;  %v540_v36 = vmax.f32 %v481_v31, 0.0 }
 0x150   :  { %v543_v34 = vmax.f32 %v6974_v32, 0.0  ;;  %v484_v35 = vpop.f32.mrb[47].mxu0 }
 0x151   :  { %v541_v37 = vmax.f32 %v484_v35, 0.0 }
 0x152   :  { %v567_v38 = vpack.c.bf16 %v543_v34, %v542_v33 }
 0x153   :  { %v566_v39 = vpack.c.bf16 %v541_v37, %v540_v36 }
 0x155   :  { %7035 = vmatprep.mubr.bf16.mxu1 %v566_v39 }
 0x156   :  { %7036 = vmatmul.mubr.bf16.gmra.mrb[44].mxu1 %v567_v38 }
 0x1d1   :  { %v6993_v48 = vpop.f32.mrb[0].mxu1 }
 0x1d2   :  { %v667_v49 = vpop.f32.mrb[1].mxu1  ;;  %v860_v51 = vmax.f32 %v6993_v48, 0.0 }
 0x1d3   :  { %v6994_v50 = vpop.f32.mrb[2].mxu1  ;;  %v858_v54 = vmax.f32 %v667_v49, 0.0 }
 0x1d4   :  { %v861_v52 = vmax.f32 %v6994_v50, 0.0  ;;  %v670_v53 = vpop.f32.mrb[3].mxu1 }
 0x1d5   :  { %v859_v55 = vmax.f32 %v670_v53, 0.0 }
 0x1d6   :  { %v907_v56 = vpack.c.bf16 %v861_v52, %v860_v51 }
 0x1d7   :  { %v906_v57 = vpack.c.bf16 %v859_v55, %v858_v54 }
 0x1d9   :  { %v6997_v58 = vpop.f32.mrb[4].mxu1  ;;  %7055 = vmatprep.mubr.bf16.mxu0 %v906_v57 }
 0x1da   :  { %v683_v59 = vpop.f32.mrb[5].mxu1  ;;  %7056 = vmatmul.mubr.bf16.vlgmr.msra.gmra.mrb[48].mxu0 %v907_v56  ;;  %v864_v61 = vmax.f32 %v6997_v58, 0.0 }
 0x1db   :  { %v6998_v60 = vpop.f32.mrb[6].mxu1  ;;  %v862_v0 = vmax.f32 %v683_v59, 0.0 }
 0x1dc   :  { %v865_v62 = vmax.f32 %v6998_v60, 0.0  ;;  %v686_v63 = vpop.f32.mrb[7].mxu1 }
 0x1dd   :  { %v863_v1 = vmax.f32 %v686_v63, 0.0 }
 0x1de   :  { %v909_v2 = vpack.c.bf16 %v865_v62, %v864_v61 }
 0x1df   :  { %v908_v3 = vpack.c.bf16 %v863_v1, %v862_v0 }
 0x1e1   :  { %v7001_v4 = vpop.f32.mrb[8].mxu1  ;;  %7059 = vmatprep.mubr.bf16.mxu0 %v908_v3 }
 0x1e2   :  { %v699_v5 = vpop.f32.mrb[9].mxu1  ;;  %7060 = vmatmul.mubr.bf16.gmra.mrb[52].mxu0 %v909_v2  ;;  %v868_v7 = vmax.f32 %v7001_v4, 0.0 }
 0x1e3   :  { %v7002_v6 = vpop.f32.mrb[10].mxu1  ;;  %v866_v10 = vmax.f32 %v699_v5, 0.0 }
 0x1e4   :  { %v869_v8 = vmax.f32 %v7002_v6, 0.0  ;;  %v702_v9 = vpop.f32.mrb[11].mxu1 }
 0x1e5   :  { %v867_v11 = vmax.f32 %v702_v9, 0.0 }
 0x1e6   :  { %v911_v12 = vpack.c.bf16 %v869_v8, %v868_v7 }
 0x1e7   :  { %v910_v13 = vpack.c.bf16 %v867_v11, %v866_v10 }
 0x1e9   :  { %v7005_v14 = vpop.f32.mrb[12].mxu1  ;;  %7063 = vmatprep.mubr.bf16.mxu0 %v910_v13 }
 0x1ea   :  { %v715_v15 = vpop.f32.mrb[13].mxu1  ;;  %7064 = vmatmul.mubr.bf16.gmra.mrb[56].mxu0 %v911_v12  ;;  %v872_v17 = vmax.f32 %v7005_v14, 0.0 }
 0x1eb   :  { %v7006_v16 = vpop.f32.mrb[14].mxu1  ;;  %v870_v20 = vmax.f32 %v715_v15, 0.0 }
 0x1ec   :  { %v873_v18 = vmax.f32 %v7006_v16, 0.0  ;;  %v718_v19 = vpop.f32.mrb[15].mxu1 }
 0x1ed   :  { %v871_v21 = vmax.f32 %v718_v19, 0.0 }
 0x1ee   :  { %v913_v22 = vpack.c.bf16 %v873_v18, %v872_v17 }
 0x1ef   :  { %v912_v23 = vpack.c.bf16 %v871_v21, %v870_v20 }
 0x1f1   :  { %v7009_v24 = vpop.f32.mrb[16].mxu1  ;;  %7067 = vmatprep.mubr.bf16.mxu0 %v912_v23 }
 0x1f2   :  { %v731_v25 = vpop.f32.mrb[17].mxu1  ;;  %7068 = vmatmul.mubr.bf16.gmra.mrb[60].mxu0 %v913_v22  ;;  %v876_v27 = vmax.f32 %v7009_v24, 0.0 }
 0x1f3   :  { %v7010_v26 = vpop.f32.mrb[18].mxu1  ;;  %v874_v30 = vmax.f32 %v731_v25, 0.0 }
 0x1f4   :  { %v877_v28 = vmax.f32 %v7010_v26, 0.0  ;;  %v734_v29 = vpop.f32.mrb[19].mxu1 }
 0x1f5   :  { %v875_v31 = vmax.f32 %v734_v29, 0.0 }
 0x1f6   :  { %v915_v32 = vpack.c.bf16 %v877_v28, %v876_v27 }
 0x1f7   :  { %v914_v33 = vpack.c.bf16 %v875_v31, %v874_v30 }
 0x1f9   :  { %v7013_v34 = vpop.f32.mrb[20].mxu1  ;;  %7071 = vmatprep.mubr.bf16.mxu0 %v914_v33 }
 0x1fa   :  { %v747_v35 = vpop.f32.mrb[21].mxu1  ;;  %7072 = vmatmul.mubr.bf16.gmra.mrb[64].mxu0 %v915_v32  ;;  %v880_v37 = vmax.f32 %v7013_v34, 0.0 }
 0x1fb   :  { %v7014_v36 = vpop.f32.mrb[22].mxu1  ;;  %v878_v40 = vmax.f32 %v747_v35, 0.0 }
 0x1fc   :  { %v881_v38 = vmax.f32 %v7014_v36, 0.0  ;;  %v750_v39 = vpop.f32.mrb[23].mxu1 }
 0x1fd   :  { %v879_v41 = vmax.f32 %v750_v39, 0.0 }
 0x1fe   :  { %v917_v42 = vpack.c.bf16 %v881_v38, %v880_v37 }
 0x1ff   :  { %v916_v43 = vpack.c.bf16 %v879_v41, %v878_v40  ;;  %v7907_v40 = vld [vmem:[%s9523_s2 + $0x100] sm:$0xff]   ;;  %v7908_v41 = vld [vmem:[%s9523_s2 + $0x108] sm:$0xff]  }
 0x200   :  { %7167 = vmatprep.subr.bf16.mxu0 %v7907_v40 }
 0x201   :  { %v7017_v44 = vpop.f32.mrb[24].mxu1  ;;  %7075 = vmatprep.mubr.bf16.mxu0 %v916_v43  ;;  %7168 = vmatpush3.bf16.msra.mxu0 %v7907_v40  ;;  %v7910_v43 = vld [vmem:[%s9523_s2 + $0x118] sm:$0xff]  }
 0x202   :  { %v763_v45 = vpop.f32.mrb[25].mxu1  ;;  %7076 = vmatmul.mubr.bf16.gmra.mrb[68].mxu0 %v917_v42  ;;  %v884_v47 = vmax.f32 %v7017_v44, 0.0  ;;  %7169 = vmatprep.subr.bf16.mxu0 %v7908_v41  ;;  %v7909_v42 = vld [vmem:[%s9523_s2 + $0x110] sm:$0xff]   ;;  %v7911_v44 = vld [vmem:[%s9523_s2 + $0x120] sm:$0xff]  }
 0x203   :  { %v7018_v46 = vpop.f32.mrb[26].mxu1  ;;  %v882_v50 = vmax.f32 %v763_v45, 0.0  ;;  %v7912_v45 = vld [vmem:[%s9523_s2 + $0x128] sm:$0xff]  }
 0x204   :  { %v885_v48 = vmax.f32 %v7018_v46, 0.0  ;;  %v766_v49 = vpop.f32.mrb[27].mxu1  ;;  %v7913_v46 = vld [vmem:[%s9523_s2 + $0x130] sm:$0xff]  }
 0x205   :  { %v883_v51 = vmax.f32 %v766_v49, 0.0  ;;  %7170 = vmatpush3.bf16.msra.mxu0 %v7908_v41 }
 0x206   :  { %v919_v52 = vpack.c.bf16 %v885_v48, %v884_v47  ;;  %7171 = vmatprep.subr.bf16.mxu0 %v7909_v42  ;;  %v7914_v47 = vld [vmem:[%s9523_s2 + $0x138] sm:$0xff]  }
 0x207   :  { %v918_v53 = vpack.c.bf16 %v883_v51, %v882_v50 }
 0x209   :  { %v7021_v54 = vpop.f32.mrb[28].mxu1  ;;  %7079 = vmatprep.mubr.bf16.mxu0 %v918_v53  ;;  %7172 = vmatpush3.bf16.msra.mxu0 %v7909_v42 }
 0x20a   :  { %v779_v55 = vpop.f32.mrb[29].mxu1  ;;  %7080 = vmatmul.mubr.bf16.gmra.mrb[72].mxu0 %v919_v52  ;;  %v888_v57 = vmax.f32 %v7021_v54, 0.0  ;;  %7173 = vmatprep.subr.bf16.mxu0 %v7910_v43 }
 0x20b   :  { %v7022_v56 = vpop.f32.mrb[30].mxu1  ;;  %v886_v60 = vmax.f32 %v779_v55, 0.0 }
 0x20c   :  { %v889_v58 = vmax.f32 %v7022_v56, 0.0  ;;  %v782_v59 = vpop.f32.mrb[31].mxu1 }
 0x20d   :  { %v887_v61 = vmax.f32 %v782_v59, 0.0  ;;  %7174 = vmatpush3.bf16.msra.mxu0 %v7910_v43 }
 0x20e   :  { %v921_v62 = vpack.c.bf16 %v889_v58, %v888_v57  ;;  %7175 = vmatprep.subr.bf16.mxu0 %v7911_v44 }
 0x20f   :  { %v920_v63 = vpack.c.bf16 %v887_v61, %v886_v60 }
 0x211   :  { %v7025_v0 = vpop.f32.mrb[32].mxu1  ;;  %7083 = vmatprep.mubr.bf16.mxu0 %v920_v63  ;;  %7176 = vmatpush3.bf16.msra.mxu0 %v7911_v44 }
 0x212   :  { %v795_v1 = vpop.f32.mrb[33].mxu1  ;;  %7084 = vmatmul.mubr.bf16.gmra.mrb[76].mxu0 %v921_v62  ;;  %v892_v3 = vmax.f32 %v7025_v0, 0.0  ;;  %7177 = vmatprep.subr.bf16.mxu0 %v7912_v45 }
 0x213   :  { %v7026_v2 = vpop.f32.mrb[34].mxu1  ;;  %v890_v6 = vmax.f32 %v795_v1, 0.0 }
 0x214   :  { %v893_v4 = vmax.f32 %v7026_v2, 0.0  ;;  %v798_v5 = vpop.f32.mrb[35].mxu1 }
 0x215   :  { %v891_v7 = vmax.f32 %v798_v5, 0.0  ;;  %7178 = vmatpush3.bf16.msra.mxu0 %v7912_v45 }
 0x216   :  { %v923_v8 = vpack.c.bf16 %v893_v4, %v892_v3  ;;  %7179 = vmatprep.subr.bf16.mxu0 %v7913_v46 }
 0x217   :  { %v922_v9 = vpack.c.bf16 %v891_v7, %v890_v6 }
 0x219   :  { %v7029_v10 = vpop.f32.mrb[36].mxu1  ;;  %7087 = vmatprep.mubr.bf16.mxu0 %v922_v9  ;;  %7180 = vmatpush3.bf16.msra.mxu0 %v7913_v46 }
 0x21a   :  { %v811_v11 = vpop.f32.mrb[37].mxu1  ;;  %7088 = vmatmul.mubr.bf16.gmra.mrb[80].mxu0 %v923_v8  ;;  %v896_v13 = vmax.f32 %v7029_v10, 0.0  ;;  %7181 = vmatprep.subr.bf16.mxu0 %v7914_v47 }
 0x21b   :  { %v7030_v12 = vpop.f32.mrb[38].mxu1  ;;  %v894_v16 = vmax.f32 %v811_v11, 0.0 }
 0x21c   :  { %v897_v14 = vmax.f32 %v7030_v12, 0.0  ;;  %v814_v15 = vpop.f32.mrb[39].mxu1 }
 0x21d   :  { %v895_v17 = vmax.f32 %v814_v15, 0.0  ;;  %7182 = vmatpush3.bf16.msra.mxu0 %v7914_v47 }
 0x21e   :  { %v925_v18 = vpack.c.bf16 %v897_v14, %v896_v13 }
 0x21f   :  { %v924_v19 = vpack.c.bf16 %v895_v17, %v894_v16 }
 0x221   :  { %v7033_v20 = vpop.f32.mrb[40].mxu1  ;;  %7091 = vmatprep.mubr.bf16.mxu0 %v924_v19 }
 0x222   :  { %v827_v21 = vpop.f32.mrb[41].mxu1  ;;  %7092 = vmatmul.mubr.bf16.gmra.mrb[84].mxu0 %v925_v18  ;;  %v900_v23 = vmax.f32 %v7033_v20, 0.0 }
 0x223   :  { %v7034_v22 = vpop.f32.mrb[42].mxu1  ;;  %v898_v26 = vmax.f32 %v827_v21, 0.0 }
 0x224   :  { %v901_v24 = vmax.f32 %v7034_v22, 0.0  ;;  %v830_v25 = vpop.f32.mrb[43].mxu1 }
 0x225   :  { %v899_v27 = vmax.f32 %v830_v25, 0.0 }
 0x226   :  { %v927_v28 = vpack.c.bf16 %v901_v24, %v900_v23 }
 0x227   :  { %v926_v29 = vpack.c.bf16 %v899_v27, %v898_v26 }
 0x229   :  { %v7037_v30 = vpop.f32.mrb[44].mxu1  ;;  %7095 = vmatprep.mubr.bf16.mxu0 %v926_v29 }
 0x22a   :  { %v843_v31 = vpop.f32.mrb[45].mxu1  ;;  %7096 = vmatmul.mubr.bf16.gmra.mrb[88].mxu0 %v927_v28  ;;  %v904_v33 = vmax.f32 %v7037_v30, 0.0 }
 0x22b   :  { %v7038_v32 = vpop.f32.mrb[46].mxu1  ;;  %v902_v36 = vmax.f32 %v843_v31, 0.0 }
 0x22c   :  { %v905_v34 = vmax.f32 %v7038_v32, 0.0  ;;  %v846_v35 = vpop.f32.mrb[47].mxu1 }
 0x22d   :  { %v903_v37 = vmax.f32 %v846_v35, 0.0 }
 0x22e   :  { %v929_v38 = vpack.c.bf16 %v905_v34, %v904_v33 }
 0x22f   :  { %v928_v39 = vpack.c.bf16 %v903_v37, %v902_v36 }
 0x231   :  { %7099 = vmatprep.mubr.bf16.mxu0 %v928_v39 }
 0x232   :  { %7100 = vmatmul.mubr.bf16.gmra.mrb[92].mxu0 %v929_v38 }
 0x2ad   :  { %v7057_v48 = vpop.f32.mrb[48].mxu0 }
 0x2ae   :  { %v1029_v49 = vpop.f32.mrb[49].mxu0  ;;  %v1222_v51 = vmax.f32 %v7057_v48, 0.0 }
 0x2af   :  { %v7058_v50 = vpop.f32.mrb[50].mxu0  ;;  %v1220_v54 = vmax.f32 %v1029_v49, 0.0 }
 0x2b0   :  { %v1223_v52 = vmax.f32 %v7058_v50, 0.0  ;;  %v1032_v53 = vpop.f32.mrb[51].mxu0 }
 0x2b1   :  { %v1221_v55 = vmax.f32 %v1032_v53, 0.0 }
 0x2b2   :  { %v1269_v56 = vpack.c.bf16 %v1223_v52, %v1222_v51 }
 0x2b3   :  { %v1268_v57 = vpack.c.bf16 %v1221_v55, %v1220_v54 }
 0x2b5   :  { %v7061_v58 = vpop.f32.mrb[52].mxu0  ;;  %7119 = vmatprep.mubr.bf16.mxu1 %v1268_v57 }
 0x2b6   :  { %v1045_v59 = vpop.f32.mrb[53].mxu0  ;;  %7120 = vmatmul.mubr.bf16.vlgmr.msra.gmra.mrb[48].mxu1 %v1269_v56  ;;  %v1226_v61 = vmax.f32 %v7061_v58, 0.0 }
 0x2b7   :  { %v7062_v60 = vpop.f32.mrb[54].mxu0  ;;  %v1224_v0 = vmax.f32 %v1045_v59, 0.0 }
 0x2b8   :  { %v1227_v62 = vmax.f32 %v7062_v60, 0.0  ;;  %v1048_v63 = vpop.f32.mrb[55].mxu0 }
 0x2b9   :  { %v1225_v1 = vmax.f32 %v1048_v63, 0.0 }
 0x2ba   :  { %v1271_v2 = vpack.c.bf16 %v1227_v62, %v1226_v61 }
 0x2bb   :  { %v1270_v3 = vpack.c.bf16 %v1225_v1, %v1224_v0 }
 0x2bd   :  { %v7065_v4 = vpop.f32.mrb[56].mxu0  ;;  %7123 = vmatprep.mubr.bf16.mxu1 %v1270_v3 }
 0x2be   :  { %v1061_v5 = vpop.f32.mrb[57].mxu0  ;;  %7124 = vmatmul.mubr.bf16.gmra.mrb[52].mxu1 %v1271_v2  ;;  %v1230_v7 = vmax.f32 %v7065_v4, 0.0 }
 0x2bf   :  { %v7066_v6 = vpop.f32.mrb[58].mxu0  ;;  %v1228_v10 = vmax.f32 %v1061_v5, 0.0 }
 0x2c0   :  { %v1231_v8 = vmax.f32 %v7066_v6, 0.0  ;;  %v1064_v9 = vpop.f32.mrb[59].mxu0 }
 0x2c1   :  { %v1229_v11 = vmax.f32 %v1064_v9, 0.0 }
 0x2c2   :  { %v1273_v12 = vpack.c.bf16 %v1231_v8, %v1230_v7 }
 0x2c3   :  { %v1272_v13 = vpack.c.bf16 %v1229_v11, %v1228_v10 }
 0x2c5   :  { %v7069_v14 = vpop.f32.mrb[60].mxu0  ;;  %7127 = vmatprep.mubr.bf16.mxu1 %v1272_v13 }
 0x2c6   :  { %v1077_v15 = vpop.f32.mrb[61].mxu0  ;;  %7128 = vmatmul.mubr.bf16.gmra.mrb[56].mxu1 %v1273_v12  ;;  %v1234_v17 = vmax.f32 %v7069_v14, 0.0 }
 0x2c7   :  { %v7070_v16 = vpop.f32.mrb[62].mxu0  ;;  %v1232_v20 = vmax.f32 %v1077_v15, 0.0 }
 0x2c8   :  { %v1235_v18 = vmax.f32 %v7070_v16, 0.0  ;;  %v1080_v19 = vpop.f32.mrb[63].mxu0 }
 0x2c9   :  { %v1233_v21 = vmax.f32 %v1080_v19, 0.0 }
 0x2ca   :  { %v1275_v22 = vpack.c.bf16 %v1235_v18, %v1234_v17 }
 0x2cb   :  { %v1274_v23 = vpack.c.bf16 %v1233_v21, %v1232_v20 }
 0x2cd   :  { %v7073_v24 = vpop.f32.mrb[64].mxu0  ;;  %7131 = vmatprep.mubr.bf16.mxu1 %v1274_v23 }
 0x2ce   :  { %v1093_v25 = vpop.f32.mrb[65].mxu0  ;;  %7132 = vmatmul.mubr.bf16.gmra.mrb[60].mxu1 %v1275_v22  ;;  %v1238_v27 = vmax.f32 %v7073_v24, 0.0 }
 0x2cf   :  { %v7074_v26 = vpop.f32.mrb[66].mxu0  ;;  %v1236_v30 = vmax.f32 %v1093_v25, 0.0 }
 0x2d0   :  { %v1239_v28 = vmax.f32 %v7074_v26, 0.0  ;;  %v1096_v29 = vpop.f32.mrb[67].mxu0 }
 0x2d1   :  { %v1237_v31 = vmax.f32 %v1096_v29, 0.0 }
 0x2d2   :  { %v1277_v32 = vpack.c.bf16 %v1239_v28, %v1238_v27 }
 0x2d3   :  { %v1276_v33 = vpack.c.bf16 %v1237_v31, %v1236_v30 }
 0x2d5   :  { %v7077_v34 = vpop.f32.mrb[68].mxu0  ;;  %7135 = vmatprep.mubr.bf16.mxu1 %v1276_v33 }
 0x2d6   :  { %v1109_v35 = vpop.f32.mrb[69].mxu0  ;;  %7136 = vmatmul.mubr.bf16.gmra.mrb[64].mxu1 %v1277_v32  ;;  %v1242_v37 = vmax.f32 %v7077_v34, 0.0 }
 0x2d7   :  { %v7078_v36 = vpop.f32.mrb[70].mxu0  ;;  %v1240_v40 = vmax.f32 %v1109_v35, 0.0 }
 0x2d8   :  { %v1243_v38 = vmax.f32 %v7078_v36, 0.0  ;;  %v1112_v39 = vpop.f32.mrb[71].mxu0 }
 0x2d9   :  { %v1241_v41 = vmax.f32 %v1112_v39, 0.0 }
 0x2da   :  { %v1279_v42 = vpack.c.bf16 %v1243_v38, %v1242_v37 }
 0x2db   :  { %v1278_v43 = vpack.c.bf16 %v1241_v41, %v1240_v40  ;;  %v8356_v40 = vld [vmem:[%s9524_s0] sm:$0xff]  }
 0x2dc   :  { %v7915_v41 = vld [vmem:[%s9523_s2 + $0x180] sm:$0xff]  }
 0x2dd   :  { %v7081_v44 = vpop.f32.mrb[72].mxu0  ;;  %7139 = vmatprep.mubr.bf16.mxu1 %v1278_v43  ;;  %7231 = vmatprep.subr.bf16.mxu1 %v7915_v41  ;;  %v7917_v43 = vld [vmem:[%s9523_s2 + $0x190] sm:$0xff]  }
 0x2de   :  { %v1125_v45 = vpop.f32.mrb[73].mxu0  ;;  %7140 = vmatmul.mubr.bf16.gmra.mrb[68].mxu1 %v1279_v42  ;;  %v1246_v47 = vmax.f32 %v7081_v44, 0.0  ;;  %v7916_v42 = vld [vmem:[%s9523_s2 + $0x188] sm:$0xff]   ;;  %v7918_v44 = vld [vmem:[%s9523_s2 + $0x198] sm:$0xff]  }
 0x2df   :  { %v7082_v46 = vpop.f32.mrb[74].mxu0  ;;  %v1244_v50 = vmax.f32 %v1125_v45, 0.0  ;;  %7232 = vmatpush3.bf16.msra.mxu1 %v7915_v41  ;;  %v7919_v45 = vld [vmem:[%s9523_s2 + $0x1a0] sm:$0xff]  }
 0x2e0   :  { %v1247_v48 = vmax.f32 %v7082_v46, 0.0  ;;  %v1128_v49 = vpop.f32.mrb[75].mxu0  ;;  %7233 = vmatprep.subr.bf16.mxu1 %v7916_v42  ;;  %v7920_v46 = vld [vmem:[%s9523_s2 + $0x1a8] sm:$0xff]  }
 0x2e1   :  { %v1245_v51 = vmax.f32 %v1128_v49, 0.0  ;;  %v7923_v49 = vld [vmem:[%s9523_s2 + $0x140] sm:$0xff]  }
 0x2e2   :  { %v1281_v52 = vpack.c.bf16 %v1247_v48, %v1246_v47  ;;  %v7921_v47 = vld [vmem:[%s9523_s2 + $0x1b0] sm:$0xff]   ;;  %v7922_v48 = vld [vmem:[%s9523_s2 + $0x1b8] sm:$0xff]  }
 0x2e3   :  { %v1280_v53 = vpack.c.bf16 %v1245_v51, %v1244_v50  ;;  %7234 = vmatpush3.bf16.msra.mxu1 %v7916_v42  ;;  %v7924_v50 = vld [vmem:[%s9523_s2 + $0x148] sm:$0xff]  }
 0x2e4   :  { %7235 = vmatprep.subr.bf16.mxu1 %v7917_v43  ;;  %v8357_v51 = vld [vmem:[%s9524_s0 + $0x8] sm:$0xff]  }
 0x2e5   :  { %v7085_v54 = vpop.f32.mrb[76].mxu0  ;;  %7143 = vmatprep.mubr.bf16.mxu1 %v1280_v53  ;;  %v7925_v53 = vld [vmem:[%s9523_s2 + $0x150] sm:$0xff]  }
 0x2e6   :  { %v1141_v55 = vpop.f32.mrb[77].mxu0  ;;  %7144 = vmatmul.mubr.bf16.gmra.mrb[72].mxu1 %v1281_v52  ;;  %v1250_v57 = vmax.f32 %v7085_v54, 0.0  ;;  %v8358_v52 = vld [vmem:[%s9524_s0 + $0x10] sm:$0xff]   ;;  %v7926_v54 = vld [vmem:[%s9523_s2 + $0x158] sm:$0xff]  }
 0x2e7   :  { %v7086_v56 = vpop.f32.mrb[78].mxu0  ;;  %v1248_v60 = vmax.f32 %v1141_v55, 0.0  ;;  %7236 = vmatpush3.bf16.msra.mxu1 %v7917_v43  ;;  %v8359_v55 = vld [vmem:[%s9524_s0 + $0x18] sm:$0xff]  }
 0x2e8   :  { %v1251_v58 = vmax.f32 %v7086_v56, 0.0  ;;  %v1144_v59 = vpop.f32.mrb[79].mxu0  ;;  %7237 = vmatprep.subr.bf16.mxu1 %v7918_v44  ;;  %v8360_v56 = vld [vmem:[%s9524_s0 + $0x20] sm:$0xff]  }
 0x2e9   :  { %v1249_v61 = vmax.f32 %v1144_v59, 0.0  ;;  %v8361_v59 = vld [vmem:[%s9524_s0 + $0x28] sm:$0xff]  }
 0x2ea   :  { %v1283_v62 = vpack.c.bf16 %v1251_v58, %v1250_v57  ;;  %v7927_v57 = vld [vmem:[%s9523_s2 + $0x160] sm:$0xff]   ;;  %v7928_v58 = vld [vmem:[%s9523_s2 + $0x168] sm:$0xff]  }
 0x2eb   :  { %v1282_v63 = vpack.c.bf16 %v1249_v61, %v1248_v60  ;;  %7238 = vmatpush3.bf16.msra.mxu1 %v7918_v44  ;;  %v8362_v60 = vld [vmem:[%s9524_s0 + $0x30] sm:$0xff]  }
 0x2ec   :  { %7239 = vmatprep.subr.bf16.mxu1 %v7919_v45 }
 0x2ed   :  { %v7089_v0 = vpop.f32.mrb[80].mxu0  ;;  %7147 = vmatprep.mubr.bf16.mxu1 %v1282_v63 }
 0x2ee   :  { %v1157_v1 = vpop.f32.mrb[81].mxu0  ;;  %7148 = vmatmul.mubr.bf16.gmra.mrb[76].mxu1 %v1283_v62  ;;  %v1254_v3 = vmax.f32 %v7089_v0, 0.0  ;;  %v7929_v62 = vld [vmem:[%s9523_s2 + $0x170] sm:$0xff]  }
 0x2ef   :  { %v7090_v2 = vpop.f32.mrb[82].mxu0  ;;  %v1252_v6 = vmax.f32 %v1157_v1, 0.0  ;;  %7240 = vmatpush3.bf16.msra.mxu1 %v7919_v45  ;;  %v8369_v45 = vld [vmem:[%s9524_s0 + $0x68] sm:$0xff]  }
 0x2f0   :  { %v1255_v4 = vmax.f32 %v7090_v2, 0.0  ;;  %v1160_v5 = vpop.f32.mrb[83].mxu0  ;;  %7241 = vmatprep.subr.bf16.mxu1 %v7920_v46 }
 0x2f1   :  { %v1253_v7 = vmax.f32 %v1160_v5, 0.0 }
 0x2f2   :  { %v1285_v8 = vpack.c.bf16 %v1255_v4, %v1254_v3 }
 0x2f3   :  { %v1284_v9 = vpack.c.bf16 %v1253_v7, %v1252_v6  ;;  %7242 = vmatpush3.bf16.msra.mxu1 %v7920_v46  ;;  %v7930_v6 = vld [vmem:[%s9523_s2 + $0x178] sm:$0xff]   ;;  %v8370_v46 = vld [vmem:[%s9524_s0 + $0x70] sm:$0xff]  }
 0x2f4   :  { %7243 = vmatprep.subr.bf16.mxu1 %v7921_v47 }
 0x2f5   :  { %v7093_v10 = vpop.f32.mrb[84].mxu0  ;;  %7151 = vmatprep.mubr.bf16.mxu1 %v1284_v9  ;;  %v8363_v9 = vld [vmem:[%s9524_s0 + $0x38] sm:$0xff]  }
 0x2f6   :  { %v1173_v11 = vpop.f32.mrb[85].mxu0  ;;  %7152 = vmatmul.mubr.bf16.gmra.mrb[80].mxu1 %v1285_v8  ;;  %v1258_v13 = vmax.f32 %v7093_v10, 0.0  ;;  %v8364_v10 = vld [vmem:[%s9524_s0 + $0x40] sm:$0xff]  }
 0x2f7   :  { %v7094_v12 = vpop.f32.mrb[86].mxu0  ;;  %v1256_v16 = vmax.f32 %v1173_v11, 0.0  ;;  %7244 = vmatpush3.bf16.msra.mxu1 %v7921_v47 }
 0x2f8   :  { %v1259_v14 = vmax.f32 %v7094_v12, 0.0  ;;  %v1176_v15 = vpop.f32.mrb[87].mxu0  ;;  %7245 = vmatprep.subr.bf16.mxu1 %v7922_v48 }
 0x2f9   :  { %v1257_v17 = vmax.f32 %v1176_v15, 0.0 }
 0x2fa   :  { %v1287_v18 = vpack.c.bf16 %v1259_v14, %v1258_v13 }
 0x2fb   :  { %v1286_v19 = vpack.c.bf16 %v1257_v17, %v1256_v16  ;;  %7246 = vmatpush3.bf16.msra.mxu1 %v7922_v48 }
 0x2fc   :  { %7295 = vmatprep.subr.bf16.mxu1 %v7923_v49 }
 0x2fd   :  { %v7097_v20 = vpop.f32.mrb[88].mxu0  ;;  %7155 = vmatprep.mubr.bf16.mxu1 %v1286_v19 }
 0x2fe   :  { %v1189_v21 = vpop.f32.mrb[89].mxu0  ;;  %7156 = vmatmul.mubr.bf16.gmra.mrb[84].mxu1 %v1287_v18  ;;  %v1262_v23 = vmax.f32 %v7097_v20, 0.0 }
 0x2ff   :  { %v7098_v22 = vpop.f32.mrb[90].mxu0  ;;  %v1260_v26 = vmax.f32 %v1189_v21, 0.0  ;;  %v8365_v21 = vld [vmem:[%s9524_s0 + $0x48] sm:$0xff]  }
 0x300   :  { %v1263_v24 = vmax.f32 %v7098_v22, 0.0  ;;  %v1192_v25 = vpop.f32.mrb[91].mxu0  ;;  %v8366_v22 = vld [vmem:[%s9524_s0 + $0x50] sm:$0xff]  }
 0x301   :  { %v1261_v27 = vmax.f32 %v1192_v25, 0.0 }
 0x302   :  { %v1289_v28 = vpack.c.bf16 %v1263_v24, %v1262_v23 }
 0x303   :  { %v1288_v29 = vpack.c.bf16 %v1261_v27, %v1260_v26 }
 0x305   :  { %v7101_v30 = vpop.f32.mrb[92].mxu0  ;;  %7159 = vmatprep.mubr.bf16.mxu1 %v1288_v29 }
 0x306   :  { %v1205_v31 = vpop.f32.mrb[93].mxu0  ;;  %7160 = vmatmul.mubr.bf16.gmra.mrb[88].mxu1 %v1289_v28  ;;  %v1266_v33 = vmax.f32 %v7101_v30, 0.0 }
 0x307   :  { %v7102_v32 = vpop.f32.mrb[94].mxu0  ;;  %v1264_v36 = vmax.f32 %v1205_v31, 0.0 }
 0x308   :  { %v1267_v34 = vmax.f32 %v7102_v32, 0.0  ;;  %v1208_v35 = vpop.f32.mrb[95].mxu0 }
 0x309   :  { %v1265_v37 = vmax.f32 %v1208_v35, 0.0 }
 0x30a   :  { %v1291_v38 = vpack.c.bf16 %v1267_v34, %v1266_v33  ;;  %v8367_v33 = vld [vmem:[%s9524_s0 + $0x58] sm:$0xff]   ;;  %v8368_v34 = vld [vmem:[%s9524_s0 + $0x60] sm:$0xff]  }
 0x30b   :  { %v1290_v39 = vpack.c.bf16 %v1265_v37, %v1264_v36 }
 0x30d   :  { %7163 = vmatprep.mubr.bf16.mxu1 %v1290_v39 }
 0x30e   :  { %7164 = vmatmul.mubr.bf16.gmra.mrb[92].mxu1 %v1291_v38 }
 0x30f   :  { %7247 = vmatprep.mubr.bf16.mxu1 %v8356_v40 }
 0x316   :  { %7248 = vmatmul.mubr.bf16.vlgmr.msra.gmra.mrb[96].mxu1 %v8357_v51 }
 0x317   :  { %7296 = vmatpush3.bf16.msra.mxu1 %v7923_v49  ;;  %7251 = vmatprep.mubr.bf16.mxu1 %v8358_v52 }
 0x318   :  { %7297 = vmatprep.subr.bf16.mxu1 %v7924_v50 }
 0x31b   :  { %7298 = vmatpush3.bf16.msra.mxu1 %v7924_v50 }
 0x31c   :  { %7299 = vmatprep.subr.bf16.mxu1 %v7925_v53 }
 0x31e   :  { %7252 = vmatmul.mubr.bf16.gmra.mrb[100].mxu1 %v8359_v55 }
 0x31f   :  { %7255 = vmatprep.mubr.bf16.mxu1 %v8360_v56  ;;  %7300 = vmatpush3.bf16.msra.mxu1 %v7925_v53 }
 0x320   :  { %7301 = vmatprep.subr.bf16.mxu1 %v7926_v54 }
 0x323   :  { %7302 = vmatpush3.bf16.msra.mxu1 %v7926_v54 }
 0x324   :  { %7303 = vmatprep.subr.bf16.mxu1 %v7927_v57 }
 0x326   :  { %7256 = vmatmul.mubr.bf16.gmra.mrb[104].mxu1 %v8361_v59 }
 0x327   :  { %7259 = vmatprep.mubr.bf16.mxu1 %v8362_v60  ;;  %7304 = vmatpush3.bf16.msra.mxu1 %v7927_v57  ;;  %v8371_v57 = vld [vmem:[%s9524_s0 + $0x78] sm:$0xff]  }
 0x328   :  { %7305 = vmatprep.subr.bf16.mxu1 %v7928_v58 }
 0x32b   :  { %7306 = vmatpush3.bf16.msra.mxu1 %v7928_v58  ;;  %v8372_v58 = vld [vmem:[%s9524_s0 + $0x80] sm:$0xff]  }
 0x32c   :  { %7307 = vmatprep.subr.bf16.mxu1 %v7929_v62 }
 0x32e   :  { %7260 = vmatmul.mubr.bf16.gmra.mrb[108].mxu1 %v8363_v9 }
 0x32f   :  { %7263 = vmatprep.mubr.bf16.mxu1 %v8364_v10  ;;  %7308 = vmatpush3.bf16.msra.mxu1 %v7929_v62 }
 0x330   :  { %7309 = vmatprep.subr.bf16.mxu1 %v7930_v6 }
 0x333   :  { %7310 = vmatpush3.bf16.msra.mxu1 %v7930_v6  ;;  %v8374_v6 = vld [vmem:[%s9524_s0 + $0x90] sm:$0xff]  }
 0x336   :  { %7264 = vmatmul.mubr.bf16.gmra.mrb[112].mxu1 %v8365_v21 }
 0x337   :  { %7267 = vmatprep.mubr.bf16.mxu1 %v8366_v22 }
 0x33e   :  { %7268 = vmatmul.mubr.bf16.gmra.mrb[116].mxu1 %v8367_v33 }
 0x33f   :  { %7271 = vmatprep.mubr.bf16.mxu1 %v8368_v34 }
 0x346   :  { %7272 = vmatmul.mubr.bf16.gmra.mrb[120].mxu1 %v8369_v45 }
 0x347   :  { %7275 = vmatprep.mubr.bf16.mxu1 %v8370_v46 }
 0x34e   :  { %7276 = vmatmul.mubr.bf16.gmra.mrb[124].mxu1 %v8371_v57 }
 0x34f   :  { %7279 = vmatprep.mubr.bf16.mxu1 %v8372_v58 }
 0x389   :  { %v7121_v61 = vpop.f32.mrb[48].mxu1 }
 0x38a   :  { %v1391_v63 = vpop.f32.mrb[49].mxu1  ;;  %v1584_v1 = vmax.f32 %v7121_v61, 0.0 }
 0x38b   :  { %v7122_v0 = vpop.f32.mrb[50].mxu1  ;;  %v1582_v4 = vmax.f32 %v1391_v63, 0.0 }
 0x38c   :  { %v1585_v2 = vmax.f32 %v7122_v0, 0.0  ;;  %v1394_v3 = vpop.f32.mrb[51].mxu1 }
 0x38d   :  { %v1583_v5 = vmax.f32 %v1394_v3, 0.0 }
 0x38e   :  { %v1631_v7 = vpack.c.bf16 %v1585_v2, %v1584_v1 }
 0x38f   :  { %v1630_v8 = vpack.c.bf16 %v1583_v5, %v1582_v4  ;;  %v8373_v5 = vld [vmem:[%s9524_s0 + $0x88] sm:$0xff]  }
 0x390   :  { %7280 = vmatmul.mubr.bf16.gmra.mrb[128].mxu1 %v8373_v5 }
 0x391   :  { %v7125_v11 = vpop.f32.mrb[52].mxu1  ;;  %7183 = vmatprep.mubr.bf16.mxu0 %v1630_v8  ;;  %7283 = vmatprep.mubr.bf16.mxu1 %v8374_v6 }
 0x392   :  { %v1407_v12 = vpop.f32.mrb[53].mxu1  ;;  %7184 = vmatmul.mubr.bf16.vlgmr.msra.gmra.mrb[96].mxu0 %v1631_v7  ;;  %v1588_v14 = vmax.f32 %v7125_v11, 0.0 }
 0x393   :  { %v7126_v13 = vpop.f32.mrb[54].mxu1  ;;  %v1586_v17 = vmax.f32 %v1407_v12, 0.0 }
 0x394   :  { %v1589_v15 = vmax.f32 %v7126_v13, 0.0  ;;  %v1410_v16 = vpop.f32.mrb[55].mxu1 }
 0x395   :  { %v1587_v18 = vmax.f32 %v1410_v16, 0.0 }
 0x396   :  { %v1633_v19 = vpack.c.bf16 %v1589_v15, %v1588_v14 }
 0x397   :  { %v1632_v20 = vpack.c.bf16 %v1587_v18, %v1586_v17  ;;  %v8375_v17 = vld [vmem:[%s9524_s0 + $0x98] sm:$0xff]   ;;  %v8376_v18 = vld [vmem:[%s9524_s0 + $0xa0] sm:$0xff]  }
 0x398   :  { %7284 = vmatmul.mubr.bf16.gmra.mrb[132].mxu1 %v8375_v17 }
 0x399   :  { %v7129_v23 = vpop.f32.mrb[56].mxu1  ;;  %7187 = vmatprep.mubr.bf16.mxu0 %v1632_v20  ;;  %7287 = vmatprep.mubr.bf16.mxu1 %v8376_v18 }
 0x39a   :  { %v1423_v24 = vpop.f32.mrb[57].mxu1  ;;  %7188 = vmatmul.mubr.bf16.gmra.mrb[100].mxu0 %v1633_v19  ;;  %v1592_v26 = vmax.f32 %v7129_v23, 0.0 }
 0x39b   :  { %v7130_v25 = vpop.f32.mrb[58].mxu1  ;;  %v1590_v29 = vmax.f32 %v1423_v24, 0.0 }
 0x39c   :  { %v1593_v27 = vmax.f32 %v7130_v25, 0.0  ;;  %v1426_v28 = vpop.f32.mrb[59].mxu1 }
 0x39d   :  { %v1591_v30 = vmax.f32 %v1426_v28, 0.0 }
 0x39e   :  { %v1635_v31 = vpack.c.bf16 %v1593_v27, %v1592_v26 }
 0x39f   :  { %v1634_v32 = vpack.c.bf16 %v1591_v30, %v1590_v29  ;;  %v8377_v29 = vld [vmem:[%s9524_s0 + $0xa8] sm:$0xff]   ;;  %v8378_v30 = vld [vmem:[%s9524_s0 + $0xb0] sm:$0xff]  }
 0x3a0   :  { %7288 = vmatmul.mubr.bf16.gmra.mrb[136].mxu1 %v8377_v29 }
 0x3a1   :  { %v7133_v35 = vpop.f32.mrb[60].mxu1  ;;  %7191 = vmatprep.mubr.bf16.mxu0 %v1634_v32  ;;  %7291 = vmatprep.mubr.bf16.mxu1 %v8378_v30 }
 0x3a2   :  { %v1439_v36 = vpop.f32.mrb[61].mxu1  ;;  %7192 = vmatmul.mubr.bf16.gmra.mrb[104].mxu0 %v1635_v31  ;;  %v1596_v38 = vmax.f32 %v7133_v35, 0.0 }
 0x3a3   :  { %v7134_v37 = vpop.f32.mrb[62].mxu1  ;;  %v1594_v41 = vmax.f32 %v1439_v36, 0.0 }
 0x3a4   :  { %v1597_v39 = vmax.f32 %v7134_v37, 0.0  ;;  %v1442_v40 = vpop.f32.mrb[63].mxu1 }
 0x3a5   :  { %v1595_v42 = vmax.f32 %v1442_v40, 0.0 }
 0x3a6   :  { %v1637_v43 = vpack.c.bf16 %v1597_v39, %v1596_v38 }
 0x3a7   :  { %v1636_v44 = vpack.c.bf16 %v1595_v42, %v1594_v41  ;;  %v8379_v41 = vld [vmem:[%s9524_s0 + $0xb8] sm:$0xff]  }
 0x3a8   :  { %7292 = vmatmul.mubr.bf16.gmra.mrb[140].mxu1 %v8379_v41 }
 0x3a9   :  { %v7137_v47 = vpop.f32.mrb[64].mxu1  ;;  %7195 = vmatprep.mubr.bf16.mxu0 %v1636_v44 }
 0x3aa   :  { %v1455_v48 = vpop.f32.mrb[65].mxu1  ;;  %7196 = vmatmul.mubr.bf16.gmra.mrb[108].mxu0 %v1637_v43  ;;  %v1600_v50 = vmax.f32 %v7137_v47, 0.0 }
 0x3ab   :  { %v7138_v49 = vpop.f32.mrb[66].mxu1  ;;  %v1598_v53 = vmax.f32 %v1455_v48, 0.0 }
 0x3ac   :  { %v1601_v51 = vmax.f32 %v7138_v49, 0.0  ;;  %v1458_v52 = vpop.f32.mrb[67].mxu1 }
 0x3ad   :  { %v1599_v54 = vmax.f32 %v1458_v52, 0.0 }
 0x3ae   :  { %v1639_v55 = vpack.c.bf16 %v1601_v51, %v1600_v50 }
 0x3af   :  { %v1638_v56 = vpack.c.bf16 %v1599_v54, %v1598_v53 }
 0x3b1   :  { %v7141_v59 = vpop.f32.mrb[68].mxu1  ;;  %7199 = vmatprep.mubr.bf16.mxu0 %v1638_v56 }
 0x3b2   :  { %v1471_v60 = vpop.f32.mrb[69].mxu1  ;;  %7200 = vmatmul.mubr.bf16.gmra.mrb[112].mxu0 %v1639_v55  ;;  %v1604_v62 = vmax.f32 %v7141_v59, 0.0 }
 0x3b3   :  { %v7142_v61 = vpop.f32.mrb[70].mxu1  ;;  %v1602_v1 = vmax.f32 %v1471_v60, 0.0 }
 0x3b4   :  { %v1605_v63 = vmax.f32 %v7142_v61, 0.0  ;;  %v1474_v0 = vpop.f32.mrb[71].mxu1 }
 0x3b5   :  { %v1603_v2 = vmax.f32 %v1474_v0, 0.0 }
 0x3b6   :  { %v1641_v3 = vpack.c.bf16 %v1605_v63, %v1604_v62 }
 0x3b7   :  { %v1640_v4 = vpack.c.bf16 %v1603_v2, %v1602_v1 }
 0x3b9   :  { %v7145_v7 = vpop.f32.mrb[72].mxu1  ;;  %7203 = vmatprep.mubr.bf16.mxu0 %v1640_v4 }
 0x3ba   :  { %v1487_v8 = vpop.f32.mrb[73].mxu1  ;;  %7204 = vmatmul.mubr.bf16.gmra.mrb[116].mxu0 %v1641_v3  ;;  %v1608_v10 = vmax.f32 %v7145_v7, 0.0 }
 0x3bb   :  { %v7146_v9 = vpop.f32.mrb[74].mxu1  ;;  %v1606_v13 = vmax.f32 %v1487_v8, 0.0  ;;  %v7931_v8 = vld [vmem:[%s9523_s2 + $0x1c0] sm:$0xff]  }
 0x3bc   :  { %v1609_v11 = vmax.f32 %v7146_v9, 0.0  ;;  %v1490_v12 = vpop.f32.mrb[75].mxu1  ;;  %v7932_v9 = vld [vmem:[%s9523_s2 + $0x1c8] sm:$0xff]   ;;  %7359 = vmatprep.subr.bf16.mxu0 %v7931_v8 }
 0x3bd   :  { %v1607_v14 = vmax.f32 %v1490_v12, 0.0  ;;  %7360 = vmatpush3.bf16.msra.mxu0 %v7931_v8  ;;  %v7935_v12 = vld [vmem:[%s9523_s2 + $0x1e0] sm:$0xff]  }
 0x3be   :  { %v1643_v15 = vpack.c.bf16 %v1609_v11, %v1608_v10  ;;  %7361 = vmatprep.subr.bf16.mxu0 %v7932_v9  ;;  %v7933_v10 = vld [vmem:[%s9523_s2 + $0x1d0] sm:$0xff]   ;;  %v7934_v11 = vld [vmem:[%s9523_s2 + $0x1d8] sm:$0xff]  }
 0x3bf   :  { %v1642_v16 = vpack.c.bf16 %v1607_v14, %v1606_v13  ;;  %v7936_v13 = vld [vmem:[%s9523_s2 + $0x1e8] sm:$0xff]   ;;  %v7937_v14 = vld [vmem:[%s9523_s2 + $0x1f0] sm:$0xff]  }
 0x3c1   :  { %v7149_v19 = vpop.f32.mrb[76].mxu1  ;;  %7207 = vmatprep.mubr.bf16.mxu0 %v1642_v16  ;;  %7362 = vmatpush3.bf16.msra.mxu0 %v7932_v9 }
 0x3c2   :  { %v1503_v20 = vpop.f32.mrb[77].mxu1  ;;  %7208 = vmatmul.mubr.bf16.gmra.mrb[120].mxu0 %v1643_v15  ;;  %v1612_v22 = vmax.f32 %v7149_v19, 0.0  ;;  %7363 = vmatprep.subr.bf16.mxu0 %v7933_v10  ;;  %v7938_v15 = vld [vmem:[%s9523_s2 + $0x1f8] sm:$0xff]  }
 0x3c3   :  { %v7150_v21 = vpop.f32.mrb[78].mxu1  ;;  %v1610_v25 = vmax.f32 %v1503_v20, 0.0 }
 0x3c4   :  { %v1613_v23 = vmax.f32 %v7150_v21, 0.0  ;;  %v1506_v24 = vpop.f32.mrb[79].mxu1 }
 0x3c5   :  { %v1611_v26 = vmax.f32 %v1506_v24, 0.0  ;;  %7364 = vmatpush3.bf16.msra.mxu0 %v7933_v10 }
 0x3c6   :  { %v1645_v27 = vpack.c.bf16 %v1613_v23, %v1612_v22  ;;  %7365 = vmatprep.subr.bf16.mxu0 %v7934_v11 }
 0x3c7   :  { %v1644_v28 = vpack.c.bf16 %v1611_v26, %v1610_v25 }
 0x3c9   :  { %v7153_v31 = vpop.f32.mrb[80].mxu1  ;;  %7211 = vmatprep.mubr.bf16.mxu0 %v1644_v28  ;;  %7366 = vmatpush3.bf16.msra.mxu0 %v7934_v11 }
 0x3ca   :  { %v1519_v32 = vpop.f32.mrb[81].mxu1  ;;  %7212 = vmatmul.mubr.bf16.gmra.mrb[124].mxu0 %v1645_v27  ;;  %v1616_v34 = vmax.f32 %v7153_v31, 0.0  ;;  %7367 = vmatprep.subr.bf16.mxu0 %v7935_v12 }
 0x3cb   :  { %v7154_v33 = vpop.f32.mrb[82].mxu1  ;;  %v1614_v37 = vmax.f32 %v1519_v32, 0.0 }
 0x3cc   :  { %v1617_v35 = vmax.f32 %v7154_v33, 0.0  ;;  %v1522_v36 = vpop.f32.mrb[83].mxu1 }
 0x3cd   :  { %v1615_v38 = vmax.f32 %v1522_v36, 0.0  ;;  %7368 = vmatpush3.bf16.msra.mxu0 %v7935_v12 }
 0x3ce   :  { %v1647_v39 = vpack.c.bf16 %v1617_v35, %v1616_v34  ;;  %7369 = vmatprep.subr.bf16.mxu0 %v7936_v13 }
 0x3cf   :  { %v1646_v40 = vpack.c.bf16 %v1615_v38, %v1614_v37 }
 0x3d1   :  { %v7157_v42 = vpop.f32.mrb[84].mxu1  ;;  %7215 = vmatprep.mubr.bf16.mxu0 %v1646_v40  ;;  %7370 = vmatpush3.bf16.msra.mxu0 %v7936_v13 }
 0x3d2   :  { %v1535_v43 = vpop.f32.mrb[85].mxu1  ;;  %7216 = vmatmul.mubr.bf16.gmra.mrb[128].mxu0 %v1647_v39  ;;  %v1620_v45 = vmax.f32 %v7157_v42, 0.0  ;;  %7371 = vmatprep.subr.bf16.mxu0 %v7937_v14 }
 0x3d3   :  { %v7158_v44 = vpop.f32.mrb[86].mxu1  ;;  %v1618_v48 = vmax.f32 %v1535_v43, 0.0 }
 0x3d4   :  { %v1621_v46 = vmax.f32 %v7158_v44, 0.0  ;;  %v1538_v47 = vpop.f32.mrb[87].mxu1 }
 0x3d5   :  { %v1619_v49 = vmax.f32 %v1538_v47, 0.0  ;;  %7372 = vmatpush3.bf16.msra.mxu0 %v7937_v14 }
 0x3d6   :  { %v1649_v50 = vpack.c.bf16 %v1621_v46, %v1620_v45  ;;  %7373 = vmatprep.subr.bf16.mxu0 %v7938_v15 }
 0x3d7   :  { %v1648_v51 = vpack.c.bf16 %v1619_v49, %v1618_v48 }
 0x3d9   :  { %v7161_v52 = vpop.f32.mrb[88].mxu1  ;;  %7219 = vmatprep.mubr.bf16.mxu0 %v1648_v51  ;;  %7374 = vmatpush3.bf16.msra.mxu0 %v7938_v15 }
 0x3da   :  { %v1551_v53 = vpop.f32.mrb[89].mxu1  ;;  %7220 = vmatmul.mubr.bf16.gmra.mrb[132].mxu0 %v1649_v50  ;;  %v1624_v55 = vmax.f32 %v7161_v52, 0.0 }
 0x3db   :  { %v7162_v54 = vpop.f32.mrb[90].mxu1  ;;  %v1622_v58 = vmax.f32 %v1551_v53, 0.0 }
 0x3dc   :  { %v1625_v56 = vmax.f32 %v7162_v54, 0.0  ;;  %v1554_v57 = vpop.f32.mrb[91].mxu1 }
 0x3dd   :  { %v1623_v59 = vmax.f32 %v1554_v57, 0.0 }
 0x3de   :  { %v1651_v60 = vpack.c.bf16 %v1625_v56, %v1624_v55 }
 0x3df   :  { %v1650_v61 = vpack.c.bf16 %v1623_v59, %v1622_v58 }
 0x3e1   :  { %v7165_v62 = vpop.f32.mrb[92].mxu1  ;;  %7223 = vmatprep.mubr.bf16.mxu0 %v1650_v61 }
 0x3e2   :  { %v1567_v63 = vpop.f32.mrb[93].mxu1  ;;  %7224 = vmatmul.mubr.bf16.gmra.mrb[136].mxu0 %v1651_v60  ;;  %v1628_v1 = vmax.f32 %v7165_v62, 0.0 }
 0x3e3   :  { %v7166_v0 = vpop.f32.mrb[94].mxu1  ;;  %v1626_v4 = vmax.f32 %v1567_v63, 0.0 }
 0x3e4   :  { %v1629_v2 = vmax.f32 %v7166_v0, 0.0  ;;  %v1570_v3 = vpop.f32.mrb[95].mxu1 }
 0x3e5   :  { %v1627_v5 = vmax.f32 %v1570_v3, 0.0 }
 0x3e6   :  { %v1653_v6 = vpack.c.bf16 %v1629_v2, %v1628_v1 }
 0x3e7   :  { %v1652_v7 = vpack.c.bf16 %v1627_v5, %v1626_v4 }
 0x3e9   :  { %7227 = vmatprep.mubr.bf16.mxu0 %v1652_v7 }
 0x3ea   :  { %7228 = vmatmul.mubr.bf16.gmra.mrb[140].mxu0 %v1653_v6 }
 0x465   :  { %v7185_v16 = vpop.f32.mrb[96].mxu0 }
 0x466   :  { %v1753_v17 = vpop.f32.mrb[97].mxu0  ;;  %v1946_v19 = vmax.f32 %v7185_v16, 0.0 }
 0x467   :  { %v7186_v18 = vpop.f32.mrb[98].mxu0  ;;  %v1944_v22 = vmax.f32 %v1753_v17, 0.0 }
 0x468   :  { %v1947_v20 = vmax.f32 %v7186_v18, 0.0  ;;  %v1756_v21 = vpop.f32.mrb[99].mxu0 }
 0x469   :  { %v1945_v23 = vmax.f32 %v1756_v21, 0.0 }
 0x46a   :  { %v1993_v24 = vpack.c.bf16 %v1947_v20, %v1946_v19 }
 0x46b   :  { %v1992_v25 = vpack.c.bf16 %v1945_v23, %v1944_v22 }
 0x46d   :  { %v7189_v26 = vpop.f32.mrb[100].mxu0  ;;  %7311 = vmatprep.mubr.bf16.mxu1 %v1992_v25 }
 0x46e   :  { %v1769_v27 = vpop.f32.mrb[101].mxu0  ;;  %7312 = vmatmul.mubr.bf16.vlgmr.msra.gmra.mrb[96].mxu1 %v1993_v24  ;;  %v1950_v29 = vmax.f32 %v7189_v26, 0.0 }
 0x46f   :  { %v7190_v28 = vpop.f32.mrb[102].mxu0  ;;  %v1948_v32 = vmax.f32 %v1769_v27, 0.0 }
 0x470   :  { %v1951_v30 = vmax.f32 %v7190_v28, 0.0  ;;  %v1772_v31 = vpop.f32.mrb[103].mxu0 }
 0x471   :  { %v1949_v33 = vmax.f32 %v1772_v31, 0.0 }
 0x472   :  { %v1995_v34 = vpack.c.bf16 %v1951_v30, %v1950_v29 }
 0x473   :  { %v1994_v35 = vpack.c.bf16 %v1949_v33, %v1948_v32 }
 0x475   :  { %v7193_v36 = vpop.f32.mrb[104].mxu0  ;;  %7315 = vmatprep.mubr.bf16.mxu1 %v1994_v35 }
 0x476   :  { %v1785_v37 = vpop.f32.mrb[105].mxu0  ;;  %7316 = vmatmul.mubr.bf16.gmra.mrb[100].mxu1 %v1995_v34  ;;  %v1954_v39 = vmax.f32 %v7193_v36, 0.0 }
 0x477   :  { %v7194_v38 = vpop.f32.mrb[106].mxu0  ;;  %v1952_v42 = vmax.f32 %v1785_v37, 0.0 }
 0x478   :  { %v1955_v40 = vmax.f32 %v7194_v38, 0.0  ;;  %v1788_v41 = vpop.f32.mrb[107].mxu0 }
 0x479   :  { %v1953_v43 = vmax.f32 %v1788_v41, 0.0 }
 0x47a   :  { %v1997_v44 = vpack.c.bf16 %v1955_v40, %v1954_v39 }
 0x47b   :  { %v1996_v45 = vpack.c.bf16 %v1953_v43, %v1952_v42 }
 0x47d   :  { %v7197_v46 = vpop.f32.mrb[108].mxu0  ;;  %7319 = vmatprep.mubr.bf16.mxu1 %v1996_v45 }
 0x47e   :  { %v1801_v47 = vpop.f32.mrb[109].mxu0  ;;  %7320 = vmatmul.mubr.bf16.gmra.mrb[104].mxu1 %v1997_v44  ;;  %v1958_v49 = vmax.f32 %v7197_v46, 0.0 }
 0x47f   :  { %v7198_v48 = vpop.f32.mrb[110].mxu0  ;;  %v1956_v52 = vmax.f32 %v1801_v47, 0.0 }
 0x480   :  { %v1959_v50 = vmax.f32 %v7198_v48, 0.0  ;;  %v1804_v51 = vpop.f32.mrb[111].mxu0 }
 0x481   :  { %v1957_v53 = vmax.f32 %v1804_v51, 0.0 }
 0x482   :  { %v1999_v54 = vpack.c.bf16 %v1959_v50, %v1958_v49 }
 0x483   :  { %v1998_v55 = vpack.c.bf16 %v1957_v53, %v1956_v52 }
 0x485   :  { %v7201_v56 = vpop.f32.mrb[112].mxu0  ;;  %7323 = vmatprep.mubr.bf16.mxu1 %v1998_v55 }
 0x486   :  { %v1817_v57 = vpop.f32.mrb[113].mxu0  ;;  %7324 = vmatmul.mubr.bf16.gmra.mrb[108].mxu1 %v1999_v54  ;;  %v1962_v59 = vmax.f32 %v7201_v56, 0.0 }
 0x487   :  { %v7202_v58 = vpop.f32.mrb[114].mxu0  ;;  %v1960_v62 = vmax.f32 %v1817_v57, 0.0 }
 0x488   :  { %v1963_v60 = vmax.f32 %v7202_v58, 0.0  ;;  %v1820_v61 = vpop.f32.mrb[115].mxu0 }
 0x489   :  { %v1961_v63 = vmax.f32 %v1820_v61, 0.0 }
 0x48a   :  { %v2001_v0 = vpack.c.bf16 %v1963_v60, %v1962_v59 }
 0x48b   :  { %v2000_v1 = vpack.c.bf16 %v1961_v63, %v1960_v62 }
 0x48d   :  { %v7205_v2 = vpop.f32.mrb[116].mxu0  ;;  %7327 = vmatprep.mubr.bf16.mxu1 %v2000_v1 }
 0x48e   :  { %v1833_v3 = vpop.f32.mrb[117].mxu0  ;;  %7328 = vmatmul.mubr.bf16.gmra.mrb[112].mxu1 %v2001_v0  ;;  %v1966_v5 = vmax.f32 %v7205_v2, 0.0 }
 0x48f   :  { %v7206_v4 = vpop.f32.mrb[118].mxu0  ;;  %v1964_v8 = vmax.f32 %v1833_v3, 0.0 }
 0x490   :  { %v1967_v6 = vmax.f32 %v7206_v4, 0.0  ;;  %v1836_v7 = vpop.f32.mrb[119].mxu0 }
 0x491   :  { %v1965_v9 = vmax.f32 %v1836_v7, 0.0 }
 0x492   :  { %v2003_v10 = vpack.c.bf16 %v1967_v6, %v1966_v5 }
 0x493   :  { %v2002_v11 = vpack.c.bf16 %v1965_v9, %v1964_v8  ;;  %v7939_v8 = vld [vmem:[%s9523_s2 + $0x200] sm:$0xff]  }
 0x494   :  { %7423 = vmatprep.subr.bf16.mxu0 %v7939_v8 }
 0x495   :  { %v7209_v12 = vpop.f32.mrb[120].mxu0  ;;  %7331 = vmatprep.mubr.bf16.mxu1 %v2002_v11 }
 0x496   :  { %v1849_v13 = vpop.f32.mrb[121].mxu0  ;;  %7332 = vmatmul.mubr.bf16.gmra.mrb[116].mxu1 %v2003_v10  ;;  %v1970_v15 = vmax.f32 %v7209_v12, 0.0 }
 0x497   :  { %v7210_v14 = vpop.f32.mrb[122].mxu0  ;;  %v1968_v18 = vmax.f32 %v1849_v13, 0.0 }
 0x498   :  { %v1971_v16 = vmax.f32 %v7210_v14, 0.0  ;;  %v1852_v17 = vpop.f32.mrb[123].mxu0 }
 0x499   :  { %v1969_v19 = vmax.f32 %v1852_v17, 0.0 }
 0x49a   :  { %v2005_v20 = vpack.c.bf16 %v1971_v16, %v1970_v15 }
 0x49b   :  { %v2004_v21 = vpack.c.bf16 %v1969_v19, %v1968_v18  ;;  %v7940_v19 = vld [vmem:[%s9523_s2 + $0x208] sm:$0xff]  }
 0x49d   :  { %v7213_v22 = vpop.f32.mrb[124].mxu0  ;;  %7335 = vmatprep.mubr.bf16.mxu1 %v2004_v21 }
 0x49e   :  { %v1865_v23 = vpop.f32.mrb[125].mxu0  ;;  %7336 = vmatmul.mubr.bf16.gmra.mrb[120].mxu1 %v2005_v20  ;;  %v1974_v25 = vmax.f32 %v7213_v22, 0.0 }
 0x49f   :  { %v7214_v24 = vpop.f32.mrb[126].mxu0  ;;  %v1972_v28 = vmax.f32 %v1865_v23, 0.0 }
 0x4a0   :  { %v1975_v26 = vmax.f32 %v7214_v24, 0.0  ;;  %v1868_v27 = vpop.f32.mrb[127].mxu0 }
 0x4a1   :  { %v1973_v29 = vmax.f32 %v1868_v27, 0.0 }
 0x4a2   :  { %v2007_v30 = vpack.c.bf16 %v1975_v26, %v1974_v25  ;;  %v7941_v26 = vld [vmem:[%s9523_s2 + $0x210] sm:$0xff]  }
 0x4a3   :  { %v2006_v31 = vpack.c.bf16 %v1973_v29, %v1972_v28 }
 0x4a5   :  { %v7217_v32 = vpop.f32.mrb[128].mxu0  ;;  %7339 = vmatprep.mubr.bf16.mxu1 %v2006_v31  ;;  %v7942_v31 = vld [vmem:[%s9523_s2 + $0x218] sm:$0xff]  }
 0x4a6   :  { %v1881_v33 = vpop.f32.mrb[129].mxu0  ;;  %7340 = vmatmul.mubr.bf16.gmra.mrb[124].mxu1 %v2007_v30  ;;  %v1978_v35 = vmax.f32 %v7217_v32, 0.0 }
 0x4a7   :  { %v7218_v34 = vpop.f32.mrb[130].mxu0  ;;  %v1976_v38 = vmax.f32 %v1881_v33, 0.0 }
 0x4a8   :  { %v1979_v36 = vmax.f32 %v7218_v34, 0.0  ;;  %v1884_v37 = vpop.f32.mrb[131].mxu0 }
 0x4a9   :  { %v1977_v39 = vmax.f32 %v1884_v37, 0.0 }
 0x4aa   :  { %v2009_v40 = vpack.c.bf16 %v1979_v36, %v1978_v35 }
 0x4ab   :  { %v2008_v41 = vpack.c.bf16 %v1977_v39, %v1976_v38  ;;  %v7943_v38 = vld [vmem:[%s9523_s2 + $0x220] sm:$0xff]  }
 0x4ad   :  { %v7221_v42 = vpop.f32.mrb[132].mxu0  ;;  %7343 = vmatprep.mubr.bf16.mxu1 %v2008_v41 }
 0x4ae   :  { %v1897_v43 = vpop.f32.mrb[133].mxu0  ;;  %7344 = vmatmul.mubr.bf16.gmra.mrb[128].mxu1 %v2009_v40  ;;  %v1982_v45 = vmax.f32 %v7221_v42, 0.0 }
 0x4af   :  { %v7222_v44 = vpop.f32.mrb[134].mxu0  ;;  %v1980_v48 = vmax.f32 %v1897_v43, 0.0  ;;  %v7944_v43 = vld [vmem:[%s9523_s2 + $0x228] sm:$0xff]  }
 0x4b0   :  { %v1983_v46 = vmax.f32 %v7222_v44, 0.0  ;;  %v1900_v47 = vpop.f32.mrb[135].mxu0 }
 0x4b1   :  { %v1981_v49 = vmax.f32 %v1900_v47, 0.0 }
 0x4b2   :  { %v2011_v50 = vpack.c.bf16 %v1983_v46, %v1982_v45 }
 0x4b3   :  { %v2010_v51 = vpack.c.bf16 %v1981_v49, %v1980_v48 }
 0x4b5   :  { %v7225_v52 = vpop.f32.mrb[136].mxu0  ;;  %7347 = vmatprep.mubr.bf16.mxu1 %v2010_v51 }
 0x4b6   :  { %v1913_v53 = vpop.f32.mrb[137].mxu0  ;;  %7348 = vmatmul.mubr.bf16.gmra.mrb[132].mxu1 %v2011_v50  ;;  %v1986_v55 = vmax.f32 %v7225_v52, 0.0  ;;  %v7945_v50 = vld [vmem:[%s9523_s2 + $0x230] sm:$0xff]  }
 0x4b7   :  { %v7226_v54 = vpop.f32.mrb[138].mxu0  ;;  %v1984_v58 = vmax.f32 %v1913_v53, 0.0 }
 0x4b8   :  { %v1987_v56 = vmax.f32 %v7226_v54, 0.0  ;;  %v1916_v57 = vpop.f32.mrb[139].mxu0 }
 0x4b9   :  { %v1985_v59 = vmax.f32 %v1916_v57, 0.0 }
 0x4ba   :  { %v2013_v60 = vpack.c.bf16 %v1987_v56, %v1986_v55  ;;  %v7946_v55 = vld [vmem:[%s9523_s2 + $0x238] sm:$0xff]  }
 0x4bb   :  { %v2012_v61 = vpack.c.bf16 %v1985_v59, %v1984_v58 }
 0x4bd   :  { %v7229_v62 = vpop.f32.mrb[140].mxu0  ;;  %7351 = vmatprep.mubr.bf16.mxu1 %v2012_v61 }
 0x4be   :  { %v1929_v63 = vpop.f32.mrb[141].mxu0  ;;  %7352 = vmatmul.mubr.bf16.gmra.mrb[136].mxu1 %v2013_v60  ;;  %v1990_v1 = vmax.f32 %v7229_v62, 0.0 }
 0x4bf   :  { %v7230_v0 = vpop.f32.mrb[142].mxu0  ;;  %v1988_v4 = vmax.f32 %v1929_v63, 0.0 }
 0x4c0   :  { %v1991_v2 = vmax.f32 %v7230_v0, 0.0  ;;  %v1932_v3 = vpop.f32.mrb[143].mxu0 }
 0x4c1   :  { %v1989_v5 = vmax.f32 %v1932_v3, 0.0 }
 0x4c2   :  { %v2015_v6 = vpack.c.bf16 %v1991_v2, %v1990_v1 }
 0x4c3   :  { %v2014_v7 = vpack.c.bf16 %v1989_v5, %v1988_v4 }
 0x4c5   :  { %7355 = vmatprep.mubr.bf16.mxu1 %v2014_v7 }
 0x4c6   :  { %7356 = vmatmul.mubr.bf16.gmra.mrb[140].mxu1 %v2015_v6 }
 0x541   :  { %v7313_v9 = vpop.f32.mrb[96].mxu1 }
 0x542   :  { %v2405_v10 = vpop.f32.mrb[97].mxu1  ;;  %v2598_v12 = vmax.f32 %v7313_v9, 0.0 }
 0x543   :  { %v7314_v11 = vpop.f32.mrb[98].mxu1  ;;  %v2596_v15 = vmax.f32 %v2405_v10, 0.0 }
 0x544   :  { %v2599_v13 = vmax.f32 %v7314_v11, 0.0  ;;  %v2408_v14 = vpop.f32.mrb[99].mxu1 }
 0x545   :  { %v2597_v16 = vmax.f32 %v2408_v14, 0.0 }
 0x546   :  { %v2645_v17 = vpack.c.bf16 %v2599_v13, %v2598_v12 }
 0x547   :  { %v2644_v18 = vpack.c.bf16 %v2597_v16, %v2596_v15 }
 0x549   :  { %v7317_v20 = vpop.f32.mrb[100].mxu1  ;;  %7375 = vmatprep.mubr.bf16.mxu0 %v2644_v18 }
 0x54a   :  { %v2421_v21 = vpop.f32.mrb[101].mxu1  ;;  %7376 = vmatmul.mubr.bf16.vlgmr.msra.gmra.mrb[144].mxu0 %v2645_v17  ;;  %v2602_v23 = vmax.f32 %v7317_v20, 0.0 }
 0x54b   :  { %v7318_v22 = vpop.f32.mrb[102].mxu1  ;;  %7424 = vmatpush3.bf16.msra.mxu0 %v7939_v8  ;;  %v2600_v27 = vmax.f32 %v2421_v21, 0.0 }
 0x54c   :  { %v2603_v24 = vmax.f32 %v7318_v22, 0.0  ;;  %v2424_v25 = vpop.f32.mrb[103].mxu1  ;;  %7425 = vmatprep.subr.bf16.mxu0 %v7940_v19 }
 0x54d   :  { %v2601_v28 = vmax.f32 %v2424_v25, 0.0 }
 0x54e   :  { %v2647_v29 = vpack.c.bf16 %v2603_v24, %v2602_v23 }
 0x54f   :  { %v2646_v30 = vpack.c.bf16 %v2601_v28, %v2600_v27  ;;  %7426 = vmatpush3.bf16.msra.mxu0 %v7940_v19 }
 0x550   :  { %7427 = vmatprep.subr.bf16.mxu0 %v7941_v26 }
 0x551   :  { %v7321_v32 = vpop.f32.mrb[104].mxu1  ;;  %7379 = vmatprep.mubr.bf16.mxu0 %v2646_v30 }
 0x552   :  { %v2437_v33 = vpop.f32.mrb[105].mxu1  ;;  %7380 = vmatmul.mubr.bf16.gmra.mrb[148].mxu0 %v2647_v29  ;;  %v2606_v35 = vmax.f32 %v7321_v32, 0.0 }
 0x553   :  { %v7322_v34 = vpop.f32.mrb[106].mxu1  ;;  %7428 = vmatpush3.bf16.msra.mxu0 %v7941_v26  ;;  %v2604_v39 = vmax.f32 %v2437_v33, 0.0 }
 0x554   :  { %v2607_v36 = vmax.f32 %v7322_v34, 0.0  ;;  %v2440_v37 = vpop.f32.mrb[107].mxu1  ;;  %7429 = vmatprep.subr.bf16.mxu0 %v7942_v31 }
 0x555   :  { %v2605_v40 = vmax.f32 %v2440_v37, 0.0 }
 0x556   :  { %v2649_v41 = vpack.c.bf16 %v2607_v36, %v2606_v35 }
 0x557   :  { %v2648_v42 = vpack.c.bf16 %v2605_v40, %v2604_v39  ;;  %7430 = vmatpush3.bf16.msra.mxu0 %v7942_v31 }
 0x558   :  { %7431 = vmatprep.subr.bf16.mxu0 %v7943_v38 }
 0x559   :  { %v7325_v44 = vpop.f32.mrb[108].mxu1  ;;  %7383 = vmatprep.mubr.bf16.mxu0 %v2648_v42 }
 0x55a   :  { %v2453_v45 = vpop.f32.mrb[109].mxu1  ;;  %7384 = vmatmul.mubr.bf16.gmra.mrb[152].mxu0 %v2649_v41  ;;  %v2610_v47 = vmax.f32 %v7325_v44, 0.0 }
 0x55b   :  { %v7326_v46 = vpop.f32.mrb[110].mxu1  ;;  %7432 = vmatpush3.bf16.msra.mxu0 %v7943_v38  ;;  %v2608_v51 = vmax.f32 %v2453_v45, 0.0 }
 0x55c   :  { %v2611_v48 = vmax.f32 %v7326_v46, 0.0  ;;  %v2456_v49 = vpop.f32.mrb[111].mxu1  ;;  %7433 = vmatprep.subr.bf16.mxu0 %v7944_v43 }
 0x55d   :  { %v2609_v52 = vmax.f32 %v2456_v49, 0.0 }
 0x55e   :  { %v2651_v53 = vpack.c.bf16 %v2611_v48, %v2610_v47 }
 0x55f   :  { %v2650_v54 = vpack.c.bf16 %v2609_v52, %v2608_v51  ;;  %7434 = vmatpush3.bf16.msra.mxu0 %v7944_v43 }
 0x560   :  { %7435 = vmatprep.subr.bf16.mxu0 %v7945_v50 }
 0x561   :  { %v7329_v56 = vpop.f32.mrb[112].mxu1  ;;  %7387 = vmatprep.mubr.bf16.mxu0 %v2650_v54 }
 0x562   :  { %v2469_v57 = vpop.f32.mrb[113].mxu1  ;;  %7388 = vmatmul.mubr.bf16.gmra.mrb[156].mxu0 %v2651_v53  ;;  %v2614_v59 = vmax.f32 %v7329_v56, 0.0 }
 0x563   :  { %v7330_v58 = vpop.f32.mrb[114].mxu1  ;;  %7436 = vmatpush3.bf16.msra.mxu0 %v7945_v50  ;;  %v2612_v62 = vmax.f32 %v2469_v57, 0.0 }
 0x564   :  { %v2615_v60 = vmax.f32 %v7330_v58, 0.0  ;;  %v2472_v61 = vpop.f32.mrb[115].mxu1  ;;  %7437 = vmatprep.subr.bf16.mxu0 %v7946_v55 }
 0x565   :  { %v2613_v63 = vmax.f32 %v2472_v61, 0.0 }
 0x566   :  { %v2653_v0 = vpack.c.bf16 %v2615_v60, %v2614_v59 }
 0x567   :  { %v2652_v1 = vpack.c.bf16 %v2613_v63, %v2612_v62  ;;  %7438 = vmatpush3.bf16.msra.mxu0 %v7946_v55 }
 0x569   :  { %v7333_v2 = vpop.f32.mrb[116].mxu1  ;;  %7391 = vmatprep.mubr.bf16.mxu0 %v2652_v1 }
 0x56a   :  { %v2485_v3 = vpop.f32.mrb[117].mxu1  ;;  %7392 = vmatmul.mubr.bf16.gmra.mrb[160].mxu0 %v2653_v0  ;;  %v2618_v5 = vmax.f32 %v7333_v2, 0.0 }
 0x56b   :  { %v7334_v4 = vpop.f32.mrb[118].mxu1  ;;  %v2616_v8 = vmax.f32 %v2485_v3, 0.0 }
 0x56c   :  { %v2619_v6 = vmax.f32 %v7334_v4, 0.0  ;;  %v2488_v7 = vpop.f32.mrb[119].mxu1 }
 0x56d   :  { %v2617_v9 = vmax.f32 %v2488_v7, 0.0 }
 0x56e   :  { %v2655_v10 = vpack.c.bf16 %v2619_v6, %v2618_v5 }
 0x56f   :  { %v2654_v11 = vpack.c.bf16 %v2617_v9, %v2616_v8  ;;  %v7947_v8 = vld [vmem:[%s9523_s2 + $0x240] sm:$0xff]   ;;  %v7948_v9 = vld [vmem:[%s9523_s2 + $0x248] sm:$0xff]  }
 0x570   :  { %7487 = vmatprep.subr.bf16.mxu1 %v7947_v8 }
 0x571   :  { %v7337_v12 = vpop.f32.mrb[120].mxu1  ;;  %7395 = vmatprep.mubr.bf16.mxu0 %v2654_v11  ;;  %7488 = vmatpush3.bf16.msra.mxu1 %v7947_v8  ;;  %v7950_v11 = vld [vmem:[%s9523_s2 + $0x258] sm:$0xff]  }
 0x572   :  { %v2501_v13 = vpop.f32.mrb[121].mxu1  ;;  %7396 = vmatmul.mubr.bf16.gmra.mrb[164].mxu0 %v2655_v10  ;;  %v2622_v15 = vmax.f32 %v7337_v12, 0.0  ;;  %7489 = vmatprep.subr.bf16.mxu1 %v7948_v9  ;;  %v7949_v10 = vld [vmem:[%s9523_s2 + $0x250] sm:$0xff]   ;;  %v7951_v12 = vld [vmem:[%s9523_s2 + $0x260] sm:$0xff]  }
 0x573   :  { %v7338_v14 = vpop.f32.mrb[122].mxu1  ;;  %v2620_v18 = vmax.f32 %v2501_v13, 0.0  ;;  %v7952_v13 = vld [vmem:[%s9523_s2 + $0x268] sm:$0xff]  }
 0x574   :  { %v2623_v16 = vmax.f32 %v7338_v14, 0.0  ;;  %v2504_v17 = vpop.f32.mrb[123].mxu1  ;;  %v7953_v14 = vld [vmem:[%s9523_s2 + $0x270] sm:$0xff]  }
 0x575   :  { %v2621_v19 = vmax.f32 %v2504_v17, 0.0  ;;  %7490 = vmatpush3.bf16.msra.mxu1 %v7948_v9 }
 0x576   :  { %v2657_v20 = vpack.c.bf16 %v2623_v16, %v2622_v15  ;;  %7491 = vmatprep.subr.bf16.mxu1 %v7949_v10  ;;  %v7954_v15 = vld [vmem:[%s9523_s2 + $0x278] sm:$0xff]  }
 0x577   :  { %v2656_v21 = vpack.c.bf16 %v2621_v19, %v2620_v18 }
 0x579   :  { %v7341_v22 = vpop.f32.mrb[124].mxu1  ;;  %7399 = vmatprep.mubr.bf16.mxu0 %v2656_v21  ;;  %7492 = vmatpush3.bf16.msra.mxu1 %v7949_v10 }
 0x57a   :  { %v2517_v23 = vpop.f32.mrb[125].mxu1  ;;  %7400 = vmatmul.mubr.bf16.gmra.mrb[168].mxu0 %v2657_v20  ;;  %v2626_v25 = vmax.f32 %v7341_v22, 0.0  ;;  %7493 = vmatprep.subr.bf16.mxu1 %v7950_v11 }
 0x57b   :  { %v7342_v24 = vpop.f32.mrb[126].mxu1  ;;  %v2624_v28 = vmax.f32 %v2517_v23, 0.0 }
 0x57c   :  { %v2627_v26 = vmax.f32 %v7342_v24, 0.0  ;;  %v2520_v27 = vpop.f32.mrb[127].mxu1 }
 0x57d   :  { %v2625_v29 = vmax.f32 %v2520_v27, 0.0  ;;  %7494 = vmatpush3.bf16.msra.mxu1 %v7950_v11 }
 0x57e   :  { %v2659_v30 = vpack.c.bf16 %v2627_v26, %v2626_v25  ;;  %7495 = vmatprep.subr.bf16.mxu1 %v7951_v12 }
 0x57f   :  { %v2658_v31 = vpack.c.bf16 %v2625_v29, %v2624_v28 }
 0x581   :  { %v7345_v32 = vpop.f32.mrb[128].mxu1  ;;  %7403 = vmatprep.mubr.bf16.mxu0 %v2658_v31  ;;  %7496 = vmatpush3.bf16.msra.mxu1 %v7951_v12 }
 0x582   :  { %v2533_v33 = vpop.f32.mrb[129].mxu1  ;;  %7404 = vmatmul.mubr.bf16.gmra.mrb[172].mxu0 %v2659_v30  ;;  %v2630_v35 = vmax.f32 %v7345_v32, 0.0  ;;  %7497 = vmatprep.subr.bf16.mxu1 %v7952_v13 }
 0x583   :  { %v7346_v34 = vpop.f32.mrb[130].mxu1  ;;  %v2628_v38 = vmax.f32 %v2533_v33, 0.0 }
 0x584   :  { %v2631_v36 = vmax.f32 %v7346_v34, 0.0  ;;  %v2536_v37 = vpop.f32.mrb[131].mxu1 }
 0x585   :  { %v2629_v39 = vmax.f32 %v2536_v37, 0.0  ;;  %7498 = vmatpush3.bf16.msra.mxu1 %v7952_v13 }
 0x586   :  { %v2661_v40 = vpack.c.bf16 %v2631_v36, %v2630_v35  ;;  %7499 = vmatprep.subr.bf16.mxu1 %v7953_v14 }
 0x587   :  { %v2660_v41 = vpack.c.bf16 %v2629_v39, %v2628_v38 }
 0x589   :  { %v7349_v42 = vpop.f32.mrb[132].mxu1  ;;  %7407 = vmatprep.mubr.bf16.mxu0 %v2660_v41  ;;  %7500 = vmatpush3.bf16.msra.mxu1 %v7953_v14 }
 0x58a   :  { %v2549_v43 = vpop.f32.mrb[133].mxu1  ;;  %7408 = vmatmul.mubr.bf16.gmra.mrb[176].mxu0 %v2661_v40  ;;  %v2634_v45 = vmax.f32 %v7349_v42, 0.0  ;;  %7501 = vmatprep.subr.bf16.mxu1 %v7954_v15 }
 0x58b   :  { %v7350_v44 = vpop.f32.mrb[134].mxu1  ;;  %v2632_v48 = vmax.f32 %v2549_v43, 0.0 }
 0x58c   :  { %v2635_v46 = vmax.f32 %v7350_v44, 0.0  ;;  %v2552_v47 = vpop.f32.mrb[135].mxu1 }
 0x58d   :  { %v2633_v49 = vmax.f32 %v2552_v47, 0.0  ;;  %7502 = vmatpush3.bf16.msra.mxu1 %v7954_v15 }
 0x58e   :  { %v2663_v50 = vpack.c.bf16 %v2635_v46, %v2634_v45 }
 0x58f   :  { %v2662_v51 = vpack.c.bf16 %v2633_v49, %v2632_v48 }
 0x591   :  { %v7353_v52 = vpop.f32.mrb[136].mxu1  ;;  %7411 = vmatprep.mubr.bf16.mxu0 %v2662_v51 }
 0x592   :  { %v2565_v53 = vpop.f32.mrb[137].mxu1  ;;  %7412 = vmatmul.mubr.bf16.gmra.mrb[180].mxu0 %v2663_v50  ;;  %v2638_v55 = vmax.f32 %v7353_v52, 0.0 }
 0x593   :  { %v7354_v54 = vpop.f32.mrb[138].mxu1  ;;  %v2636_v58 = vmax.f32 %v2565_v53, 0.0 }
 0x594   :  { %v2639_v56 = vmax.f32 %v7354_v54, 0.0  ;;  %v2568_v57 = vpop.f32.mrb[139].mxu1 }
 0x595   :  { %v2637_v59 = vmax.f32 %v2568_v57, 0.0 }
 0x596   :  { %v2665_v60 = vpack.c.bf16 %v2639_v56, %v2638_v55 }
 0x597   :  { %v2664_v61 = vpack.c.bf16 %v2637_v59, %v2636_v58 }
 0x599   :  { %v7357_v62 = vpop.f32.mrb[140].mxu1  ;;  %7415 = vmatprep.mubr.bf16.mxu0 %v2664_v61 }
 0x59a   :  { %v2581_v63 = vpop.f32.mrb[141].mxu1  ;;  %7416 = vmatmul.mubr.bf16.gmra.mrb[184].mxu0 %v2665_v60  ;;  %v2642_v1 = vmax.f32 %v7357_v62, 0.0 }
 0x59b   :  { %v7358_v0 = vpop.f32.mrb[142].mxu1  ;;  %v2640_v4 = vmax.f32 %v2581_v63, 0.0 }
 0x59c   :  { %v2643_v2 = vmax.f32 %v7358_v0, 0.0  ;;  %v2584_v3 = vpop.f32.mrb[143].mxu1 }
 0x59d   :  { %v2641_v5 = vmax.f32 %v2584_v3, 0.0 }
 0x59e   :  { %v2667_v6 = vpack.c.bf16 %v2643_v2, %v2642_v1 }
 0x59f   :  { %v2666_v7 = vpack.c.bf16 %v2641_v5, %v2640_v4 }
 0x5a1   :  { %7419 = vmatprep.mubr.bf16.mxu0 %v2666_v7 }
 0x5a2   :  { %7420 = vmatmul.mubr.bf16.gmra.mrb[188].mxu0 %v2667_v6 }
 0x61d   :  { %v7377_v16 = vpop.f32.mrb[144].mxu0 }
 0x61e   :  { %v2767_v17 = vpop.f32.mrb[145].mxu0  ;;  %v2960_v19 = vmax.f32 %v7377_v16, 0.0 }
 0x61f   :  { %v7378_v18 = vpop.f32.mrb[146].mxu0  ;;  %v2958_v22 = vmax.f32 %v2767_v17, 0.0 }
 0x620   :  { %v2961_v20 = vmax.f32 %v7378_v18, 0.0  ;;  %v2770_v21 = vpop.f32.mrb[147].mxu0 }
 0x621   :  { %v2959_v23 = vmax.f32 %v2770_v21, 0.0 }
 0x622   :  { %v3007_v24 = vpack.c.bf16 %v2961_v20, %v2960_v19 }
 0x623   :  { %v3006_v25 = vpack.c.bf16 %v2959_v23, %v2958_v22 }
 0x625   :  { %v7381_v26 = vpop.f32.mrb[148].mxu0  ;;  %7439 = vmatprep.mubr.bf16.mxu0 %v3006_v25 }
 0x626   :  { %v2783_v27 = vpop.f32.mrb[149].mxu0  ;;  %7440 = vmatmul.mubr.bf16.vlgmr.msra.gmra.mrb[192].mxu0 %v3007_v24  ;;  %v2964_v29 = vmax.f32 %v7381_v26, 0.0 }
 0x627   :  { %v7382_v28 = vpop.f32.mrb[150].mxu0  ;;  %v2962_v32 = vmax.f32 %v2783_v27, 0.0 }
 0x628   :  { %v2965_v30 = vmax.f32 %v7382_v28, 0.0  ;;  %v2786_v31 = vpop.f32.mrb[151].mxu0 }
 0x629   :  { %v2963_v33 = vmax.f32 %v2786_v31, 0.0 }
 0x62a   :  { %v3009_v34 = vpack.c.bf16 %v2965_v30, %v2964_v29 }
 0x62b   :  { %v3008_v35 = vpack.c.bf16 %v2963_v33, %v2962_v32 }
 0x62d   :  { %v7385_v36 = vpop.f32.mrb[152].mxu0  ;;  %7443 = vmatprep.mubr.bf16.mxu0 %v3008_v35 }
 0x62e   :  { %v2799_v37 = vpop.f32.mrb[153].mxu0  ;;  %7444 = vmatmul.mubr.bf16.gmra.mrb[196].mxu0 %v3009_v34  ;;  %v2968_v39 = vmax.f32 %v7385_v36, 0.0 }
 0x62f   :  { %v7386_v38 = vpop.f32.mrb[154].mxu0  ;;  %v2966_v42 = vmax.f32 %v2799_v37, 0.0 }
 0x630   :  { %v2969_v40 = vmax.f32 %v7386_v38, 0.0  ;;  %v2802_v41 = vpop.f32.mrb[155].mxu0 }
 0x631   :  { %v2967_v43 = vmax.f32 %v2802_v41, 0.0 }
 0x632   :  { %v3011_v44 = vpack.c.bf16 %v2969_v40, %v2968_v39 }
 0x633   :  { %v3010_v45 = vpack.c.bf16 %v2967_v43, %v2966_v42 }
 0x635   :  { %v7389_v46 = vpop.f32.mrb[156].mxu0  ;;  %7447 = vmatprep.mubr.bf16.mxu0 %v3010_v45 }
 0x636   :  { %v2815_v47 = vpop.f32.mrb[157].mxu0  ;;  %7448 = vmatmul.mubr.bf16.gmra.mrb[200].mxu0 %v3011_v44  ;;  %v2972_v49 = vmax.f32 %v7389_v46, 0.0 }
 0x637   :  { %v7390_v48 = vpop.f32.mrb[158].mxu0  ;;  %v2970_v52 = vmax.f32 %v2815_v47, 0.0 }
 0x638   :  { %v2973_v50 = vmax.f32 %v7390_v48, 0.0  ;;  %v2818_v51 = vpop.f32.mrb[159].mxu0 }
 0x639   :  { %v2971_v53 = vmax.f32 %v2818_v51, 0.0 }
 0x63a   :  { %v3013_v54 = vpack.c.bf16 %v2973_v50, %v2972_v49 }
 0x63b   :  { %v3012_v55 = vpack.c.bf16 %v2971_v53, %v2970_v52 }
 0x63d   :  { %v7393_v56 = vpop.f32.mrb[160].mxu0  ;;  %7451 = vmatprep.mubr.bf16.mxu0 %v3012_v55 }
 0x63e   :  { %v2831_v57 = vpop.f32.mrb[161].mxu0  ;;  %7452 = vmatmul.mubr.bf16.gmra.mrb[204].mxu0 %v3013_v54  ;;  %v2976_v59 = vmax.f32 %v7393_v56, 0.0 }
 0x63f   :  { %v7394_v58 = vpop.f32.mrb[162].mxu0  ;;  %v2974_v62 = vmax.f32 %v2831_v57, 0.0 }
 0x640   :  { %v2977_v60 = vmax.f32 %v7394_v58, 0.0  ;;  %v2834_v61 = vpop.f32.mrb[163].mxu0 }
 0x641   :  { %v2975_v63 = vmax.f32 %v2834_v61, 0.0 }
 0x642   :  { %v3015_v0 = vpack.c.bf16 %v2977_v60, %v2976_v59 }
 0x643   :  { %v3014_v1 = vpack.c.bf16 %v2975_v63, %v2974_v62 }
 0x645   :  { %v7397_v2 = vpop.f32.mrb[164].mxu0  ;;  %7455 = vmatprep.mubr.bf16.mxu0 %v3014_v1 }
 0x646   :  { %v2847_v3 = vpop.f32.mrb[165].mxu0  ;;  %7456 = vmatmul.mubr.bf16.gmra.mrb[208].mxu0 %v3015_v0  ;;  %v2980_v5 = vmax.f32 %v7397_v2, 0.0 }
 0x647   :  { %v7398_v4 = vpop.f32.mrb[166].mxu0  ;;  %v2978_v8 = vmax.f32 %v2847_v3, 0.0 }
 0x648   :  { %v2981_v6 = vmax.f32 %v7398_v4, 0.0  ;;  %v2850_v7 = vpop.f32.mrb[167].mxu0 }
 0x649   :  { %v2979_v9 = vmax.f32 %v2850_v7, 0.0 }
 0x64a   :  { %v3017_v10 = vpack.c.bf16 %v2981_v6, %v2980_v5 }
 0x64b   :  { %v3016_v11 = vpack.c.bf16 %v2979_v9, %v2978_v8  ;;  %v7955_v8 = vld [vmem:[%s9523_s2 + $0x280] sm:$0xff]   ;;  %v7956_v9 = vld [vmem:[%s9523_s2 + $0x288] sm:$0xff]  }
 0x64c   :  { %7551 = vmatprep.subr.bf16.mxu0 %v7955_v8 }
 0x64d   :  { %v7401_v12 = vpop.f32.mrb[168].mxu0  ;;  %7459 = vmatprep.mubr.bf16.mxu0 %v3016_v11  ;;  %7552 = vmatpush3.bf16.msra.mxu0 %v7955_v8  ;;  %v7958_v11 = vld [vmem:[%s9523_s2 + $0x298] sm:$0xff]  }
 0x64e   :  { %v2863_v13 = vpop.f32.mrb[169].mxu0  ;;  %7460 = vmatmul.mubr.bf16.gmra.mrb[212].mxu0 %v3017_v10  ;;  %v2984_v15 = vmax.f32 %v7401_v12, 0.0  ;;  %7553 = vmatprep.subr.bf16.mxu0 %v7956_v9  ;;  %v7957_v10 = vld [vmem:[%s9523_s2 + $0x290] sm:$0xff]   ;;  %v7959_v12 = vld [vmem:[%s9523_s2 + $0x2a0] sm:$0xff]  }
 0x64f   :  { %v7402_v14 = vpop.f32.mrb[170].mxu0  ;;  %v2982_v18 = vmax.f32 %v2863_v13, 0.0  ;;  %v7960_v13 = vld [vmem:[%s9523_s2 + $0x2a8] sm:$0xff]  }
 0x650   :  { %v2985_v16 = vmax.f32 %v7402_v14, 0.0  ;;  %v2866_v17 = vpop.f32.mrb[171].mxu0  ;;  %v7961_v14 = vld [vmem:[%s9523_s2 + $0x2b0] sm:$0xff]  }
 0x651   :  { %v2983_v19 = vmax.f32 %v2866_v17, 0.0  ;;  %7554 = vmatpush3.bf16.msra.mxu0 %v7956_v9 }
 0x652   :  { %v3019_v20 = vpack.c.bf16 %v2985_v16, %v2984_v15  ;;  %7555 = vmatprep.subr.bf16.mxu0 %v7957_v10  ;;  %v7962_v15 = vld [vmem:[%s9523_s2 + $0x2b8] sm:$0xff]  }
 0x653   :  { %v3018_v21 = vpack.c.bf16 %v2983_v19, %v2982_v18 }
 0x655   :  { %v7405_v22 = vpop.f32.mrb[172].mxu0  ;;  %7463 = vmatprep.mubr.bf16.mxu0 %v3018_v21  ;;  %7556 = vmatpush3.bf16.msra.mxu0 %v7957_v10 }
 0x656   :  { %v2879_v23 = vpop.f32.mrb[173].mxu0  ;;  %7464 = vmatmul.mubr.bf16.gmra.mrb[216].mxu0 %v3019_v20  ;;  %v2988_v25 = vmax.f32 %v7405_v22, 0.0  ;;  %7557 = vmatprep.subr.bf16.mxu0 %v7958_v11 }
 0x657   :  { %v7406_v24 = vpop.f32.mrb[174].mxu0  ;;  %v2986_v28 = vmax.f32 %v2879_v23, 0.0 }
 0x658   :  { %v2989_v26 = vmax.f32 %v7406_v24, 0.0  ;;  %v2882_v27 = vpop.f32.mrb[175].mxu0 }
 0x659   :  { %v2987_v29 = vmax.f32 %v2882_v27, 0.0  ;;  %7558 = vmatpush3.bf16.msra.mxu0 %v7958_v11 }
 0x65a   :  { %v3021_v30 = vpack.c.bf16 %v2989_v26, %v2988_v25  ;;  %7559 = vmatprep.subr.bf16.mxu0 %v7959_v12 }
 0x65b   :  { %v3020_v31 = vpack.c.bf16 %v2987_v29, %v2986_v28 }
 0x65d   :  { %v7409_v32 = vpop.f32.mrb[176].mxu0  ;;  %7467 = vmatprep.mubr.bf16.mxu0 %v3020_v31  ;;  %7560 = vmatpush3.bf16.msra.mxu0 %v7959_v12 }
 0x65e   :  { %v2895_v33 = vpop.f32.mrb[177].mxu0  ;;  %7468 = vmatmul.mubr.bf16.gmra.mrb[220].mxu0 %v3021_v30  ;;  %v2992_v35 = vmax.f32 %v7409_v32, 0.0  ;;  %7561 = vmatprep.subr.bf16.mxu0 %v7960_v13 }
 0x65f   :  { %v7410_v34 = vpop.f32.mrb[178].mxu0  ;;  %v2990_v38 = vmax.f32 %v2895_v33, 0.0 }
 0x660   :  { %v2993_v36 = vmax.f32 %v7410_v34, 0.0  ;;  %v2898_v37 = vpop.f32.mrb[179].mxu0 }
 0x661   :  { %v2991_v39 = vmax.f32 %v2898_v37, 0.0  ;;  %7562 = vmatpush3.bf16.msra.mxu0 %v7960_v13 }
 0x662   :  { %v3023_v40 = vpack.c.bf16 %v2993_v36, %v2992_v35  ;;  %7563 = vmatprep.subr.bf16.mxu0 %v7961_v14 }
 0x663   :  { %v3022_v41 = vpack.c.bf16 %v2991_v39, %v2990_v38 }
 0x665   :  { %v7413_v42 = vpop.f32.mrb[180].mxu0  ;;  %7471 = vmatprep.mubr.bf16.mxu0 %v3022_v41  ;;  %7564 = vmatpush3.bf16.msra.mxu0 %v7961_v14 }
 0x666   :  { %v2911_v43 = vpop.f32.mrb[181].mxu0  ;;  %7472 = vmatmul.mubr.bf16.gmra.mrb[224].mxu0 %v3023_v40  ;;  %v2996_v45 = vmax.f32 %v7413_v42, 0.0  ;;  %7565 = vmatprep.subr.bf16.mxu0 %v7962_v15 }
 0x667   :  { %v7414_v44 = vpop.f32.mrb[182].mxu0  ;;  %v2994_v48 = vmax.f32 %v2911_v43, 0.0 }
 0x668   :  { %v2997_v46 = vmax.f32 %v7414_v44, 0.0  ;;  %v2914_v47 = vpop.f32.mrb[183].mxu0 }
 0x669   :  { %v2995_v49 = vmax.f32 %v2914_v47, 0.0  ;;  %7566 = vmatpush3.bf16.msra.mxu0 %v7962_v15 }
 0x66a   :  { %v3025_v50 = vpack.c.bf16 %v2997_v46, %v2996_v45 }
 0x66b   :  { %v3024_v51 = vpack.c.bf16 %v2995_v49, %v2994_v48 }
 0x66d   :  { %v7417_v52 = vpop.f32.mrb[184].mxu0  ;;  %7475 = vmatprep.mubr.bf16.mxu0 %v3024_v51 }
 0x66e   :  { %v2927_v53 = vpop.f32.mrb[185].mxu0  ;;  %7476 = vmatmul.mubr.bf16.gmra.mrb[228].mxu0 %v3025_v50  ;;  %v3000_v55 = vmax.f32 %v7417_v52, 0.0 }
 0x66f   :  { %v7418_v54 = vpop.f32.mrb[186].mxu0  ;;  %v2998_v58 = vmax.f32 %v2927_v53, 0.0 }
 0x670   :  { %v3001_v56 = vmax.f32 %v7418_v54, 0.0  ;;  %v2930_v57 = vpop.f32.mrb[187].mxu0 }
 0x671   :  { %v2999_v59 = vmax.f32 %v2930_v57, 0.0 }
 0x672   :  { %v3027_v60 = vpack.c.bf16 %v3001_v56, %v3000_v55 }
 0x673   :  { %v3026_v61 = vpack.c.bf16 %v2999_v59, %v2998_v58 }
 0x675   :  { %v7421_v62 = vpop.f32.mrb[188].mxu0  ;;  %7479 = vmatprep.mubr.bf16.mxu0 %v3026_v61 }
 0x676   :  { %v2943_v63 = vpop.f32.mrb[189].mxu0  ;;  %7480 = vmatmul.mubr.bf16.gmra.mrb[232].mxu0 %v3027_v60  ;;  %v3004_v1 = vmax.f32 %v7421_v62, 0.0 }
 0x677   :  { %v7422_v0 = vpop.f32.mrb[190].mxu0  ;;  %v3002_v4 = vmax.f32 %v2943_v63, 0.0 }
 0x678   :  { %v3005_v2 = vmax.f32 %v7422_v0, 0.0  ;;  %v2946_v3 = vpop.f32.mrb[191].mxu0 }
 0x679   :  { %v3003_v5 = vmax.f32 %v2946_v3, 0.0 }
 0x67a   :  { %v3029_v6 = vpack.c.bf16 %v3005_v2, %v3004_v1 }
 0x67b   :  { %v3028_v7 = vpack.c.bf16 %v3003_v5, %v3002_v4 }
 0x67d   :  { %7483 = vmatprep.mubr.bf16.mxu0 %v3028_v7 }
 0x67e   :  { %7484 = vmatmul.mubr.bf16.gmra.mrb[236].mxu0 %v3029_v6 }
 0x6f9   :  { %v7441_v16 = vpop.f32.mrb[192].mxu0 }
 0x6fa   :  { %v3129_v17 = vpop.f32.mrb[193].mxu0  ;;  %v3322_v19 = vmax.f32 %v7441_v16, 0.0 }
 0x6fb   :  { %v7442_v18 = vpop.f32.mrb[194].mxu0  ;;  %v3320_v22 = vmax.f32 %v3129_v17, 0.0 }
 0x6fc   :  { %v3323_v20 = vmax.f32 %v7442_v18, 0.0  ;;  %v3132_v21 = vpop.f32.mrb[195].mxu0 }
 0x6fd   :  { %v3321_v23 = vmax.f32 %v3132_v21, 0.0 }
 0x6fe   :  { %v3369_v24 = vpack.c.bf16 %v3323_v20, %v3322_v19 }
 0x6ff   :  { %v3368_v25 = vpack.c.bf16 %v3321_v23, %v3320_v22 }
 0x701   :  { %v7445_v26 = vpop.f32.mrb[196].mxu0  ;;  %7503 = vmatprep.mubr.bf16.mxu1 %v3368_v25 }
 0x702   :  { %v3145_v27 = vpop.f32.mrb[197].mxu0  ;;  %7504 = vmatmul.mubr.bf16.vlgmr.msra.gmra.mrb[144].mxu1 %v3369_v24  ;;  %v3326_v29 = vmax.f32 %v7445_v26, 0.0 }
 0x703   :  { %v7446_v28 = vpop.f32.mrb[198].mxu0  ;;  %v3324_v32 = vmax.f32 %v3145_v27, 0.0 }
 0x704   :  { %v3327_v30 = vmax.f32 %v7446_v28, 0.0  ;;  %v3148_v31 = vpop.f32.mrb[199].mxu0 }
 0x705   :  { %v3325_v33 = vmax.f32 %v3148_v31, 0.0 }
 0x706   :  { %v3371_v34 = vpack.c.bf16 %v3327_v30, %v3326_v29 }
 0x707   :  { %v3370_v35 = vpack.c.bf16 %v3325_v33, %v3324_v32 }
 0x709   :  { %v7449_v36 = vpop.f32.mrb[200].mxu0  ;;  %7507 = vmatprep.mubr.bf16.mxu1 %v3370_v35 }
 0x70a   :  { %v3161_v37 = vpop.f32.mrb[201].mxu0  ;;  %7508 = vmatmul.mubr.bf16.gmra.mrb[148].mxu1 %v3371_v34  ;;  %v3330_v39 = vmax.f32 %v7449_v36, 0.0 }
 0x70b   :  { %v7450_v38 = vpop.f32.mrb[202].mxu0  ;;  %v3328_v42 = vmax.f32 %v3161_v37, 0.0 }
 0x70c   :  { %v3331_v40 = vmax.f32 %v7450_v38, 0.0  ;;  %v3164_v41 = vpop.f32.mrb[203].mxu0 }
 0x70d   :  { %v3329_v43 = vmax.f32 %v3164_v41, 0.0 }
 0x70e   :  { %v3373_v44 = vpack.c.bf16 %v3331_v40, %v3330_v39 }
 0x70f   :  { %v3372_v45 = vpack.c.bf16 %v3329_v43, %v3328_v42 }
 0x711   :  { %v7453_v46 = vpop.f32.mrb[204].mxu0  ;;  %7511 = vmatprep.mubr.bf16.mxu1 %v3372_v45 }
 0x712   :  { %v3177_v47 = vpop.f32.mrb[205].mxu0  ;;  %7512 = vmatmul.mubr.bf16.gmra.mrb[152].mxu1 %v3373_v44  ;;  %v3334_v49 = vmax.f32 %v7453_v46, 0.0 }
 0x713   :  { %v7454_v48 = vpop.f32.mrb[206].mxu0  ;;  %v3332_v52 = vmax.f32 %v3177_v47, 0.0 }
 0x714   :  { %v3335_v50 = vmax.f32 %v7454_v48, 0.0  ;;  %v3180_v51 = vpop.f32.mrb[207].mxu0 }
 0x715   :  { %v3333_v53 = vmax.f32 %v3180_v51, 0.0 }
 0x716   :  { %v3375_v54 = vpack.c.bf16 %v3335_v50, %v3334_v49 }
 0x717   :  { %v3374_v55 = vpack.c.bf16 %v3333_v53, %v3332_v52 }
 0x719   :  { %v7457_v56 = vpop.f32.mrb[208].mxu0  ;;  %7515 = vmatprep.mubr.bf16.mxu1 %v3374_v55 }
 0x71a   :  { %v3193_v57 = vpop.f32.mrb[209].mxu0  ;;  %7516 = vmatmul.mubr.bf16.gmra.mrb[156].mxu1 %v3375_v54  ;;  %v3338_v59 = vmax.f32 %v7457_v56, 0.0 }
 0x71b   :  { %v7458_v58 = vpop.f32.mrb[210].mxu0  ;;  %v3336_v62 = vmax.f32 %v3193_v57, 0.0 }
 0x71c   :  { %v3339_v60 = vmax.f32 %v7458_v58, 0.0  ;;  %v3196_v61 = vpop.f32.mrb[211].mxu0 }
 0x71d   :  { %v3337_v63 = vmax.f32 %v3196_v61, 0.0 }
 0x71e   :  { %v3377_v0 = vpack.c.bf16 %v3339_v60, %v3338_v59 }
 0x71f   :  { %v3376_v1 = vpack.c.bf16 %v3337_v63, %v3336_v62 }
 0x721   :  { %v7461_v2 = vpop.f32.mrb[212].mxu0  ;;  %7519 = vmatprep.mubr.bf16.mxu1 %v3376_v1 }
 0x722   :  { %v3209_v3 = vpop.f32.mrb[213].mxu0  ;;  %7520 = vmatmul.mubr.bf16.gmra.mrb[160].mxu1 %v3377_v0  ;;  %v3342_v5 = vmax.f32 %v7461_v2, 0.0 }
 0x723   :  { %v7462_v4 = vpop.f32.mrb[214].mxu0  ;;  %v3340_v8 = vmax.f32 %v3209_v3, 0.0 }
 0x724   :  { %v3343_v6 = vmax.f32 %v7462_v4, 0.0  ;;  %v3212_v7 = vpop.f32.mrb[215].mxu0 }
 0x725   :  { %v3341_v9 = vmax.f32 %v3212_v7, 0.0 }
 0x726   :  { %v3379_v10 = vpack.c.bf16 %v3343_v6, %v3342_v5 }
 0x727   :  { %v3378_v11 = vpack.c.bf16 %v3341_v9, %v3340_v8  ;;  %v8380_v8 = vmov 0  }
 0x728   :  { %7729 = vset.pattern.permute.xlu0 %v8380_v8  ;;  %7740 = vset.pattern.permute.xlu1 %v8380_v8 }
 0x729   :  { %v7465_v12 = vpop.f32.mrb[216].mxu0  ;;  %7523 = vmatprep.mubr.bf16.mxu1 %v3378_v11 }
 0x72a   :  { %v3225_v13 = vpop.f32.mrb[217].mxu0  ;;  %7524 = vmatmul.mubr.bf16.gmra.mrb[164].mxu1 %v3379_v10  ;;  %v3346_v15 = vmax.f32 %v7465_v12, 0.0 }
 0x72b   :  { %v7466_v14 = vpop.f32.mrb[218].mxu0  ;;  %v3344_v18 = vmax.f32 %v3225_v13, 0.0 }
 0x72c   :  { %v3347_v16 = vmax.f32 %v7466_v14, 0.0  ;;  %v3228_v17 = vpop.f32.mrb[219].mxu0 }
 0x72d   :  { %v3345_v19 = vmax.f32 %v3228_v17, 0.0 }
 0x72e   :  { %v3381_v20 = vpack.c.bf16 %v3347_v16, %v3346_v15 }
 0x72f   :  { %v3380_v21 = vpack.c.bf16 %v3345_v19, %v3344_v18 }
 0x731   :  { %v7469_v22 = vpop.f32.mrb[220].mxu0  ;;  %7527 = vmatprep.mubr.bf16.mxu1 %v3380_v21 }
 0x732   :  { %v3241_v23 = vpop.f32.mrb[221].mxu0  ;;  %7528 = vmatmul.mubr.bf16.gmra.mrb[168].mxu1 %v3381_v20  ;;  %v3350_v25 = vmax.f32 %v7469_v22, 0.0 }
 0x733   :  { %v7470_v24 = vpop.f32.mrb[222].mxu0  ;;  %v3348_v28 = vmax.f32 %v3241_v23, 0.0 }
 0x734   :  { %v3351_v26 = vmax.f32 %v7470_v24, 0.0  ;;  %v3244_v27 = vpop.f32.mrb[223].mxu0 }
 0x735   :  { %v3349_v29 = vmax.f32 %v3244_v27, 0.0 }
 0x736   :  { %v3383_v30 = vpack.c.bf16 %v3351_v26, %v3350_v25 }
 0x737   :  { %v3382_v31 = vpack.c.bf16 %v3349_v29, %v3348_v28 }
 0x739   :  { %v7473_v32 = vpop.f32.mrb[224].mxu0  ;;  %7531 = vmatprep.mubr.bf16.mxu1 %v3382_v31 }
 0x73a   :  { %v3257_v33 = vpop.f32.mrb[225].mxu0  ;;  %7532 = vmatmul.mubr.bf16.gmra.mrb[172].mxu1 %v3383_v30  ;;  %v3354_v35 = vmax.f32 %v7473_v32, 0.0 }
 0x73b   :  { %v7474_v34 = vpop.f32.mrb[226].mxu0  ;;  %v3352_v38 = vmax.f32 %v3257_v33, 0.0 }
 0x73c   :  { %v3355_v36 = vmax.f32 %v7474_v34, 0.0  ;;  %v3260_v37 = vpop.f32.mrb[227].mxu0 }
 0x73d   :  { %v3353_v39 = vmax.f32 %v3260_v37, 0.0 }
 0x73e   :  { %v3385_v40 = vpack.c.bf16 %v3355_v36, %v3354_v35 }
 0x73f   :  { %v3384_v41 = vpack.c.bf16 %v3353_v39, %v3352_v38 }
 0x741   :  { %v7477_v42 = vpop.f32.mrb[228].mxu0  ;;  %7535 = vmatprep.mubr.bf16.mxu1 %v3384_v41 }
 0x742   :  { %v3273_v43 = vpop.f32.mrb[229].mxu0  ;;  %7536 = vmatmul.mubr.bf16.gmra.mrb[176].mxu1 %v3385_v40  ;;  %v3358_v45 = vmax.f32 %v7477_v42, 0.0 }
 0x743   :  { %v7478_v44 = vpop.f32.mrb[230].mxu0  ;;  %v3356_v48 = vmax.f32 %v3273_v43, 0.0 }
 0x744   :  { %v3359_v46 = vmax.f32 %v7478_v44, 0.0  ;;  %v3276_v47 = vpop.f32.mrb[231].mxu0 }
 0x745   :  { %v3357_v49 = vmax.f32 %v3276_v47, 0.0 }
 0x746   :  { %v3387_v50 = vpack.c.bf16 %v3359_v46, %v3358_v45 }
 0x747   :  { %v3386_v51 = vpack.c.bf16 %v3357_v49, %v3356_v48 }
 0x749   :  { %v7481_v52 = vpop.f32.mrb[232].mxu0  ;;  %7539 = vmatprep.mubr.bf16.mxu1 %v3386_v51 }
 0x74a   :  { %v3289_v53 = vpop.f32.mrb[233].mxu0  ;;  %7540 = vmatmul.mubr.bf16.gmra.mrb[180].mxu1 %v3387_v50  ;;  %v3362_v55 = vmax.f32 %v7481_v52, 0.0 }
 0x74b   :  { %v7482_v54 = vpop.f32.mrb[234].mxu0  ;;  %v3360_v58 = vmax.f32 %v3289_v53, 0.0 }
 0x74c   :  { %v3363_v56 = vmax.f32 %v7482_v54, 0.0  ;;  %v3292_v57 = vpop.f32.mrb[235].mxu0 }
 0x74d   :  { %v3361_v59 = vmax.f32 %v3292_v57, 0.0 }
 0x74e   :  { %v3389_v60 = vpack.c.bf16 %v3363_v56, %v3362_v55 }
 0x74f   :  { %v3388_v61 = vpack.c.bf16 %v3361_v59, %v3360_v58 }
 0x751   :  { %v7485_v62 = vpop.f32.mrb[236].mxu0  ;;  %7543 = vmatprep.mubr.bf16.mxu1 %v3388_v61 }
 0x752   :  { %v3305_v63 = vpop.f32.mrb[237].mxu0  ;;  %7544 = vmatmul.mubr.bf16.gmra.mrb[184].mxu1 %v3389_v60  ;;  %v3366_v1 = vmax.f32 %v7485_v62, 0.0 }
 0x753   :  { %v7486_v0 = vpop.f32.mrb[238].mxu0  ;;  %v3364_v4 = vmax.f32 %v3305_v63, 0.0 }
 0x754   :  { %v3367_v2 = vmax.f32 %v7486_v0, 0.0  ;;  %v3308_v3 = vpop.f32.mrb[239].mxu0 }
 0x755   :  { %v3365_v5 = vmax.f32 %v3308_v3, 0.0 }
 0x756   :  { %v3391_v6 = vpack.c.bf16 %v3367_v2, %v3366_v1 }
 0x757   :  { %v3390_v7 = vpack.c.bf16 %v3365_v5, %v3364_v4 }
 0x759   :  { %7547 = vmatprep.mubr.bf16.mxu1 %v3390_v7 }
 0x75a   :  { %7548 = vmatmul.mubr.bf16.gmra.mrb[188].mxu1 %v3391_v6 }
 0x7d5   :  { %v7505_v9 = vpop.f32.mrb[144].mxu1 }
 0x7d6   :  { %v8810_v10 = vadd.f32 -1.0, %v7505_v9  ;;  %v3491_v11 = vpop.f32.mrb[145].mxu1 }
 0x7d7   :  { %v8812_v12 = vadd.f32 -1.0, %v3491_v11  ;;  %v7506_v13 = vpop.f32.mrb[146].mxu1 }
 0x7d8   :  { %v3780_v14 = vand.u32 2147483647, %v8810_v10  ;;  %v4164_v15 = vpack.c.bf16 %v7506_v13, %v7505_v9  ;;  %v3494_v16 = vpop.f32.mrb[147].mxu1  ;;  %v8818_v20 = vadd.f32 -1.0, %v7506_v13  ;;  %v3732_v1 = vmax.f32 %v8810_v10, 0.0 }
 0x7d9   :  { %v3778_v17 = vand.u32 2147483647, %v8812_v12  ;;  %v8816_v18 = vadd.f32 -1.0, %v3494_v16  ;;  %v4163_v19 = vpack.c.bf16 %v3494_v16, %v3491_v11  ;;  %v3730_v4 = vmax.f32 %v8812_v12, 0.0 }
 0x7da   :  { %v3828_v21 = vsub.f32 0.0, %v3780_v14  ;;  %v3781_v26 = vand.u32 2147483647, %v8818_v20 }
 0x7db   :  { %v3826_v22 = vsub.f32 0.0, %v3778_v17  ;;  %v3779_v23 = vand.u32 2147483647, %v8816_v18  ;;  %7567 = vmatprep.mubr.bf16.mxu0 %v4163_v19 }
 0x7dc   :  { %7568 = vmatmul.mubr.bf16.vlgmr.msra.gmra.mrb[240].mxu0 %v4164_v15  ;;  %v3878_v30 = vmul.f32 1.442695, %v3828_v21  ;;  %v3829_v38 = vsub.f32 0.0, %v3781_v26  ;;  %v3733_v15 = vmax.f32 %v8818_v20, 0.0  ;;  %v3731_v21 = vmax.f32 %v8816_v18, 0.0 }
 0x7dd   :  { %v3874_v24 = vmul.f32 1.442695, %v3826_v22  ;;  %v7509_v25 = vpop.f32.mrb[148].mxu1  ;;  %v3827_v27 = vsub.f32 0.0, %v3779_v23 }
 0x7de   :  { %v8822_v28 = vadd.f32 -1.0, %v7509_v25  ;;  %v3507_v29 = vpop.f32.mrb[149].mxu1  ;;  %v3880_v51 = vmul.f32 1.442695, %v3829_v38 }
 0x7df   :  { %7972 = vpow2.f32 %v3874_v24  ;;  %v8824_v31 = vadd.f32 -1.0, %v3507_v29  ;;  %v7510_v32 = vpop.f32.mrb[150].mxu1  ;;  %v3876_v39 = vmul.f32 1.442695, %v3827_v27 }
 0x7e0   :  { %v3784_v33 = vand.u32 2147483647, %v8822_v28  ;;  %v3510_v34 = vpop.f32.mrb[151].mxu1  ;;  %v8828_v36 = vadd.f32 -1.0, %v7510_v32  ;;  %v4166_v37 = vpack.c.bf16 %v7510_v32, %v7509_v25  ;;  %7974 = vpow2.f32 %v3878_v30 }
 0x7e1   :  { %v3782_v35 = vand.u32 2147483647, %v8824_v31  ;;  %v8830_v40 = vadd.f32 -1.0, %v3510_v34  ;;  %v4165_v43 = vpack.c.bf16 %v3510_v34, %v3507_v29  ;;  %7976 = vpow2.f32 %v3876_v39 }
 0x7e2   :  { %v3832_v41 = vsub.f32 0.0, %v3784_v33  ;;  %v3785_v46 = vand.u32 2147483647, %v8828_v36  ;;  %v3734_v34 = vmax.f32 %v8824_v31, 0.0 }
 0x7e3   :  { %v3830_v42 = vsub.f32 0.0, %v3782_v35  ;;  %v3783_v44 = vand.u32 2147483647, %v8830_v40  ;;  %7571 = vmatprep.mubr.bf16.mxu0 %v4165_v43 }
 0x7e4   :  { %7572 = vmatmul.mubr.bf16.gmra.mrb[244].mxu0 %v4166_v37  ;;  %v3886_v52 = vmul.f32 1.442695, %v3832_v41  ;;  %v3833_v59 = vsub.f32 0.0, %v3785_v46 }
 0x7e5   :  { %v3882_v45 = vmul.f32 1.442695, %v3830_v42  ;;  %v7513_v47 = vpop.f32.mrb[152].mxu1  ;;  %v3831_v48 = vsub.f32 0.0, %v3783_v44 }
 0x7e6   :  { %v8834_v49 = vadd.f32 -1.0, %v7513_v47  ;;  %v3523_v50 = vpop.f32.mrb[153].mxu1  ;;  %v3888_v8 = vmul.f32 1.442695, %v3833_v59 }
 0x7e7   :  { %7978 = vpow2.f32 %v3882_v45  ;;  %v8836_v53 = vadd.f32 -1.0, %v3523_v50  ;;  %v7514_v54 = vpop.f32.mrb[154].mxu1  ;;  %v3884_v55 = vmul.f32 1.442695, %v3831_v48 }
 0x7e8   :  { %v3788_v56 = vand.u32 2147483647, %v8834_v49  ;;  %v3526_v57 = vpop.f32.mrb[155].mxu1  ;;  %v8840_v61 = vadd.f32 -1.0, %v7514_v54  ;;  %v4168_v0 = vpack.c.bf16 %v7514_v54, %v7513_v47 }
 0x7e9   :  { %v7973_v58 = vpop.eup %7972  ;;  %v3786_v60 = vand.u32 2147483647, %v8836_v53  ;;  %7980 = vpow2.f32 %v3884_v55  ;;  %v8845_v6 = vadd.f32 -1.0, %v3526_v57  ;;  %v4167_v13 = vpack.c.bf16 %v3526_v57, %v3523_v50 }
 0x7ea   :  { %v3970_v62 = vadd.f32 1.0, %v7973_v58  ;;  %v3836_v63 = vsub.f32 0.0, %v3788_v56  ;;  %7982 = vpow2.f32 %v3880_v51  ;;  %v3789_v3 = vand.u32 2147483647, %v8840_v61  ;;  %v7975_v7 = vpop.eup %7974  ;;  %v7963_v56 = vld [vmem:[%s9523_s2 + $0x2c0] sm:$0xff]  }
 0x7eb   :  { %v3834_v2 = vsub.f32 0.0, %v3786_v60  ;;  %7984 = vpow2.f32 %v3886_v52  ;;  %v3787_v16 = vand.u32 2147483647, %v8845_v6  ;;  %7575 = vmatprep.mubr.bf16.mxu0 %v4167_v13  ;;  %v7977_v25 = vpop.eup %7976  ;;  %v3972_v26 = vadd.f32 1.0, %v7975_v7  ;;  %7615 = vmatprep.subr.bf16.mxu1 %v7963_v56 }
 0x7ec   :  { %v3894_v5 = vmul.f32 1.442695, %v3836_v63  ;;  %v3837_v11 = vsub.f32 0.0, %v3789_v3  ;;  %7986 = vlog2.f32 %v3970_v62  ;;  %7576 = vmatmul.mubr.bf16.gmra.mrb[248].mxu0 %v4168_v0  ;;  %v3971_v41 = vadd.f32 1.0, %v7977_v25  ;;  %v7964_v63 = vld [vmem:[%s9523_s2 + $0x2c8] sm:$0xff]   ;;  %7616 = vmatpush3.bf16.msra.mxu1 %v7963_v56 }
 0x7ed   :  { %v3890_v9 = vmul.f32 1.442695, %v3834_v2  ;;  %v8847_v14 = vpop.f32.mrb[156].mxu1  ;;  %v3835_v27 = vsub.f32 0.0, %v3787_v16  ;;  %v3735_v0 = vmax.f32 %v8830_v40, 0.0  ;;  %v3740_v16 = vmax.f32 %v8834_v49, 0.0  ;;  %7617 = vmatprep.subr.bf16.mxu1 %v7964_v63 }
 0x7ee   :  { %v8852_v17 = vadd.f32 -1.0, %v8847_v14  ;;  %v3539_v19 = vpop.f32.mrb[157].mxu1  ;;  %7988 = vpow2.f32 %v3894_v5  ;;  %v3896_v22 = vmul.f32 1.442695, %v3837_v11 }
 0x7ef   :  { %v8855_v23 = vadd.f32 -1.0, %v3539_v19  ;;  %v7518_v24 = vpop.f32.mrb[158].mxu1  ;;  %7990 = vpow2.f32 %v3890_v9  ;;  %v3892_v37 = vmul.f32 1.442695, %v3835_v27 }
 0x7f0   :  { %v3792_v29 = vand.u32 2147483647, %v8852_v17  ;;  %v3542_v30 = vpop.f32.mrb[159].mxu1  ;;  %7992 = vpow2.f32 %v3888_v8  ;;  %v8861_v39 = vadd.f32 -1.0, %v7518_v24  ;;  %v4170_v43 = vpack.c.bf16 %v7518_v24, %v8847_v14  ;;  %v7965_v24 = vld [vmem:[%s9523_s2 + $0x2d0] sm:$0xff]   ;;  %7618 = vmatpush3.bf16.msra.mxu1 %v7964_v63 }
 0x7f1   :  { %v7979_v32 = vpop.eup %7978  ;;  %v3790_v35 = vand.u32 2147483647, %v8855_v23  ;;  %7994 = vpow2.f32 %v3896_v22  ;;  %v8864_v44 = vadd.f32 -1.0, %v3542_v30  ;;  %v4169_v60 = vpack.c.bf16 %v3542_v30, %v3539_v19  ;;  %7619 = vmatprep.subr.bf16.mxu1 %v7965_v24 }
 0x7f2   :  { %v3840_v38 = vsub.f32 0.0, %v3792_v29  ;;  %v3974_v46 = vadd.f32 1.0, %v7979_v32  ;;  %v3793_v48 = vand.u32 2147483647, %v8861_v39  ;;  %7996 = vlog2.f32 %v3972_v26 }
 0x7f3   :  { %v3838_v42 = vsub.f32 0.0, %v3790_v35  ;;  %v7981_v45 = vpop.eup %7980  ;;  %7998 = vpow2.f32 %v3892_v37  ;;  %v3791_v59 = vand.u32 2147483647, %v8864_v44  ;;  %7579 = vmatprep.mubr.bf16.mxu0 %v4169_v60  ;;  %v3738_v19 = vmax.f32 %v8836_v53, 0.0 }
 0x7f4   :  { %v3902_v47 = vmul.f32 1.442695, %v3840_v38  ;;  %v7983_v50 = vpop.eup %7982  ;;  %v3975_v52 = vadd.f32 1.0, %v7981_v45  ;;  %v3841_v58 = vsub.f32 0.0, %v3793_v48  ;;  %7580 = vmatmul.mubr.bf16.gmra.mrb[252].mxu0 %v4170_v43  ;;  %v3741_v29 = vmax.f32 %v8840_v61, 0.0  ;;  %7620 = vmatpush3.bf16.msra.mxu1 %v7965_v24 }
 0x7f5   :  { %v3898_v54 = vmul.f32 1.442695, %v3838_v42  ;;  %v8868_v55 = vpop.f32.mrb[160].mxu1  ;;  %v8873_v57 = vpop.eup %7984  ;;  %v3839_v9 = vsub.f32 0.0, %v3791_v59  ;;  %v8899_v26 = vadd.f32 1.0, %v7983_v50  ;;  %v3739_v43 = vmax.f32 %v8845_v6, 0.0 }
 0x7f6   :  { %8000 = vpow2.f32 %v3902_v47  ;;  %v8876_v62 = vpop.f32.mrb[161].mxu1  ;;  %v8883_v2 = vadd.f32 -1.0, %v8868_v55  ;;  %v7987_v7 = vpop.eup %7986  ;;  %v3904_v8 = vmul.f32 1.442695, %v3841_v58 }
 0x7f7   :  { %8002 = vlog2.f32 %v3971_v41  ;;  %v8886_v3 = vadd.f32 -1.0, %v8876_v62  ;;  %v8888_v5 = vpop.f32.mrb[162].mxu1  ;;  %v3900_v35 = vmul.f32 1.442695, %v3839_v9  ;;  %v4019_v42 = vmul.f32 0.6931472, %v7987_v7 }
 0x7f8   :  { %8004 = vlog2.f32 %v3974_v46  ;;  %v8891_v11 = vadd.f32 -1.0, %v8888_v5  ;;  %v3558_v13 = vpop.f32.mrb[163].mxu1  ;;  %v7989_v14 = vpop.eup %7988  ;;  %v3796_v22 = vand.u32 2147483647, %v8883_v2  ;;  %v4172_v48 = vpack.c.bf16 %v8888_v5, %v8868_v55 }
 0x7f9   :  { %8006 = vlog2.f32 %v3975_v52  ;;  %v7991_v25 = vpop.eup %7990  ;;  %v3980_v27 = vadd.f32 1.0, %v7989_v14  ;;  %v3794_v38 = vand.u32 2147483647, %v8886_v3  ;;  %v7966_v52 = vld [vmem:[%s9523_s2 + $0x2d8] sm:$0xff]   ;;  %v8914_v58 = vadd.f32 -1.0, %v3558_v13 }
 0x7fa   :  { %8008 = vpow2.f32 %v3898_v54  ;;  %v7993_v30 = vpop.eup %7992  ;;  %v3978_v32 = vadd.f32 1.0, %v7991_v25  ;;  %v3844_v37 = vsub.f32 0.0, %v3796_v22  ;;  %v3797_v45 = vand.u32 2147483647, %v8891_v11  ;;  %7621 = vmatprep.subr.bf16.mxu1 %v7966_v52 }
 0x7fb   :  { %v7995_v41 = vpop.eup %7994  ;;  %8010 = vpow2.f32 %v3904_v8  ;;  %v3842_v47 = vsub.f32 0.0, %v3794_v38  ;;  %v4171_v59 = vpack.c.bf16 %v3558_v13, %v8876_v62  ;;  %v8925_v14 = vadd.f32 1.0, %v8873_v57  ;;  %7622 = vmatpush3.bf16.msra.mxu1 %v7966_v52 }
 0x7fc   :  { %8012 = vlog2.f32 %v3980_v27  ;;  %v3910_v46 = vmul.f32 1.442695, %v3844_v37  ;;  %v8912_v54 = vpop.eup %7996  ;;  %v3845_v56 = vsub.f32 0.0, %v3797_v45  ;;  %v3981_v7 = vadd.f32 1.0, %v7995_v41 }
 0x7fd   :  { %v8907_v50 = vpop.f32.mrb[164].mxu1  ;;  %8014 = vlog2.f32 %v3978_v32  ;;  %v7999_v63 = vpop.eup %7998  ;;  %v3906_v55 = vmul.f32 1.442695, %v3842_v47  ;;  %v3744_v25 = vmax.f32 %v8852_v17, 0.0  ;;  %7583 = vmatprep.mubr.bf16.mxu0 %v4171_v59  ;;  %v3742_v27 = vmax.f32 %v8855_v23, 0.0 }
 0x7fe   :  { %v8917_v60 = vpop.f32.mrb[165].mxu1  ;;  %8016 = vpow2.f32 %v3900_v35  ;;  %v8920_v5 = vadd.f32 -1.0, %v8907_v50  ;;  %v3979_v22 = vadd.f32 1.0, %v7999_v63  ;;  %v3912_v32 = vmul.f32 1.442695, %v3845_v56  ;;  %7584 = vmatmul.mubr.bf16.gmra.mrb[0].mxu0 %v4172_v48 }
 0x7ff   :  { %v8922_v8 = vpop.f32.mrb[166].mxu1  ;;  %8018 = vpow2.f32 %v3910_v46  ;;  %v3795_v35 = vand.u32 2147483647, %v8914_v58  ;;  %v8932_v57 = vadd.f32 1.0, %v7993_v30  ;;  %v8939_v24 = vadd.f32 %v4019_v42, %v3730_v4 }
 0x800   :  { %v8001_v9 = vpop.eup %8000  ;;  %v8928_v62 = vpop.f32.mrb[167].mxu1  ;;  %8020 = vpow2.f32 %v3906_v55  ;;  %v3800_v45 = vand.u32 2147483647, %v8920_v5  ;;  %v8942_v30 = vadd.f32 -1.0, %v8917_v60  ;;  %v4023_v38 = vmul.f32 0.6931472, %v8912_v54 }
 0x801   :  { %v8003_v13 = vpop.eup %8002  ;;  %8022 = vlog2.f32 %v3981_v7  ;;  %v3984_v47 = vadd.f32 1.0, %v8001_v9  ;;  %v3843_v56 = vsub.f32 0.0, %v3795_v35  ;;  %v4173_v31 = vpack.c.bf16 %v8928_v62, %v8917_v60 }
 0x802   :  { %v8005_v37 = vpop.eup %8004  ;;  %v4021_v48 = vmul.f32 0.6931472, %v8003_v13  ;;  %8024 = vlog2.f32 %v3979_v22  ;;  %v3848_v63 = vsub.f32 0.0, %v3800_v45  ;;  %v3798_v7 = vand.u32 2147483647, %v8942_v30 }
 0x803   :  { %v8007_v46 = vpop.eup %8006  ;;  %v4027_v55 = vmul.f32 0.6931472, %v8005_v37  ;;  %8026 = vpow2.f32 %v3912_v32  ;;  %v3908_v33 = vmul.f32 1.442695, %v3843_v56  ;;  %v8953_v13 = vadd.f32 -1.0, %v8922_v8  ;;  %7587 = vmatprep.mubr.bf16.mxu0 %v4173_v31 }
 0x804   :  { %v8009_v59 = vpop.eup %8008  ;;  %v3918_v42 = vmul.f32 1.442695, %v3848_v63  ;;  %8028 = vlog2.f32 %v8899_v26  ;;  %v4174_v32 = vpack.c.bf16 %v8922_v8, %v8907_v50  ;;  %v8961_v45 = vadd.f32 %v4021_v48, %v3731_v21 }
 0x805   :  { %v8945_v41 = vpop.f32.mrb[168].mxu1  ;;  %v8011_v12 = vpop.eup %8010  ;;  %8030 = vlog2.f32 %v3984_v47  ;;  %v3982_v52 = vadd.f32 1.0, %v8009_v59  ;;  %v3846_v26 = vsub.f32 0.0, %v3798_v7  ;;  %v8964_v56 = vadd.f32 -1.0, %v8928_v62 }
 0x806   :  { %v8950_v9 = vpop.f32.mrb[169].mxu1  ;;  %v8013_v22 = vpop.eup %8012  ;;  %8032 = vpow2.f32 %v3908_v33  ;;  %v4029_v63 = vmul.f32 0.6931472, %v8007_v46  ;;  %v3985_v4 = vadd.f32 1.0, %v8011_v12  ;;  %v8971_v8 = vadd.f32 %v4027_v55, %v3734_v34  ;;  %7588 = vmatmul.mubr.bf16.gmra.mrb[4].mxu0 %v4174_v32 }
 0x807   :  { %v8957_v35 = vpop.f32.mrb[170].mxu1  ;;  %v8015_v37 = vpop.eup %8014  ;;  %8034 = vpow2.f32 %v3918_v42  ;;  %v3801_v33 = vand.u32 2147483647, %v8953_v13  ;;  %v3799_v46 = vand.u32 2147483647, %v8964_v56  ;;  %v8989_v60 = vadd.f32 -1.0, %v8945_v41 }
 0x808   :  { %v8966_v47 = vpop.f32.mrb[171].mxu1  ;;  %v8017_v59 = vpop.eup %8016  ;;  %8036 = vlog2.f32 %v3982_v52  ;;  %v4039_v12 = vmul.f32 0.6931472, %v8013_v22  ;;  %v3914_v51 = vmul.f32 1.442695, %v3846_v26  ;;  %v8981_v55 = vadd.f32 %v4029_v63, %v3735_v0 }
 0x809   :  { %v8019_v50 = vpop.eup %8018  ;;  %v3983_v18 = vadd.f32 1.0, %v8017_v59  ;;  %v3849_v42 = vsub.f32 0.0, %v3801_v33  ;;  %8038 = vlog2.f32 %v3985_v4  ;;  %v7735_v52 = vpack.i.bf16 %v8961_v45, %v8939_v24 }
 0x80a   :  { %v8021_v48 = vpop.eup %8020  ;;  %v3988_v7 = vadd.f32 1.0, %v8019_v50  ;;  %v4035_v22 = vmul.f32 0.6931472, %v8015_v37  ;;  %v4116_v0 = vadd.f32 %v4023_v38, %v3732_v1  ;;  %v3847_v63 = vsub.f32 0.0, %v3799_v46 }
 0x80b   :  { %v8023_v34 = vpop.eup %8022  ;;  %8040 = vlog2.f32 %v3983_v18  ;;  %v3986_v26 = vadd.f32 1.0, %v8021_v48  ;;  %v9000_v18 = vadd.f32 %v4039_v12, %v3740_v16  ;;  %v3920_v31 = vmul.f32 1.442695, %v3849_v42 }
 0x80c   :  { %v8025_v50 = vpop.eup %8024  ;;  %8042 = vlog2.f32 %v3988_v7  ;;  %v4041_v48 = vmul.f32 0.6931472, %v8023_v34  ;;  %v3804_v1 = vand.u32 2147483647, %v8989_v60  ;;  %v9007_v38 = vadd.f32 -1.0, %v8950_v9 }
 0x80d   :  { %v8986_v54 = vpop.f32.mrb[172].mxu1  ;;  %v8027_v40 = vpop.eup %8026  ;;  %8044 = vpow2.f32 %v3914_v51  ;;  %v9011_v49 = vadd.f32 %v4035_v22, %v3738_v19  ;;  %v9014_v51 = vadd.f32 -1.0, %v8957_v35  ;;  %v3916_v42 = vmul.f32 1.442695, %v3847_v63 }
 0x80e   :  { %v8991_v62 = vpop.f32.mrb[173].mxu1  ;;  %v8029_v37 = vpop.eup %8028  ;;  %8046 = vlog2.f32 %v3986_v26  ;;  %v3989_v16 = vadd.f32 1.0, %v8027_v40  ;;  %v3852_v34 = vsub.f32 0.0, %v3804_v1  ;;  %v3802_v26 = vand.u32 2147483647, %v9007_v38 }
 0x80f   :  { %v8996_v33 = vpop.f32.mrb[174].mxu1  ;;  %v8031_v7 = vpop.eup %8030  ;;  %v4025_v21 = vmul.f32 0.6931472, %v8029_v37  ;;  %8048 = vlog2.f32 %v8925_v14  ;;  %v4037_v37 = vmul.f32 0.6931472, %v8025_v50  ;;  %v4176_v14 = vpack.c.bf16 %v8957_v35, %v8945_v41 }
 0x810   :  { %v9002_v59 = vpop.f32.mrb[175].mxu1  ;;  %v8033_v32 = vpop.eup %8032  ;;  %v4047_v10 = vmul.f32 0.6931472, %v8031_v7  ;;  %8050 = vlog2.f32 %v8932_v57  ;;  %v3926_v20 = vmul.f32 1.442695, %v3852_v34  ;;  %v9030_v57 = vadd.f32 %v4041_v48, %v3741_v29 }
 0x811   :  { %v8035_v46 = vpop.eup %8034  ;;  %v4117_v12 = vadd.f32 %v4025_v21, %v3733_v15  ;;  %v3987_v4 = vadd.f32 1.0, %v8033_v32  ;;  %8052 = vpow2.f32 %v3920_v31  ;;  %v3805_v15 = vand.u32 2147483647, %v9014_v51 }
 0x812   :  { %v8037_v53 = vpop.eup %8036  ;;  %v3992_v19 = vadd.f32 1.0, %v8035_v46  ;;  %8054 = vlog2.f32 %v3989_v16  ;;  %v9033_v63 = vadd.f32 -1.0, %v8966_v47  ;;  %v4175_v41 = vpack.c.bf16 %v8966_v47, %v8950_v9 }
 0x813   :  { %v7730_v22 = vpack.i.bf16 %v4117_v12, %v4116_v0  ;;  %v8039_v50 = vpop.eup %8038  ;;  %8056 = vpow2.f32 %v3916_v42  ;;  %v3850_v0 = vsub.f32 0.0, %v3802_v26  ;;  %v3853_v1 = vsub.f32 0.0, %v3805_v15 }
 0x814   :  { %8058 = vlog2.f32 %v3987_v4  ;;  %v7746_v35 = vpack.i.bf16 %v8981_v55, %v8971_v8  ;;  %v4123_v48 = vadd.f32 %v4037_v37, %v3739_v43  ;;  %v4043_v32 = vmul.f32 0.6931472, %v8037_v53  ;;  %7591 = vmatprep.mubr.bf16.mxu0 %v4175_v41 }
 0x815   :  { %v9021_v40 = vpop.f32.mrb[176].mxu1  ;;  %7731 = vperm.xlu0 %7729, %v7730_v22   ;;  %v8041_v7 = vpop.eup %8040  ;;  %8060 = vlog2.f32 %v3992_v19  ;;  %v3751_v16 = vmax.f32 %v8964_v56, 0.0  ;;  %v9048_v4 = vadd.f32 %v4047_v10, %v3744_v25  ;;  %v4049_v12 = vmul.f32 0.6931472, %v8039_v50  ;;  %7592 = vmatmul.mubr.bf16.gmra.mrb[8].mxu0 %v4176_v14 }
 0x816   :  { %v9026_v21 = vpop.f32.mrb[177].mxu1  ;;  %v8043_v29 = vpop.eup %8042  ;;  %8062 = vpow2.f32 %v3926_v20  ;;  %v3803_v9 = vand.u32 2147483647, %v9033_v63  ;;  %v3922_v47 = vmul.f32 1.442695, %v3850_v0  ;;  %v9057_v42 = vadd.f32 -1.0, %v8986_v54 }
 0x817   :  { %v9035_v31 = vpop.f32.mrb[178].mxu1  ;;  %v8045_v46 = vpop.eup %8044  ;;  %v4045_v25 = vmul.f32 0.6931472, %v8041_v7  ;;  %v3928_v10 = vmul.f32 1.442695, %v3853_v1  ;;  %v7751_v37 = vpack.i.bf16 %v9030_v57, %v9000_v18  ;;  %v9063_v24 = vadd.f32 %v4043_v32, %v3742_v27 }
 0x818   :  { %v9041_v61 = vpop.f32.mrb[179].mxu1  ;;  %v8047_v17 = vpop.eup %8046  ;;  %v3851_v34 = vsub.f32 0.0, %v3803_v9  ;;  %v4055_v45 = vmul.f32 0.6931472, %v8043_v29  ;;  %v3808_v19 = vand.u32 2147483647, %v9057_v42  ;;  %8064 = vpow2.f32 %v3922_v47 }
 0x819   :  { %7736 = vperm.xlu0 %7729, %v7735_v52   ;;  %v8049_v53 = vpop.eup %8048  ;;  %v3990_v52 = vadd.f32 1.0, %v8045_v46  ;;  %v9527_v20 = vmax.f32 %v8861_v39, 0.0  ;;  %v9076_v41 = vadd.f32 -1.0, %v8991_v62  ;;  %v9528_v39 = vmax.f32 %v8864_v44, 0.0 }
 0x81a   :  { %v8051_v26 = vpop.eup %8050  ;;  %v4031_v14 = vmul.f32 0.6931472, %v8049_v53  ;;  %v3924_v0 = vmul.f32 1.442695, %v3851_v34  ;;  %v3856_v1 = vsub.f32 0.0, %v3808_v19  ;;  %8066 = vpow2.f32 %v3928_v10 }
 0x81b   :  { %v9070_v15 = vadd.f32 %v4049_v12, %v9527_v20  ;;  %v8053_v23 = vpop.eup %8052  ;;  %v4033_v27 = vmul.f32 0.6931472, %v8051_v26  ;;  %v9082_v46 = vadd.f32 %v4045_v25, %v9528_v39  ;;  %v4051_v12 = vmul.f32 0.6931472, %v8047_v17 }
 0x81c   :  { %v8055_v32 = vpop.eup %8054  ;;  %v7756_v9 = vpack.i.bf16 %v4123_v48, %v9011_v49  ;;  %8068 = vlog2.f32 %v3990_v52  ;;  %v9529_v47 = vmax.f32 %v8822_v28, 0.0  ;;  %v9530_v26 = vmax.f32 %v8828_v36, 0.0 }
 0x81d   :  { %v9066_v22 = vpop.f32.mrb[180].mxu1  ;;  %v8057_v53 = vpop.eup %8056  ;;  %v3934_v43 = vmul.f32 1.442695, %v3856_v1  ;;  %v3993_v6 = vadd.f32 1.0, %v8053_v23  ;;  %8070 = vpow2.f32 %v3924_v0  ;;  %v3806_v44 = vand.u32 2147483647, %v9076_v41 }
 0x81e   :  { %v9073_v7 = vpop.f32.mrb[181].mxu1  ;;  %v4120_v19 = vadd.f32 %v4031_v14, %v9529_v47  ;;  %v4121_v20 = vadd.f32 %v4033_v27, %v9530_v26  ;;  %v8059_v50 = vpop.eup %8058  ;;  %7757 = vperm.xlu0 %7729, %v7756_v9   ;;  %v9093_v17 = vadd.f32 -1.0, %v8996_v33  ;;  %v3755_v25 = vmax.f32 %v9033_v63, 0.0 }
 0x81f   :  { %v9078_v29 = vpop.f32.mrb[182].mxu1  ;;  %v8061_v49 = vpop.eup %8060  ;;  %8072 = vpow2.f32 %v3934_v43  ;;  %v4178_v28 = vpack.c.bf16 %v8996_v33, %v8986_v54  ;;  %v4057_v10 = vmul.f32 0.6931472, %v8055_v32  ;;  %v3991_v52 = vadd.f32 1.0, %v8057_v53  ;;  %v7967_v33 = vld [vmem:[%s9523_s2 + $0x2e0] sm:$0xff]  }
 0x820   :  { %v9085_v34 = vpop.f32.mrb[183].mxu1  ;;  %v7741_v48 = vpack.i.bf16 %v4121_v20, %v4120_v19  ;;  %v8063_v36 = vpop.eup %8062  ;;  %v3854_v14 = vsub.f32 0.0, %v3806_v44  ;;  %v3809_v0 = vand.u32 2147483647, %v9093_v17  ;;  %v9100_v23 = vadd.f32 -1.0, %v9002_v59  ;;  %7623 = vmatprep.subr.bf16.mxu1 %v7967_v33 }
 0x821   :  { %v4177_v27 = vpack.c.bf16 %v9002_v59, %v8991_v62  ;;  %v9105_v1 = vadd.f32 -1.0, %v9021_v40  ;;  %v7761_v43 = vpack.i.bf16 %v9070_v15, %v9048_v4  ;;  %v4053_v32 = vmul.f32 0.6931472, %v8059_v50  ;;  %7624 = vmatpush3.bf16.msra.mxu1 %v7967_v33 }
 0x822   :  { %7742 = vperm.xlu1 %7740, %v7741_v48   ;;  %8074 = vlog2.f32 %v3993_v6  ;;  %v3930_v39 = vmul.f32 1.442695, %v3854_v14  ;;  %v3857_v9 = vsub.f32 0.0, %v3809_v0  ;;  %v9531_v59 = vmax.f32 %v8883_v2, 0.0  ;;  %v8065_v44 = vpop.eup %8064 }
 0x823   :  { %v4063_v47 = vmul.f32 0.6931472, %v8061_v49  ;;  %v3996_v19 = vadd.f32 1.0, %v8063_v36  ;;  %v3807_v26 = vand.u32 2147483647, %v9100_v23  ;;  %7595 = vmatprep.mubr.bf16.mxu0 %v4177_v27  ;;  %8076 = vlog2.f32 %v3991_v52 }
 0x824   :  { %v9118_v62 = vadd.f32 %v4055_v45, %v9531_v59  ;;  %v3936_v20 = vmul.f32 1.442695, %v3857_v9  ;;  %7596 = vmatmul.mubr.bf16.gmra.mrb[12].mxu0 %v4178_v28  ;;  %v3812_v50 = vand.u32 2147483647, %v9105_v1  ;;  %v9123_v6 = vadd.f32 -1.0, %v9026_v21  ;;  %v8067_v36 = vpop.eup %8066 }
 0x825   :  { %v9109_v54 = vpop.f32.mrb[184].mxu1  ;;  %v9532_v2 = vmax.f32 %v8886_v3, 0.0  ;;  %v3760_v49 = vmax.f32 %v9057_v42, 0.0  ;;  %8078 = vpow2.f32 %v3930_v39  ;;  %v3855_v48 = vsub.f32 0.0, %v3807_v26 }
 0x826   :  { %v9114_v53 = vpop.f32.mrb[185].mxu1  ;;  %7747 = vperm.xlu1 %7740, %v7746_v35   ;;  %v9533_v52 = vmax.f32 %v8891_v11, 0.0  ;;  %v3758_v0 = vmax.f32 %v9076_v41, 0.0  ;;  %8080 = vpow2.f32 %v3936_v20  ;;  %v3860_v3 = vsub.f32 0.0, %v3812_v50  ;;  %v8069_v27 = vpop.eup %8068 }
 0x827   :  { %v9127_v45 = vadd.f32 %v4051_v12, %v9532_v2  ;;  %v9133_v28 = vpop.f32.mrb[186].mxu1  ;;  %v9534_v8 = vmax.f32 %v8914_v58, 0.0  ;;  %v9535_v35 = vmax.f32 %v8920_v5, 0.0  ;;  %8082 = vlog2.f32 %v3996_v19  ;;  %v8071_v9 = vpop.eup %8070 }
 0x828   :  { %v9137_v14 = vadd.f32 %v4057_v10, %v9533_v52  ;;  %v9140_v12 = vpop.f32.mrb[187].mxu1  ;;  %v3932_v39 = vmul.f32 1.442695, %v3855_v48  ;;  %v3994_v11 = vadd.f32 1.0, %v8065_v44  ;;  %v3942_v10 = vmul.f32 1.442695, %v3860_v3 }
 0x829   :  { %v4131_v55 = vadd.f32 %v4053_v32, %v9534_v8  ;;  %v9146_v33 = vadd.f32 %v4063_v47, %v9535_v35  ;;  %v3810_v59 = vand.u32 2147483647, %v9123_v6  ;;  %v7766_v26 = vpack.i.bf16 %v9082_v46, %v9063_v24  ;;  %v8073_v20 = vpop.eup %8072  ;;  %v7968_v24 = vld [vmem:[%s9523_s2 + $0x2e8] sm:$0xff]  }
 0x82a   :  { %v3997_v50 = vadd.f32 1.0, %v8067_v36  ;;  %7752 = vperm.xlu1 %7740, %v7751_v37   ;;  %v9155_v58 = vadd.f32 -1.0, %v9035_v31  ;;  %v4180_v5 = vpack.c.bf16 %v9035_v31, %v9021_v40  ;;  %v9160_v32 = vadd.f32 -1.0, %v9041_v61  ;;  %7625 = vmatprep.subr.bf16.mxu1 %v7968_v24 }
 0x82b   :  { %v3761_v46 = vmax.f32 %v9093_v17, 0.0  ;;  %8084 = vpow2.f32 %v3932_v39  ;;  %v3858_v18 = vsub.f32 0.0, %v3810_v59  ;;  %7767 = vperm.xlu0 %7729, %v7766_v26   ;;  %v4179_v57 = vpack.c.bf16 %v9041_v61, %v9026_v21  ;;  %7626 = vmatpush3.bf16.msra.mxu1 %v7968_v24 }
 0x82c   :  { %v4059_v40 = vmul.f32 0.6931472, %v8069_v27  ;;  %v3995_v31 = vadd.f32 1.0, %v8071_v9  ;;  %8086 = vpow2.f32 %v3942_v10  ;;  %v3813_v19 = vand.u32 2147483647, %v9155_v58  ;;  %v8075_v2 = vpop.eup %8074 }
 0x82d   :  { %v9162_v47 = vpop.f32.mrb[188].mxu1  ;;  %8088 = vlog2.f32 %v3994_v11  ;;  %v4000_v48 = vadd.f32 1.0, %v8073_v20  ;;  %v3938_v36 = vmul.f32 1.442695, %v3858_v18  ;;  %v3811_v52 = vand.u32 2147483647, %v9160_v32  ;;  %7599 = vmatprep.mubr.bf16.mxu0 %v4179_v57  ;;  %v8077_v8 = vpop.eup %8076 }
 0x82e   :  { %v9170_v37 = vpop.f32.mrb[189].mxu1  ;;  %8090 = vlog2.f32 %v3997_v50  ;;  %7762 = vperm.xlu1 %7740, %v7761_v43   ;;  %v3861_v21 = vsub.f32 0.0, %v3813_v19  ;;  %7600 = vmatmul.mubr.bf16.gmra.mrb[16].mxu0 %v4180_v5  ;;  %v9182_v61 = vadd.f32 -1.0, %v9066_v22  ;;  %v7771_v27 = vpack.i.bf16 %v9137_v14, %v9118_v62 }
 0x82f   :  { %v9173_v44 = vpop.f32.mrb[190].mxu1  ;;  %8092 = vpow2.f32 %v3938_v36  ;;  %v3859_v35 = vsub.f32 0.0, %v3811_v52  ;;  %v9187_v39 = vadd.f32 -1.0, %v9073_v7  ;;  %v7776_v9 = vpack.i.bf16 %v4131_v55, %v9127_v45  ;;  %v8079_v11 = vpop.eup %8078  ;;  %v7969_v55 = vld [vmem:[%s9523_s2 + $0x2f0] sm:$0xff]  }
 0x830   :  { %v9176_v3 = vpop.f32.mrb[191].mxu1  ;;  %v4065_v10 = vmul.f32 0.6931472, %v8075_v2  ;;  %8094 = vlog2.f32 %v3995_v31  ;;  %v3944_v4 = vmul.f32 1.442695, %v3861_v21  ;;  %v9191_v15 = vadd.f32 -1.0, %v9078_v29  ;;  %v8081_v43 = vpop.eup %8080  ;;  %7627 = vmatprep.subr.bf16.mxu1 %v7969_v55 }
 0x831   :  { %8096 = vlog2.f32 %v4000_v48  ;;  %v3998_v59 = vadd.f32 1.0, %v8079_v11  ;;  %v3940_v26 = vmul.f32 1.442695, %v3859_v35  ;;  %v3816_v62 = vand.u32 2147483647, %v9182_v61  ;;  %7777 = vperm.xlu0 %7729, %v7776_v9   ;;  %v8083_v14 = vpop.eup %8082  ;;  %7628 = vmatpush3.bf16.msra.mxu1 %v7969_v55 }
 0x832   :  { %v4001_v20 = vadd.f32 1.0, %v8081_v43  ;;  %v3759_v50 = vmax.f32 %v9100_v23, 0.0  ;;  %8098 = vpow2.f32 %v3944_v4  ;;  %7772 = vperm.xlu1 %7740, %v7771_v27   ;;  %v3814_v45 = vand.u32 2147483647, %v9187_v39 }
 0x833   :  { %v4061_v5 = vmul.f32 0.6931472, %v8077_v8  ;;  %8100 = vlog2.f32 %v3998_v59  ;;  %v3764_v24 = vmax.f32 %v9105_v1, 0.0  ;;  %v3864_v18 = vsub.f32 0.0, %v3816_v62 }
 0x834   :  { %8102 = vlog2.f32 %v4001_v20  ;;  %v3862_v57 = vsub.f32 0.0, %v3814_v45  ;;  %v3817_v31 = vand.u32 2147483647, %v9191_v15  ;;  %v4182_v19 = vpack.c.bf16 %v9078_v29, %v9066_v22 }
 0x835   :  { %v8085_v2 = vpop.eup %8084  ;;  %v9536_v48 = vmax.f32 %v8942_v30, 0.0  ;;  %v9537_v52 = vmax.f32 %v8953_v13, 0.0  ;;  %8104 = vpow2.f32 %v3940_v26  ;;  %v3950_v27 = vmul.f32 1.442695, %v3864_v18 }
 0x836   :  { %v8087_v8 = vpop.eup %8086  ;;  %v3999_v35 = vadd.f32 1.0, %v8085_v2  ;;  %v3946_v9 = vmul.f32 1.442695, %v3862_v57  ;;  %v3865_v11 = vsub.f32 0.0, %v3817_v31  ;;  %v9208_v4 = vadd.f32 -1.0, %v9085_v34 }
 0x837   :  { %v4134_v36 = vadd.f32 %v4059_v40, %v9536_v48  ;;  %v4137_v21 = vadd.f32 %v4065_v10, %v9537_v52  ;;  %v8089_v43 = vpop.eup %8088  ;;  %v4004_v22 = vadd.f32 1.0, %v8087_v8  ;;  %v3762_v29 = vmax.f32 %v9123_v6, 0.0 }
 0x838   :  { %8106 = vpow2.f32 %v3950_v27  ;;  %v4181_v30 = vpack.c.bf16 %v9085_v34, %v9073_v7  ;;  %v8091_v13 = vpop.eup %8090  ;;  %v4135_v40 = vadd.f32 %v4061_v5, %v3751_v16  ;;  %v4071_v10 = vmul.f32 0.6931472, %v8083_v14 }
 0x839   :  { %8108 = vlog2.f32 %v3999_v35  ;;  %v3952_v59 = vmul.f32 1.442695, %v3865_v11  ;;  %v8093_v26 = vpop.eup %8092  ;;  %v3815_v62 = vand.u32 2147483647, %v9208_v4  ;;  %v9217_v20 = vadd.f32 -1.0, %v9109_v54 }
 0x83a   :  { %8110 = vlog2.f32 %v4004_v22  ;;  %7603 = vmatprep.mubr.bf16.mxu0 %v4181_v30  ;;  %v7781_v45 = vpack.i.bf16 %v4137_v21, %v9146_v33  ;;  %v8095_v55 = vpop.eup %8094  ;;  %v4002_v18 = vadd.f32 1.0, %v8093_v26  ;;  %v3765_v7 = vmax.f32 %v9155_v58, 0.0 }
 0x83b   :  { %8112 = vpow2.f32 %v3946_v9  ;;  %7604 = vmatmul.mubr.bf16.gmra.mrb[20].mxu0 %v4182_v19  ;;  %v9222_v56 = vadd.f32 -1.0, %v9114_v53  ;;  %v8097_v16 = vpop.eup %8096  ;;  %v3763_v34 = vmax.f32 %v9160_v32, 0.0  ;;  %v3863_v14 = vsub.f32 0.0, %v3815_v62 }
 0x83c   :  { %8114 = vpow2.f32 %v3952_v59  ;;  %v3820_v5 = vand.u32 2147483647, %v9217_v20  ;;  %7782 = vperm.xlu1 %7740, %v7781_v45   ;;  %v8099_v57 = vpop.eup %8098  ;;  %v4073_v31 = vmul.f32 0.6931472, %v8091_v13  ;;  %v7786_v2 = vpack.i.bf16 %v4135_v40, %v4134_v36  ;;  %v7970_v36 = vld [vmem:[%s9523_s2 + $0x2f8] sm:$0xff]  }
 0x83d   :  { %8116 = vlog2.f32 %v4002_v18  ;;  %v3818_v33 = vand.u32 2147483647, %v9222_v56  ;;  %v8101_v48 = vpop.eup %8100  ;;  %v4005_v52 = vadd.f32 1.0, %v8099_v57  ;;  %v3948_v19 = vmul.f32 1.442695, %v3863_v14  ;;  %7629 = vmatprep.subr.bf16.mxu1 %v7970_v36 }
 0x83e   :  { %v3868_v21 = vsub.f32 0.0, %v3820_v5  ;;  %v9228_v27 = vadd.f32 -1.0, %v9133_v28  ;;  %v8103_v8 = vpop.eup %8102  ;;  %v9538_v35 = vmax.f32 %v8989_v60, 0.0  ;;  %7787 = vperm.xlu0 %7729, %v7786_v2   ;;  %v4184_v22 = vpack.c.bf16 %v9133_v28, %v9109_v54  ;;  %7630 = vmatpush3.bf16.msra.mxu1 %v7970_v36 }
 0x83f   :  { %v3866_v11 = vsub.f32 0.0, %v3818_v33  ;;  %v9235_v30 = vadd.f32 -1.0, %v9140_v12  ;;  %v8105_v13 = vpop.eup %8104  ;;  %v4067_v40 = vmul.f32 0.6931472, %v8089_v43  ;;  %v4069_v59 = vmul.f32 0.6931472, %v8095_v55 }
 0x840   :  { %v4140_v9 = vadd.f32 %v4071_v10, %v9538_v35  ;;  %8118 = vlog2.f32 %v4005_v52  ;;  %v3958_v26 = vmul.f32 1.442695, %v3868_v21  ;;  %v9539_v60 = vmax.f32 %v9014_v51, 0.0 }
 0x841   :  { %v4003_v62 = vadd.f32 1.0, %v8105_v13  ;;  %8120 = vpow2.f32 %v3948_v19  ;;  %v3954_v45 = vmul.f32 1.442695, %v3866_v11  ;;  %v4079_v28 = vmul.f32 0.6931472, %v8097_v16 }
 0x842   :  { %v4141_v10 = vadd.f32 %v4073_v31, %v9539_v60  ;;  %v8107_v54 = vpop.eup %8106  ;;  %v4075_v18 = vmul.f32 0.6931472, %v8101_v48  ;;  %8122 = vpow2.f32 %v3958_v26  ;;  %v3821_v14 = vand.u32 2147483647, %v9228_v27 }
 0x843   :  { %v8109_v5 = vpop.eup %8108  ;;  %8124 = vlog2.f32 %v4003_v62  ;;  %v4008_v43 = vadd.f32 1.0, %v8107_v54  ;;  %v3819_v55 = vand.u32 2147483647, %v9235_v30  ;;  %v4183_v51 = vpack.c.bf16 %v9140_v12, %v9114_v53 }
 0x844   :  { %v8111_v57 = vpop.eup %8110  ;;  %v4139_v31 = vadd.f32 %v4069_v59, %v3755_v25  ;;  %8126 = vpow2.f32 %v3954_v45  ;;  %v3869_v33 = vsub.f32 0.0, %v3821_v14  ;;  %v9249_v16 = vadd.f32 -1.0, %v9162_v47 }
 0x845   :  { %v8113_v2 = vpop.eup %8112  ;;  %v9540_v48 = vmax.f32 %v9007_v38, 0.0  ;;  %8128 = vlog2.f32 %v4008_v43  ;;  %v3867_v19 = vsub.f32 0.0, %v3819_v55  ;;  %7607 = vmatprep.mubr.bf16.mxu0 %v4183_v51  ;;  %v7791_v21 = vpack.i.bf16 %v4141_v10, %v4140_v9 }
 0x846   :  { %v8115_v35 = vpop.eup %8114  ;;  %v9255_v53 = vadd.f32 %v4079_v28, %v3760_v49  ;;  %v4081_v63 = vmul.f32 0.6931472, %v8103_v8  ;;  %v4006_v25 = vadd.f32 1.0, %v8113_v2  ;;  %v3960_v12 = vmul.f32 1.442695, %v3869_v33  ;;  %7608 = vmatmul.mubr.bf16.gmra.mrb[24].mxu0 %v4184_v22 }
 0x847   :  { %v4138_v52 = vadd.f32 %v4067_v40, %v9540_v48  ;;  %v8117_v11 = vpop.eup %8116  ;;  %v4142_v36 = vadd.f32 %v4075_v18, %v3758_v0  ;;  %v4009_v13 = vadd.f32 1.0, %v8115_v35  ;;  %v3956_v38 = vmul.f32 1.442695, %v3867_v19  ;;  %7792 = vperm.xlu1 %7740, %v7791_v21  }
 0x848   :  { %v3824_v40 = vand.u32 2147483647, %v9249_v16  ;;  %v4077_v59 = vmul.f32 0.6931472, %v8109_v5  ;;  %8130 = vlog2.f32 %v4006_v25  ;;  %v9261_v9 = vadd.f32 -1.0, %v9170_v37 }
 0x849   :  { %v7796_v42 = vpack.i.bf16 %v4139_v31, %v4138_v52  ;;  %8132 = vlog2.f32 %v4009_v13  ;;  %v9264_v8 = vadd.f32 -1.0, %v9173_v44  ;;  %v4186_v41 = vpack.c.bf16 %v9173_v44, %v9162_v47 }
 0x84a   :  { %v3872_v49 = vsub.f32 0.0, %v3824_v40  ;;  %v8119_v0 = vpop.eup %8118  ;;  %v4145_v22 = vadd.f32 %v4081_v63, %v3761_v46  ;;  %v4087_v26 = vmul.f32 0.6931472, %v8111_v57  ;;  %8134 = vpow2.f32 %v3960_v12 }
 0x84b   :  { %v3822_v60 = vand.u32 2147483647, %v9261_v9  ;;  %7797 = vperm.xlu0 %7729, %v7796_v42   ;;  %v8121_v10 = vpop.eup %8120  ;;  %v4083_v62 = vmul.f32 0.6931472, %v8117_v11  ;;  %v4089_v45 = vmul.f32 0.6931472, %v8119_v0  ;;  %8136 = vpow2.f32 %v3956_v38 }
 0x84c   :  { %v3966_v54 = vmul.f32 1.442695, %v3872_v49  ;;  %v8123_v28 = vpop.eup %8122  ;;  %v4007_v18 = vadd.f32 1.0, %v8121_v10  ;;  %v3825_v5 = vand.u32 2147483647, %v9264_v8  ;;  %v9273_v47 = vadd.f32 -1.0, %v9176_v3 }
 0x84d   :  { %v3870_v14 = vsub.f32 0.0, %v3822_v60  ;;  %v8125_v17 = vpop.eup %8124  ;;  %v4143_v46 = vadd.f32 %v4077_v59, %v3759_v50  ;;  %v4149_v44 = vadd.f32 %v4089_v45, %v3765_v7  ;;  %v4185_v43 = vpack.c.bf16 %v9176_v3, %v9170_v37 }
 0x84e   :  { %8138 = vpow2.f32 %v3966_v54  ;;  %v8127_v55 = vpop.eup %8126  ;;  %v4085_v51 = vmul.f32 0.6931472, %v8125_v17  ;;  %v3873_v31 = vsub.f32 0.0, %v3825_v5  ;;  %v4148_v2 = vadd.f32 %v4087_v26, %v3764_v24 }
 0x84f   :  { %8140 = vlog2.f32 %v4007_v18  ;;  %v3962_v57 = vmul.f32 1.442695, %v3870_v14  ;;  %v8129_v33 = vpop.eup %8128  ;;  %v4146_v23 = vadd.f32 %v4083_v62, %v3762_v29  ;;  %v4012_v50 = vadd.f32 1.0, %v8123_v28  ;;  %7611 = vmatprep.mubr.bf16.mxu0 %v4185_v43 }
 0x850   :  { %v3823_v58 = vand.u32 2147483647, %v9273_v47  ;;  %v4147_v7 = vadd.f32 %v4085_v51, %v3763_v34  ;;  %v4010_v37 = vadd.f32 1.0, %v8127_v55  ;;  %v3968_v3 = vmul.f32 1.442695, %v3873_v31  ;;  %7612 = vmatmul.mubr.bf16.gmra.mrb[28].mxu0 %v4186_v41 }
 0x851   :  { %8142 = vpow2.f32 %v3962_v57  ;;  %v7801_v52 = vpack.i.bf16 %v4145_v22, %v9255_v53  ;;  %v7806_v19 = vpack.i.bf16 %v4143_v46, %v4142_v36  ;;  %v4095_v24 = vmul.f32 0.6931472, %v8129_v33 }
 0x852   :  { %v3871_v48 = vsub.f32 0.0, %v3823_v58  ;;  %v8131_v1 = vpop.eup %8130  ;;  %8144 = vpow2.f32 %v3968_v3  ;;  %v7811_v6 = vpack.i.bf16 %v4149_v44, %v4148_v2  ;;  %v7816_v29 = vpack.i.bf16 %v4147_v7, %v4146_v23 }
 0x853   :  { %v8133_v21 = vpop.eup %8132  ;;  %8146 = vlog2.f32 %v4012_v50  ;;  %7802 = vperm.xlu1 %7740, %v7801_v52   ;;  %7807 = vperm.xlu0 %7729, %v7806_v19   ;;  %v3768_v34 = vmax.f32 %v9182_v61, 0.0  ;;  %v3769_v63 = vmax.f32 %v9191_v15, 0.0  ;;  %v4091_v40 = vmul.f32 0.6931472, %v8131_v1 }
 0x854   :  { %v3964_v35 = vmul.f32 1.442695, %v3871_v48  ;;  %v8135_v32 = vpop.eup %8134  ;;  %v4097_v25 = vmul.f32 0.6931472, %v8133_v21  ;;  %8148 = vlog2.f32 %v4010_v37  ;;  %v3766_v61 = vmax.f32 %v9187_v39, 0.0 }
 0x855   :  { %v8137_v12 = vpop.eup %8136  ;;  %v4013_v53 = vadd.f32 1.0, %v8135_v32  ;;  %v4152_v11 = vadd.f32 %v4095_v24, %v3768_v34  ;;  %v3767_v15 = vmax.f32 %v9208_v4, 0.0  ;;  %v3772_v46 = vmax.f32 %v9217_v20, 0.0 }
 0x856   :  { %8150 = vpow2.f32 %v3964_v35  ;;  %v4153_v36 = vadd.f32 %v4097_v25, %v3769_v63  ;;  %v4011_v13 = vadd.f32 1.0, %v8137_v12  ;;  %v4150_v22 = vadd.f32 %v4091_v40, %v3766_v61 }
 0x857   :  { %8152 = vlog2.f32 %v4013_v53  ;;  %7812 = vperm.xlu1 %7740, %v7811_v6   ;;  %7817 = vperm.xlu0 %7729, %v7816_v29   ;;  %v3773_v44 = vmax.f32 %v9228_v27, 0.0  ;;  %v3770_v55 = vmax.f32 %v9222_v56, 0.0  ;;  %v3771_v51 = vmax.f32 %v9235_v30, 0.0  ;;  %v4162_v53 = vld [vmem:[%s9525_s1] sm:$0xff] }
 0x858   :  { %v8139_v38 = vpop.eup %8138  ;;  %8154 = vlog2.f32 %v4011_v13  ;;  %v7821_v49 = vpack.i.bf16 %v4153_v36, %v4152_v11  ;;  %v3776_v27 = vmax.f32 %v9249_v16, 0.0  ;;  %v3777_v48 = vmax.f32 %v9264_v8, 0.0 }
 0x859   :  { %v8141_v59 = vpop.eup %8140  ;;  %v4016_v42 = vadd.f32 1.0, %v8139_v38  ;;  %v8381_v30 = vmov 1966171168   ;;  %v4482_v1 = vlaneseq  ;;  %v3774_v21 = vmax.f32 %v9261_v9, 0.0 }
 0x85a   :  { %v4093_v41 = vmul.f32 0.6931472, %v8141_v59  ;;  %v4480_v19 = vunpack.c.l.s4 %v8381_v30  ;;  %v3775_v35 = vmax.f32 %v9273_v47, 0.0  ;;  %v4478_v36 = vcombine.high %v4162_v53, %v4162_v53 }
 0x85b   :  { %v8143_v0 = vpop.eup %8142  ;;  %8156 = vlog2.f32 %v4016_v42  ;;  %7822 = vperm.xlu1 %7740, %v7821_v49   ;;  %v4483_v16 = vshrl.u32 %v4482_v1, 7 }
 0x85c   :  { %v4151_v26 = vadd.f32 %v4093_v41, %v3767_v15  ;;  %v4014_v60 = vadd.f32 1.0, %v8143_v0  ;;  %v8145_v10 = vpop.eup %8144  ;;  %v4481_v12 = vunpack.c.0.s8 %v4480_v19 }
 0x85d   :  { %v8147_v62 = vpop.eup %8146  ;;  %v4017_v45 = vadd.f32 1.0, %v8145_v10  ;;  %v9305_v9 = vsub.s32 0, %v4483_v16 }
 0x85e   :  { %v7826_v54 = vpack.i.bf16 %v4151_v26, %v4150_v22  ;;  %v8149_v28 = vpop.eup %8148  ;;  %8158 = vlog2.f32 %v4014_v60  ;;  %v4103_v14 = vmul.f32 0.6931472, %v8147_v62  ;;  %v4484_v11 = vsub.s32 %v4481_v12, %v4483_v16 }
 0x85f   :  { %8160 = vlog2.f32 %v4017_v45  ;;  %v4099_v4 = vmul.f32 0.6931472, %v8149_v28 }
 0x860   :  { %v8151_v18 = vpop.eup %8150  ;;  %7827 = vperm.xlu0 %7729, %v7826_v54   ;;  %v4156_v31 = vadd.f32 %v4103_v14, %v3772_v46  ;;  %v4492_v13 = vrot.slane %v4478_v36, %v4484_v11  ;;  %v4485_v0 = vrot.slane %v4162_v53, %v4484_v11 }
 0x861   :  { %v4015_v39 = vadd.f32 1.0, %v8151_v18  ;;  %v8153_v5 = vpop.eup %8152  ;;  %v4154_v23 = vadd.f32 %v4099_v4, %v3770_v55 }
 0x862   :  { %v8155_v17 = vpop.eup %8154  ;;  %v4105_v43 = vmul.f32 0.6931472, %v8153_v5  ;;  %v4508_v47 = vrot.slane %v4492_v13, %v4484_v11  ;;  %v4494_v40 = vcombine.high %v4492_v13, %v4492_v13  ;;  %v4501_v22 = vrot.slane %v4485_v0, %v4484_v11 }
 0x863   :  { %8162 = vlog2.f32 %v4015_v39  ;;  %v4101_v57 = vmul.f32 0.6931472, %v8155_v17  ;;  %v4493_v60 = vcombine.high %v4485_v0, %v4485_v0 }
 0x864   :  { %v4157_v33 = vadd.f32 %v4105_v43, %v3773_v44  ;;  %v9308_v38 = vrot.slane %v4508_v47, %v9305_v9  ;;  %v4522_v59 = vrot.slane %v4494_v40, %v4484_v11  ;;  %v4524_v49 = vcombine.high %v4508_v47, %v4508_v47 }
 0x865   :  { %v8157_v2 = vpop.eup %8156  ;;  %v4155_v50 = vadd.f32 %v4101_v57, %v3771_v51  ;;  %v4530_v26 = vrot.slane %v4501_v22, %v9305_v9  ;;  %v4515_v39 = vrot.slane %v4493_v60, %v4484_v11 }
 0x866   :  { %v7831_v58 = vpack.i.bf16 %v4157_v33, %v4156_v31  ;;  %v4111_v3 = vmul.f32 0.6931472, %v8157_v2  ;;  %v9311_v42 = vrot.slane %v4522_v59, %v9305_v9  ;;  %v9314_v61 = vrot.slane %v4524_v49, %v9305_v9 }
 0x867   :  { %v7836_v7 = vpack.i.bf16 %v4155_v50, %v4154_v23  ;;  %v4526_v15 = vcombine.high %v4522_v59, %v4522_v59  ;;  %v4534_v55 = vrot.slane %v4515_v39, %v9305_v9  ;;  %v4525_v59 = vcombine.high %v4515_v39, %v4515_v39 }
 0x868   :  { %v8159_v37 = vpop.eup %8158  ;;  %7832 = vperm.xlu1 %7740, %v7831_v58   ;;  %v4160_v6 = vadd.f32 %v4111_v3, %v3776_v27 }
 0x869   :  { %v8161_v20 = vpop.eup %8160  ;;  %7837 = vperm.xlu0 %7729, %v7836_v7   ;;  %v4107_v52 = vmul.f32 0.6931472, %v8159_v37  ;;  %v9317_v41 = vrot.slane %v4526_v15, %v9305_v9 }
 0x86a   :  { %v4113_v56 = vmul.f32 0.6931472, %v8161_v20 }
 0x86b   :  { %v4158_v63 = vadd.f32 %v4107_v52, %v3774_v21 }
 0x86c   :  { %v4161_v29 = vadd.f32 %v4113_v56, %v3777_v48 }
 0x86d   :  { %v8163_v24 = vpop.eup %8162 }
 0x86e   :  { %v4109_v32 = vmul.f32 0.6931472, %v8163_v24  ;;  %v7846_v34 = vpack.i.bf16 %v4161_v29, %v4160_v6  ;;  %v4523_v29 = vcombine.high %v4501_v22, %v4501_v22 }
 0x870   :  { %v4159_v25 = vadd.f32 %v4109_v32, %v3775_v35  ;;  %7847 = vperm.xlu1 %7740, %v7846_v34   ;;  %v4538_v16 = vrot.slane %v4523_v29, %v9305_v9 }
 0x872   :  { %v7841_v8 = vpack.i.bf16 %v4159_v25, %v4158_v63 }
 0x874   :  { %7842 = vperm.xlu0 %7729, %v7841_v8  }
 0x8af   :  { %v7569_v10 = vpop.f32.mrb[240].mxu0 }
 0x8b0   :  { %v4569_v62 = vadd.f32 %v7569_v10, %v4530_v26  ;;  %v4286_v45 = vpop.f32.mrb[241].mxu0 }
 0x8b1   :  { %v4567_v54 = vadd.f32 %v4530_v26, %v4286_v45  ;;  %v7570_v28 = vpop.f32.mrb[242].mxu0 }
 0x8b2   :  { %v4570_v18 = vadd.f32 %v7570_v28, %v4530_v26  ;;  %v4289_v14 = vpop.f32.mrb[243].mxu0  ;;  %v4617_v4 = vmax.f32 %v4569_v62, 0.0  ;;  %v4542_v62 = vrot.slane %v4525_v59, %v9305_v9 }
 0x8b3   :  { %v4568_v5 = vadd.f32 %v4530_v26, %v4289_v14  ;;  %v4615_v46 = vmax.f32 %v4567_v54, 0.0 }
 0x8b4   :  { %v4618_v17 = vmax.f32 %v4570_v18, 0.0 }
 0x8b5   :  { %v4616_v44 = vmax.f32 %v4568_v5, 0.0 }
 0x8b6   :  { %v4664_v43 = vpack.c.bf16 %v4618_v17, %v4617_v4 }
 0x8b7   :  { %v4663_v51 = vpack.c.bf16 %v4616_v44, %v4615_v46  ;;  %v7573_v57 = vpop.f32.mrb[244].mxu0 }
 0x8b8   :  { %v4573_v31 = vadd.f32 %v7573_v57, %v4534_v55  ;;  %v4302_v33 = vpop.f32.mrb[245].mxu0 }
 0x8b9   :  { %7631 = vmatprep.mubr.bf16.mxu1 %v4663_v51  ;;  %v4571_v2 = vadd.f32 %v4530_v26, %v4302_v33  ;;  %v7574_v23 = vpop.f32.mrb[246].mxu0 }
 0x8ba   :  { %7632 = vmatmul.mubr.bf16.vlgmr.msra.gmra.mrb[192].mxu1 %v4664_v43  ;;  %v4574_v50 = vadd.f32 %v7574_v23, %v4534_v55  ;;  %v4305_v58 = vpop.f32.mrb[247].mxu0  ;;  %v4621_v37 = vmax.f32 %v4573_v31, 0.0 }
 0x8bb   :  { %v4572_v7 = vadd.f32 %v4530_v26, %v4305_v58  ;;  %v4619_v20 = vmax.f32 %v4571_v2, 0.0 }
 0x8bc   :  { %v4622_v3 = vmax.f32 %v4574_v50, 0.0 }
 0x8bd   :  { %v4620_v27 = vmax.f32 %v4572_v7, 0.0 }
 0x8be   :  { %v4666_v48 = vpack.c.bf16 %v4622_v3, %v4621_v37 }
 0x8bf   :  { %v4665_v56 = vpack.c.bf16 %v4620_v27, %v4619_v20  ;;  %v7577_v52 = vpop.f32.mrb[248].mxu0 }
 0x8c0   :  { %v4577_v30 = vadd.f32 %v7577_v52, %v4534_v55  ;;  %v4318_v19 = vpop.f32.mrb[249].mxu0 }
 0x8c1   :  { %7635 = vmatprep.mubr.bf16.mxu1 %v4665_v56  ;;  %v4575_v24 = vadd.f32 %v4534_v55, %v4318_v19  ;;  %v7578_v6 = vpop.f32.mrb[250].mxu0 }
 0x8c2   :  { %7636 = vmatmul.mubr.bf16.gmra.mrb[196].mxu1 %v4666_v48  ;;  %v4578_v21 = vadd.f32 %v7578_v6, %v4534_v55  ;;  %v4321_v35 = vpop.f32.mrb[251].mxu0  ;;  %v4625_v34 = vmax.f32 %v4577_v30, 0.0 }
 0x8c3   :  { %v4576_v32 = vadd.f32 %v4534_v55, %v4321_v35  ;;  %v4623_v25 = vmax.f32 %v4575_v24, 0.0 }
 0x8c4   :  { %v4626_v63 = vmax.f32 %v4578_v21, 0.0 }
 0x8c5   :  { %v4624_v12 = vmax.f32 %v4576_v32, 0.0 }
 0x8c6   :  { %v4668_v8 = vpack.c.bf16 %v4626_v63, %v4625_v34 }
 0x8c7   :  { %v4667_v53 = vpack.c.bf16 %v4624_v12, %v4623_v25  ;;  %v7581_v11 = vpop.f32.mrb[252].mxu0 }
 0x8c8   :  { %v4581_v36 = vadd.f32 %v7581_v11, %v4538_v16  ;;  %v4334_v13 = vpop.f32.mrb[253].mxu0 }
 0x8c9   :  { %7639 = vmatprep.mubr.bf16.mxu1 %v4667_v53  ;;  %v4579_v47 = vadd.f32 %v4538_v16, %v4334_v13  ;;  %v7582_v40 = vpop.f32.mrb[254].mxu0 }
 0x8ca   :  { %7640 = vmatmul.mubr.bf16.gmra.mrb[200].mxu1 %v4668_v8  ;;  %v4582_v49 = vadd.f32 %v7582_v40, %v4538_v16  ;;  %v4337_v15 = vpop.f32.mrb[255].mxu0  ;;  %v4629_v22 = vmax.f32 %v4581_v36, 0.0 }
 0x8cb   :  { %v4580_v0 = vadd.f32 %v4538_v16, %v4337_v15  ;;  %v4627_v60 = vmax.f32 %v4579_v47, 0.0 }
 0x8cc   :  { %v4630_v26 = vmax.f32 %v4582_v49, 0.0 }
 0x8cd   :  { %v4628_v10 = vmax.f32 %v4580_v0, 0.0 }
 0x8ce   :  { %v4670_v45 = vpack.c.bf16 %v4630_v26, %v4629_v22 }
 0x8cf   :  { %v4669_v54 = vpack.c.bf16 %v4628_v10, %v4627_v60 }
 0x8d1   :  { %v7585_v28 = vpop.f32.mrb[0].mxu0  ;;  %7643 = vmatprep.mubr.bf16.mxu1 %v4669_v54 }
 0x8d2   :  { %v4585_v18 = vadd.f32 %v7585_v28, %v4542_v62  ;;  %v4350_v14 = vpop.f32.mrb[1].mxu0  ;;  %7644 = vmatmul.mubr.bf16.gmra.mrb[204].mxu1 %v4670_v45 }
 0x8d3   :  { %v7586_v5 = vpop.f32.mrb[2].mxu0  ;;  %v4583_v4 = vadd.f32 %v4538_v16, %v4350_v14 }
 0x8d4   :  { %v4586_v17 = vadd.f32 %v7586_v5, %v4542_v62  ;;  %v4353_v39 = vpop.f32.mrb[3].mxu0  ;;  %v4633_v46 = vmax.f32 %v4585_v18, 0.0 }
 0x8d5   :  { %v4584_v43 = vadd.f32 %v4538_v16, %v4353_v39  ;;  %v4631_v55 = vmax.f32 %v4583_v4, 0.0 }
 0x8d6   :  { %v4634_v44 = vmax.f32 %v4586_v17, 0.0 }
 0x8d7   :  { %v4632_v57 = vmax.f32 %v4584_v43, 0.0 }
 0x8d8   :  { %v4672_v51 = vpack.c.bf16 %v4634_v44, %v4633_v46 }
 0x8d9   :  { %v4671_v31 = vpack.c.bf16 %v4632_v57, %v4631_v55  ;;  %v7589_v9 = vpop.f32.mrb[4].mxu0 }
 0x8da   :  { %v4589_v33 = vadd.f32 %v7589_v9, %v4542_v62  ;;  %v4366_v2 = vpop.f32.mrb[5].mxu0 }
 0x8db   :  { %7647 = vmatprep.mubr.bf16.mxu1 %v4671_v31  ;;  %v4587_v23 = vadd.f32 %v4542_v62, %v4366_v2  ;;  %v7590_v50 = vpop.f32.mrb[6].mxu0 }
 0x8dc   :  { %7648 = vmatmul.mubr.bf16.gmra.mrb[208].mxu1 %v4672_v51  ;;  %v4590_v58 = vadd.f32 %v7590_v50, %v4542_v62  ;;  %v4369_v7 = vpop.f32.mrb[7].mxu0  ;;  %v4637_v3 = vmax.f32 %v4589_v33, 0.0 }
 0x8dd   :  { %v4588_v37 = vadd.f32 %v4542_v62, %v4369_v7  ;;  %v4635_v27 = vmax.f32 %v4587_v23, 0.0 }
 0x8de   :  { %v4638_v20 = vmax.f32 %v4590_v58, 0.0 }
 0x8df   :  { %v4636_v48 = vmax.f32 %v4588_v37, 0.0 }
 0x8e0   :  { %v4674_v56 = vpack.c.bf16 %v4638_v20, %v4637_v3 }
 0x8e1   :  { %v4673_v52 = vpack.c.bf16 %v4636_v48, %v4635_v27 }
 0x8e3   :  { %7651 = vmatprep.mubr.bf16.mxu1 %v4673_v52 }
 0x8e4   :  { %7652 = vmatmul.mubr.bf16.gmra.mrb[212].mxu1 %v4674_v56 }
 0x8e8   :  { %v7593_v30 = vpop.f32.mrb[8].mxu0 }
 0x8e9   :  { %v4593_v19 = vadd.f32 %v7593_v30, %v9308_v38  ;;  %v4382_v24 = vpop.f32.mrb[9].mxu0 }
 0x8ea   :  { %v4591_v6 = vadd.f32 %v9308_v38, %v4382_v24  ;;  %v7594_v29 = vpop.f32.mrb[10].mxu0 }
 0x8eb   :  { %v4594_v21 = vadd.f32 %v7594_v29, %v9308_v38  ;;  %v4385_v35 = vpop.f32.mrb[11].mxu0  ;;  %v4641_v34 = vmax.f32 %v4593_v19, 0.0 }
 0x8ec   :  { %v4592_v32 = vadd.f32 %v9308_v38, %v4385_v35  ;;  %v4639_v25 = vmax.f32 %v4591_v6, 0.0 }
 0x8ed   :  { %v4642_v63 = vmax.f32 %v4594_v21, 0.0 }
 0x8ee   :  { %v4640_v12 = vmax.f32 %v4592_v32, 0.0 }
 0x8ef   :  { %v4676_v16 = vpack.c.bf16 %v4642_v63, %v4641_v34 }
 0x8f0   :  { %v4675_v8 = vpack.c.bf16 %v4640_v12, %v4639_v25 }
 0x8f2   :  { %7655 = vmatprep.mubr.bf16.mxu1 %v4675_v8 }
 0x8f3   :  { %7656 = vmatmul.mubr.bf16.gmra.mrb[216].mxu1 %v4676_v16 }
 0x8f7   :  { %v7597_v53 = vpop.f32.mrb[12].mxu0 }
 0x8f8   :  { %v4597_v11 = vadd.f32 %v7597_v53, %v9311_v42  ;;  %v4398_v36 = vpop.f32.mrb[13].mxu0 }
 0x8f9   :  { %v4595_v13 = vadd.f32 %v9308_v38, %v4398_v36  ;;  %v7598_v47 = vpop.f32.mrb[14].mxu0 }
 0x8fa   :  { %v4598_v40 = vadd.f32 %v7598_v47, %v9311_v42  ;;  %v4401_v59 = vpop.f32.mrb[15].mxu0  ;;  %v4645_v15 = vmax.f32 %v4597_v11, 0.0 }
 0x8fb   :  { %v4596_v49 = vadd.f32 %v9308_v38, %v4401_v59  ;;  %v4643_v22 = vmax.f32 %v4595_v13, 0.0 }
 0x8fc   :  { %v4646_v0 = vmax.f32 %v4598_v40, 0.0 }
 0x8fd   :  { %v4644_v26 = vmax.f32 %v4596_v49, 0.0 }
 0x8fe   :  { %v4678_v60 = vpack.c.bf16 %v4646_v0, %v4645_v15 }
 0x8ff   :  { %v4677_v10 = vpack.c.bf16 %v4644_v26, %v4643_v22 }
 0x901   :  { %v7601_v62 = vpop.f32.mrb[16].mxu0  ;;  %7659 = vmatprep.mubr.bf16.mxu1 %v4677_v10 }
 0x902   :  { %v4601_v45 = vadd.f32 %v7601_v62, %v9311_v42  ;;  %v4414_v54 = vpop.f32.mrb[17].mxu0  ;;  %7660 = vmatmul.mubr.bf16.gmra.mrb[220].mxu1 %v4678_v60 }
 0x903   :  { %v4599_v28 = vadd.f32 %v9311_v42, %v4414_v54  ;;  %v7602_v18 = vpop.f32.mrb[18].mxu0 }
 0x904   :  { %v4602_v14 = vadd.f32 %v7602_v18, %v9311_v42  ;;  %v4417_v5 = vpop.f32.mrb[19].mxu0  ;;  %v4649_v4 = vmax.f32 %v4601_v45, 0.0 }
 0x905   :  { %v4600_v38 = vadd.f32 %v9311_v42, %v4417_v5  ;;  %v4647_v39 = vmax.f32 %v4599_v28, 0.0 }
 0x906   :  { %v4650_v17 = vmax.f32 %v4602_v14, 0.0 }
 0x907   :  { %v4648_v46 = vmax.f32 %v4600_v38, 0.0 }
 0x908   :  { %v4680_v44 = vpack.c.bf16 %v4650_v17, %v4649_v4 }
 0x909   :  { %v4679_v43 = vpack.c.bf16 %v4648_v46, %v4647_v39 }
 0x90b   :  { %7663 = vmatprep.mubr.bf16.mxu1 %v4679_v43 }
 0x90c   :  { %7664 = vmatmul.mubr.bf16.gmra.mrb[224].mxu1 %v4680_v44 }
 0x90e   :  { %v7605_v55 = vpop.f32.mrb[20].mxu0 }
 0x90f   :  { %v4605_v51 = vadd.f32 %v7605_v55, %v9314_v61  ;;  %v4430_v57 = vpop.f32.mrb[21].mxu0 }
 0x910   :  { %v4603_v31 = vadd.f32 %v9314_v61, %v4430_v57  ;;  %v7606_v9 = vpop.f32.mrb[22].mxu0 }
 0x911   :  { %v4606_v33 = vadd.f32 %v7606_v9, %v9314_v61  ;;  %v4433_v2 = vpop.f32.mrb[23].mxu0  ;;  %v4653_v23 = vmax.f32 %v4605_v51, 0.0 }
 0x912   :  { %v4604_v42 = vadd.f32 %v9314_v61, %v4433_v2  ;;  %v4651_v58 = vmax.f32 %v4603_v31, 0.0  ;;  %v7732_v2 = vpop.permute.xlu0 %7731 }
 0x913   :  { %v4654_v50 = vmax.f32 %v4606_v33, 0.0 }
 0x914   :  { %v4652_v7 = vmax.f32 %v4604_v42, 0.0 }
 0x915   :  { %v4682_v37 = vpack.c.bf16 %v4654_v50, %v4653_v23 }
 0x916   :  { %v4681_v3 = vpack.c.bf16 %v4652_v7, %v4651_v58 }
 0x918   :  { %7667 = vmatprep.mubr.bf16.mxu1 %v4681_v3  ;;  %v9348_v3 = vand.u32 127, %v4482_v1 }
 0x919   :  { %v7609_v20 = vpop.f32.mrb[24].mxu0  ;;  %7668 = vmatmul.mubr.bf16.gmra.mrb[228].mxu1 %v4682_v37 }
 0x91a   :  { %v4609_v27 = vadd.f32 %v7609_v20, %v9317_v41  ;;  %v4446_v48 = vpop.f32.mrb[25].mxu0  ;;  %vm5363_vm0 = vcmp.eq.s32.totalorder %v9348_v3, 3 }
 0x91b   :  { %v4607_v56 = vadd.f32 %v9314_v61, %v4446_v48  ;;  %v7610_v52 = vpop.f32.mrb[26].mxu0 }
 0x91c   :  { %v4610_v30 = vadd.f32 %v7610_v52, %v9317_v41  ;;  %v4449_v19 = vpop.f32.mrb[27].mxu0  ;;  %v4657_v6 = vmax.f32 %v4609_v27, 0.0 }
 0x91d   :  { %v4608_v24 = vadd.f32 %v9314_v61, %v4449_v19  ;;  %v4655_v21 = vmax.f32 %v4607_v56, 0.0 }
 0x91e   :  { %v4658_v29 = vmax.f32 %v4610_v30, 0.0 }
 0x91f   :  { %v4656_v35 = vmax.f32 %v4608_v24, 0.0 }
 0x920   :  { %v4684_v32 = vpack.c.bf16 %v4658_v29, %v4657_v6  ;;  %v7737_v29 = vpop.permute.xlu0 %7736 }
 0x921   :  { %v4683_v34 = vpack.c.bf16 %v4656_v35, %v4655_v21  ;;  %v7734_v35 = vunpack.i.h.bf16 %v7732_v2 }
 0x923   :  { %v7613_v63 = vpop.f32.mrb[28].mxu0  ;;  %7671 = vmatprep.mubr.bf16.mxu1 %v4683_v34 }
 0x924   :  { %v4613_v25 = vadd.f32 %v7613_v63, %v9317_v41  ;;  %v4462_v12 = vpop.f32.mrb[29].mxu0  ;;  %7672 = vmatmul.mubr.bf16.gmra.mrb[232].mxu1 %v4684_v32 }
 0x925   :  { %v4611_v16 = vadd.f32 %v9317_v41, %v4462_v12  ;;  %v7614_v8 = vpop.f32.mrb[30].mxu0  ;;  %v7733_v12 = vunpack.i.l.bf16 %v7732_v2 }
 0x926   :  { %v4614_v53 = vadd.f32 %v7614_v8, %v9317_v41  ;;  %v4465_v11 = vpop.f32.mrb[31].mxu0  ;;  %v4661_v36 = vmax.f32 %v4613_v25, 0.0 }
 0x927   :  { %v4612_v61 = vadd.f32 %v9317_v41, %v4465_v11  ;;  %v4659_v47 = vmax.f32 %v4611_v16, 0.0  ;;  %v7739_v11 = vunpack.i.h.bf16 %v7737_v29 }
 0x928   :  { %v4662_v13 = vmax.f32 %v4614_v53, 0.0 }
 0x929   :  { %v4660_v40 = vmax.f32 %v4612_v61, 0.0  ;;  %v7738_v61 = vunpack.i.l.bf16 %v7737_v29 }
 0x92a   :  { %v4686_v59 = vpack.c.bf16 %v4662_v13, %v4661_v36 }
 0x92b   :  { %v4685_v49 = vpack.c.bf16 %v4660_v40, %v4659_v47 }
 0x92d   :  { %7675 = vmatprep.mubr.bf16.mxu1 %v4685_v49 }
 0x92e   :  { %7676 = vmatmul.mubr.bf16.gmra.mrb[236].mxu1 %v4686_v59 }
 0x98d   :  { %v7633_v15 = vpop.f32.mrb[192].mxu1 }
 0x98e   :  { %v6194_v0 = vmul.f32 -1.442695, %v7633_v15  ;;  %v4786_v22 = vpop.f32.mrb[193].mxu1 }
 0x98f   :  { %v6192_v26 = vmul.f32 -1.442695, %v4786_v22  ;;  %v7634_v60 = vpop.f32.mrb[194].mxu1 }
 0x990   :  { %8164 = vpow2.f32 %v6194_v0  ;;  %v6195_v10 = vmul.f32 -1.442695, %v7634_v60  ;;  %v4789_v62 = vpop.f32.mrb[195].mxu1 }
 0x991   :  { %8166 = vpow2.f32 %v6192_v26  ;;  %v6193_v45 = vmul.f32 -1.442695, %v4789_v62 }
 0x992   :  { %8168 = vpow2.f32 %v6195_v10 }
 0x993   :  { %8170 = vpow2.f32 %v6193_v45 }
 0x995   :  { %v7637_v41 = vpop.f32.mrb[196].mxu1 }
 0x996   :  { %v6198_v54 = vmul.f32 -1.442695, %v7637_v41  ;;  %v4802_v28 = vpop.f32.mrb[197].mxu1 }
 0x997   :  { %v6196_v18 = vmul.f32 -1.442695, %v4802_v28  ;;  %v7638_v14 = vpop.f32.mrb[198].mxu1 }
 0x998   :  { %8172 = vpow2.f32 %v6198_v54  ;;  %v6199_v38 = vmul.f32 -1.442695, %v7638_v14  ;;  %v4805_v4 = vpop.f32.mrb[199].mxu1 }
 0x999   :  { %8174 = vpow2.f32 %v6196_v18  ;;  %v6197_v51 = vmul.f32 -1.442695, %v4805_v4  ;;  %v7743_v4 = vpop.permute.xlu1 %7742 }
 0x99a   :  { %v8165_v5 = vpop.eup %8164  ;;  %8176 = vpow2.f32 %v6199_v38 }
 0x99b   :  { %v8167_v17 = vpop.eup %8166  ;;  %v5123_v39 = vadd.f32 1.0, %v8165_v5 }
 0x99c   :  { %v8169_v46 = vpop.eup %8168  ;;  %v5121_v44 = vadd.f32 1.0, %v8167_v17 }
 0x99d   :  { %v8171_v43 = vpop.eup %8170  ;;  %8178 = vrcp.f32 %v5123_v39  ;;  %v5124_v55 = vadd.f32 1.0, %v8169_v46  ;;  %v7641_v31 = vpop.f32.mrb[200].mxu1 }
 0x99e   :  { %8180 = vrcp.f32 %v5121_v44  ;;  %v5122_v57 = vadd.f32 1.0, %v8171_v43  ;;  %v6202_v9 = vmul.f32 -1.442695, %v7641_v31  ;;  %v4818_v33 = vpop.f32.mrb[201].mxu1 }
 0x99f   :  { %8182 = vrcp.f32 %v5124_v55  ;;  %v6200_v42 = vmul.f32 -1.442695, %v4818_v33  ;;  %v7642_v23 = vpop.f32.mrb[202].mxu1 }
 0x9a0   :  { %8184 = vrcp.f32 %v5122_v57  ;;  %v6203_v58 = vmul.f32 -1.442695, %v7642_v23  ;;  %v4821_v7 = vpop.f32.mrb[203].mxu1  ;;  %v7744_v23 = vunpack.i.l.bf16 %v7743_v4 }
 0x9a1   :  { %8186 = vpow2.f32 %v6197_v51  ;;  %v6201_v56 = vmul.f32 -1.442695, %v4821_v7 }
 0x9a2   :  { %v8173_v50 = vpop.eup %8172  ;;  %8188 = vpow2.f32 %v6202_v9 }
 0x9a3   :  { %v8175_v37 = vpop.eup %8174  ;;  %v5127_v20 = vadd.f32 1.0, %v8173_v50  ;;  %8190 = vpow2.f32 %v6200_v42  ;;  %v7745_v42 = vunpack.i.h.bf16 %v7743_v4 }
 0x9a4   :  { %v8177_v27 = vpop.eup %8176  ;;  %v5125_v48 = vadd.f32 1.0, %v8175_v37  ;;  %8192 = vpow2.f32 %v6203_v58 }
 0x9a5   :  { %8194 = vrcp.f32 %v5127_v20  ;;  %v5128_v30 = vadd.f32 1.0, %v8177_v27  ;;  %v7645_v63 = vpop.f32.mrb[204].mxu1  ;;  %v7748_v20 = vpop.permute.xlu1 %7747 }
 0x9a6   :  { %8196 = vrcp.f32 %v5125_v48  ;;  %v6206_v53 = vmul.f32 -1.442695, %v7645_v63  ;;  %v4834_v47 = vpop.f32.mrb[205].mxu1 }
 0x9a7   :  { %v8179_v52 = vpop.eup %8178  ;;  %8198 = vrcp.f32 %v5128_v30  ;;  %v6204_v49 = vmul.f32 -1.442695, %v4834_v47  ;;  %v7646_v15 = vpop.f32.mrb[206].mxu1 }
 0x9a8   :  { %v8181_v19 = vpop.eup %8180  ;;  %v5267_v24 = vmul.f32 1.002, %v8179_v52  ;;  %8200 = vpow2.f32 %v6201_v56  ;;  %v6207_v60 = vmul.f32 -1.442695, %v7646_v15  ;;  %v4837_v10 = vpop.f32.mrb[207].mxu1 }
 0x9a9   :  { %v8183_v6 = vpop.eup %8182  ;;  %v5265_v21 = vmul.f32 1.002, %v8181_v19  ;;  %8202 = vpow2.f32 %v6206_v53  ;;  %v6205_v5 = vmul.f32 -1.442695, %v4837_v10 }
 0x9aa   :  { %v8185_v1 = vpop.eup %8184  ;;  %v6242_v32 = vadd.f32 -0.001, %v5267_v24  ;;  %v5268_v34 = vmul.f32 1.002, %v8183_v6 }
 0x9ab   :  { %v8187_v25 = vpop.eup %8186  ;;  %v6240_v16 = vadd.f32 -0.001, %v5265_v21  ;;  %v5266_v8 = vmul.f32 1.002, %v8185_v1 }
 0x9ac   :  { %v6243_v36 = vadd.f32 -0.001, %v5268_v34  ;;  %v5126_v13 = vadd.f32 1.0, %v8187_v25  ;;  %v5606_v40 = vsel %vm5363_vm0, %v7733_v12, %v6242_v32  ;;  %v8189_v0 = vpop.eup %8188  ;;  %v7749_v25 = vunpack.i.l.bf16 %v7748_v20 }
 0x9ad   :  { %v6241_v59 = vadd.f32 -0.001, %v5266_v8  ;;  %v5604_v22 = vsel %vm5363_vm0, %v7738_v61, %v6240_v16  ;;  %v8191_v62 = vpop.eup %8190  ;;  %v5131_v54 = vadd.f32 1.0, %v8189_v0  ;;  %v7753_v61 = vpop.permute.xlu1 %7752 }
 0x9ae   :  { %v5607_v26 = vsel %vm5363_vm0, %v7734_v35, %v6243_v36  ;;  %8204 = vrcp.f32 %v5126_v13  ;;  %v8193_v28 = vpop.eup %8192  ;;  %v5129_v14 = vadd.f32 1.0, %v8191_v62  ;;  %v7750_v35 = vunpack.i.h.bf16 %v7748_v20 }
 0x9af   :  { %v6392_v45 = vpack.c.bf16 %v5607_v26, %v5606_v40  ;;  %v5605_v41 = vsel %vm5363_vm0, %v7739_v11, %v6241_v59  ;;  %8206 = vpow2.f32 %v6204_v49  ;;  %v8195_v38 = vpop.eup %8194  ;;  %v5132_v17 = vadd.f32 1.0, %v8193_v28  ;;  %v7649_v57 = vpop.f32.mrb[208].mxu1 }
 0x9b0   :  { %v6387_v18 = vpack.c.bf16 %v5605_v41, %v5604_v22  ;;  %8208 = vpow2.f32 %v6207_v60  ;;  %v8197_v39 = vpop.eup %8196  ;;  %v5271_v46 = vmul.f32 1.002, %v8195_v38  ;;  %v6210_v33 = vmul.f32 -1.442695, %v7649_v57  ;;  %v4850_v2 = vpop.f32.mrb[209].mxu1 }
 0x9b1   :  { %6504 = vst [vmem:[%s9526_s3 + $0x8] sm:$0xff] %v6392_v45   ;;  %8210 = vrcp.f32 %v5131_v54  ;;  %v8199_v44 = vpop.eup %8198  ;;  %v5269_v31 = vmul.f32 1.002, %v8197_v39  ;;  %v6208_v58 = vmul.f32 -1.442695, %v4850_v2  ;;  %v7650_v7 = vpop.f32.mrb[210].mxu1  ;;  %v7755_v26 = vunpack.i.h.bf16 %v7753_v61 }
 0x9b2   :  { %6388 = vst [vmem:[%s9526_s3] sm:$0xff] %v6387_v18   ;;  %8212 = vrcp.f32 %v5129_v14  ;;  %v8201_v43 = vpop.eup %8200  ;;  %v6246_v55 = vadd.f32 -0.001, %v5271_v46  ;;  %v5272_v51 = vmul.f32 1.002, %v8199_v44  ;;  %v6211_v27 = vmul.f32 -1.442695, %v7650_v7  ;;  %v7758_v59 = vpop.permute.xlu0 %7757 }
 0x9b3   :  { %8214 = vrcp.f32 %v5132_v17  ;;  %v5130_v9 = vadd.f32 1.0, %v8201_v43  ;;  %v8203_v37 = vpop.eup %8202  ;;  %v4853_v48 = vpop.f32.mrb[211].mxu1  ;;  %v6244_v6 = vadd.f32 -0.001, %v5269_v31  ;;  %v7754_v60 = vunpack.i.l.bf16 %v7753_v61 }
 0x9b4   :  { %8216 = vpow2.f32 %v6205_v5  ;;  %v6247_v50 = vadd.f32 -0.001, %v5272_v51  ;;  %v5610_v52 = vsel %vm5363_vm0, %v7744_v23, %v6246_v55  ;;  %v5135_v19 = vadd.f32 1.0, %v8203_v37 }
 0x9b5   :  { %8218 = vrcp.f32 %v5130_v9  ;;  %v6209_v34 = vmul.f32 -1.442695, %v4853_v48  ;;  %v5608_v36 = vsel %vm5363_vm0, %v7749_v25, %v6244_v6  ;;  %v7760_v41 = vunpack.i.h.bf16 %v7758_v59 }
 0x9b6   :  { %v5611_v30 = vsel %vm5363_vm0, %v7745_v42, %v6247_v50  ;;  %8220 = vpow2.f32 %v6210_v33  ;;  %v7759_v31 = vunpack.i.l.bf16 %v7758_v59 }
 0x9b7   :  { %v6402_v29 = vpack.c.bf16 %v5611_v30, %v5610_v52  ;;  %8222 = vpow2.f32 %v6208_v58  ;;  %v7653_v62 = vpop.f32.mrb[212].mxu1 }
 0x9b8   :  { %v8205_v56 = vpop.eup %8204  ;;  %8224 = vrcp.f32 %v5135_v19  ;;  %v6214_v28 = vmul.f32 -1.442695, %v7653_v62  ;;  %v4866_v18 = vpop.f32.mrb[213].mxu1 }
 0x9b9   :  { %v8207_v24 = vpop.eup %8206  ;;  %v5270_v21 = vmul.f32 1.002, %v8205_v56  ;;  %6506 = vst [vmem:[%s9526_s3 + $0x18] sm:$0xff] %v6402_v29   ;;  %8226 = vpow2.f32 %v6211_v27  ;;  %v6212_v17 = vmul.f32 -1.442695, %v4866_v18  ;;  %v7654_v39 = vpop.f32.mrb[214].mxu1 }
 0x9ba   :  { %v8209_v1 = vpop.eup %8208  ;;  %v5133_v32 = vadd.f32 1.0, %v8207_v24  ;;  %v6215_v55 = vmul.f32 -1.442695, %v7654_v39  ;;  %v4869_v51 = vpop.f32.mrb[215].mxu1 }
 0x9bb   :  { %v8211_v63 = vpop.eup %8210  ;;  %v6245_v12 = vadd.f32 -0.001, %v5270_v21  ;;  %v5136_v16 = vadd.f32 1.0, %v8209_v1  ;;  %v6213_v23 = vmul.f32 -1.442695, %v4869_v51  ;;  %v7763_v27 = vpop.permute.xlu1 %7762 }
 0x9bc   :  { %v8213_v8 = vpop.eup %8212  ;;  %v5275_v53 = vmul.f32 1.002, %v8211_v63  ;;  %8228 = vrcp.f32 %v5133_v32  ;;  %v7765_v6 = vunpack.i.h.bf16 %v7763_v27  ;;  %v7764_v29 = vunpack.i.l.bf16 %v7763_v27  ;;  %v7768_v21 = vpop.permute.xlu0 %7767 }
 0x9bd   :  { %v8215_v11 = vpop.eup %8214  ;;  %v5609_v13 = vsel %vm5363_vm0, %v7750_v35, %v6245_v12  ;;  %v5273_v47 = vmul.f32 1.002, %v8213_v8  ;;  %8230 = vrcp.f32 %v5136_v16  ;;  %v7770_v8 = vunpack.i.h.bf16 %v7768_v21 }
 0x9be   :  { %v8217_v40 = vpop.eup %8216  ;;  %v6397_v49 = vpack.c.bf16 %v5609_v13, %v5608_v36  ;;  %v6250_v15 = vadd.f32 -0.001, %v5275_v53  ;;  %v5276_v0 = vmul.f32 1.002, %v8215_v11  ;;  %8232 = vpow2.f32 %v6209_v34 }
 0x9bf   :  { %v5134_v22 = vadd.f32 1.0, %v8217_v40  ;;  %v8219_v45 = vpop.eup %8218  ;;  %v6248_v54 = vadd.f32 -0.001, %v5273_v47  ;;  %v7769_v13 = vunpack.i.l.bf16 %v7768_v21 }
 0x9c0   :  { %6505 = vst [vmem:[%s9526_s3 + $0x10] sm:$0xff] %v6397_v49   ;;  %v6251_v10 = vadd.f32 -0.001, %v5276_v0  ;;  %v8221_v14 = vpop.eup %8220  ;;  %v5614_v5 = vsel %vm5363_vm0, %v7754_v60, %v6250_v15  ;;  %v5274_v4 = vmul.f32 1.002, %v8219_v45  ;;  %v7778_v51 = vpop.permute.xlu0 %7777 }
 0x9c1   :  { %8234 = vrcp.f32 %v5134_v22  ;;  %v8223_v46 = vpop.eup %8222  ;;  %v5139_v43 = vadd.f32 1.0, %v8221_v14  ;;  %v5612_v58 = vsel %vm5363_vm0, %v7759_v31, %v6248_v54  ;;  %v7773_v14 = vpop.permute.xlu1 %7772 }
 0x9c2   :  { %v5615_v38 = vsel %vm5363_vm0, %v7755_v26, %v6251_v10  ;;  %8236 = vpow2.f32 %v6214_v28  ;;  %v8225_v57 = vpop.eup %8224  ;;  %v6249_v9 = vadd.f32 -0.001, %v5274_v4  ;;  %v5137_v33 = vadd.f32 1.0, %v8223_v46 }
 0x9c3   :  { %v6412_v44 = vpack.c.bf16 %v5615_v38, %v5614_v5  ;;  %8238 = vpow2.f32 %v6212_v17  ;;  %v8227_v2 = vpop.eup %8226  ;;  %v5279_v42 = vmul.f32 1.002, %v8225_v57 }
 0x9c4   :  { %8240 = vrcp.f32 %v5139_v43  ;;  %v5613_v7 = vsel %vm5363_vm0, %v7760_v41, %v6249_v9  ;;  %v5140_v37 = vadd.f32 1.0, %v8227_v2  ;;  %v7775_v43 = vunpack.i.h.bf16 %v7773_v14 }
 0x9c5   :  { %6508 = vst [vmem:[%s9526_s3 + $0x28] sm:$0xff] %v6412_v44   ;;  %8242 = vrcp.f32 %v5137_v33  ;;  %v6407_v48 = vpack.c.bf16 %v5613_v7, %v5612_v58  ;;  %v6254_v52 = vadd.f32 -0.001, %v5279_v42  ;;  %v7780_v42 = vunpack.i.h.bf16 %v7778_v51 }
 0x9c6   :  { %v8229_v50 = vpop.eup %8228  ;;  %8244 = vpow2.f32 %v6215_v55  ;;  %v7657_v12 = vpop.f32.mrb[216].mxu1  ;;  %v7774_v55 = vunpack.i.l.bf16 %v7773_v14 }
 0x9c7   :  { %v8231_v20 = vpop.eup %8230  ;;  %v5277_v30 = vmul.f32 1.002, %v8229_v50  ;;  %8246 = vrcp.f32 %v5140_v37  ;;  %6507 = vst [vmem:[%s9526_s3 + $0x20] sm:$0xff] %v6407_v48   ;;  %v5618_v32 = vsel %vm5363_vm0, %v7764_v29, %v6254_v52  ;;  %v6218_v11 = vmul.f32 -1.442695, %v7657_v12  ;;  %v4882_v61 = vpop.f32.mrb[217].mxu1 }
 0x9c8   :  { %v8233_v56 = vpop.eup %8232  ;;  %v5280_v19 = vmul.f32 1.002, %v8231_v20  ;;  %8248 = vpow2.f32 %v6213_v23  ;;  %v6216_v59 = vmul.f32 -1.442695, %v4882_v61  ;;  %v7658_v49 = vpop.f32.mrb[218].mxu1  ;;  %v7779_v23 = vunpack.i.l.bf16 %v7778_v51 }
 0x9c9   :  { %v5138_v24 = vadd.f32 1.0, %v8233_v56  ;;  %v6252_v34 = vadd.f32 -0.001, %v5277_v30  ;;  %v6219_v22 = vmul.f32 -1.442695, %v7658_v49  ;;  %v4885_v26 = vpop.f32.mrb[219].mxu1  ;;  %v7788_v61 = vpop.permute.xlu0 %7787 }
 0x9ca   :  { %v6255_v1 = vadd.f32 -0.001, %v5280_v19  ;;  %v6217_v28 = vmul.f32 -1.442695, %v4885_v26  ;;  %v7790_v26 = vunpack.i.h.bf16 %v7788_v61 }
 0x9cb   :  { %v8235_v35 = vpop.eup %8234  ;;  %8250 = vrcp.f32 %v5138_v24  ;;  %v5616_v10 = vsel %vm5363_vm0, %v7769_v13, %v6252_v34  ;;  %v7783_v34 = vpop.permute.xlu1 %7782 }
 0x9cc   :  { %v5619_v63 = vsel %vm5363_vm0, %v7765_v6, %v6255_v1  ;;  %v5278_v25 = vmul.f32 1.002, %v8235_v35  ;;  %v8237_v16 = vpop.eup %8236  ;;  %8252 = vpow2.f32 %v6218_v11 }
 0x9cd   :  { %v6422_v53 = vpack.c.bf16 %v5619_v63, %v5618_v32  ;;  %v8239_v36 = vpop.eup %8238  ;;  %v5143_v40 = vadd.f32 1.0, %v8237_v16 }
 0x9ce   :  { %v6253_v47 = vadd.f32 -0.001, %v5278_v25  ;;  %v8241_v15 = vpop.eup %8240  ;;  %v5141_v0 = vadd.f32 1.0, %v8239_v36 }
 0x9cf   :  { %6510 = vst [vmem:[%s9526_s3 + $0x38] sm:$0xff] %v6422_v53   ;;  %v8243_v60 = vpop.eup %8242  ;;  %v5283_v45 = vmul.f32 1.002, %v8241_v15  ;;  %8254 = vrcp.f32 %v5143_v40  ;;  %v7785_v40 = vunpack.i.h.bf16 %v7783_v34 }
 0x9d0   :  { %v5617_v62 = vsel %vm5363_vm0, %v7770_v8, %v6253_v47  ;;  %v8245_v41 = vpop.eup %8244  ;;  %8256 = vrcp.f32 %v5141_v0  ;;  %v5281_v5 = vmul.f32 1.002, %v8243_v60  ;;  %v7789_v60 = vunpack.i.l.bf16 %v7788_v61 }
 0x9d1   :  { %v6417_v54 = vpack.c.bf16 %v5617_v62, %v5616_v10  ;;  %v8247_v18 = vpop.eup %8246  ;;  %v5144_v38 = vadd.f32 1.0, %v8245_v41  ;;  %8258 = vpow2.f32 %v6216_v59  ;;  %v6258_v17 = vadd.f32 -0.001, %v5283_v45 }
 0x9d2   :  { %v8249_v4 = vpop.eup %8248  ;;  %v5284_v39 = vmul.f32 1.002, %v8247_v18  ;;  %8260 = vpow2.f32 %v6219_v22  ;;  %v6256_v31 = vadd.f32 -0.001, %v5281_v5  ;;  %v7784_v59 = vunpack.i.l.bf16 %v7783_v34 }
 0x9d3   :  { %6509 = vst [vmem:[%s9526_s3 + $0x30] sm:$0xff] %v6417_v54   ;;  %8262 = vrcp.f32 %v5144_v38  ;;  %v5142_v46 = vadd.f32 1.0, %v8249_v4  ;;  %v5622_v33 = vsel %vm5363_vm0, %v7774_v55, %v6258_v17 }
 0x9d4   :  { %v6259_v57 = vadd.f32 -0.001, %v5284_v39  ;;  %8264 = vpow2.f32 %v6217_v28  ;;  %v5620_v27 = vsel %vm5363_vm0, %v7779_v23, %v6256_v31 }
 0x9d5   :  { %v8251_v44 = vpop.eup %8250  ;;  %8266 = vrcp.f32 %v5142_v46  ;;  %v7661_v37 = vpop.f32.mrb[220].mxu1 }
 0x9d6   :  { %v5282_v9 = vmul.f32 1.002, %v8251_v44  ;;  %v5623_v2 = vsel %vm5363_vm0, %v7775_v43, %v6259_v57  ;;  %v8253_v7 = vpop.eup %8252  ;;  %v6222_v52 = vmul.f32 -1.442695, %v7661_v37  ;;  %v4898_v30 = vpop.f32.mrb[221].mxu1 }
 0x9d7   :  { %v6432_v50 = vpack.c.bf16 %v5623_v2, %v5622_v33  ;;  %v5147_v56 = vadd.f32 1.0, %v8253_v7  ;;  %v6220_v29 = vmul.f32 -1.442695, %v4898_v30  ;;  %v7662_v21 = vpop.f32.mrb[222].mxu1  ;;  %v7793_v33 = vpop.permute.xlu1 %7792 }
 0x9d8   :  { %v6257_v58 = vadd.f32 -0.001, %v5282_v9  ;;  %v4901_v35 = vpop.f32.mrb[223].mxu1  ;;  %v6223_v12 = vmul.f32 -1.442695, %v7662_v21 }
 0x9d9   :  { %v8255_v20 = vpop.eup %8254  ;;  %6512 = vst [vmem:[%s9526_s3 + $0x48] sm:$0xff] %v6432_v50   ;;  %8268 = vrcp.f32 %v5147_v56  ;;  %v6221_v13 = vmul.f32 -1.442695, %v4901_v35 }
 0x9da   :  { %v5621_v48 = vsel %vm5363_vm0, %v7780_v42, %v6257_v58  ;;  %v8257_v19 = vpop.eup %8256  ;;  %v5287_v6 = vmul.f32 1.002, %v8255_v20  ;;  %8270 = vpow2.f32 %v6222_v52  ;;  %v7798_v58 = vpop.permute.xlu0 %7797  ;;  %v7794_v52 = vunpack.i.l.bf16 %v7793_v33 }
 0x9db   :  { %v6427_v24 = vpack.c.bf16 %v5621_v48, %v5620_v27  ;;  %v8259_v1 = vpop.eup %8258  ;;  %v5285_v63 = vmul.f32 1.002, %v8257_v19  ;;  %8272 = vpow2.f32 %v6220_v29  ;;  %v7795_v27 = vunpack.i.h.bf16 %v7793_v33 }
 0x9dc   :  { %v8261_v32 = vpop.eup %8260  ;;  %v5145_v25 = vadd.f32 1.0, %v8259_v1  ;;  %v6262_v8 = vadd.f32 -0.001, %v5287_v6  ;;  %v7800_v6 = vunpack.i.h.bf16 %v7798_v58  ;;  %v7799_v29 = vunpack.i.l.bf16 %v7798_v58 }
 0x9dd   :  { %6511 = vst [vmem:[%s9526_s3 + $0x40] sm:$0xff] %v6427_v24   ;;  %v8263_v16 = vpop.eup %8262  ;;  %v5148_v53 = vadd.f32 1.0, %v8261_v32  ;;  %v6260_v15 = vadd.f32 -0.001, %v5285_v63 }
 0x9de   :  { %v8265_v11 = vpop.eup %8264  ;;  %v5288_v36 = vmul.f32 1.002, %v8263_v16  ;;  %8274 = vrcp.f32 %v5145_v25  ;;  %v5626_v10 = vsel %vm5363_vm0, %v7784_v59, %v6262_v8 }
 0x9df   :  { %v8267_v47 = vpop.eup %8266  ;;  %8276 = vrcp.f32 %v5148_v53  ;;  %v5146_v49 = vadd.f32 1.0, %v8265_v11  ;;  %v7665_v62 = vpop.f32.mrb[224].mxu1  ;;  %v5624_v38 = vsel %vm5363_vm0, %v7789_v60, %v6260_v15 }
 0x9e0   :  { %v6263_v0 = vadd.f32 -0.001, %v5288_v36  ;;  %v5286_v22 = vmul.f32 1.002, %v8267_v47  ;;  %8278 = vpow2.f32 %v6223_v12  ;;  %v6226_v54 = vmul.f32 -1.442695, %v7665_v62 }
 0x9e1   :  { %8280 = vrcp.f32 %v5146_v49  ;;  %v4914_v28 = vpop.f32.mrb[225].mxu1 }
 0x9e2   :  { %v5627_v45 = vsel %vm5363_vm0, %v7785_v40, %v6263_v0  ;;  %v6261_v41 = vadd.f32 -0.001, %v5286_v22  ;;  %8282 = vpow2.f32 %v6221_v13  ;;  %v6224_v14 = vmul.f32 -1.442695, %v4914_v28  ;;  %v7666_v5 = vpop.f32.mrb[226].mxu1  ;;  %v7803_v22 = vpop.permute.xlu1 %7802 }
 0x9e3   :  { %v6442_v18 = vpack.c.bf16 %v5627_v45, %v5626_v10  ;;  %8284 = vpow2.f32 %v6226_v54  ;;  %v6227_v17 = vmul.f32 -1.442695, %v7666_v5  ;;  %v4917_v39 = vpop.f32.mrb[227].mxu1  ;;  %v8269_v46 = vpop.eup %8268 }
 0x9e4   :  { %v5625_v4 = vsel %vm5363_vm0, %v7790_v26, %v6261_v41  ;;  %8286 = vpow2.f32 %v6224_v14  ;;  %v6225_v43 = vmul.f32 -1.442695, %v4917_v39  ;;  %v8271_v55 = vpop.eup %8270  ;;  %v5291_v51 = vmul.f32 1.002, %v8269_v46  ;;  %v7808_v28 = vpop.permute.xlu0 %7807 }
 0x9e5   :  { %6514 = vst [vmem:[%s9526_s3 + $0x58] sm:$0xff] %v6442_v18   ;;  %v6437_v44 = vpack.c.bf16 %v5625_v4, %v5624_v38  ;;  %8288 = vpow2.f32 %v6227_v17  ;;  %v8273_v57 = vpop.eup %8272  ;;  %v5151_v31 = vadd.f32 1.0, %v8271_v55  ;;  %v7805_v4 = vunpack.i.h.bf16 %v7803_v22 }
 0x9e6   :  { %8290 = vpow2.f32 %v6225_v43  ;;  %v5149_v2 = vadd.f32 1.0, %v8273_v57  ;;  %v6266_v7 = vadd.f32 -0.001, %v5291_v51  ;;  %v9449_v18 = vpop.permute.xlu1 %7812  ;;  %v7804_v17 = vunpack.i.l.bf16 %v7803_v22 }
 0x9e7   :  { %6513 = vst [vmem:[%s9526_s3 + $0x50] sm:$0xff] %v6437_v44   ;;  %8292 = vrcp.f32 %v5151_v31  ;;  %v7810_v43 = vunpack.i.h.bf16 %v7808_v28  ;;  %v7809_v55 = vunpack.i.l.bf16 %v7808_v28  ;;  %v7815_v51 = vunpack.i.h.bf16 %v9449_v18 }
 0x9e8   :  { %v8275_v9 = vpop.eup %8274  ;;  %8294 = vrcp.f32 %v5149_v2  ;;  %v5630_v32 = vsel %vm5363_vm0, %v7794_v52, %v6266_v7  ;;  %v7814_v33 = vunpack.i.l.bf16 %v9449_v18 }
 0x9e9   :  { %v8277_v42 = vpop.eup %8276  ;;  %v5289_v23 = vmul.f32 1.002, %v8275_v9 }
 0x9ea   :  { %v8279_v50 = vpop.eup %8278  ;;  %v5292_v37 = vmul.f32 1.002, %v8277_v42 }
 0x9eb   :  { %v8281_v20 = vpop.eup %8280  ;;  %v5152_v48 = vadd.f32 1.0, %v8279_v50  ;;  %v6264_v30 = vadd.f32 -0.001, %v5289_v23 }
 0x9ec   :  { %v8283_v56 = vpop.eup %8282  ;;  %v6267_v19 = vadd.f32 -0.001, %v5292_v37  ;;  %v5290_v24 = vmul.f32 1.002, %v8281_v20  ;;  %v7669_v1 = vpop.f32.mrb[228].mxu1 }
 0x9ed   :  { %8296 = vrcp.f32 %v5152_v48  ;;  %v5150_v21 = vadd.f32 1.0, %v8283_v56  ;;  %v8285_v35 = vpop.eup %8284  ;;  %v6230_v25 = vmul.f32 -1.442695, %v7669_v1  ;;  %v4930_v12 = vpop.f32.mrb[229].mxu1  ;;  %v5628_v36 = vsel %vm5363_vm0, %v7799_v29, %v6264_v30 }
 0x9ee   :  { %v5631_v34 = vsel %vm5363_vm0, %v7795_v27, %v6267_v19  ;;  %v6265_v63 = vadd.f32 -0.001, %v5290_v24  ;;  %v8287_v16 = vpop.eup %8286  ;;  %v5155_v53 = vadd.f32 1.0, %v8285_v35  ;;  %v7670_v11 = vpop.f32.mrb[230].mxu1  ;;  %v6228_v0 = vmul.f32 -1.442695, %v4930_v12 }
 0x9ef   :  { %v6452_v8 = vpack.c.bf16 %v5631_v34, %v5630_v32  ;;  %8298 = vrcp.f32 %v5150_v21  ;;  %v8289_v61 = vpop.eup %8288  ;;  %v5153_v47 = vadd.f32 1.0, %v8287_v16  ;;  %v4933_v40 = vpop.f32.mrb[231].mxu1  ;;  %v6231_v60 = vmul.f32 -1.442695, %v7670_v11 }
 0x9f0   :  { %v5629_v13 = vsel %vm5363_vm0, %v7800_v6, %v6265_v63  ;;  %8300 = vpow2.f32 %v6230_v25  ;;  %v8291_v59 = vpop.eup %8290  ;;  %v5156_v15 = vadd.f32 1.0, %v8289_v61  ;;  %v6229_v62 = vmul.f32 -1.442695, %v4933_v40  ;;  %v7818_v24 = vpop.permute.xlu0 %7817 }
 0x9f1   :  { %6516 = vst [vmem:[%s9526_s3 + $0x68] sm:$0xff] %v6452_v8   ;;  %v6447_v49 = vpack.c.bf16 %v5629_v13, %v5628_v36  ;;  %8302 = vrcp.f32 %v5155_v53  ;;  %v5154_v26 = vadd.f32 1.0, %v8291_v59  ;;  %v8293_v10 = vpop.eup %8292  ;;  %v7819_v11 = vunpack.i.l.bf16 %v7818_v24 }
 0x9f2   :  { %8304 = vrcp.f32 %v5153_v47  ;;  %v8295_v45 = vpop.eup %8294  ;;  %v5295_v41 = vmul.f32 1.002, %v8293_v10  ;;  %v7820_v47 = vunpack.i.h.bf16 %v7818_v24 }
 0x9f3   :  { %6515 = vst [vmem:[%s9526_s3 + $0x60] sm:$0xff] %v6447_v49   ;;  %8306 = vrcp.f32 %v5156_v15  ;;  %v5293_v54 = vmul.f32 1.002, %v8295_v45 }
 0x9f4   :  { %8308 = vrcp.f32 %v5154_v26  ;;  %v6270_v5 = vadd.f32 -0.001, %v5295_v41 }
 0x9f5   :  { %8310 = vpow2.f32 %v6228_v0  ;;  %v6268_v38 = vadd.f32 -0.001, %v5293_v54 }
 0x9f6   :  { %8312 = vpow2.f32 %v6231_v60  ;;  %v5634_v58 = vsel %vm5363_vm0, %v7804_v17, %v6270_v5 }
 0x9f7   :  { %v8297_v14 = vpop.eup %8296  ;;  %8314 = vpow2.f32 %v6229_v62  ;;  %v7673_v46 = vpop.f32.mrb[232].mxu1  ;;  %v5632_v7 = vsel %vm5363_vm0, %v7809_v55, %v6268_v38 }
 0x9f8   :  { %v5296_v39 = vmul.f32 1.002, %v8297_v14  ;;  %v6234_v57 = vmul.f32 -1.442695, %v7673_v46  ;;  %v4946_v31 = vpop.f32.mrb[233].mxu1 }
 0x9f9   :  { %v8299_v44 = vpop.eup %8298  ;;  %v6232_v23 = vmul.f32 -1.442695, %v4946_v31  ;;  %v7674_v20 = vpop.f32.mrb[234].mxu1 }
 0x9fa   :  { %v8301_v9 = vpop.eup %8300  ;;  %v6271_v2 = vadd.f32 -0.001, %v5296_v39  ;;  %v5294_v42 = vmul.f32 1.002, %v8299_v44  ;;  %8316 = vpow2.f32 %v6234_v57  ;;  %v4949_v30 = vpop.f32.mrb[235].mxu1 }
 0x9fb   :  { %v8303_v50 = vpop.eup %8302  ;;  %v5159_v37 = vadd.f32 1.0, %v8301_v9  ;;  %8318 = vpow2.f32 %v6232_v23  ;;  %v6235_v21 = vmul.f32 -1.442695, %v7674_v20  ;;  %v6233_v63 = vmul.f32 -1.442695, %v4949_v30  ;;  %v7823_v9 = vpop.permute.xlu1 %7822 }
 0x9fc   :  { %v8305_v27 = vpop.eup %8304  ;;  %v5635_v48 = vsel %vm5363_vm0, %v7805_v4, %v6271_v2  ;;  %v6269_v56 = vadd.f32 -0.001, %v5294_v42  ;;  %v5299_v52 = vmul.f32 1.002, %v8303_v50  ;;  %v7828_v2 = vpop.permute.xlu0 %7827 }
 0x9fd   :  { %v8307_v19 = vpop.eup %8306  ;;  %v6462_v6 = vpack.c.bf16 %v5635_v48, %v5634_v58  ;;  %v5297_v29 = vmul.f32 1.002, %v8305_v27  ;;  %8320 = vrcp.f32 %v5159_v37  ;;  %v7824_v37 = vunpack.i.l.bf16 %v7823_v9 }
 0x9fe   :  { %v8309_v1 = vpop.eup %8308  ;;  %v5633_v35 = vsel %vm5363_vm0, %v7810_v43, %v6269_v56  ;;  %v6274_v32 = vadd.f32 -0.001, %v5299_v52  ;;  %v5300_v34 = vmul.f32 1.002, %v8307_v19  ;;  %8322 = vpow2.f32 %v6235_v21 }
 0x9ff   :  { %v8311_v25 = vpop.eup %8310  ;;  %6518 = vst [vmem:[%s9526_s3 + $0x78] sm:$0xff] %v6462_v6   ;;  %v6457_v12 = vpack.c.bf16 %v5633_v35, %v5632_v7  ;;  %v6272_v16 = vadd.f32 -0.001, %v5297_v29  ;;  %v5298_v8 = vmul.f32 1.002, %v8309_v1  ;;  %8324 = vpow2.f32 %v6233_v63 }
 0xa00   :  { %v8313_v53 = vpop.eup %8312  ;;  %v6275_v61 = vadd.f32 -0.001, %v5300_v34  ;;  %v5157_v36 = vadd.f32 1.0, %v8311_v25  ;;  %v5638_v40 = vsel %vm5363_vm0, %v7814_v33, %v6274_v32  ;;  %v7825_v56 = vunpack.i.h.bf16 %v7823_v9 }
 0xa01   :  { %v8315_v13 = vpop.eup %8314  ;;  %6517 = vst [vmem:[%s9526_s3 + $0x70] sm:$0xff] %v6457_v12   ;;  %v6273_v59 = vadd.f32 -0.001, %v5298_v8  ;;  %v5160_v49 = vadd.f32 1.0, %v8313_v53  ;;  %v5636_v15 = vsel %vm5363_vm0, %v7819_v11, %v6272_v16  ;;  %v7677_v26 = vpop.f32.mrb[236].mxu1  ;;  %v7829_v52 = vunpack.i.l.bf16 %v7828_v2 }
 0xa02   :  { %v5639_v0 = vsel %vm5363_vm0, %v7815_v51, %v6275_v61  ;;  %8326 = vrcp.f32 %v5157_v36  ;;  %v5158_v22 = vadd.f32 1.0, %v8315_v13  ;;  %v6238_v62 = vmul.f32 -1.442695, %v7677_v26  ;;  %v4962_v45 = vpop.f32.mrb[237].mxu1 }
 0xa03   :  { %v6472_v60 = vpack.c.bf16 %v5639_v0, %v5638_v40  ;;  %v5637_v10 = vsel %vm5363_vm0, %v7820_v47, %v6273_v59  ;;  %8328 = vrcp.f32 %v5160_v49  ;;  %v6236_v54 = vmul.f32 -1.442695, %v4962_v45  ;;  %v7678_v28 = vpop.f32.mrb[238].mxu1  ;;  %v7833_v47 = vpop.permute.xlu1 %7832 }
 0xa04   :  { %v6467_v41 = vpack.c.bf16 %v5637_v10, %v5636_v15  ;;  %8330 = vrcp.f32 %v5158_v22  ;;  %v8317_v18 = vpop.eup %8316  ;;  %v6239_v14 = vmul.f32 -1.442695, %v7678_v28  ;;  %v4965_v5 = vpop.f32.mrb[239].mxu1  ;;  %v7830_v6 = vunpack.i.h.bf16 %v7828_v2 }
 0xa05   :  { %6520 = vst [vmem:[%s9526_s3 + $0x88] sm:$0xff] %v6472_v60   ;;  %8332 = vpow2.f32 %v6238_v62  ;;  %v8319_v38 = vpop.eup %8318  ;;  %v5163_v4 = vadd.f32 1.0, %v8317_v18  ;;  %v6237_v17 = vmul.f32 -1.442695, %v4965_v5  ;;  %v7838_v59 = vpop.permute.xlu0 %7837  ;;  %v7835_v26 = vunpack.i.h.bf16 %v7833_v47 }
 0xa06   :  { %6519 = vst [vmem:[%s9526_s3 + $0x80] sm:$0xff] %v6467_v41   ;;  %8334 = vpow2.f32 %v6236_v54  ;;  %v5161_v46 = vadd.f32 1.0, %v8319_v38  ;;  %v7834_v60 = vunpack.i.l.bf16 %v7833_v47  ;;  %v7840_v62 = vunpack.i.h.bf16 %v7838_v59 }
 0xa07   :  { %v8321_v39 = vpop.eup %8320  ;;  %8336 = vpow2.f32 %v6239_v14  ;;  %v7839_v45 = vunpack.i.l.bf16 %v7838_v59 }
 0xa08   :  { %8338 = vrcp.f32 %v5163_v4  ;;  %v8323_v44 = vpop.eup %8322  ;;  %v5303_v43 = vmul.f32 1.002, %v8321_v39 }
 0xa09   :  { %8340 = vrcp.f32 %v5161_v46  ;;  %v8325_v55 = vpop.eup %8324  ;;  %v5164_v51 = vadd.f32 1.0, %v8323_v44  ;;  %v7848_v44 = vpop.permute.xlu1 %7847 }
 0xa0a   :  { %8342 = vpow2.f32 %v6237_v17  ;;  %v5162_v57 = vadd.f32 1.0, %v8325_v55  ;;  %v6278_v42 = vadd.f32 -0.001, %v5303_v43  ;;  %v7849_v9 = vunpack.i.l.bf16 %v7848_v44 }
 0xa0b   :  { %8344 = vrcp.f32 %v5164_v51 }
 0xa0c   :  { %v8327_v31 = vpop.eup %8326  ;;  %8346 = vrcp.f32 %v5162_v57  ;;  %v5642_v29 = vsel %vm5363_vm0, %v7824_v37, %v6278_v42 }
 0xa0d   :  { %v8329_v33 = vpop.eup %8328  ;;  %v5301_v23 = vmul.f32 1.002, %v8327_v31  ;;  %v7850_v31 = vunpack.i.h.bf16 %v7848_v44 }
 0xa0e   :  { %v8331_v50 = vpop.eup %8330  ;;  %v5304_v58 = vmul.f32 1.002, %v8329_v33  ;;  %v7843_v33 = vpop.permute.xlu0 %7842 }
 0xa0f   :  { %v8333_v7 = vpop.eup %8332  ;;  %v6276_v20 = vadd.f32 -0.001, %v5301_v23  ;;  %v5302_v27 = vmul.f32 1.002, %v8331_v50  ;;  %v7844_v37 = vunpack.i.l.bf16 %v7843_v33 }
 0xa10   :  { %v8335_v48 = vpop.eup %8334  ;;  %v6279_v30 = vadd.f32 -0.001, %v5304_v58  ;;  %v5167_v19 = vadd.f32 1.0, %v8333_v7  ;;  %v7845_v7 = vunpack.i.h.bf16 %v7843_v33 }
 0xa11   :  { %v8337_v24 = vpop.eup %8336  ;;  %v6277_v21 = vadd.f32 -0.001, %v5302_v27  ;;  %v5165_v1 = vadd.f32 1.0, %v8335_v48  ;;  %v5640_v32 = vsel %vm5363_vm0, %v7829_v52, %v6276_v20 }
 0xa12   :  { %v8339_v35 = vpop.eup %8338  ;;  %v5643_v34 = vsel %vm5363_vm0, %v7825_v56, %v6279_v30  ;;  %8348 = vrcp.f32 %v5167_v19  ;;  %v5168_v63 = vadd.f32 1.0, %v8337_v24 }
 0xa13   :  { %v8341_v25 = vpop.eup %8340  ;;  %v6482_v12 = vpack.c.bf16 %v5643_v34, %v5642_v29  ;;  %v5641_v16 = vsel %vm5363_vm0, %v7830_v6, %v6277_v21  ;;  %v5307_v8 = vmul.f32 1.002, %v8339_v35  ;;  %8350 = vrcp.f32 %v5165_v1 }
 0xa14   :  { %v8343_v53 = vpop.eup %8342  ;;  %v6477_v11 = vpack.c.bf16 %v5641_v16, %v5640_v32  ;;  %v5305_v61 = vmul.f32 1.002, %v8341_v25  ;;  %8352 = vrcp.f32 %v5168_v63 }
 0xa15   :  { %6522 = vst [vmem:[%s9526_s3 + $0x98] sm:$0xff] %v6482_v12   ;;  %v5166_v36 = vadd.f32 1.0, %v8343_v53  ;;  %v8345_v13 = vpop.eup %8344  ;;  %v6282_v49 = vadd.f32 -0.001, %v5307_v8 }
 0xa16   :  { %6521 = vst [vmem:[%s9526_s3 + $0x90] sm:$0xff] %v6477_v11   ;;  %v8347_v40 = vpop.eup %8346  ;;  %v5308_v15 = vmul.f32 1.002, %v8345_v13  ;;  %v6280_v0 = vadd.f32 -0.001, %v5305_v61 }
 0xa17   :  { %8354 = vrcp.f32 %v5166_v36  ;;  %v5306_v22 = vmul.f32 1.002, %v8347_v40  ;;  %v5646_v54 = vsel %vm5363_vm0, %v7834_v60, %v6282_v49 }
 0xa18   :  { %v6283_v10 = vadd.f32 -0.001, %v5308_v15  ;;  %v5644_v14 = vsel %vm5363_vm0, %v7839_v45, %v6280_v0 }
 0xa19   :  { %v6281_v41 = vadd.f32 -0.001, %v5306_v22 }
 0xa1a   :  { %v5647_v28 = vsel %vm5363_vm0, %v7835_v26, %v6283_v10 }
 0xa1b   :  { %v6492_v5 = vpack.c.bf16 %v5647_v28, %v5646_v54  ;;  %v5645_v38 = vsel %vm5363_vm0, %v7840_v62, %v6281_v41 }
 0xa1c   :  { %v8349_v18 = vpop.eup %8348  ;;  %v6487_v17 = vpack.c.bf16 %v5645_v38, %v5644_v14 }
 0xa1d   :  { %v8351_v4 = vpop.eup %8350  ;;  %v5311_v39 = vmul.f32 1.002, %v8349_v18  ;;  %6524 = vst [vmem:[%s9526_s3 + $0xa8] sm:$0xff] %v6492_v5  }
 0xa1e   :  { %v8353_v46 = vpop.eup %8352  ;;  %v5309_v43 = vmul.f32 1.002, %v8351_v4  ;;  %6523 = vst [vmem:[%s9526_s3 + $0xa0] sm:$0xff] %v6487_v17  }
 0xa1f   :  { %v6286_v55 = vadd.f32 -0.001, %v5311_v39  ;;  %v5312_v51 = vmul.f32 1.002, %v8353_v46 }
 0xa20   :  { %v6284_v42 = vadd.f32 -0.001, %v5309_v43 }
 0xa21   :  { %v8355_v57 = vpop.eup %8354  ;;  %v6287_v2 = vadd.f32 -0.001, %v5312_v51  ;;  %v5650_v50 = vsel %vm5363_vm0, %v7849_v9, %v6286_v55 }
 0xa22   :  { %v5310_v23 = vmul.f32 1.002, %v8355_v57  ;;  %v5648_v48 = vsel %vm5363_vm0, %v7844_v37, %v6284_v42 }
 0xa23   :  { %v5651_v58 = vsel %vm5363_vm0, %v7850_v31, %v6287_v2 }
 0xa24   :  { %v6502_v20 = vpack.c.bf16 %v5651_v58, %v5650_v50  ;;  %v6285_v27 = vadd.f32 -0.001, %v5310_v23 }
 0xa26   :  { %6526 = vst [vmem:[%s9526_s3 + $0xb8] sm:$0xff] %v6502_v20   ;;  %v5649_v56 = vsel %vm5363_vm0, %v7845_v7, %v6285_v27 }
 0xa27   :  { %v6497_v52 = vpack.c.bf16 %v5649_v56, %v5648_v48 }
 0xa29   :  { %6525 = vst [vmem:[%s9526_s3 + $0xb0] sm:$0xff] %v6497_v52  }

</bundles_post_ra>
